<compile_context>
chip_gen: v5e
topology: v5e:2x2
jax: 0.10.0
libtpu: 0.0.40
codegen_flags: <defaults>
</compile_context>

<pallas_src>
import jax
import jax.numpy as jnp
from jax.experimental import pallas as pl
from jax.experimental.pallas import tpu as pltpu

HIDDEN_SIZE = 256
INPUT_SIZE = 42 + 512          # 554
INPUT_PAD = 640                # next multiple of 128
OUT_DIM = 6
BATCH = 8                      # small batch for the demo


def lstm_kernel(x_ref, h0_ref, c0_ref, wxc_ref, wh_ref, b_ref,
                wfcf_ref, wfcb_ref, bfc_ref,
                logp_ref, hn_ref, cn_ref):
    H = HIDDEN_SIZE
    x = x_ref[...].astype(jnp.bfloat16)                      # (N, I_pad)

    # One fused MXU weight-streaming pass over both directions' input weights.
    gates_x = jnp.dot(x, wxc_ref[...],
                      preferred_element_type=jnp.float32)    # (N, 8H) f32

    def cell(d):                                             # d = 0 (fwd) / 1 (bwd), static
        h0 = h0_ref[d, :, :]                                 # (N, H) f32
        c0 = c0_ref[d, :, :]                                 # (N, H) f32
        gates = (gates_x[:, d * 4 * H:(d + 1) * 4 * H]
                 + jnp.dot(h0.astype(jnp.bfloat16), wh_ref[d, :, :],
                           preferred_element_type=jnp.float32)
                 + b_ref[d, :, :])                           # (N, 4H), bias broadcasts (1,4H)
        i = jax.nn.sigmoid(gates[:, 0 * H:1 * H])
        f = jax.nn.sigmoid(gates[:, 1 * H:2 * H])
        g = jnp.tanh(gates[:, 2 * H:3 * H])
        o = jax.nn.sigmoid(gates[:, 3 * H:4 * H])
        c = f * c0 + i * g
        h = o * jnp.tanh(c)
        return h, c

    h_f, c_f = cell(0)
    h_b, c_b = cell(1)

    hn_ref[0, :, :] = h_f
    hn_ref[1, :, :] = h_b
    cn_ref[0, :, :] = c_f
    cn_ref[1, :, :] = c_b

    # fc on the split halves of wfc -> no (N, 2H) concat materialization.
    logits = (jnp.dot(h_f, wfcf_ref[...], preferred_element_type=jnp.float32)
              + jnp.dot(h_b, wfcb_ref[...], preferred_element_type=jnp.float32)
              + bfc_ref[...])                                # (N, OUT_DIM)

    # log_softmax along dim=1
    m = jnp.max(logits, axis=1, keepdims=True)
    z = logits - m
    lse = jnp.log(jnp.sum(jnp.exp(z), axis=1, keepdims=True))
    logp_ref[...] = z - lse


def lstm_forward(text, h0, c0, params):
    """text: (N, INPUT_SIZE); h0,c0: (2, N, HIDDEN). Returns (logp, (h_n, c_n))."""
    N = text.shape[0]
    wxc, wh, b, wfc_f, wfc_b, bfc = params

    # Zero-pad the feature axis to a multiple of 128 (clean MXU K tiles).
    x = jnp.pad(text, ((0, 0), (0, INPUT_PAD - INPUT_SIZE)))

    vmem = pl.BlockSpec(memory_space=pltpu.MemorySpace.VMEM)

    H = HIDDEN_SIZE
    flops = (2 * N * INPUT_PAD * 8 * H            # x @ wx_cat
             + 2 * 2 * N * H * 4 * H              # two h @ wh
             + 2 * 2 * N * H * OUT_DIM)           # fc
    transcendentals = 10 * N * H + N * OUT_DIM    # 5 per cell element x 2 dirs + softmax exp
    bytes_accessed = (wxc.size * 2 + wh.size * 2                       # bf16 weights
                      + (x.size + h0.size + c0.size) * 4               # f32 inputs
                      + (b.size + wfc_f.size + wfc_b.size + bfc.size) * 4
                      + (2 * 2 * N * H + N * OUT_DIM) * 4)             # f32 outputs

    logp, h_n, c_n = pl.pallas_call(
        lstm_kernel,
        out_shape=(
            jax.ShapeDtypeStruct((N, OUT_DIM), jnp.float32),
            jax.ShapeDtypeStruct((2, N, HIDDEN_SIZE), jnp.float32),
            jax.ShapeDtypeStruct((2, N, HIDDEN_SIZE), jnp.float32),
        ),
        in_specs=[vmem] * 9,
        out_specs=(vmem, vmem, vmem),
        compiler_params=pltpu.CompilerParams(vmem_limit_bytes=32 * 1024 * 1024),
        cost_estimate=pl.CostEstimate(flops=flops,
                                      transcendentals=transcendentals,
                                      bytes_accessed=bytes_accessed),
    )(x, h0, c0, wxc, wh, b, wfc_f, wfc_b, bfc)
    return logp, (h_n, c_n)


def make_params(key):
    """Deterministic synthetic weights with PyTorch-style uniform(-k, k) init.

    Stored pre-transposed / pre-fused for the kernel:
      wxc   : (INPUT_PAD, 8H) bf16   -- [fwd gates | bwd gates] along columns
      wh    : (2, H, 4H)      bf16
      b     : (2, 1, 4H)      f32    -- b_ih + b_hh
      wfc_f : (H, OUT_DIM)    f32    -- first half of fc weight
      wfc_b : (H, OUT_DIM)    f32    -- second half of fc weight
      bfc   : (1, OUT_DIM)    f32
    """
    H, I = HIDDEN_SIZE, INPUT_SIZE
    k = 1.0 / jnp.sqrt(H)
    ks = jax.random.split(key, 10)
    u = lambda kk, shape: jax.random.uniform(kk, shape, jnp.float32, -k, k)

    wx_f = u(ks[0], (I, 4 * H))
    wx_b = u(ks[1], (I, 4 * H))
    wx_cat = jnp.concatenate([wx_f, wx_b], axis=1)                     # (I, 8H)
    wx_cat = jnp.pad(wx_cat, ((0, INPUT_PAD - I), (0, 0)))             # (I_pad, 8H)
    wxc = wx_cat.astype(jnp.bfloat16)

    wh = jnp.stack([u(ks[2], (H, 4 * H)),
                    u(ks[3], (H, 4 * H))]).astype(jnp.bfloat16)        # (2, H, 4H)

    b_ih = jnp.stack([u(ks[4], (4 * H,)), u(ks[5], (4 * H,))])
    b_hh = jnp.stack([u(ks[6], (4 * H,)), u(ks[7], (4 * H,))])
    b = (b_ih + b_hh).reshape(2, 1, 4 * H)                             # (2, 1, 4H) f32

    kf = 1.0 / jnp.sqrt(2 * H)
    wfc = jax.random.uniform(ks[8], (2 * H, OUT_DIM), jnp.float32, -kf, kf)
    wfc_f, wfc_b = wfc[:H, :], wfc[H:, :]
    bfc = jax.random.uniform(ks[9], (1, OUT_DIM), jnp.float32, -kf, kf)
    return wxc, wh, b, wfc_f, wfc_b, bfc


def reference_forward(text, h0, c0, params):
    """Pure-JAX reference using the same (bf16-rounded) parameters."""
    wxc, wh, b, wfc_f, wfc_b, bfc = params
    H = HIDDEN_SIZE

    x = jnp.pad(text, ((0, 0), (0, INPUT_PAD - INPUT_SIZE)))
    x = x.astype(jnp.bfloat16).astype(jnp.float32)
    wxc32 = wxc.astype(jnp.float32)
    wh32 = wh.astype(jnp.float32)
    gates_x = x @ wxc32                                                # (N, 8H)

    def cell(d):
        hd = h0[d].astype(jnp.bfloat16).astype(jnp.float32)
        gates = gates_x[:, d * 4 * H:(d + 1) * 4 * H] + hd @ wh32[d] + b[d]
        i = jax.nn.sigmoid(gates[:, 0 * H:1 * H])
        f = jax.nn.sigmoid(gates[:, 1 * H:2 * H])
        g = jnp.tanh(gates[:, 2 * H:3 * H])
        o = jax.nn.sigmoid(gates[:, 3 * H:4 * H])
        c = f * c0[d] + i * g
        h = o * jnp.tanh(c)
        return h, c

    h_f, c_f = cell(0)
    h_b, c_b = cell(1)
    logits = h_f @ wfc_f + h_b @ wfc_b + bfc
    logp = jax.nn.log_softmax(logits, axis=1)
    return logp, (jnp.stack([h_f, h_b]), jnp.stack([c_f, c_b]))


if __name__ == "__main__":
    key = jax.random.PRNGKey(0)
    k_param, k_x, k_h, k_c = jax.random.split(key, 4)

    params = make_params(k_param)
    text = jax.random.normal(k_x, (BATCH, INPUT_SIZE), jnp.float32)
    # init_hidden(): zeros of shape (num_layers*2, batch, hidden); also exercise
    # non-zero hidden state to make sure the h @ wh path is checked.
    h0 = 0.1 * jax.random.normal(k_h, (2, BATCH, HIDDEN_SIZE), jnp.float32)
    c0 = 0.1 * jax.random.normal(k_c, (2, BATCH, HIDDEN_SIZE), jnp.float32)

    logp, (h_n, c_n) = lstm_forward(text, h0, c0, params)
    jax.block_until_ready((logp, h_n, c_n))

    ref_logp, (ref_h, ref_c) = reference_forward(text, h0, c0, params)
    assert jnp.allclose(logp, ref_logp, atol=2e-3, rtol=2e-3)
    assert jnp.allclose(h_n, ref_h, atol=2e-3, rtol=2e-3)
    assert jnp.allclose(c_n, ref_c, atol=2e-3, rtol=2e-3)

    # Also check the zero-initialized hidden path used by LSTM.init_hidden().
    z0 = jnp.zeros((2, BATCH, HIDDEN_SIZE), jnp.float32)
    logp2, (h2, c2) = lstm_forward(text, z0, z0, params)
    ref2, (rh2, rc2) = reference_forward(text, z0, z0, params)
    jax.block_until_ready((logp2, h2, c2))
    assert jnp.allclose(logp2, ref2, atol=2e-3, rtol=2e-3)
    assert jnp.allclose(h2, rh2, atol=2e-3, rtol=2e-3)
    assert jnp.allclose(c2, rc2, atol=2e-3, rtol=2e-3)

    print("KERNEL_OK")
</pallas_src>

<mosaic_0001>
module attributes {stable_mosaic.version = 11 : i64} {
  func.func @lstm_kernel(%arg0: memref<8x640xf32, #tpu.memory_space<vmem>>, %arg1: memref<2x8x256xf32, #tpu.memory_space<vmem>>, %arg2: memref<2x8x256xf32, #tpu.memory_space<vmem>>, %arg3: memref<640x2048xbf16, #tpu.memory_space<vmem>>, %arg4: memref<2x256x1024xbf16, #tpu.memory_space<vmem>>, %arg5: memref<2x1x1024xf32, #tpu.memory_space<vmem>>, %arg6: memref<256x6xf32, #tpu.memory_space<vmem>>, %arg7: memref<256x6xf32, #tpu.memory_space<vmem>>, %arg8: memref<1x6xf32, #tpu.memory_space<vmem>>, %arg9: memref<8x6xf32, #tpu.memory_space<vmem>>, %arg10: memref<2x8x256xf32, #tpu.memory_space<vmem>>, %arg11: memref<2x8x256xf32, #tpu.memory_space<vmem>>) attributes {dimension_semantics = [], scalar_prefetch = 0 : i64, scratch_operands = 0 : i64, tpu.core_type = #tpu.core_type<tc>} {
    %c0 = arith.constant 0 : index
    %c0_0 = arith.constant 0 : index
    %0 = vector.load %arg0[%c0, %c0_0] : memref<8x640xf32, #tpu.memory_space<vmem>>, vector<8x640xf32>
    %1 = arith.truncf %0 : vector<8x640xf32> to vector<8x640xbf16>
    %c0_1 = arith.constant 0 : index
    %c0_2 = arith.constant 0 : index
    %2 = vector.load %arg3[%c0_1, %c0_2] : memref<640x2048xbf16, #tpu.memory_space<vmem>>, vector<640x2048xbf16>
    %cst = arith.constant dense<0.000000e+00> : vector<8x2048xf32>
    %3 = tpu.matmul %1, %2, %cst {dimension_numbers = #tpu.dot_dimension_numbers<[1], [0], [0], [1], [0, 0, 1, 1], [], []>} : vector<8x640xbf16>, vector<640x2048xbf16>, vector<8x2048xf32> -> vector<8x2048xf32>
    %c0_3 = arith.constant 0 : index
    %c0_4 = arith.constant 0 : index
    %c0_5 = arith.constant 0 : index
    %4 = vector.load %arg1[%c0_3, %c0_4, %c0_5] : memref<2x8x256xf32, #tpu.memory_space<vmem>>, vector<1x8x256xf32>
    %5 = vector.shape_cast %4 : vector<1x8x256xf32> to vector<8x256xf32>
    %c0_6 = arith.constant 0 : index
    %c0_7 = arith.constant 0 : index
    %c0_8 = arith.constant 0 : index
    %6 = vector.load %arg2[%c0_6, %c0_7, %c0_8] : memref<2x8x256xf32, #tpu.memory_space<vmem>>, vector<1x8x256xf32>
    %7 = vector.shape_cast %6 : vector<1x8x256xf32> to vector<8x256xf32>
    %8 = vector.extract_strided_slice %3 {offsets = [0, 0], sizes = [8, 1024], strides = [1, 1]} : vector<8x2048xf32> to vector<8x1024xf32>
    %9 = arith.truncf %5 : vector<8x256xf32> to vector<8x256xbf16>
    %c0_9 = arith.constant 0 : index
    %c0_10 = arith.constant 0 : index
    %c0_11 = arith.constant 0 : index
    %10 = vector.load %arg4[%c0_9, %c0_10, %c0_11] : memref<2x256x1024xbf16, #tpu.memory_space<vmem>>, vector<1x256x1024xbf16>
    %11 = vector.shape_cast %10 : vector<1x256x1024xbf16> to vector<256x1024xbf16>
    %cst_12 = arith.constant dense<0.000000e+00> : vector<8x1024xf32>
    %12 = tpu.matmul %9, %11, %cst_12 {dimension_numbers = #tpu.dot_dimension_numbers<[1], [0], [0], [1], [0, 0, 1, 1], [], []>} : vector<8x256xbf16>, vector<256x1024xbf16>, vector<8x1024xf32> -> vector<8x1024xf32>
    %13 = arith.addf %8, %12 : vector<8x1024xf32>
    %c0_13 = arith.constant 0 : index
    %c0_14 = arith.constant 0 : index
    %c0_15 = arith.constant 0 : index
    %14 = vector.load %arg5[%c0_13, %c0_14, %c0_15] : memref<2x1x1024xf32, #tpu.memory_space<vmem>>, vector<1x1x1024xf32>
    %15 = vector.shape_cast %14 : vector<1x1x1024xf32> to vector<1x1024xf32>
    %16 = vector.broadcast %15 : vector<1x1024xf32> to vector<8x1024xf32>
    %17 = arith.addf %13, %16 : vector<8x1024xf32>
    %18 = vector.extract_strided_slice %17 {offsets = [0, 0], sizes = [8, 256], strides = [1, 1]} : vector<8x1024xf32> to vector<8x256xf32>
    %19 = arith.negf %18 : vector<8x256xf32>
    %20 = math.exp %19 : vector<8x256xf32>
    %cst_16 = arith.constant 1.000000e+00 : f32
    %21 = vector.broadcast %cst_16 : f32 to vector<8x256xf32>
    %22 = arith.addf %21, %20 : vector<8x256xf32>
    %23 = arith.divf %21, %22 : vector<8x256xf32>
    %24 = vector.extract_strided_slice %17 {offsets = [0, 256], sizes = [8, 256], strides = [1, 1]} : vector<8x1024xf32> to vector<8x256xf32>
    %25 = arith.negf %24 : vector<8x256xf32>
    %26 = math.exp %25 : vector<8x256xf32>
    %cst_17 = arith.constant 1.000000e+00 : f32
    %27 = vector.broadcast %cst_17 : f32 to vector<8x256xf32>
    %28 = arith.addf %27, %26 : vector<8x256xf32>
    %29 = arith.divf %27, %28 : vector<8x256xf32>
    %30 = vector.extract_strided_slice %17 {offsets = [0, 512], sizes = [8, 256], strides = [1, 1]} : vector<8x1024xf32> to vector<8x256xf32>
    %31 = math.tanh %30 : vector<8x256xf32>
    %32 = vector.extract_strided_slice %17 {offsets = [0, 768], sizes = [8, 256], strides = [1, 1]} : vector<8x1024xf32> to vector<8x256xf32>
    %33 = arith.negf %32 : vector<8x256xf32>
    %34 = math.exp %33 : vector<8x256xf32>
    %cst_18 = arith.constant 1.000000e+00 : f32
    %35 = vector.broadcast %cst_18 : f32 to vector<8x256xf32>
    %36 = arith.addf %35, %34 : vector<8x256xf32>
    %37 = arith.divf %35, %36 : vector<8x256xf32>
    %38 = arith.mulf %29, %7 : vector<8x256xf32>
    %39 = arith.mulf %23, %31 : vector<8x256xf32>
    %40 = arith.addf %38, %39 : vector<8x256xf32>
    %41 = math.tanh %40 : vector<8x256xf32>
    %42 = arith.mulf %37, %41 : vector<8x256xf32>
    %c1 = arith.constant 1 : index
    %c0_19 = arith.constant 0 : index
    %c0_20 = arith.constant 0 : index
    %43 = vector.load %arg1[%c1, %c0_19, %c0_20] : memref<2x8x256xf32, #tpu.memory_space<vmem>>, vector<1x8x256xf32>
    %44 = vector.shape_cast %43 : vector<1x8x256xf32> to vector<8x256xf32>
    %c1_21 = arith.constant 1 : index
    %c0_22 = arith.constant 0 : index
    %c0_23 = arith.constant 0 : index
    %45 = vector.load %arg2[%c1_21, %c0_22, %c0_23] : memref<2x8x256xf32, #tpu.memory_space<vmem>>, vector<1x8x256xf32>
    %46 = vector.shape_cast %45 : vector<1x8x256xf32> to vector<8x256xf32>
    %47 = vector.extract_strided_slice %3 {offsets = [0, 1024], sizes = [8, 1024], strides = [1, 1]} : vector<8x2048xf32> to vector<8x1024xf32>
    %48 = arith.truncf %44 : vector<8x256xf32> to vector<8x256xbf16>
    %c1_24 = arith.constant 1 : index
    %c0_25 = arith.constant 0 : index
    %c0_26 = arith.constant 0 : index
    %49 = vector.load %arg4[%c1_24, %c0_25, %c0_26] : memref<2x256x1024xbf16, #tpu.memory_space<vmem>>, vector<1x256x1024xbf16>
    %50 = vector.shape_cast %49 : vector<1x256x1024xbf16> to vector<256x1024xbf16>
    %cst_27 = arith.constant dense<0.000000e+00> : vector<8x1024xf32>
    %51 = tpu.matmul %48, %50, %cst_27 {dimension_numbers = #tpu.dot_dimension_numbers<[1], [0], [0], [1], [0, 0, 1, 1], [], []>} : vector<8x256xbf16>, vector<256x1024xbf16>, vector<8x1024xf32> -> vector<8x1024xf32>
    %52 = arith.addf %47, %51 : vector<8x1024xf32>
    %c1_28 = arith.constant 1 : index
    %c0_29 = arith.constant 0 : index
    %c0_30 = arith.constant 0 : index
    %53 = vector.load %arg5[%c1_28, %c0_29, %c0_30] : memref<2x1x1024xf32, #tpu.memory_space<vmem>>, vector<1x1x1024xf32>
    %54 = vector.shape_cast %53 : vector<1x1x1024xf32> to vector<1x1024xf32>
    %55 = vector.broadcast %54 : vector<1x1024xf32> to vector<8x1024xf32>
    %56 = arith.addf %52, %55 : vector<8x1024xf32>
    %57 = vector.extract_strided_slice %56 {offsets = [0, 0], sizes = [8, 256], strides = [1, 1]} : vector<8x1024xf32> to vector<8x256xf32>
    %58 = arith.negf %57 : vector<8x256xf32>
    %59 = math.exp %58 : vector<8x256xf32>
    %cst_31 = arith.constant 1.000000e+00 : f32
    %60 = vector.broadcast %cst_31 : f32 to vector<8x256xf32>
    %61 = arith.addf %60, %59 : vector<8x256xf32>
    %62 = arith.divf %60, %61 : vector<8x256xf32>
    %63 = vector.extract_strided_slice %56 {offsets = [0, 256], sizes = [8, 256], strides = [1, 1]} : vector<8x1024xf32> to vector<8x256xf32>
    %64 = arith.negf %63 : vector<8x256xf32>
    %65 = math.exp %64 : vector<8x256xf32>
    %cst_32 = arith.constant 1.000000e+00 : f32
    %66 = vector.broadcast %cst_32 : f32 to vector<8x256xf32>
    %67 = arith.addf %66, %65 : vector<8x256xf32>
    %68 = arith.divf %66, %67 : vector<8x256xf32>
    %69 = vector.extract_strided_slice %56 {offsets = [0, 512], sizes = [8, 256], strides = [1, 1]} : vector<8x1024xf32> to vector<8x256xf32>
    %70 = math.tanh %69 : vector<8x256xf32>
    %71 = vector.extract_strided_slice %56 {offsets = [0, 768], sizes = [8, 256], strides = [1, 1]} : vector<8x1024xf32> to vector<8x256xf32>
    %72 = arith.negf %71 : vector<8x256xf32>
    %73 = math.exp %72 : vector<8x256xf32>
    %cst_33 = arith.constant 1.000000e+00 : f32
    %74 = vector.broadcast %cst_33 : f32 to vector<8x256xf32>
    %75 = arith.addf %74, %73 : vector<8x256xf32>
    %76 = arith.divf %74, %75 : vector<8x256xf32>
    %77 = arith.mulf %68, %46 : vector<8x256xf32>
    %78 = arith.mulf %62, %70 : vector<8x256xf32>
    %79 = arith.addf %77, %78 : vector<8x256xf32>
    %80 = math.tanh %79 : vector<8x256xf32>
    %81 = arith.mulf %76, %80 : vector<8x256xf32>
    %c0_34 = arith.constant 0 : index
    %c0_35 = arith.constant 0 : index
    %c0_36 = arith.constant 0 : index
    %82 = vector.load %arg10[%c0_34, %c0_35, %c0_36] : memref<2x8x256xf32, #tpu.memory_space<vmem>>, vector<1x8x256xf32>
    %83 = vector.shape_cast %82 : vector<1x8x256xf32> to vector<8x256xf32>
    %84 = vector.shape_cast %42 : vector<8x256xf32> to vector<1x8x256xf32>
    tpu.vector_store %arg10[%c0_34, %c0_35, %c0_36], %84 {strides = array<i32>} : memref<2x8x256xf32, #tpu.memory_space<vmem>>, vector<1x8x256xf32>,
    %c1_37 = arith.constant 1 : index
    %c0_38 = arith.constant 0 : index
    %c0_39 = arith.constant 0 : index
    %85 = vector.load %arg10[%c1_37, %c0_38, %c0_39] : memref<2x8x256xf32, #tpu.memory_space<vmem>>, vector<1x8x256xf32>
    %86 = vector.shape_cast %85 : vector<1x8x256xf32> to vector<8x256xf32>
    %87 = vector.shape_cast %81 : vector<8x256xf32> to vector<1x8x256xf32>
    tpu.vector_store %arg10[%c1_37, %c0_38, %c0_39], %87 {strides = array<i32>} : memref<2x8x256xf32, #tpu.memory_space<vmem>>, vector<1x8x256xf32>,
    %c0_40 = arith.constant 0 : index
    %c0_41 = arith.constant 0 : index
    %c0_42 = arith.constant 0 : index
    %88 = vector.load %arg11[%c0_40, %c0_41, %c0_42] : memref<2x8x256xf32, #tpu.memory_space<vmem>>, vector<1x8x256xf32>
    %89 = vector.shape_cast %88 : vector<1x8x256xf32> to vector<8x256xf32>
    %90 = vector.shape_cast %40 : vector<8x256xf32> to vector<1x8x256xf32>
    tpu.vector_store %arg11[%c0_40, %c0_41, %c0_42], %90 {strides = array<i32>} : memref<2x8x256xf32, #tpu.memory_space<vmem>>, vector<1x8x256xf32>,
    %c1_43 = arith.constant 1 : index
    %c0_44 = arith.constant 0 : index
    %c0_45 = arith.constant 0 : index
    %91 = vector.load %arg11[%c1_43, %c0_44, %c0_45] : memref<2x8x256xf32, #tpu.memory_space<vmem>>, vector<1x8x256xf32>
    %92 = vector.shape_cast %91 : vector<1x8x256xf32> to vector<8x256xf32>
    %93 = vector.shape_cast %79 : vector<8x256xf32> to vector<1x8x256xf32>
    tpu.vector_store %arg11[%c1_43, %c0_44, %c0_45], %93 {strides = array<i32>} : memref<2x8x256xf32, #tpu.memory_space<vmem>>, vector<1x8x256xf32>,
    %c0_46 = arith.constant 0 : index
    %c0_47 = arith.constant 0 : index
    %94 = vector.load %arg6[%c0_46, %c0_47] : memref<256x6xf32, #tpu.memory_space<vmem>>, vector<256x6xf32>
    %cst_48 = arith.constant dense<0.000000e+00> : vector<8x6xf32>
    %95 = tpu.matmul %42, %94, %cst_48 {dimension_numbers = #tpu.dot_dimension_numbers<[1], [0], [0], [1], [0, 0, 1, 1], [], []>} : vector<8x256xf32>, vector<256x6xf32>, vector<8x6xf32> -> vector<8x6xf32>
    %c0_49 = arith.constant 0 : index
    %c0_50 = arith.constant 0 : index
    %96 = vector.load %arg7[%c0_49, %c0_50] : memref<256x6xf32, #tpu.memory_space<vmem>>, vector<256x6xf32>
    %cst_51 = arith.constant dense<0.000000e+00> : vector<8x6xf32>
    %97 = tpu.matmul %81, %96, %cst_51 {dimension_numbers = #tpu.dot_dimension_numbers<[1], [0], [0], [1], [0, 0, 1, 1], [], []>} : vector<8x256xf32>, vector<256x6xf32>, vector<8x6xf32> -> vector<8x6xf32>
    %98 = arith.addf %95, %97 : vector<8x6xf32>
    %c0_52 = arith.constant 0 : index
    %c0_53 = arith.constant 0 : index
    %99 = vector.load %arg8[%c0_52, %c0_53] : memref<1x6xf32, #tpu.memory_space<vmem>>, vector<1x6xf32>
    %100 = vector.broadcast %99 : vector<1x6xf32> to vector<8x6xf32>
    %101 = arith.addf %98, %100 : vector<8x6xf32>
    %cst_54 = arith.constant dense<0xFF800000> : vector<8xf32>
    %102 = vector.multi_reduction <maximumf>, %101, %cst_54 [1] : vector<8x6xf32> to vector<8xf32>
    %103 = vector.shape_cast %102 : vector<8xf32> to vector<8x1xf32>
    %104 = vector.broadcast %103 : vector<8x1xf32> to vector<8x6xf32>
    %105 = arith.subf %101, %104 : vector<8x6xf32>
    %106 = math.exp %105 : vector<8x6xf32>
    %cst_55 = arith.constant dense<0.000000e+00> : vector<8xf32>
    %107 = vector.multi_reduction <add>, %106, %cst_55 [1] : vector<8x6xf32> to vector<8xf32>
    %108 = vector.shape_cast %107 : vector<8xf32> to vector<8x1xf32>
    %109 = math.log %108 : vector<8x1xf32>
    %110 = vector.broadcast %109 : vector<8x1xf32> to vector<8x6xf32>
    %111 = arith.subf %105, %110 : vector<8x6xf32>
    %c0_56 = arith.constant 0 : index
    %c0_57 = arith.constant 0 : index
    %112 = vector.load %arg9[%c0_56, %c0_57] : memref<8x6xf32, #tpu.memory_space<vmem>>, vector<8x6xf32>
    tpu.vector_store %arg9[%c0_56, %c0_57], %111 {strides = array<i32>} : memref<8x6xf32, #tpu.memory_space<vmem>>, vector<8x6xf32>,
    return
  }
}

</mosaic_0001>

<bundles_post_ra>
// kernel: tpu_custom_call.1
= control target key start
LH: loop header
LB: loop body
LE: loop exit
PB: predicated region body
PF: predicated region fallthrough
CT: control target
= control target key end

     0   :  { %17 = vsyncpa [#allocation3], 0  ;;  %s13142_s0 = inlined_call_operand.hbm [shape: f32[8,640], index: 0, kind: input, shape index: {}]   ;;  %s13143_s1 = inlined_call_operand.hbm [shape: f32[2,8,256], index: 1, kind: input, shape index: {}]   ;;  %s13144_s2 = inlined_call_operand.hbm [shape: f32[2,8,256], index: 2, kind: input, shape index: {}]   ;;  %s13145_s3 = inlined_call_operand.hbm [shape: bf16[640,2048], index: 3, kind: input, shape index: {}]   ;;  %s13146_s4 = inlined_call_operand.hbm [shape: bf16[2,256,1024], index: 4, kind: input, shape index: {}]   ;;  %s13147_s5 = inlined_call_operand.hbm [shape: f32[2,1,1024], index: 5, kind: input, shape index: {}]   ;;  %s13148_s6 = inlined_call_operand.vmem [shape: f32[256,6], index: 6, kind: input, shape index: {}]   ;;  %s13149_s7 = inlined_call_operand.vmem [shape: f32[256,6], index: 7, kind: input, shape index: {}]   ;;  %s13150_s8 = inlined_call_operand.hbm [shape: f32[1,6], index: 8, kind: input, shape index: {}]   ;;  %s13151_s9 = inlined_call_operand.hbm [shape: f32[8,6], index: 9, kind: output, shape index: {0}]   ;;  %s13152_s10 = inlined_call_operand.hbm [shape: f32[2,8,256], index: 10, kind: output, shape index: {1}]   ;;  %s13153_s11 = inlined_call_operand.hbm [shape: f32[2,8,256], index: 11, kind: output, shape index: {2}]  }
   0x1   :  { %18 = vsyncpa [#allocation6], 0 }
   0x2   :  { %19 = vsyncpa [#allocation9], 0 }
   0x3   :  { %20 = vsyncpa [#allocation12], 0 }
   0x4   :  { %21 = vsyncpa [#allocation4], 0  ;;  %s38_s19 = sshll.u32 %s13143_s1, 4  ;;  %s39_s19 = int_to_ptr.hbm [resolvable:$true] %s38_s19 }
   0x5   :  { %22 = vsyncpa [#allocation16], 0  ;;  %s12379_s20 = smov [#allocation5]   ;;  %s64_s24 = sshll.u32 %s13145_s3, 4  ;;  %s65_s24 = int_to_ptr.hbm [resolvable:$true] %s64_s24 }
   0x6   :  { %s40_s21 = sshll.u32 %s12379_s20, 4  ;;  %s12380_s25 = smov 256   ;;  %s41_s21 = int_to_ptr.vmem [resolvable:$true] %s40_s21 }
   0x7   :  { %s12381_s26 = smov 16   ;;  %s12382_s27 = smov [#allocation8]  }
   0x8   :  { %46 = dma.hbm_to_vmem [thread:$0]  %s39_s19, 512, %s41_s21, [#allocation6], %s12380_s25, %s12380_s25, %s12381_s26  }
   0x9   :  { %s66_s28 = sshll.u32 %s12382_s27, 4  ;;  %s12383_s1 = smov 1024   ;;  %s67_s28 = int_to_ptr.vmem [resolvable:$true] %s66_s28 }
   0xa   :  { %s12384_s29 = smov 64   ;;  %s90_s13 = sshll.u32 %s13147_s5, 4  ;;  %s91_s13 = int_to_ptr.hbm [resolvable:$true] %s90_s13 }
   0xb   :  { %72 = dma.hbm_to_vmem [thread:$0]  %s65_s24, 81920, %s67_s28, [#allocation9], %s12383_s1, %s12383_s1, %s12384_s29  }
   0xc   :  { %s12385_s14 = smov [#allocation11]   ;;  %s28_s17 = sshll.u32 %s13142_s0, 4  ;;  %s29_s17 = int_to_ptr.hbm [resolvable:$true] %s28_s17 }
   0xd   :  { %s92_s3 = sshll.u32 %s12385_s14, 4  ;;  %s12386_s18 = smov 128   ;;  %s93_s3 = int_to_ptr.vmem [resolvable:$true] %s92_s3 }
   0xe   :  { %s12387_s19 = smov 8   ;;  %s12388_s20 = smov [#allocation2]  }
   0xf   :  { %98 = dma.hbm_to_vmem [thread:$0]  %s91_s13, 256, %s93_s3, [#allocation12], %s12386_s18, %s12386_s18, %s12387_s19  }
  0x10   :  { %s30_s21 = sshll.u32 %s12388_s20, 4  ;;  %s51_s24 = sshll.u32 %s13144_s2, 4  ;;  %s31_s21 = int_to_ptr.vmem [resolvable:$true] %s30_s21  ;;  %s52_s24 = int_to_ptr.hbm [resolvable:$true] %s51_s24 }
  0x11   :  { %33 = dma.hbm_to_vmem [thread:$0]  %s29_s17, 640, %s31_s21, [#allocation3]  }
  0x12   :  { %s77_s28 = sshll.u32 %s13146_s4, 4  ;;  %s12389_s1 = smov [#allocation7]   ;;  %s78_s28 = int_to_ptr.hbm [resolvable:$true] %s77_s28 }
  0x13   :  { %s53_s29 = sshll.u32 %s12389_s1, 4  ;;  %s12390_s0 = smov [#allocation10]   ;;  %s54_s29 = int_to_ptr.vmem [resolvable:$true] %s53_s29 }
  0x14   :  { %59 = dma.hbm_to_vmem [thread:$0]  %s52_s24, 512, %s54_s29, [#allocation6], %s12380_s25, %s12380_s25, %s12381_s26  }
  0x15   :  { %s79_s30 = sshll.u32 %s12390_s0, 4  ;;  %s12391_s12 = smov 512   ;;  %s80_s30 = int_to_ptr.vmem [resolvable:$true] %s79_s30 }
  0x16   :  { %s12392_s2 = smov 32   ;;  %s108_s3 = sshll.u32 %s13150_s8, 4  ;;  %s109_s3 = int_to_ptr.hbm [resolvable:$true] %s108_s3 }
  0x17   :  { %85 = dma.hbm_to_vmem [thread:$0]  %s78_s28, 32768, %s80_s30, [#allocation9], %s12391_s12, %s12391_s12, %s12392_s2  }
  0x18   :  { %s12393_s4 = smov [#allocation13]  }
  0x19   :  { %s110_s15 = sshll.u32 %s12393_s4, 4  ;;  %s111_s15 = int_to_ptr.vmem [resolvable:$true] %s110_s15 }
  0x1a   :  { %113 = dma.hbm_to_vmem [thread:$0]  %s109_s3, 16, %s111_s15, [#allocation12]  }
  0x1b   :  { %12367 = dma.done.wait [#allocation3], 640  }
  0x1c   :  { %12368 = vsyncadd [#allocation3], 4294966656 }
  0x1d   :  { %12369 = dma.done.wait [#allocation6], 1024  }
  0x1e   :  { %12370 = vsyncadd [#allocation6], 4294966272 }
  0x1f   :  { %12371 = dma.done.wait [#allocation9], 114688  }
  0x20   :  { %12372 = vsyncadd [#allocation9], 4294852608 }
  0x21   :  { %12373 = dma.done.wait [#allocation12], 272  }
  0x22   :  { %12374 = vsyncadd [#allocation12], 4294967024  ;;  %v7998_v0 = vld [vmem:[#allocation8 + $0x380] sm:$0xf]  ;;  %s7510_s21 = sshll.u32 %s13152_s10, 4  ;;  %s12394_s22 = smov [#allocation15]   ;;  %s7511_s21 = int_to_ptr.hbm [resolvable:$true] %s7510_s21 }
  0x23   :  { %v11264_v1 = vld [vmem:[#allocation8 + $0x3bc] sm:$0xf0]  ;;  %s7508_s23 = sshll.u32 %s12394_s22, 4  ;;  %s7523_s27 = sshll.u32 %s13153_s11, 4  ;;  %s7509_s23 = int_to_ptr.vmem [resolvable:$true] %s7508_s23  ;;  %s7524_s27 = int_to_ptr.hbm [resolvable:$true] %s7523_s27 }
  0x24   :  { %v8510_v2 = vld [vmem:[#allocation8 + $0x780] sm:$0xf]  ;;  %v7999_v3 = vor.u32 %v11264_v1, %v7998_v0  ;;  %s12395_s28 = smov [#allocation17]   ;;  %s12396_s10 = smov [#allocation14]  }
  0x25   :  { %v11392_v4 = vld [vmem:[#allocation8 + $0x7bc] sm:$0xf0]  ;;  %s7521_s1 = sshll.u32 %s12395_s28, 4  ;;  %s7498_s29 = sshll.u32 %s12396_s10, 4  ;;  %s7522_s1 = int_to_ptr.vmem [resolvable:$true] %s7521_s1  ;;  %s7499_s29 = int_to_ptr.vmem [resolvable:$true] %s7498_s29 }
  0x26   :  { %v9022_v5 = vld [vmem:[#allocation8 + $0xb80] sm:$0xf]  ;;  %v8511_v7 = vor.u32 %v11392_v4, %v8510_v2  ;;  %3992 = vmatpush.bf16.msra.mxu0 %v7999_v3  ;;  %s7500_s30 = sshll.u32 %s13151_s9, 4  ;;  %s7501_s30 = int_to_ptr.hbm [resolvable:$true] %s7500_s30 }
  0x27   :  { %v11520_v6 = vld [vmem:[#allocation8 + $0xbbc] sm:$0xf0] }
  0x28   :  { %v9023_v8 = vor.u32 %v11520_v6, %v9022_v5  ;;  %v9534_v9 = vld [vmem:[#allocation8 + $0xf80] sm:$0xf]  ;;  %4005 = vmatpush.bf16.msra.mxu1 %v8511_v7 }
  0x29   :  { %v11648_v10 = vld [vmem:[#allocation8 + $0xfbc] sm:$0xf0] }
  0x2a   :  { %v7934_v11 = vld [vmem:[#allocation8 + $0x300] sm:$0xf]  ;;  %v9535_v12 = vor.u32 %v11648_v10, %v9534_v9  ;;  %4018 = vmatpush.bf16.msra.mxu2 %v9023_v8 }
  0x2b   :  { %v11248_v13 = vld [vmem:[#allocation8 + $0x33c] sm:$0xf0] }
  0x2c   :  { %v8446_v14 = vld [vmem:[#allocation8 + $0x700] sm:$0xf]  ;;  %v7935_v16 = vor.u32 %v11248_v13, %v7934_v11  ;;  %4031 = vmatpush.bf16.msra.mxu3 %v9535_v12 }
  0x2d   :  { %v11376_v15 = vld [vmem:[#allocation8 + $0x73c] sm:$0xf0] }
  0x2e   :  { %v8447_v17 = vor.u32 %v11376_v15, %v8446_v14  ;;  %v8958_v18 = vld [vmem:[#allocation8 + $0xb00] sm:$0xf]  ;;  %3993 = vmatpush.bf16.msra.mxu0 %v7935_v16 }
  0x2f   :  { %v11504_v19 = vld [vmem:[#allocation8 + $0xb3c] sm:$0xf0] }
  0x30   :  { %v9470_v20 = vld [vmem:[#allocation8 + $0xf00] sm:$0xf]  ;;  %v8959_v21 = vor.u32 %v11504_v19, %v8958_v18  ;;  %4006 = vmatpush.bf16.msra.mxu1 %v8447_v17 }
  0x31   :  { %v11632_v22 = vld [vmem:[#allocation8 + $0xf3c] sm:$0xf0] }
  0x32   :  { %v7870_v23 = vld [vmem:[#allocation8 + $0x280] sm:$0xf]  ;;  %v9471_v25 = vor.u32 %v11632_v22, %v9470_v20  ;;  %4019 = vmatpush.bf16.msra.mxu2 %v8959_v21 }
  0x33   :  { %v11232_v24 = vld [vmem:[#allocation8 + $0x2bc] sm:$0xf0] }
  0x34   :  { %v8382_v26 = vld [vmem:[#allocation8 + $0x680] sm:$0xf]  ;;  %v7871_v29 = vor.u32 %v11232_v24, %v7870_v23  ;;  %4032 = vmatpush.bf16.msra.mxu3 %v9471_v25 }
  0x35   :  { %v11360_v27 = vld [vmem:[#allocation8 + $0x6bc] sm:$0xf0] }
  0x36   :  { %v8894_v28 = vld [vmem:[#allocation8 + $0xa80] sm:$0xf]  ;;  %v8383_v33 = vor.u32 %v11360_v27, %v8382_v26  ;;  %3994 = vmatpush.bf16.msra.mxu0 %v7871_v29 }
  0x37   :  { %v11488_v30 = vld [vmem:[#allocation8 + $0xabc] sm:$0xf0] }
  0x38   :  { %v9406_v31 = vld [vmem:[#allocation8 + $0xe80] sm:$0xf]  ;;  %v8895_v34 = vor.u32 %v11488_v30, %v8894_v28  ;;  %4007 = vmatpush.bf16.msra.mxu1 %v8383_v33  ;;  %v11256_v30 = vld [vmem:[#allocation8 + $0x384] sm:$0xf] }
  0x39   :  { %v11616_v32 = vld [vmem:[#allocation8 + $0xebc] sm:$0xf0]  ;;  %v11384_v33 = vld [vmem:[#allocation8 + $0x784] sm:$0xf] }
  0x3a   :  { %v7806_v35 = vld [vmem:[#allocation8 + $0x200] sm:$0xf]  ;;  %v9407_v38 = vor.u32 %v11616_v32, %v9406_v31  ;;  %4020 = vmatpush.bf16.msra.mxu2 %v8895_v34  ;;  %v8000_v32 = vld [vmem:[#allocation8 + $0x3c0] sm:$0xf0] }
  0x3b   :  { %v11216_v36 = vld [vmem:[#allocation8 + $0x23c] sm:$0xf0]  ;;  %v8512_v34 = vld [vmem:[#allocation8 + $0x7c0] sm:$0xf0] }
  0x3c   :  { %v8318_v37 = vld [vmem:[#allocation8 + $0x600] sm:$0xf]  ;;  %v7807_v44 = vor.u32 %v11216_v36, %v7806_v35  ;;  %4033 = vmatpush.bf16.msra.mxu3 %v9407_v38  ;;  %v9024_v38 = vld [vmem:[#allocation8 + $0xbc0] sm:$0xf0] }
  0x3d   :  { %v11344_v39 = vld [vmem:[#allocation8 + $0x63c] sm:$0xf0] }
  0x3e   :  { %v8830_v40 = vld [vmem:[#allocation8 + $0xa00] sm:$0xf]  ;;  %v8319_v45 = vor.u32 %v11344_v39, %v8318_v37  ;;  %3995 = vmatpush.bf16.msra.mxu0 %v7807_v44  ;;  %v11512_v37 = vld [vmem:[#allocation8 + $0xb84] sm:$0xf] }
  0x3f   :  { %v11472_v41 = vld [vmem:[#allocation8 + $0xa3c] sm:$0xf0] }
  0x40   :  { %v9342_v42 = vld [vmem:[#allocation8 + $0xe00] sm:$0xf]  ;;  %v8831_v46 = vor.u32 %v11472_v41, %v8830_v40  ;;  %4008 = vmatpush.bf16.msra.mxu1 %v8319_v45  ;;  %v8003_v41 = vor.u32 %v11256_v30, %v8000_v32  ;;  %v11240_v45 = vld [vmem:[#allocation8 + $0x304] sm:$0xf] }
  0x41   :  { %v11600_v43 = vld [vmem:[#allocation8 + $0xe3c] sm:$0xf0]  ;;  %v11448_v30 = vld [vmem:[#allocation8 + $0x984] sm:$0xf] }
  0x42   :  { %v7742_v47 = vld [vmem:[#allocation8 + $0x180] sm:$0xf]  ;;  %v9343_v50 = vor.u32 %v11600_v43, %v9342_v42  ;;  %4021 = vmatpush.bf16.msra.mxu2 %v8831_v46  ;;  %v8515_v42 = vor.u32 %v11384_v33, %v8512_v34  ;;  %v9027_v46 = vor.u32 %v11512_v37, %v9024_v38  ;;  %v11176_v37 = vld [vmem:[#allocation8 + $0x104] sm:$0xf] }
  0x43   :  { %v11200_v48 = vld [vmem:[#allocation8 + $0x1bc] sm:$0xf0] }
  0x44   :  { %v8254_v49 = vld [vmem:[#allocation8 + $0x580] sm:$0xf]  ;;  %v7743_v56 = vor.u32 %v11200_v48, %v7742_v47  ;;  %4034 = vmatpush.bf16.msra.mxu3 %v9343_v50  ;;  %v7936_v47 = vld [vmem:[#allocation8 + $0x340] sm:$0xf0] }
  0x45   :  { %v11328_v51 = vld [vmem:[#allocation8 + $0x5bc] sm:$0xf0]  ;;  %v11368_v48 = vld [vmem:[#allocation8 + $0x704] sm:$0xf] }
  0x46   :  { %v8766_v52 = vld [vmem:[#allocation8 + $0x980] sm:$0xf]  ;;  %v8255_v57 = vor.u32 %v11328_v51, %v8254_v49  ;;  %3996 = vmatpush.bf16.msra.mxu0 %v7743_v56  ;;  %v8448_v49 = vld [vmem:[#allocation8 + $0x740] sm:$0xf0] }
  0x47   :  { %v11456_v53 = vld [vmem:[#allocation8 + $0x9bc] sm:$0xf0]  ;;  %v11496_v50 = vld [vmem:[#allocation8 + $0xb04] sm:$0xf] }
  0x48   :  { %v9278_v54 = vld [vmem:[#allocation8 + $0xd80] sm:$0xf]  ;;  %v8767_v58 = vor.u32 %v11456_v53, %v8766_v52  ;;  %4009 = vmatpush.bf16.msra.mxu1 %v8255_v57  ;;  %v8960_v51 = vld [vmem:[#allocation8 + $0xb40] sm:$0xf0] }
  0x49   :  { %v11584_v55 = vld [vmem:[#allocation8 + $0xdbc] sm:$0xf0]  ;;  %v11224_v57 = vld [vmem:[#allocation8 + $0x284] sm:$0xf] }
  0x4a   :  { %v7678_v59 = vld [vmem:[#allocation8 + $0x100] sm:$0xf]  ;;  %v9279_v62 = vor.u32 %v11584_v55, %v9278_v54  ;;  %4022 = vmatpush.bf16.msra.mxu2 %v8767_v58  ;;  %v7939_v54 = vor.u32 %v11240_v45, %v7936_v47  ;;  %v8451_v55 = vor.u32 %v11368_v48, %v8448_v49  ;;  %v7872_v58 = vld [vmem:[#allocation8 + $0x2c0] sm:$0xf0] }
  0x4b   :  { %v11184_v60 = vld [vmem:[#allocation8 + $0x13c] sm:$0xf0]  ;;  %v11160_v49 = vld [vmem:[#allocation8 + $0x84] sm:$0xf] }
  0x4c   :  { %v8190_v61 = vld [vmem:[#allocation8 + $0x500] sm:$0xf]  ;;  %v7679_v4 = vor.u32 %v11184_v60, %v7678_v59  ;;  %4035 = vmatpush.bf16.msra.mxu3 %v9279_v62  ;;  %v8963_v59 = vor.u32 %v11496_v50, %v8960_v51  ;;  %v11352_v60 = vld [vmem:[#allocation8 + $0x684] sm:$0xf] }
  0x4d   :  { %v11312_v63 = vld [vmem:[#allocation8 + $0x53c] sm:$0xf0]  ;;  %v11480_v62 = vld [vmem:[#allocation8 + $0xa84] sm:$0xf] }
  0x4e   :  { %v8702_v0 = vld [vmem:[#allocation8 + $0x900] sm:$0xf]  ;;  %v8191_v5 = vor.u32 %v11312_v63, %v8190_v61  ;;  %3997 = vmatpush.bf16.msra.mxu0 %v7679_v4  ;;  %v8384_v61 = vld [vmem:[#allocation8 + $0x6c0] sm:$0xf0]  ;;  %v144_v4 = vld [vmem:[#allocation2 + $0x10] sm:$0xff] }
  0x4f   :  { %v11440_v1 = vld [vmem:[#allocation8 + $0x93c] sm:$0xf0]  ;;  %v8896_v63 = vld [vmem:[#allocation8 + $0xac0] sm:$0xf0] }
  0x50   :  { %v9214_v2 = vld [vmem:[#allocation8 + $0xd00] sm:$0xf]  ;;  %v8703_v6 = vor.u32 %v11440_v1, %v8702_v0  ;;  %4010 = vmatpush.bf16.msra.mxu1 %v8191_v5  ;;  %v7875_v1 = vor.u32 %v11224_v57, %v7872_v58  ;;  %v8387_v5 = vor.u32 %v11352_v60, %v8384_v61  ;;  %v7616_v51 = vld [vmem:[#allocation8 + $0xc0] sm:$0xf0] }
  0x51   :  { %v11568_v3 = vld [vmem:[#allocation8 + $0xd3c] sm:$0xf0]  ;;  %v11144_v61 = vld [vmem:[#allocation8 + $0x4] sm:$0xf] }
  0x52   :  { %v7614_v7 = vld [vmem:[#allocation8 + $0x80] sm:$0xf]  ;;  %v9215_v10 = vor.u32 %v11568_v3, %v9214_v2  ;;  %4023 = vmatpush.bf16.msra.mxu2 %v8703_v6  ;;  %v142_v3 = vld [vmem:[#allocation2] sm:$0xff] }
  0x53   :  { %v11168_v8 = vld [vmem:[#allocation8 + $0xbc] sm:$0xf0] }
  0x54   :  { %v8126_v9 = vld [vmem:[#allocation8 + $0x480] sm:$0xf]  ;;  %v7615_v16 = vor.u32 %v11168_v8, %v7614_v7  ;;  %4036 = vmatpush.bf16.msra.mxu3 %v9215_v10  ;;  %v11208_v7 = vld [vmem:[#allocation8 + $0x204] sm:$0xf]  ;;  %v12484_v8 = vpack.c.bf16 %v142_v3, %v142_v3  ;;  %v145_v10 = vld [vmem:[#allocation2 + $0x18] sm:$0xff] }
  0x55   :  { %v11296_v11 = vld [vmem:[#allocation8 + $0x4bc] sm:$0xf0]  ;;  %v8576_v3 = vld [vmem:[#allocation8 + $0x840] sm:$0xf0] }
  0x56   :  { %v8638_v12 = vld [vmem:[#allocation8 + $0x880] sm:$0xf]  ;;  %v8127_v19 = vor.u32 %v11296_v11, %v8126_v9  ;;  %3998 = vmatpush.bf16.msra.mxu0 %v7615_v16  ;;  %v12486_v9 = vpack.c.bf16 %v144_v4, %v144_v4  ;;  %v8899_v11 = vor.u32 %v11480_v62, %v8896_v63  ;;  %v11464_v16 = vld [vmem:[#allocation8 + $0xa04] sm:$0xf] }
  0x57   :  { %v11424_v13 = vld [vmem:[#allocation8 + $0x8bc] sm:$0xf0]  ;;  %v7552_v62 = vld [vmem:[#allocation8 + $0x40] sm:$0xf0] }
  0x58   :  { %v9150_v14 = vld [vmem:[#allocation8 + $0xc80] sm:$0xf]  ;;  %v8639_v20 = vor.u32 %v11424_v13, %v8638_v12  ;;  %4011 = vmatpush.bf16.msra.mxu1 %v8127_v19  ;;  %v7808_v12 = vld [vmem:[#allocation8 + $0x240] sm:$0xf0] }
  0x59   :  { %v11552_v15 = vld [vmem:[#allocation8 + $0xcbc] sm:$0xf0]  ;;  %v11336_v13 = vld [vmem:[#allocation8 + $0x604] sm:$0xf] }
  0x5a   :  { %v7550_v17 = vld [vmem:[#allocation8] sm:$0xf]  ;;  %v9151_v24 = vor.u32 %v11552_v15, %v9150_v14  ;;  %4024 = vmatpush.bf16.msra.mxu2 %v8639_v20  ;;  %v8320_v14 = vld [vmem:[#allocation8 + $0x640] sm:$0xf0]  ;;  %v12488_v15 = vpack.c.bf16 %v145_v10, %v145_v10  ;;  %v7811_v20 = vor.u32 %v11208_v7, %v7808_v12  ;;  %v11265_v12 = vld [vmem:[#allocation8 + $0x3c4] sm:$0xf0] }
  0x5b   :  { %v11152_v18 = vld [vmem:[#allocation8 + $0x3c] sm:$0xf0]  ;;  %v11272_v63 = vld [vmem:[#allocation8 + $0x404] sm:$0xf] }
  0x5c   :  { %v8062_v21 = vld [vmem:[#allocation8 + $0x400] sm:$0xf]  ;;  %v7551_v31 = vor.u32 %v11152_v18, %v7550_v17  ;;  %4037 = vmatpush.bf16.msra.mxu3 %v9151_v24  ;;  %v8832_v17 = vld [vmem:[#allocation8 + $0xa40] sm:$0xf0] }
  0x5d   :  { %v11280_v22 = vld [vmem:[#allocation8 + $0x43c] sm:$0xf0]  ;;  %v11192_v24 = vld [vmem:[#allocation8 + $0x184] sm:$0xf] }
  0x5e   :  { %v8574_v23 = vld [vmem:[#allocation8 + $0x800] sm:$0xf]  ;;  %v8063_v35 = vor.u32 %v11280_v22, %v8062_v21  ;;  %3999 = vmatpush.bf16.msra.mxu0 %v7551_v31  ;;  %v8323_v21 = vor.u32 %v11336_v13, %v8320_v14  ;;  %v8768_v31 = vld [vmem:[#allocation8 + $0x9c0] sm:$0xf0]  ;;  %v7555_v13 = vor.u32 %v11144_v61, %v7552_v62 }
  0x5f   :  { %v11408_v25 = vld [vmem:[#allocation8 + $0x83c] sm:$0xf0]  ;;  %v8771_v38 = vor.u32 %v11448_v30, %v8768_v31  ;;  %v11640_v4 = vld [vmem:[#allocation8 + $0xf84] sm:$0xf]  ;;  %v11249_v30 = vld [vmem:[#allocation8 + $0x344] sm:$0xf0] }
  0x60   :  { %v9086_v26 = vld [vmem:[#allocation8 + $0xc00] sm:$0xf]  ;;  %v8575_v36 = vor.u32 %v11408_v25, %v8574_v23  ;;  %4012 = vmatpush.bf16.msra.mxu1 %v8063_v35  ;;  %v10048_v10 = vld [vmem:[#allocation8 + $0x13c0] sm:$0xf0] }
  0x61   :  { %v11536_v27 = vld [vmem:[#allocation8 + $0xc3c] sm:$0xf0]  ;;  %4000 = vmatmul.bf16.vlgmr.msra.gmra.mxu0 %v12484_v8  ;;  %v11576_v61 = vld [vmem:[#allocation8 + $0xd84] sm:$0xf] }
  0x62   :  { %v10046_v28 = vld [vmem:[#allocation8 + $0x1380] sm:$0xf]  ;;  %v9087_v39 = vor.u32 %v11536_v27, %v9086_v26  ;;  %4025 = vmatpush.bf16.msra.mxu2 %v8575_v36  ;;  %v8835_v26 = vor.u32 %v11464_v16, %v8832_v17  ;;  %v7744_v27 = vld [vmem:[#allocation8 + $0x1c0] sm:$0xf0]  ;;  %v8518_v16 = vld [vmem:[#allocation8 + $0x788] sm:$0xf] }
  0x63   :  { %v11776_v29 = vld [vmem:[#allocation8 + $0x13bc] sm:$0xf0]  ;;  %v7747_v33 = vor.u32 %v11192_v24, %v7744_v27  ;;  %v11393_v17 = vld [vmem:[#allocation8 + $0x7c4] sm:$0xf0]  ;;  %v9472_v24 = vld [vmem:[#allocation8 + $0xf40] sm:$0xf0] }
  0x64   :  { %v10047_v40 = vor.u32 %v11776_v29, %v10046_v28  ;;  %v9982_v43 = vld [vmem:[#allocation8 + $0x1300] sm:$0xf]  ;;  %4038 = vmatpush.bf16.msra.mxu3 %v9087_v39  ;;  %4057 = vmatpush.bf16.msrb.mxu1 %v8003_v41  ;;  %v11320_v28 = vld [vmem:[#allocation8 + $0x584] sm:$0xf]  ;;  %v8519_v27 = vor.u32 %v11393_v17, %v8518_v16  ;;  %v7686_v17 = vld [vmem:[#allocation8 + $0x108] sm:$0xf] }
  0x65   :  { %v11760_v44 = vld [vmem:[#allocation8 + $0x133c] sm:$0xf0]  ;;  %4026 = vmatmul.bf16.vlgmr.msra.gmra.mxu2 %v12486_v9  ;;  %v8256_v29 = vld [vmem:[#allocation8 + $0x5c0] sm:$0xf0] }
  0x66   :  { %4044 = vmatpush.bf16.msrb.mxu0 %v10047_v40  ;;  %v9983_v52 = vor.u32 %v11760_v44, %v9982_v43  ;;  %v9918_v53 = vld [vmem:[#allocation8 + $0x1280] sm:$0xf]  ;;  %4070 = vmatpush.bf16.msrb.mxu2 %v8515_v42  ;;  %v8259_v34 = vor.u32 %v11320_v28, %v8256_v29  ;;  %v7680_v39 = vld [vmem:[#allocation8 + $0x140] sm:$0xf0]  ;;  %v7942_v29 = vld [vmem:[#allocation8 + $0x308] sm:$0xf] }
  0x67   :  { %v11744_v56 = vld [vmem:[#allocation8 + $0x12bc] sm:$0xf0]  ;;  %4039 = vmatmul.bf16.vlgmr.msra.gmra.mxu3 %v12488_v15  ;;  %v11304_v40 = vld [vmem:[#allocation8 + $0x504] sm:$0xf]  ;;  %v7683_v45 = vor.u32 %v11176_v37, %v7680_v39 }
  0x68   :  { %4083 = vmatpush.bf16.msrb.mxu3 %v9027_v46  ;;  %v9919_v0 = vor.u32 %v11744_v56, %v9918_v53  ;;  %v9854_v2 = vld [vmem:[#allocation8 + $0x1200] sm:$0xf]  ;;  %4058 = vmatpush.bf16.msrb.mxu1 %v7939_v54  ;;  %v8192_v41 = vld [vmem:[#allocation8 + $0x540] sm:$0xf0] }
  0x69   :  { %v11728_v6 = vld [vmem:[#allocation8 + $0x123c] sm:$0xf0]  ;;  %v11432_v42 = vld [vmem:[#allocation8 + $0x904] sm:$0xf]  ;;  %v8195_v46 = vor.u32 %v11304_v40, %v8192_v41 }
  0x6a   :  { %4045 = vmatpush.bf16.msrb.mxu0 %v9983_v52  ;;  %4071 = vmatpush.bf16.msrb.mxu2 %v8451_v55  ;;  %v9855_v18 = vor.u32 %v11728_v6, %v9854_v2  ;;  %v143_v19 = vld [vmem:[#allocation2 + $0x8] sm:$0xff] }
  0x6b   :  { %v9790_v22 = vld [vmem:[#allocation8 + $0x1180] sm:$0xf]  ;;  %v12493_v25 = vpack.c.bf16 %v143_v19, %v143_v19  ;;  %v8704_v43 = vld [vmem:[#allocation8 + $0x940] sm:$0xf0] }
  0x6c   :  { %4084 = vmatpush.bf16.msrb.mxu3 %v8963_v59  ;;  %4059 = vmatpush.bf16.msrb.mxu1 %v7875_v1  ;;  %v11712_v23 = vld [vmem:[#allocation8 + $0x11bc] sm:$0xf0]  ;;  %v8707_v50 = vor.u32 %v11432_v42, %v8704_v43  ;;  %v11288_v52 = vld [vmem:[#allocation8 + $0x484] sm:$0xf]  ;;  %v7619_v59 = vor.u32 %v11160_v49, %v7616_v51  ;;  %v7878_v42 = vld [vmem:[#allocation8 + $0x288] sm:$0xf] }
  0x6d   :  { %4013 = vmatmul.bf16.vlgmr.msra.gmra.mxu1 %v12493_v25  ;;  %v9791_v32 = vor.u32 %v11712_v23, %v9790_v22  ;;  %v9726_v35 = vld [vmem:[#allocation8 + $0x1100] sm:$0xf]  ;;  %v8128_v53 = vld [vmem:[#allocation8 + $0x4c0] sm:$0xf0]  ;;  %v11233_v43 = vld [vmem:[#allocation8 + $0x2c4] sm:$0xf0] }
  0x6e   :  { %4046 = vmatpush.bf16.msrb.mxu0 %v9919_v0  ;;  %4072 = vmatpush.bf16.msrb.mxu2 %v8387_v5  ;;  %v11696_v36 = vld [vmem:[#allocation8 + $0x113c] sm:$0xf0]  ;;  %v11416_v54 = vld [vmem:[#allocation8 + $0x884] sm:$0xf]  ;;  %v8131_v60 = vor.u32 %v11288_v52, %v8128_v53 }
  0x6f   :  { %v9727_v44 = vor.u32 %v11696_v36, %v9726_v35  ;;  %v9662_v47 = vld [vmem:[#allocation8 + $0x1080] sm:$0xf]  ;;  %v8640_v55 = vld [vmem:[#allocation8 + $0x8c0] sm:$0xf0]  ;;  %v7943_v36 = vor.u32 %v11249_v30, %v7942_v29  ;;  %v7622_v30 = vld [vmem:[#allocation8 + $0x88] sm:$0xf] }
  0x70   :  { %4085 = vmatpush.bf16.msrb.mxu3 %v8899_v11  ;;  %4060 = vmatpush.bf16.msrb.mxu1 %v7811_v20  ;;  %v11680_v48 = vld [vmem:[#allocation8 + $0x10bc] sm:$0xf0]  ;;  %v8643_v0 = vor.u32 %v11416_v54, %v8640_v55  ;;  %v8064_v1 = vld [vmem:[#allocation8 + $0x440] sm:$0xf0]  ;;  %v8006_v11 = vld [vmem:[#allocation8 + $0x388] sm:$0xf] }
  0x71   :  { %v9663_v56 = vor.u32 %v11680_v48, %v9662_v47  ;;  %v9598_v57 = vld [vmem:[#allocation8 + $0x1000] sm:$0xf]  ;;  %v11400_v2 = vld [vmem:[#allocation8 + $0x804] sm:$0xf]  ;;  %v8067_v14 = vor.u32 %v11272_v63, %v8064_v1  ;;  %v8007_v22 = vor.u32 %v11265_v12, %v8006_v11  ;;  %v7879_v48 = vor.u32 %v11233_v43, %v7878_v42  ;;  %v7814_v54 = vld [vmem:[#allocation8 + $0x208] sm:$0xf] }
  0x72   :  { %4047 = vmatpush.bf16.msrb.mxu0 %v9855_v18  ;;  %4073 = vmatpush.bf16.msrb.mxu2 %v8323_v21  ;;  %v11664_v58 = vld [vmem:[#allocation8 + $0x103c] sm:$0xf0]  ;;  %v9536_v5 = vld [vmem:[#allocation8 + $0xfc0] sm:$0xf0]  ;;  %v146_v18 = vld [vmem:[#allocation2 + $0x20] sm:$0xff]  ;;  %v8579_v19 = vor.u32 %v11400_v2, %v8576_v3 }
  0x73   :  { %v11768_v6 = vld [vmem:[#allocation8 + $0x1384] sm:$0xf]  ;;  %v9599_v7 = vor.u32 %v11664_v58, %v9598_v57  ;;  %v9539_v20 = vor.u32 %v11640_v4, %v9536_v5  ;;  %v12496_v31 = vpack.c.bf16 %v146_v18, %v146_v18  ;;  %v11217_v55 = vld [vmem:[#allocation8 + $0x244] sm:$0xf0] }
  0x74   :  { %4086 = vmatpush.bf16.msrb.mxu3 %v8835_v26  ;;  %4061 = vmatpush.bf16.msrb.mxu1 %v7747_v33  ;;  %v10051_v21 = vor.u32 %v11768_v6, %v10048_v10  ;;  %v11624_v23 = vld [vmem:[#allocation8 + $0xf04] sm:$0xf]  ;;  %v11377_v33 = vld [vmem:[#allocation8 + $0x744] sm:$0xf0] }
  0x75   :  { %v11752_v26 = vld [vmem:[#allocation8 + $0x1304] sm:$0xf]  ;;  %v11345_v57 = vld [vmem:[#allocation8 + $0x644] sm:$0xf0] }
  0x76   :  { %4048 = vmatpush.bf16.msrb.mxu0 %v9791_v32  ;;  %4074 = vmatpush.bf16.msrb.mxu2 %v8259_v34  ;;  %v9984_v28 = vld [vmem:[#allocation8 + $0x1340] sm:$0xf0]  ;;  %v8454_v32 = vld [vmem:[#allocation8 + $0x708] sm:$0xf]  ;;  %v9475_v34 = vor.u32 %v11624_v23, %v9472_v24 }
  0x77   :  { %v9987_v35 = vor.u32 %v11752_v26, %v9984_v28  ;;  %v11608_v37 = vld [vmem:[#allocation8 + $0xe84] sm:$0xf]  ;;  %v8455_v40 = vor.u32 %v11377_v33, %v8454_v32  ;;  %v7750_v2 = vld [vmem:[#allocation8 + $0x188] sm:$0xf] }
  0x78   :  { %4087 = vmatpush.bf16.msrb.mxu3 %v8771_v38  ;;  %4062 = vmatpush.bf16.msrb.mxu1 %v7683_v45  ;;  %v9408_v38 = vld [vmem:[#allocation8 + $0xec0] sm:$0xf0]  ;;  %v11361_v45 = vld [vmem:[#allocation8 + $0x6c4] sm:$0xf0] }
  0x79   :  { %v11736_v39 = vld [vmem:[#allocation8 + $0x1284] sm:$0xf]  ;;  %v11201_v3 = vld [vmem:[#allocation8 + $0x1c4] sm:$0xf0] }
  0x7a   :  { %4049 = vmatpush.bf16.msrb.mxu0 %v9727_v44  ;;  %4075 = vmatpush.bf16.msrb.mxu2 %v8195_v46  ;;  %v9920_v41 = vld [vmem:[#allocation8 + $0x12c0] sm:$0xf0]  ;;  %v8390_v44 = vld [vmem:[#allocation8 + $0x688] sm:$0xf]  ;;  %v9411_v46 = vor.u32 %v11608_v37, %v9408_v38  ;;  %v7751_v10 = vor.u32 %v11201_v3, %v7750_v2 }
  0x7b   :  { %v9923_v47 = vor.u32 %v11736_v39, %v9920_v41  ;;  %v11592_v49 = vld [vmem:[#allocation8 + $0xe04] sm:$0xf]  ;;  %v8391_v52 = vor.u32 %v11361_v45, %v8390_v44  ;;  %v8262_v4 = vld [vmem:[#allocation8 + $0x588] sm:$0xf] }
  0x7c   :  { %4088 = vmatpush.bf16.msrb.mxu3 %v8707_v50  ;;  %4063 = vmatpush.bf16.msrb.mxu1 %v7619_v59  ;;  %v9344_v50 = vld [vmem:[#allocation8 + $0xe40] sm:$0xf0]  ;;  %v11329_v5 = vld [vmem:[#allocation8 + $0x5c4] sm:$0xf0] }
  0x7d   :  { %v11720_v51 = vld [vmem:[#allocation8 + $0x1204] sm:$0xf]  ;;  %v9347_v58 = vor.u32 %v11592_v49, %v9344_v50  ;;  %v11185_v18 = vld [vmem:[#allocation8 + $0x144] sm:$0xf0] }
  0x7e   :  { %4050 = vmatpush.bf16.msrb.mxu0 %v9663_v56  ;;  %4076 = vmatpush.bf16.msrb.mxu2 %v8131_v60  ;;  %v9856_v53 = vld [vmem:[#allocation8 + $0x1240] sm:$0xf0]  ;;  %v8326_v56 = vld [vmem:[#allocation8 + $0x608] sm:$0xf]  ;;  %v7815_v60 = vor.u32 %v11217_v55, %v7814_v54  ;;  %v7687_v23 = vor.u32 %v11185_v18, %v7686_v17 }
  0x7f   :  { %v9859_v59 = vor.u32 %v11720_v51, %v9856_v53  ;;  %v9280_v62 = vld [vmem:[#allocation8 + $0xdc0] sm:$0xf0]  ;;  %v11169_v32 = vld [vmem:[#allocation8 + $0xc4] sm:$0xf0] }
  0x80   :  { %4089 = vmatpush.bf16.msrb.mxu3 %v8643_v0  ;;  %4064 = vmatpush.bf16.msrb.mxu1 %v7555_v13  ;;  %v11704_v63 = vld [vmem:[#allocation8 + $0x1184] sm:$0xf]  ;;  %v8327_v0 = vor.u32 %v11345_v57, %v8326_v56  ;;  %v9283_v6 = vor.u32 %v11576_v61, %v9280_v62  ;;  %v8134_v33 = vld [vmem:[#allocation8 + $0x488] sm:$0xf]  ;;  %v7623_v39 = vor.u32 %v11169_v32, %v7622_v30  ;;  %v11257_v56 = vld [vmem:[#allocation8 + $0x38c] sm:$0xf] }
  0x81   :  { %v9792_v1 = vld [vmem:[#allocation8 + $0x11c0] sm:$0xf0]  ;;  %v7558_v42 = vld [vmem:[#allocation8 + $0x8] sm:$0xf]  ;;  %v8008_v57 = vld [vmem:[#allocation8 + $0x3c8] sm:$0xf0] }
  0x82   :  { %4051 = vmatpush.bf16.msrb.mxu0 %v9599_v7  ;;  %4077 = vmatpush.bf16.msrb.mxu2 %v8067_v14  ;;  %v9795_v7 = vor.u32 %v11704_v63, %v9792_v1  ;;  %v11560_v11 = vld [vmem:[#allocation8 + $0xd04] sm:$0xf]  ;;  %v8263_v14 = vor.u32 %v11329_v5, %v8262_v4  ;;  %v11153_v44 = vld [vmem:[#allocation8 + $0x44] sm:$0xf0]  ;;  %v8011_v1 = vor.u32 %v11257_v56, %v8008_v57  ;;  %v11241_v5 = vld [vmem:[#allocation8 + $0x30c] sm:$0xf] }
  0x83   :  { %4065 = vmatmul.bf16.vlgmr.msrb.gmra.mxu1 %v12484_v8  ;;  %v9216_v12 = vld [vmem:[#allocation8 + $0xd40] sm:$0xf0]  ;;  %v8070_v45 = vld [vmem:[#allocation8 + $0x408] sm:$0xf]  ;;  %v7559_v55 = vor.u32 %v11153_v44, %v7558_v42 }
  0x84   :  { %4090 = vmatpush.bf16.msrb.mxu3 %v8579_v19  ;;  %4109 = vmatpush.bf16.msra.mxu1 %v10051_v21  ;;  %v11688_v13 = vld [vmem:[#allocation8 + $0x1104] sm:$0xf]  ;;  %v8198_v19 = vld [vmem:[#allocation8 + $0x508] sm:$0xf]  ;;  %v9219_v21 = vor.u32 %v11560_v11, %v9216_v12 }
  0x85   :  { %4052 = vmatmul.bf16.vlgmr.msrb.gmra.mxu0 %v12496_v31  ;;  %4078 = vmatmul.bf16.vlgmr.msrb.gmra.mxu2 %v12493_v25  ;;  %v9728_v16 = vld [vmem:[#allocation8 + $0x1140] sm:$0xf0]  ;;  %v9542_v49 = vld [vmem:[#allocation8 + $0xf88] sm:$0xf] }
  0x86   :  { %4096 = vmatpush.bf16.msra.mxu0 %v9539_v20  ;;  %4122 = vmatpush.bf16.msra.mxu2 %v8007_v22  ;;  %v11313_v20 = vld [vmem:[#allocation8 + $0x544] sm:$0xf0]  ;;  %v9731_v22 = vor.u32 %v11688_v13, %v9728_v16  ;;  %v11544_v24 = vld [vmem:[#allocation8 + $0xc84] sm:$0xf] }
  0x87   :  { %4091 = vmatmul.bf16.vlgmr.msrb.gmra.mxu3 %v12486_v9  ;;  %v9152_v26 = vld [vmem:[#allocation8 + $0xcc0] sm:$0xf0]  ;;  %v8199_v28 = vor.u32 %v11313_v20, %v8198_v19  ;;  %v11649_v51 = vld [vmem:[#allocation8 + $0xfc4] sm:$0xf0]  ;;  %v11225_v20 = vld [vmem:[#allocation8 + $0x28c] sm:$0xf] }
  0x88   :  { %4135 = vmatpush.bf16.msra.mxu3 %v8519_v27  ;;  %4110 = vmatpush.bf16.msra.mxu1 %v9987_v35  ;;  %v11672_v27 = vld [vmem:[#allocation8 + $0x1084] sm:$0xf]  ;;  %v9155_v35 = vor.u32 %v11544_v24, %v9152_v26  ;;  %v11777_v53 = vld [vmem:[#allocation8 + $0x13c4] sm:$0xf0] }
  0x89   :  { %v9664_v29 = vld [vmem:[#allocation8 + $0x10c0] sm:$0xf0]  ;;  %v8966_v62 = vld [vmem:[#allocation8 + $0xb08] sm:$0xf] }
  0x8a   :  { %4097 = vmatpush.bf16.msra.mxu0 %v9475_v34  ;;  %4123 = vmatpush.bf16.msra.mxu2 %v7943_v36  ;;  %v11297_v34 = vld [vmem:[#allocation8 + $0x4c4] sm:$0xf0]  ;;  %v11528_v36 = vld [vmem:[#allocation8 + $0xc04] sm:$0xf]  ;;  %v9667_v38 = vor.u32 %v11672_v27, %v9664_v29 }
  0x8b   :  { %v9088_v37 = vld [vmem:[#allocation8 + $0xc40] sm:$0xf0]  ;;  %v8135_v43 = vor.u32 %v11297_v34, %v8134_v33  ;;  %v11505_v63 = vld [vmem:[#allocation8 + $0xb44] sm:$0xf0]  ;;  %v11209_v34 = vld [vmem:[#allocation8 + $0x20c] sm:$0xf] }
  0x8c   :  { %4136 = vmatpush.bf16.msra.mxu3 %v8455_v40  ;;  %4111 = vmatpush.bf16.msra.mxu1 %v9923_v47  ;;  %v11656_v40 = vld [vmem:[#allocation8 + $0x1004] sm:$0xf]  ;;  %v9030_v47 = vld [vmem:[#allocation8 + $0xb88] sm:$0xf]  ;;  %v9091_v50 = vor.u32 %v11528_v36, %v9088_v37 }
  0x8d   :  { %v9600_v41 = vld [vmem:[#allocation8 + $0x1040] sm:$0xf0]  ;;  %v11633_v2 = vld [vmem:[#allocation8 + $0xf44] sm:$0xf0] }
  0x8e   :  { %4098 = vmatpush.bf16.msra.mxu0 %v9411_v46  ;;  %4124 = vmatpush.bf16.msra.mxu2 %v7879_v48  ;;  %v11281_v46 = vld [vmem:[#allocation8 + $0x444] sm:$0xf0]  ;;  %v9603_v54 = vor.u32 %v11656_v40, %v9600_v41 }
  0x8f   :  { %v11521_v48 = vld [vmem:[#allocation8 + $0xbc4] sm:$0xf0] }
  0x90   :  { %4137 = vmatpush.bf16.msra.mxu3 %v8391_v52  ;;  %4112 = vmatpush.bf16.msra.mxu1 %v9859_v59  ;;  %v10054_v52 = vld [vmem:[#allocation8 + $0x1388] sm:$0xf]  ;;  %v9031_v59 = vor.u32 %v11521_v48, %v9030_v47  ;;  %v7752_v47 = vld [vmem:[#allocation8 + $0x1c8] sm:$0xf0] }
  0x91   :  { %v10055_v61 = vor.u32 %v11777_v53, %v10054_v52  ;;  %v9990_v3 = vld [vmem:[#allocation8 + $0x1308] sm:$0xf] }
  0x92   :  { %4099 = vmatpush.bf16.msra.mxu0 %v9347_v58  ;;  %4125 = vmatpush.bf16.msra.mxu2 %v7815_v60  ;;  %v8071_v58 = vor.u32 %v11281_v46, %v8070_v45  ;;  %v9543_v60 = vor.u32 %v11649_v51, %v9542_v49  ;;  %v11761_v4 = vld [vmem:[#allocation8 + $0x1344] sm:$0xf0]  ;;  %v11193_v46 = vld [vmem:[#allocation8 + $0x18c] sm:$0xf] }
  0x93   :  { %v9991_v11 = vor.u32 %v11761_v4, %v9990_v3  ;;  %v8902_v12 = vld [vmem:[#allocation8 + $0xa88] sm:$0xf] }
  0x94   :  { %4138 = vmatpush.bf16.msra.mxu3 %v8327_v0  ;;  %4113 = vmatpush.bf16.msra.mxu1 %v9795_v7  ;;  %v9478_v0 = vld [vmem:[#allocation8 + $0xf08] sm:$0xf]  ;;  %v8967_v7 = vor.u32 %v11505_v63, %v8966_v62 }
  0x95   :  { %v11489_v13 = vld [vmem:[#allocation8 + $0xac4] sm:$0xf0] }
  0x96   :  { %4100 = vmatpush.bf16.msra.mxu0 %v9283_v6  ;;  %4126 = vmatpush.bf16.msra.mxu2 %v7751_v10  ;;  %v7944_v6 = vld [vmem:[#allocation8 + $0x348] sm:$0xf0]  ;;  %v9479_v10 = vor.u32 %v11633_v2, %v9478_v0  ;;  %v11617_v17 = vld [vmem:[#allocation8 + $0xec4] sm:$0xf0] }
  0x97   :  { %v7947_v16 = vor.u32 %v11241_v5, %v7944_v6  ;;  %v9926_v18 = vld [vmem:[#allocation8 + $0x1288] sm:$0xf]  ;;  %v11161_v6 = vld [vmem:[#allocation8 + $0x8c] sm:$0xf] }
  0x98   :  { %4139 = vmatpush.bf16.msra.mxu3 %v8263_v14  ;;  %4114 = vmatpush.bf16.msra.mxu1 %v9731_v22  ;;  %v9414_v14 = vld [vmem:[#allocation8 + $0xe88] sm:$0xf]  ;;  %v8903_v22 = vor.u32 %v11489_v13, %v8902_v12 }
  0x99   :  { %v11745_v19 = vld [vmem:[#allocation8 + $0x12c4] sm:$0xf0] }
  0x9a   :  { %4101 = vmatpush.bf16.msra.mxu0 %v9219_v21  ;;  %4127 = vmatpush.bf16.msra.mxu2 %v7687_v23  ;;  %v7880_v21 = vld [vmem:[#allocation8 + $0x2c8] sm:$0xf0]  ;;  %v9415_v23 = vor.u32 %v11617_v17, %v9414_v14  ;;  %v9927_v24 = vor.u32 %v11745_v19, %v9926_v18  ;;  %v8838_v26 = vld [vmem:[#allocation8 + $0xa08] sm:$0xf] }
  0x9b   :  { %v11473_v27 = vld [vmem:[#allocation8 + $0xa44] sm:$0xf0]  ;;  %v7883_v29 = vor.u32 %v11225_v20, %v7880_v21  ;;  %v11145_v21 = vld [vmem:[#allocation8 + $0xc] sm:$0xf] }
  0x9c   :  { %4140 = vmatpush.bf16.msra.mxu3 %v8199_v28  ;;  %4115 = vmatpush.bf16.msra.mxu1 %v9667_v38  ;;  %v9350_v28 = vld [vmem:[#allocation8 + $0xe08] sm:$0xf]  ;;  %v8839_v36 = vor.u32 %v11473_v27, %v8838_v26  ;;  %v11513_v26 = vld [vmem:[#allocation8 + $0xb8c] sm:$0xf] }
  0x9d   :  { %v11601_v30 = vld [vmem:[#allocation8 + $0xe44] sm:$0xf0] }
  0x9e   :  { %4102 = vmatpush.bf16.msra.mxu0 %v9155_v35  ;;  %4128 = vmatpush.bf16.msra.mxu2 %v7623_v39  ;;  %v9862_v32 = vld [vmem:[#allocation8 + $0x1208] sm:$0xf]  ;;  %v7816_v35 = vld [vmem:[#allocation8 + $0x248] sm:$0xf0]  ;;  %v9351_v37 = vor.u32 %v11601_v30, %v9350_v28 }
  0x9f   :  { %v11729_v33 = vld [vmem:[#allocation8 + $0x1244] sm:$0xf0]  ;;  %v7819_v42 = vor.u32 %v11209_v34, %v7816_v35  ;;  %v9032_v28 = vld [vmem:[#allocation8 + $0xbc8] sm:$0xf0] }
  0xa0   :  { %4141 = vmatpush.bf16.msra.mxu3 %v8135_v43  ;;  %4116 = vmatpush.bf16.msra.mxu1 %v9603_v54  ;;  %v9863_v38 = vor.u32 %v11729_v33, %v9862_v32  ;;  %v8774_v39 = vld [vmem:[#allocation8 + $0x988] sm:$0xf]  ;;  %v7755_v54 = vor.u32 %v11193_v46, %v7752_v47  ;;  %v9544_v30 = vld [vmem:[#allocation8 + $0xfc8] sm:$0xf0] }
  0xa1   :  { %v11457_v40 = vld [vmem:[#allocation8 + $0x9c4] sm:$0xf0]  ;;  %v11769_v34 = vld [vmem:[#allocation8 + $0x138c] sm:$0xf] }
  0xa2   :  { %4103 = vmatpush.bf16.msra.mxu0 %v9091_v50  ;;  %4129 = vmatpush.bf16.msra.mxu2 %v7559_v55  ;;  %v9286_v41 = vld [vmem:[#allocation8 + $0xd88] sm:$0xf]  ;;  %v8775_v48 = vor.u32 %v11457_v40, %v8774_v39  ;;  %v10056_v35 = vld [vmem:[#allocation8 + $0x13c8] sm:$0xf0] }
  0xa3   :  { %4117 = vmatmul.bf16.vlgmr.msra.gmra.mxu1 %v12496_v31  ;;  %v11585_v43 = vld [vmem:[#allocation8 + $0xdc4] sm:$0xf0]  ;;  %v11369_v40 = vld [vmem:[#allocation8 + $0x70c] sm:$0xf] }
  0xa4   :  { %4142 = vmatpush.bf16.msra.mxu3 %v8071_v58  ;;  %4161 = vmatpush.bf16.msrb.mxu1 %v9543_v60  ;;  %v9798_v44 = vld [vmem:[#allocation8 + $0x1188] sm:$0xf]  ;;  %v9287_v49 = vor.u32 %v11585_v43, %v9286_v41  ;;  %v11177_v58 = vld [vmem:[#allocation8 + $0x10c] sm:$0xf]  ;;  %v10059_v43 = vor.u32 %v11769_v34, %v10056_v35 }
  0xa5   :  { %4104 = vmatmul.bf16.vlgmr.msra.gmra.mxu0 %v12488_v15  ;;  %4130 = vmatmul.bf16.vlgmr.msra.gmra.mxu2 %v12484_v8  ;;  %v11713_v45 = vld [vmem:[#allocation8 + $0x11c4] sm:$0xf0]  ;;  %v8456_v41 = vld [vmem:[#allocation8 + $0x748] sm:$0xf0] }
  0xa6   :  { %4148 = vmatpush.bf16.msrb.mxu0 %v9031_v59  ;;  %4174 = vmatpush.bf16.msrb.mxu2 %v10055_v61  ;;  %v9799_v50 = vor.u32 %v11713_v45, %v9798_v44  ;;  %v8710_v51 = vld [vmem:[#allocation8 + $0x908] sm:$0xf]  ;;  %v7688_v59 = vld [vmem:[#allocation8 + $0x148] sm:$0xf0] }
  0xa7   :  { %4143 = vmatmul.bf16.vlgmr.msra.gmra.mxu3 %v12493_v25  ;;  %v11441_v52 = vld [vmem:[#allocation8 + $0x944] sm:$0xf0]  ;;  %v7691_v2 = vor.u32 %v11177_v58, %v7688_v59  ;;  %v8968_v44 = vld [vmem:[#allocation8 + $0xb48] sm:$0xf0] }
  0xa8   :  { %4187 = vmatpush.bf16.msrb.mxu3 %v8011_v1  ;;  %4162 = vmatpush.bf16.msrb.mxu1 %v9479_v10  ;;  %v9222_v53 = vld [vmem:[#allocation8 + $0xd08] sm:$0xf]  ;;  %v8711_v60 = vor.u32 %v11441_v52, %v8710_v51  ;;  %v11625_v45 = vld [vmem:[#allocation8 + $0xf0c] sm:$0xf] }
  0xa9   :  { %v11569_v55 = vld [vmem:[#allocation8 + $0xd44] sm:$0xf0]  ;;  %v9480_v46 = vld [vmem:[#allocation8 + $0xf48] sm:$0xf0] }
  0xaa   :  { %4149 = vmatpush.bf16.msrb.mxu0 %v8967_v7  ;;  %4175 = vmatpush.bf16.msrb.mxu2 %v9991_v11  ;;  %v9734_v56 = vld [vmem:[#allocation8 + $0x1108] sm:$0xf]  ;;  %v9223_v61 = vor.u32 %v11569_v55, %v9222_v53  ;;  %v7624_v7 = vld [vmem:[#allocation8 + $0xc8] sm:$0xf0]  ;;  %v9483_v51 = vor.u32 %v11625_v45, %v9480_v46 }
  0xab   :  { %v11697_v57 = vld [vmem:[#allocation8 + $0x1144] sm:$0xf0]  ;;  %v7627_v19 = vor.u32 %v11161_v6, %v7624_v7  ;;  %v11753_v47 = vld [vmem:[#allocation8 + $0x130c] sm:$0xf] }
  0xac   :  { %4188 = vmatpush.bf16.msrb.mxu3 %v7947_v16  ;;  %4163 = vmatpush.bf16.msrb.mxu1 %v9415_v23  ;;  %v9735_v62 = vor.u32 %v11697_v57, %v9734_v56  ;;  %v8646_v63 = vld [vmem:[#allocation8 + $0x888] sm:$0xf]  ;;  %v11385_v23 = vld [vmem:[#allocation8 + $0x78c] sm:$0xf] }
  0xad   :  { %v11425_v0 = vld [vmem:[#allocation8 + $0x8c4] sm:$0xf0]  ;;  %v11353_v52 = vld [vmem:[#allocation8 + $0x68c] sm:$0xf] }
  0xae   :  { %4150 = vmatpush.bf16.msrb.mxu0 %v8903_v22  ;;  %4176 = vmatpush.bf16.msrb.mxu2 %v9927_v24  ;;  %v9158_v1 = vld [vmem:[#allocation8 + $0xc88] sm:$0xf]  ;;  %v8647_v10 = vor.u32 %v11425_v0, %v8646_v63  ;;  %v7560_v22 = vld [vmem:[#allocation8 + $0x48] sm:$0xf0] }
  0xaf   :  { %v11553_v3 = vld [vmem:[#allocation8 + $0xcc4] sm:$0xf0]  ;;  %v8520_v24 = vld [vmem:[#allocation8 + $0x7c8] sm:$0xf0] }
  0xb0   :  { %4189 = vmatpush.bf16.msrb.mxu3 %v7883_v29  ;;  %4164 = vmatpush.bf16.msrb.mxu1 %v9351_v37  ;;  %v9670_v4 = vld [vmem:[#allocation8 + $0x1088] sm:$0xf]  ;;  %v9159_v13 = vor.u32 %v11553_v3, %v9158_v1  ;;  %v11641_v29 = vld [vmem:[#allocation8 + $0xf8c] sm:$0xf]  ;;  %v8523_v37 = vor.u32 %v11385_v23, %v8520_v24 }
  0xb1   :  { %v11681_v5 = vld [vmem:[#allocation8 + $0x10c4] sm:$0xf0]  ;;  %v9547_v39 = vor.u32 %v11641_v29, %v9544_v30  ;;  %v8392_v53 = vld [vmem:[#allocation8 + $0x6c8] sm:$0xf0] }
  0xb2   :  { %4151 = vmatpush.bf16.msrb.mxu0 %v8839_v36  ;;  %4177 = vmatpush.bf16.msrb.mxu2 %v9863_v38  ;;  %v8582_v11 = vld [vmem:[#allocation8 + $0x808] sm:$0xf]  ;;  %v9671_v14 = vor.u32 %v11681_v5, %v9670_v4  ;;  %v7563_v36 = vor.u32 %v11145_v21, %v7560_v22  ;;  %v9035_v38 = vor.u32 %v11513_v26, %v9032_v28  ;;  %v8904_v56 = vld [vmem:[#allocation8 + $0xac8] sm:$0xf0] }
  0xb3   :  { %v11409_v12 = vld [vmem:[#allocation8 + $0x844] sm:$0xf0]  ;;  %v11609_v57 = vld [vmem:[#allocation8 + $0xe8c] sm:$0xf] }
  0xb4   :  { %4190 = vmatpush.bf16.msrb.mxu3 %v7819_v42  ;;  %4165 = vmatpush.bf16.msrb.mxu1 %v9287_v49  ;;  %v9094_v16 = vld [vmem:[#allocation8 + $0xc08] sm:$0xf]  ;;  %v8583_v27 = vor.u32 %v11409_v12, %v8582_v11  ;;  %v11497_v42 = vld [vmem:[#allocation8 + $0xb0c] sm:$0xf]  ;;  %v8459_v49 = vor.u32 %v11369_v40, %v8456_v41 }
  0xb5   :  { %v11537_v17 = vld [vmem:[#allocation8 + $0xc44] sm:$0xf0]  ;;  %v9416_v58 = vld [vmem:[#allocation8 + $0xec8] sm:$0xf0] }
  0xb6   :  { %4152 = vmatpush.bf16.msrb.mxu0 %v8775_v48  ;;  %4178 = vmatpush.bf16.msrb.mxu2 %v9799_v50  ;;  %v9606_v18 = vld [vmem:[#allocation8 + $0x1008] sm:$0xf]  ;;  %v9095_v32 = vor.u32 %v11537_v17, %v9094_v16  ;;  %v9992_v48 = vld [vmem:[#allocation8 + $0x1348] sm:$0xf0]  ;;  %v8971_v50 = vor.u32 %v11497_v42, %v8968_v44  ;;  %v9419_v63 = vor.u32 %v11609_v57, %v9416_v58 }
  0xb7   :  { %v11665_v20 = vld [vmem:[#allocation8 + $0x1044] sm:$0xf0]  ;;  %v9995_v55 = vor.u32 %v11753_v47, %v9992_v48  ;;  %v11737_v59 = vld [vmem:[#allocation8 + $0x128c] sm:$0xf] }
  0xb8   :  { %4191 = vmatpush.bf16.msrb.mxu3 %v7755_v54  ;;  %4166 = vmatpush.bf16.msrb.mxu1 %v9223_v61  ;;  %v9607_v33 = vor.u32 %v11665_v20, %v9606_v18  ;;  %v11481_v54 = vld [vmem:[#allocation8 + $0xa8c] sm:$0xf]  ;;  %v8395_v61 = vor.u32 %v11353_v52, %v8392_v53 }
  0xb9   :  { %v11337_v0 = vld [vmem:[#allocation8 + $0x60c] sm:$0xf] }
  0xba   :  { %4153 = vmatpush.bf16.msrb.mxu0 %v8711_v60  ;;  %4179 = vmatpush.bf16.msrb.mxu2 %v9735_v62  ;;  %v9928_v60 = vld [vmem:[#allocation8 + $0x12c8] sm:$0xf0]  ;;  %v8907_v62 = vor.u32 %v11481_v54, %v8904_v56 }
  0xbb   :  { %v8328_v1 = vld [vmem:[#allocation8 + $0x648] sm:$0xf0]  ;;  %v9931_v3 = vor.u32 %v11737_v59, %v9928_v60 }
  0xbc   :  { %4192 = vmatpush.bf16.msrb.mxu3 %v7691_v2  ;;  %4167 = vmatpush.bf16.msrb.mxu1 %v9159_v13  ;;  %v11465_v2 = vld [vmem:[#allocation8 + $0xa0c] sm:$0xf]  ;;  %v8331_v11 = vor.u32 %v11337_v0, %v8328_v1  ;;  %v8526_v0 = vld [vmem:[#allocation8 + $0x790] sm:$0xf] }
  0xbd   :  { %v8840_v4 = vld [vmem:[#allocation8 + $0xa48] sm:$0xf0] }
  0xbe   :  { %4154 = vmatpush.bf16.msrb.mxu0 %v8647_v10  ;;  %4180 = vmatpush.bf16.msrb.mxu2 %v9671_v14  ;;  %v11593_v5 = vld [vmem:[#allocation8 + $0xe0c] sm:$0xf]  ;;  %v8843_v12 = vor.u32 %v11465_v2, %v8840_v4  ;;  %v11394_v2 = vld [vmem:[#allocation8 + $0x7cc] sm:$0xf0] }
  0xbf   :  { %v9352_v6 = vld [vmem:[#allocation8 + $0xe48] sm:$0xf0]  ;;  %v11522_v4 = vld [vmem:[#allocation8 + $0xbcc] sm:$0xf0] }
  0xc0   :  { %4193 = vmatpush.bf16.msrb.mxu3 %v7627_v19  ;;  %4168 = vmatpush.bf16.msrb.mxu1 %v9095_v32  ;;  %v11721_v7 = vld [vmem:[#allocation8 + $0x120c] sm:$0xf]  ;;  %v9355_v13 = vor.u32 %v11593_v5, %v9352_v6 }
  0xc1   :  { %v9864_v10 = vld [vmem:[#allocation8 + $0x1248] sm:$0xf0] }
  0xc2   :  { %4155 = vmatpush.bf16.msrb.mxu0 %v8583_v27  ;;  %4181 = vmatpush.bf16.msrb.mxu2 %v9607_v33  ;;  %v11321_v14 = vld [vmem:[#allocation8 + $0x58c] sm:$0xf]  ;;  %v9867_v18 = vor.u32 %v11721_v7, %v9864_v10  ;;  %v9550_v7 = vld [vmem:[#allocation8 + $0xf90] sm:$0xf] }
  0xc3   :  { %4169 = vmatmul.bf16.vlgmr.msrb.gmra.mxu1 %v12488_v15  ;;  %v8264_v16 = vld [vmem:[#allocation8 + $0x5c8] sm:$0xf0]  ;;  %v11650_v10 = vld [vmem:[#allocation8 + $0xfcc] sm:$0xf0] }
  0xc4   :  { %4194 = vmatpush.bf16.msrb.mxu3 %v7563_v36  ;;  %4213 = vmatpush.bf16.msra.mxu1 %v9035_v38  ;;  %v11449_v17 = vld [vmem:[#allocation8 + $0x98c] sm:$0xf]  ;;  %v8267_v24 = vor.u32 %v11321_v14, %v8264_v16  ;;  %v7950_v16 = vld [vmem:[#allocation8 + $0x310] sm:$0xf] }
  0xc5   :  { %4182 = vmatmul.bf16.vlgmr.msrb.gmra.mxu2 %v12496_v31  ;;  %4156 = vmatmul.bf16.vlgmr.msrb.gmra.mxu0 %v12486_v9  ;;  %v8776_v19 = vld [vmem:[#allocation8 + $0x9c8] sm:$0xf0] }
  0xc6   :  { %4200 = vmatpush.bf16.msra.mxu0 %v8523_v37  ;;  %4226 = vmatpush.bf16.msra.mxu2 %v9547_v39  ;;  %v11577_v20 = vld [vmem:[#allocation8 + $0xd8c] sm:$0xf]  ;;  %v8779_v26 = vor.u32 %v11449_v17, %v8776_v19  ;;  %v11250_v17 = vld [vmem:[#allocation8 + $0x34c] sm:$0xf0]  ;;  %v9551_v19 = vor.u32 %v11650_v10, %v9550_v7 }
  0xc7   :  { %4195 = vmatmul.bf16.vlgmr.msrb.gmra.mxu3 %v12484_v8  ;;  %v9288_v21 = vld [vmem:[#allocation8 + $0xdc8] sm:$0xf0]  ;;  %v11314_v7 = vld [vmem:[#allocation8 + $0x54c] sm:$0xf0] }
  0xc8   :  { %4239 = vmatpush.bf16.msra.mxu3 %v10059_v43  ;;  %4214 = vmatpush.bf16.msra.mxu1 %v8971_v50  ;;  %v11705_v22 = vld [vmem:[#allocation8 + $0x118c] sm:$0xf]  ;;  %v9291_v27 = vor.u32 %v11577_v20, %v9288_v21  ;;  %v11378_v20 = vld [vmem:[#allocation8 + $0x74c] sm:$0xf0] }
  0xc9   :  { %v9800_v23 = vld [vmem:[#allocation8 + $0x11c8] sm:$0xf0]  ;;  %v8974_v21 = vld [vmem:[#allocation8 + $0xb10] sm:$0xf] }
  0xca   :  { %4201 = vmatpush.bf16.msra.mxu0 %v8459_v49  ;;  %4227 = vmatpush.bf16.msra.mxu2 %v9483_v51  ;;  %v11305_v28 = vld [vmem:[#allocation8 + $0x50c] sm:$0xf]  ;;  %v9803_v32 = vor.u32 %v11705_v22, %v9800_v23  ;;  %v11506_v22 = vld [vmem:[#allocation8 + $0xb4c] sm:$0xf0] }
  0xcb   :  { %v8200_v29 = vld [vmem:[#allocation8 + $0x548] sm:$0xf0]  ;;  %v9486_v23 = vld [vmem:[#allocation8 + $0xf10] sm:$0xf] }
  0xcc   :  { %4240 = vmatpush.bf16.msra.mxu3 %v9995_v55  ;;  %4215 = vmatpush.bf16.msra.mxu1 %v8907_v62  ;;  %v11433_v30 = vld [vmem:[#allocation8 + $0x90c] sm:$0xf]  ;;  %v8203_v38 = vor.u32 %v11305_v28, %v8200_v29  ;;  %v8014_v62 = vld [vmem:[#allocation8 + $0x390] sm:$0xf]  ;;  %v8975_v28 = vor.u32 %v11506_v22, %v8974_v21 }
  0xcd   :  { %v8712_v33 = vld [vmem:[#allocation8 + $0x948] sm:$0xf0]  ;;  %v7886_v29 = vld [vmem:[#allocation8 + $0x290] sm:$0xf] }
  0xce   :  { %4202 = vmatpush.bf16.msra.mxu0 %v8395_v61  ;;  %4228 = vmatpush.bf16.msra.mxu2 %v9419_v63  ;;  %v11561_v34 = vld [vmem:[#allocation8 + $0xd0c] sm:$0xf]  ;;  %v8715_v39 = vor.u32 %v11433_v30, %v8712_v33  ;;  %v11266_v63 = vld [vmem:[#allocation8 + $0x3cc] sm:$0xf0] }
  0xcf   :  { %v9224_v35 = vld [vmem:[#allocation8 + $0xd48] sm:$0xf0]  ;;  %v11234_v30 = vld [vmem:[#allocation8 + $0x2cc] sm:$0xf0] }
  0xd0   :  { %4241 = vmatpush.bf16.msra.mxu3 %v9931_v3  ;;  %4216 = vmatpush.bf16.msra.mxu1 %v8843_v12  ;;  %v11689_v36 = vld [vmem:[#allocation8 + $0x110c] sm:$0xf]  ;;  %v9227_v40 = vor.u32 %v11561_v34, %v9224_v35  ;;  %v9038_v3 = vld [vmem:[#allocation8 + $0xb90] sm:$0xf]  ;;  %v8015_v12 = vor.u32 %v11266_v63, %v8014_v62 }
  0xd1   :  { %v9736_v37 = vld [vmem:[#allocation8 + $0x1148] sm:$0xf0]  ;;  %v9039_v14 = vor.u32 %v11522_v4, %v9038_v3  ;;  %v11362_v34 = vld [vmem:[#allocation8 + $0x6cc] sm:$0xf0] }
  0xd2   :  { %4203 = vmatpush.bf16.msra.mxu0 %v8331_v11  ;;  %4229 = vmatpush.bf16.msra.mxu2 %v9355_v13  ;;  %v11289_v41 = vld [vmem:[#allocation8 + $0x48c] sm:$0xf]  ;;  %v9739_v44 = vor.u32 %v11689_v36, %v9736_v37  ;;  %v8527_v13 = vor.u32 %v11394_v2, %v8526_v0  ;;  %v8910_v35 = vld [vmem:[#allocation8 + $0xa90] sm:$0xf] }
  0xd3   :  { %v8136_v42 = vld [vmem:[#allocation8 + $0x4c8] sm:$0xf0]  ;;  %v11490_v36 = vld [vmem:[#allocation8 + $0xacc] sm:$0xf0] }
  0xd4   :  { %4242 = vmatpush.bf16.msra.mxu3 %v9867_v18  ;;  %4217 = vmatpush.bf16.msra.mxu1 %v8779_v26  ;;  %v11417_v43 = vld [vmem:[#allocation8 + $0x88c] sm:$0xf]  ;;  %v8139_v50 = vor.u32 %v11289_v41, %v8136_v42  ;;  %v8462_v18 = vld [vmem:[#allocation8 + $0x710] sm:$0xf]  ;;  %v7951_v26 = vor.u32 %v11250_v17, %v7950_v16  ;;  %v8911_v41 = vor.u32 %v11490_v36, %v8910_v35 }
  0xd5   :  { %v8648_v45 = vld [vmem:[#allocation8 + $0x8c8] sm:$0xf0]  ;;  %v9422_v37 = vld [vmem:[#allocation8 + $0xe90] sm:$0xf] }
  0xd6   :  { %4204 = vmatpush.bf16.msra.mxu0 %v8267_v24  ;;  %4230 = vmatpush.bf16.msra.mxu2 %v9291_v27  ;;  %v11545_v46 = vld [vmem:[#allocation8 + $0xc8c] sm:$0xf]  ;;  %v8651_v53 = vor.u32 %v11417_v43, %v8648_v45  ;;  %v11634_v24 = vld [vmem:[#allocation8 + $0xf4c] sm:$0xf0]  ;;  %v8463_v27 = vor.u32 %v11378_v20, %v8462_v18 }
  0xd7   :  { %v9160_v47 = vld [vmem:[#allocation8 + $0xcc8] sm:$0xf0]  ;;  %v9487_v33 = vor.u32 %v11634_v24, %v9486_v23  ;;  %v7822_v42 = vld [vmem:[#allocation8 + $0x210] sm:$0xf] }
  0xd8   :  { %4243 = vmatpush.bf16.msra.mxu3 %v9803_v32  ;;  %v11673_v48 = vld [vmem:[#allocation8 + $0x108c] sm:$0xf]  ;;  %4218 = vmatpush.bf16.msra.mxu1 %v8715_v39  ;;  %v9163_v54 = vor.u32 %v11545_v46, %v9160_v47  ;;  %v8398_v32 = vld [vmem:[#allocation8 + $0x690] sm:$0xf]  ;;  %v7887_v39 = vor.u32 %v11234_v30, %v7886_v29 }
  0xd9   :  { %v9672_v49 = vld [vmem:[#allocation8 + $0x10c8] sm:$0xf0]  ;;  %v11218_v43 = vld [vmem:[#allocation8 + $0x24c] sm:$0xf0] }
  0xda   :  { %4205 = vmatpush.bf16.msra.mxu0 %v8203_v38  ;;  %v11273_v51 = vld [vmem:[#allocation8 + $0x40c] sm:$0xf]  ;;  %4231 = vmatpush.bf16.msra.mxu2 %v9227_v40  ;;  %v9675_v58 = vor.u32 %v11673_v48, %v9672_v49  ;;  %v11618_v38 = vld [vmem:[#allocation8 + $0xecc] sm:$0xf0]  ;;  %v8399_v40 = vor.u32 %v11362_v34, %v8398_v32 }
  0xdb   :  { %v8072_v52 = vld [vmem:[#allocation8 + $0x448] sm:$0xf0]  ;;  %v9423_v45 = vor.u32 %v11618_v38, %v9422_v37  ;;  %v11346_v46 = vld [vmem:[#allocation8 + $0x64c] sm:$0xf0] }
  0xdc   :  { %v11401_v55 = vld [vmem:[#allocation8 + $0x80c] sm:$0xf]  ;;  %4244 = vmatpush.bf16.msra.mxu3 %v9739_v44  ;;  %v8075_v1 = vor.u32 %v11273_v51, %v8072_v52  ;;  %4219 = vmatpush.bf16.msra.mxu1 %v8651_v53  ;;  %v8334_v44 = vld [vmem:[#allocation8 + $0x610] sm:$0xf]  ;;  %v7823_v51 = vor.u32 %v11218_v43, %v7822_v42 }
  0xdd   :  { %v8584_v56 = vld [vmem:[#allocation8 + $0x848] sm:$0xf0]  ;;  %v8846_v47 = vld [vmem:[#allocation8 + $0xa10] sm:$0xf]  ;;  %v8335_v52 = vor.u32 %v11346_v46, %v8334_v44 }
  0xde   :  { %v11529_v57 = vld [vmem:[#allocation8 + $0xc0c] sm:$0xf]  ;;  %4206 = vmatpush.bf16.msra.mxu0 %v8139_v50  ;;  %4232 = vmatpush.bf16.msra.mxu2 %v9163_v54  ;;  %v8587_v5 = vor.u32 %v11401_v55, %v8584_v56  ;;  %v11474_v48 = vld [vmem:[#allocation8 + $0xa4c] sm:$0xf0]  ;;  %v4001_v0 = vpop.f32.mrf.mxu0 }
  0xdf   :  { %v9096_v59 = vld [vmem:[#allocation8 + $0xc48] sm:$0xf0]  ;;  %v9358_v49 = vld [vmem:[#allocation8 + $0xe10] sm:$0xf]  ;;  %v8847_v53 = vor.u32 %v11474_v48, %v8846_v47 }
  0xe0   :  { %v11657_v60 = vld [vmem:[#allocation8 + $0x100c] sm:$0xf]  ;;  %v9099_v6 = vor.u32 %v11529_v57, %v9096_v59  ;;  %4245 = vmatpush.bf16.msra.mxu3 %v9675_v58  ;;  %4220 = vmatpush.bf16.msra.mxu1 %v8587_v5  ;;  %v11602_v50 = vld [vmem:[#allocation8 + $0xe4c] sm:$0xf0] }
  0xe1   :  { %v9608_v61 = vld [vmem:[#allocation8 + $0x1048] sm:$0xf0]  ;;  %v7758_v54 = vld [vmem:[#allocation8 + $0x190] sm:$0xf]  ;;  %v9359_v57 = vor.u32 %v11602_v50, %v9358_v49  ;;  %v11258_v50 = vld [vmem:[#allocation8 + $0x394] sm:$0xf] }
  0xe2   :  { %v9611_v11 = vor.u32 %v11657_v60, %v9608_v61  ;;  %4207 = vmatpush.bf16.msra.mxu0 %v8075_v1  ;;  %4233 = vmatpush.bf16.msra.mxu2 %v9099_v6  ;;  %v11202_v55 = vld [vmem:[#allocation8 + $0x1cc] sm:$0xf0] }
  0xe3   :  { %4221 = vmatmul.bf16.vlgmr.msra.gmra.mxu1 %v12486_v9  ;;  %v8270_v56 = vld [vmem:[#allocation8 + $0x590] sm:$0xf]  ;;  %v7759_v63 = vor.u32 %v11202_v55, %v7758_v54  ;;  %v8528_v54 = vld [vmem:[#allocation8 + $0x7d0] sm:$0xf0] }
  0xe4   :  { %4246 = vmatpush.bf16.msra.mxu3 %v9611_v11  ;;  %4265 = vmatpush.bf16.msrb.mxu1 %v8527_v13  ;;  %v11330_v58 = vld [vmem:[#allocation8 + $0x5cc] sm:$0xf0] }
  0xe5   :  { %4234 = vmatmul.bf16.vlgmr.msra.gmra.mxu2 %v12488_v15  ;;  %4208 = vmatmul.bf16.vlgmr.msra.gmra.mxu0 %v12493_v25  ;;  %v8782_v59 = vld [vmem:[#allocation8 + $0x990] sm:$0xf]  ;;  %v8271_v1 = vor.u32 %v11330_v58, %v8270_v56  ;;  %v11514_v58 = vld [vmem:[#allocation8 + $0xb94] sm:$0xf] }
  0xe6   :  { %4252 = vmatpush.bf16.msrb.mxu0 %v8015_v12  ;;  %4278 = vmatpush.bf16.msrb.mxu2 %v9039_v14  ;;  %v11458_v60 = vld [vmem:[#allocation8 + $0x9cc] sm:$0xf0]  ;;  %v4003_v37 = vpop.f32.mrf.mxu0 }
  0xe7   :  { %4247 = vmatmul.bf16.vlgmr.msra.gmra.mxu3 %v12496_v31  ;;  %v9294_v61 = vld [vmem:[#allocation8 + $0xd90] sm:$0xf]  ;;  %v8783_v2 = vor.u32 %v11458_v60, %v8782_v59  ;;  %v9040_v59 = vld [vmem:[#allocation8 + $0xbd0] sm:$0xf0] }
  0xe8   :  { %4291 = vmatpush.bf16.msrb.mxu3 %v9551_v19  ;;  %4266 = vmatpush.bf16.msrb.mxu1 %v8463_v27  ;;  %v11586_v62 = vld [vmem:[#allocation8 + $0xdcc] sm:$0xf0]  ;;  %v8336_v37 = vld [vmem:[#allocation8 + $0x650] sm:$0xf0] }
  0xe9   :  { %v7694_v3 = vld [vmem:[#allocation8 + $0x110] sm:$0xf]  ;;  %v9295_v6 = vor.u32 %v11586_v62, %v9294_v61 }
  0xea   :  { %4253 = vmatpush.bf16.msrb.mxu0 %v7951_v26  ;;  %4279 = vmatpush.bf16.msrb.mxu2 %v8975_v28  ;;  %v11186_v4 = vld [vmem:[#allocation8 + $0x14c] sm:$0xf0]  ;;  %v4014_v16 = vpop.f32.mrf.mxu1  ;;  %v4027_v28 = vpop.f32.mrf.mxu2 }
  0xeb   :  { %v8206_v5 = vld [vmem:[#allocation8 + $0x510] sm:$0xf]  ;;  %v7695_v14 = vor.u32 %v11186_v4, %v7694_v3  ;;  %v4015_v22 = vadd.f32 %v4014_v16, %v4001_v0  ;;  %v11242_v3 = vld [vmem:[#allocation8 + $0x314] sm:$0xf] }
  0xec   :  { %4292 = vmatpush.bf16.msrb.mxu3 %v9487_v33  ;;  %4267 = vmatpush.bf16.msrb.mxu1 %v8399_v40  ;;  %v8718_v10 = vld [vmem:[#allocation8 + $0x910] sm:$0xf]  ;;  %v8207_v17 = vor.u32 %v11314_v7, %v8206_v5  ;;  %v4040_v33 = vpop.f32.mrf.mxu3  ;;  %v9043_v5 = vor.u32 %v11514_v58, %v9040_v59  ;;  %v11370_v7 = vld [vmem:[#allocation8 + $0x714] sm:$0xf] }
  0xed   :  { %v11442_v11 = vld [vmem:[#allocation8 + $0x94c] sm:$0xf0]  ;;  %v4028_v32 = vadd.f32 %v4027_v28, %v4015_v22  ;;  %v11354_v22 = vld [vmem:[#allocation8 + $0x694] sm:$0xf] }
  0xee   :  { %4254 = vmatpush.bf16.msrb.mxu0 %v7887_v39  ;;  %4280 = vmatpush.bf16.msrb.mxu2 %v8911_v41  ;;  %v9230_v12 = vld [vmem:[#allocation8 + $0xd10] sm:$0xf]  ;;  %v8719_v18 = vor.u32 %v11442_v11, %v8718_v10  ;;  %v8464_v10 = vld [vmem:[#allocation8 + $0x750] sm:$0xf0] }
  0xef   :  { %v11570_v13 = vld [vmem:[#allocation8 + $0xd4c] sm:$0xf0]  ;;  %v12514_v43 = vadd.f32 %v4040_v33, %v4028_v32  ;;  %v11498_v11 = vld [vmem:[#allocation8 + $0xb14] sm:$0xf]  ;;  %v8467_v16 = vor.u32 %v11370_v7, %v8464_v10 }
  0xf0   :  { %4293 = vmatpush.bf16.msrb.mxu3 %v9423_v45  ;;  %4268 = vmatpush.bf16.msrb.mxu1 %v8335_v52  ;;  %v7630_v19 = vld [vmem:[#allocation8 + $0x90] sm:$0xf]  ;;  %v9231_v23 = vor.u32 %v11570_v13, %v9230_v12  ;;  %v8016_v52 = vld [vmem:[#allocation8 + $0x3d0] sm:$0xf0] }
  0xf1   :  { %v11170_v20 = vld [vmem:[#allocation8 + $0xcc] sm:$0xf0]  ;;  %v8976_v12 = vld [vmem:[#allocation8 + $0xb50] sm:$0xf0] }
  0xf2   :  { %4255 = vmatpush.bf16.msrb.mxu0 %v7823_v51  ;;  %4281 = vmatpush.bf16.msrb.mxu2 %v8847_v53  ;;  %v8142_v21 = vld [vmem:[#allocation8 + $0x490] sm:$0xf]  ;;  %v7631_v34 = vor.u32 %v11170_v20, %v7630_v19  ;;  %v11386_v53 = vld [vmem:[#allocation8 + $0x794] sm:$0xf]  ;;  %v4016_v55 = vpop.f32.mrf.mxu1  ;;  %v4029_v62 = vpop.f32.mrf.mxu2  ;;  %v8979_v20 = vor.u32 %v11498_v11, %v8976_v12 }
  0xf3   :  { %v11298_v24 = vld [vmem:[#allocation8 + $0x4cc] sm:$0xf0]  ;;  %v8531_v0 = vor.u32 %v11386_v53, %v8528_v54  ;;  %v11226_v19 = vld [vmem:[#allocation8 + $0x294] sm:$0xf] }
  0xf4   :  { %4294 = vmatpush.bf16.msrb.mxu3 %v9359_v57  ;;  %4269 = vmatpush.bf16.msrb.mxu1 %v8271_v1  ;;  %v8654_v26 = vld [vmem:[#allocation8 + $0x890] sm:$0xf]  ;;  %v8143_v38 = vor.u32 %v11298_v24, %v8142_v21  ;;  %v4042_v4 = vpop.f32.mrf.mxu3  ;;  %v7888_v21 = vld [vmem:[#allocation8 + $0x2d0] sm:$0xf0] }
  0xf5   :  { %v11426_v27 = vld [vmem:[#allocation8 + $0x8cc] sm:$0xf0]  ;;  %v11482_v24 = vld [vmem:[#allocation8 + $0xa94] sm:$0xf]  ;;  %v7891_v28 = vor.u32 %v11226_v19, %v7888_v21 }
  0xf6   :  { %4256 = vmatpush.bf16.msrb.mxu0 %v7759_v63  ;;  %4282 = vmatpush.bf16.msrb.mxu2 %v8783_v2  ;;  %v9166_v29 = vld [vmem:[#allocation8 + $0xc90] sm:$0xf]  ;;  %v8655_v39 = vor.u32 %v11426_v27, %v8654_v26  ;;  %v8019_v63 = vor.u32 %v11258_v50, %v8016_v52  ;;  %v8912_v26 = vld [vmem:[#allocation8 + $0xad0] sm:$0xf0] }
  0xf7   :  { %v11554_v30 = vld [vmem:[#allocation8 + $0xccc] sm:$0xf0]  ;;  %v11210_v33 = vld [vmem:[#allocation8 + $0x214] sm:$0xf] }
  0xf8   :  { %4295 = vmatpush.bf16.msrb.mxu3 %v9295_v6  ;;  %v7566_v35 = vld [vmem:[#allocation8 + $0x10] sm:$0xf]  ;;  %4270 = vmatpush.bf16.msrb.mxu1 %v8207_v17  ;;  %v9167_v44 = vor.u32 %v11554_v30, %v9166_v29  ;;  %v7952_v6 = vld [vmem:[#allocation8 + $0x350] sm:$0xf0] }
  0xf9   :  { %v11154_v36 = vld [vmem:[#allocation8 + $0x4c] sm:$0xf0]  ;;  %v11322_v52 = vld [vmem:[#allocation8 + $0x594] sm:$0xf] }
  0xfa   :  { %4257 = vmatpush.bf16.msrb.mxu0 %v7695_v14  ;;  %4283 = vmatpush.bf16.msrb.mxu2 %v8719_v18  ;;  %v8078_v40 = vld [vmem:[#allocation8 + $0x410] sm:$0xf]  ;;  %v7567_v51 = vor.u32 %v11154_v36, %v7566_v35  ;;  %v7955_v14 = vor.u32 %v11242_v3, %v7952_v6  ;;  %v7824_v35 = vld [vmem:[#allocation8 + $0x250] sm:$0xf0] }
  0xfb   :  { %v11282_v41 = vld [vmem:[#allocation8 + $0x44c] sm:$0xf0]  ;;  %v11338_v36 = vld [vmem:[#allocation8 + $0x614] sm:$0xf] }
  0xfc   :  { %v8590_v42 = vld [vmem:[#allocation8 + $0x810] sm:$0xf]  ;;  %4296 = vmatpush.bf16.msrb.mxu3 %v9231_v23  ;;  %4271 = vmatpush.bf16.msrb.mxu1 %v8143_v38  ;;  %v8079_v56 = vor.u32 %v11282_v41, %v8078_v40  ;;  %v8400_v23 = vld [vmem:[#allocation8 + $0x6d0] sm:$0xf0] }
  0xfd   :  { %v11410_v45 = vld [vmem:[#allocation8 + $0x84c] sm:$0xf0]  ;;  %v8403_v29 = vor.u32 %v11354_v22, %v8400_v23  ;;  %v11466_v38 = vld [vmem:[#allocation8 + $0xa14] sm:$0xf] }
  0xfe   :  { %v9102_v46 = vld [vmem:[#allocation8 + $0xc10] sm:$0xf]  ;;  %4258 = vmatpush.bf16.msrb.mxu0 %v7631_v34  ;;  %4284 = vmatpush.bf16.msrb.mxu2 %v8655_v39  ;;  %v8591_v57 = vor.u32 %v11410_v45, %v8590_v42  ;;  %v8915_v34 = vor.u32 %v11482_v24, %v8912_v26  ;;  %v8848_v39 = vld [vmem:[#allocation8 + $0xa50] sm:$0xf0]  ;;  %v8339_v45 = vor.u32 %v11338_v36, %v8336_v37 }
  0xff   :  { %v11538_v47 = vld [vmem:[#allocation8 + $0xc4c] sm:$0xf0]  ;;  %v8851_v50 = vor.u32 %v11466_v38, %v8848_v39  ;;  %v8272_v53 = vld [vmem:[#allocation8 + $0x5d0] sm:$0xf0] }
 0x100   :  { %v10062_v48 = vld [vmem:[#allocation8 + $0x1390] sm:$0xf]  ;;  %4297 = vmatpush.bf16.msrb.mxu3 %v9167_v44  ;;  %v9103_v60 = vor.u32 %v11538_v47, %v9102_v46  ;;  %4272 = vmatpush.bf16.msrb.mxu1 %v8079_v56  ;;  %v7827_v44 = vor.u32 %v11210_v33, %v7824_v35  ;;  %v11450_v54 = vld [vmem:[#allocation8 + $0x994] sm:$0xf] }
 0x101   :  { %v11778_v49 = vld [vmem:[#allocation8 + $0x13cc] sm:$0xf0]  ;;  %v8784_v55 = vld [vmem:[#allocation8 + $0x9d0] sm:$0xf0] }
 0x102   :  { %v10063_v61 = vor.u32 %v11778_v49, %v10062_v48  ;;  %v9998_v1 = vld [vmem:[#allocation8 + $0x1310] sm:$0xf]  ;;  %4259 = vmatpush.bf16.msrb.mxu0 %v7567_v51  ;;  %4285 = vmatpush.bf16.msrb.mxu2 %v8591_v57  ;;  %v4053_v40 = vpop.f32.mrf.mxu0  ;;  %v11194_v48 = vld [vmem:[#allocation8 + $0x194] sm:$0xf]  ;;  %v4066_v49 = vpop.f32.mrf.mxu1  ;;  %v8275_v57 = vor.u32 %v11322_v52, %v8272_v53  ;;  %v11395_v52 = vld [vmem:[#allocation8 + $0x7d4] sm:$0xf0] }
 0x103   :  { %v11762_v2 = vld [vmem:[#allocation8 + $0x134c] sm:$0xf0]  ;;  %4273 = vmatmul.bf16.vlgmr.msrb.gmra.mxu1 %v12493_v25  ;;  %v12521_v42 = vadd.f32 %v4053_v40, %v12514_v43  ;;  %v7760_v51 = vld [vmem:[#allocation8 + $0x1d0] sm:$0xf0] }
 0x104   :  { %4298 = vmatpush.bf16.msrb.mxu3 %v9103_v60  ;;  %v9999_v13 = vor.u32 %v11762_v2, %v9998_v1  ;;  %4317 = vmatpush.bf16.msra.mxu1 %v8019_v63  ;;  %v9934_v17 = vld [vmem:[#allocation8 + $0x1290] sm:$0xf]  ;;  %v7763_v43 = vor.u32 %v11194_v48, %v7760_v51  ;;  %v11178_v60 = vld [vmem:[#allocation8 + $0x114] sm:$0xf]  ;;  %v11267_v48 = vld [vmem:[#allocation8 + $0x3d4] sm:$0xf0] }
 0x105   :  { %v11746_v18 = vld [vmem:[#allocation8 + $0x12cc] sm:$0xf0]  ;;  %4260 = vmatmul.bf16.vlgmr.msrb.gmra.mxu0 %v12484_v8  ;;  %4286 = vmatmul.bf16.vlgmr.msrb.gmra.mxu2 %v12486_v9  ;;  %v7696_v62 = vld [vmem:[#allocation8 + $0x150] sm:$0xf0]  ;;  %v8534_v51 = vld [vmem:[#allocation8 + $0x798] sm:$0xf] }
 0x106   :  { %4304 = vmatpush.bf16.msra.mxu0 %v10063_v61  ;;  %4330 = vmatpush.bf16.msra.mxu2 %v8531_v0  ;;  %v9935_v27 = vor.u32 %v11746_v18, %v9934_v17  ;;  %v9870_v30 = vld [vmem:[#allocation8 + $0x1210] sm:$0xf]  ;;  %v8787_v61 = vor.u32 %v11450_v54, %v8784_v55  ;;  %v11306_v63 = vld [vmem:[#allocation8 + $0x514] sm:$0xf]  ;;  %v7699_v10 = vor.u32 %v11178_v60, %v7696_v62  ;;  %v11251_v62 = vld [vmem:[#allocation8 + $0x354] sm:$0xf0] }
 0x107   :  { %4299 = vmatmul.bf16.vlgmr.msrb.gmra.mxu3 %v12488_v15  ;;  %v11730_v32 = vld [vmem:[#allocation8 + $0x124c] sm:$0xf0]  ;;  %v8208_v0 = vld [vmem:[#allocation8 + $0x550] sm:$0xf0] }
 0x108   :  { %4343 = vmatpush.bf16.msra.mxu3 %v9043_v5  ;;  %4318 = vmatpush.bf16.msra.mxu1 %v7955_v14  ;;  %v9871_v41 = vor.u32 %v11730_v32, %v9870_v30  ;;  %v9806_v46 = vld [vmem:[#allocation8 + $0x1190] sm:$0xf]  ;;  %v4079_v1 = vpop.f32.mrf.mxu2  ;;  %v11434_v3 = vld [vmem:[#allocation8 + $0x914] sm:$0xf]  ;;  %v8211_v11 = vor.u32 %v11306_v63, %v8208_v0  ;;  %v8470_v63 = vld [vmem:[#allocation8 + $0x718] sm:$0xf] }
 0x109   :  { %v11714_v47 = vld [vmem:[#allocation8 + $0x11cc] sm:$0xf0]  ;;  %v8720_v4 = vld [vmem:[#allocation8 + $0x950] sm:$0xf0]  ;;  %v4080_v5 = vadd.f32 %v4079_v1, %v4066_v49  ;;  %v11379_v0 = vld [vmem:[#allocation8 + $0x754] sm:$0xf0] }
 0x10a   :  { %4305 = vmatpush.bf16.msra.mxu0 %v9999_v13  ;;  %4331 = vmatpush.bf16.msra.mxu2 %v8467_v16  ;;  %v9807_v56 = vor.u32 %v11714_v47, %v9806_v46  ;;  %v9742_v58 = vld [vmem:[#allocation8 + $0x1110] sm:$0xf]  ;;  %v4092_v2 = vpop.f32.mrf.mxu3  ;;  %v4055_v6 = vpop.f32.mrf.mxu0  ;;  %v11162_v14 = vld [vmem:[#allocation8 + $0x94] sm:$0xf]  ;;  %v8723_v18 = vor.u32 %v11434_v3, %v8720_v4  ;;  %v8022_v47 = vld [vmem:[#allocation8 + $0x398] sm:$0xf] }
 0x10b   :  { %v11698_v59 = vld [vmem:[#allocation8 + $0x114c] sm:$0xf0]  ;;  %v12523_v16 = vadd.f32 %v4092_v2, %v4080_v5  ;;  %v4068_v17 = vpop.f32.mrf.mxu1  ;;  %v7632_v19 = vld [vmem:[#allocation8 + $0xd0] sm:$0xf0] }
 0x10c   :  { %4344 = vmatpush.bf16.msra.mxu3 %v8979_v20  ;;  %4319 = vmatpush.bf16.msra.mxu1 %v7891_v28  ;;  %v9743_v7 = vor.u32 %v11698_v59, %v9742_v58  ;;  %v9678_v12 = vld [vmem:[#allocation8 + $0x1090] sm:$0xf]  ;;  %v11290_v20 = vld [vmem:[#allocation8 + $0x494] sm:$0xf]  ;;  %v7635_v28 = vor.u32 %v11162_v14, %v7632_v19  ;;  %v8535_v59 = vor.u32 %v11395_v52, %v8534_v51  ;;  %v11363_v14 = vld [vmem:[#allocation8 + $0x6d4] sm:$0xf0] }
 0x10d   :  { %v11682_v13 = vld [vmem:[#allocation8 + $0x10cc] sm:$0xf0]  ;;  %v8144_v21 = vld [vmem:[#allocation8 + $0x4d0] sm:$0xf0] }
 0x10e   :  { %4306 = vmatpush.bf16.msra.mxu0 %v9935_v27  ;;  %4332 = vmatpush.bf16.msra.mxu2 %v8403_v29  ;;  %v11418_v22 = vld [vmem:[#allocation8 + $0x894] sm:$0xf]  ;;  %v9679_v24 = vor.u32 %v11682_v13, %v9678_v12  ;;  %v9614_v26 = vld [vmem:[#allocation8 + $0x1010] sm:$0xf]  ;;  %v8147_v29 = vor.u32 %v11290_v20, %v8144_v21  ;;  %v11235_v12 = vld [vmem:[#allocation8 + $0x2d4] sm:$0xf0] }
 0x10f   :  { %v8656_v23 = vld [vmem:[#allocation8 + $0x8d0] sm:$0xf0]  ;;  %v11666_v27 = vld [vmem:[#allocation8 + $0x104c] sm:$0xf0]  ;;  %v8406_v13 = vld [vmem:[#allocation8 + $0x698] sm:$0xf] }
 0x110   :  { %4345 = vmatpush.bf16.msra.mxu3 %v8915_v34  ;;  %4320 = vmatpush.bf16.msra.mxu1 %v7827_v44  ;;  %v11146_v30 = vld [vmem:[#allocation8 + $0x14] sm:$0xf]  ;;  %v8659_v34 = vor.u32 %v11418_v22, %v8656_v23  ;;  %v4081_v38 = vpop.f32.mrf.mxu2  ;;  %v8407_v23 = vor.u32 %v11363_v14, %v8406_v13  ;;  %v11299_v13 = vld [vmem:[#allocation8 + $0x4d4] sm:$0xf0] }
 0x111   :  { %v7568_v32 = vld [vmem:[#allocation8 + $0x50] sm:$0xf0] }
 0x112   :  { %4307 = vmatpush.bf16.msra.mxu0 %v9871_v41  ;;  %4333 = vmatpush.bf16.msra.mxu2 %v8339_v45  ;;  %v11274_v33 = vld [vmem:[#allocation8 + $0x414] sm:$0xf]  ;;  %v4094_v39 = vpop.f32.mrf.mxu3  ;;  %v9615_v45 = vor.u32 %v11666_v27, %v9614_v26  ;;  %v7571_v49 = vor.u32 %v11146_v30, %v7568_v32  ;;  %v7830_v26 = vld [vmem:[#allocation8 + $0x218] sm:$0xf] }
 0x113   :  { %v8080_v35 = vld [vmem:[#allocation8 + $0x450] sm:$0xf0]  ;;  %v11219_v27 = vld [vmem:[#allocation8 + $0x254] sm:$0xf0] }
 0x114   :  { %4346 = vmatpush.bf16.msra.mxu3 %v8851_v50  ;;  %4321 = vmatpush.bf16.msra.mxu1 %v7763_v43  ;;  %v11402_v36 = vld [vmem:[#allocation8 + $0x814] sm:$0xf]  ;;  %v8083_v50 = vor.u32 %v11274_v33, %v8080_v35 }
 0x115   :  { %v8592_v37 = vld [vmem:[#allocation8 + $0x850] sm:$0xf0] }
 0x116   :  { %4308 = vmatpush.bf16.msra.mxu0 %v9807_v56  ;;  %4334 = vmatpush.bf16.msra.mxu2 %v8275_v57  ;;  %v11642_v40 = vld [vmem:[#allocation8 + $0xf94] sm:$0xf]  ;;  %v8595_v53 = vor.u32 %v11402_v36, %v8592_v37  ;;  %v8023_v56 = vor.u32 %v11267_v48, %v8022_v47  ;;  %v7831_v36 = vor.u32 %v11219_v27, %v7830_v26  ;;  %v8278_v47 = vld [vmem:[#allocation8 + $0x598] sm:$0xf] }
 0x117   :  { %v9552_v41 = vld [vmem:[#allocation8 + $0xfd0] sm:$0xf0]  ;;  %v11331_v48 = vld [vmem:[#allocation8 + $0x5d4] sm:$0xf0] }
 0x118   :  { %4347 = vmatpush.bf16.msra.mxu3 %v8787_v61  ;;  %4322 = vmatpush.bf16.msra.mxu1 %v7699_v10  ;;  %v11770_v44 = vld [vmem:[#allocation8 + $0x1394] sm:$0xf]  ;;  %v9555_v54 = vor.u32 %v11642_v40, %v9552_v41  ;;  %v7958_v61 = vld [vmem:[#allocation8 + $0x318] sm:$0xf] }
 0x119   :  { %v10064_v46 = vld [vmem:[#allocation8 + $0x13d0] sm:$0xf0]  ;;  %v7959_v3 = vor.u32 %v11251_v62, %v7958_v61  ;;  %v11155_v26 = vld [vmem:[#allocation8 + $0x54] sm:$0xf0] }
 0x11a   :  { %4309 = vmatpush.bf16.msra.mxu0 %v9743_v7  ;;  %4335 = vmatpush.bf16.msra.mxu2 %v8211_v11  ;;  %v10067_v55 = vor.u32 %v11770_v44, %v10064_v46  ;;  %v11626_v43 = vld [vmem:[#allocation8 + $0xf14] sm:$0xf]  ;;  %v8471_v7 = vor.u32 %v11379_v0, %v8470_v63  ;;  %v7894_v11 = vld [vmem:[#allocation8 + $0x298] sm:$0xf] }
 0x11b   :  { %v9488_v57 = vld [vmem:[#allocation8 + $0xf50] sm:$0xf0]  ;;  %v7895_v19 = vor.u32 %v11235_v12, %v7894_v11  ;;  %v7766_v44 = vld [vmem:[#allocation8 + $0x198] sm:$0xf] }
 0x11c   :  { %4348 = vmatpush.bf16.msra.mxu3 %v8723_v18  ;;  %4323 = vmatpush.bf16.msra.mxu1 %v7635_v28  ;;  %v11754_v58 = vld [vmem:[#allocation8 + $0x1314] sm:$0xf]  ;;  %v9491_v1 = vor.u32 %v11626_v43, %v9488_v57  ;;  %v8342_v28 = vld [vmem:[#allocation8 + $0x618] sm:$0xf] }
 0x11d   :  { %v10000_v60 = vld [vmem:[#allocation8 + $0x1350] sm:$0xf0]  ;;  %v11187_v43 = vld [vmem:[#allocation8 + $0x154] sm:$0xf0] }
 0x11e   :  { %4310 = vmatpush.bf16.msra.mxu0 %v9679_v24  ;;  %4336 = vmatpush.bf16.msra.mxu2 %v8147_v29  ;;  %v10003_v2 = vor.u32 %v11754_v58, %v10000_v60  ;;  %v11610_v4 = vld [vmem:[#allocation8 + $0xe94] sm:$0xf]  ;;  %v11347_v29 = vld [vmem:[#allocation8 + $0x654] sm:$0xf0] }
 0x11f   :  { %v9424_v5 = vld [vmem:[#allocation8 + $0xed0] sm:$0xf0]  ;;  %v8343_v40 = vor.u32 %v11347_v29, %v8342_v28  ;;  %v8214_v58 = vld [vmem:[#allocation8 + $0x518] sm:$0xf] }
 0x120   :  { %4349 = vmatpush.bf16.msra.mxu3 %v8659_v34  ;;  %4324 = vmatpush.bf16.msra.mxu1 %v7571_v49  ;;  %v11738_v6 = vld [vmem:[#allocation8 + $0x1294] sm:$0xf]  ;;  %v9427_v17 = vor.u32 %v11610_v4, %v9424_v5  ;;  %v4118_v34 = vpop.f32.mrf.mxu1  ;;  %v11171_v11 = vld [vmem:[#allocation8 + $0xd4] sm:$0xf0] }
 0x121   :  { %v9936_v10 = vld [vmem:[#allocation8 + $0x12d0] sm:$0xf0]  ;;  %v8150_v12 = vld [vmem:[#allocation8 + $0x498] sm:$0xf] }
 0x122   :  { %4311 = vmatpush.bf16.msra.mxu0 %v9615_v45  ;;  %4337 = vmatpush.bf16.msra.mxu2 %v8083_v50  ;;  %v9939_v18 = vor.u32 %v11738_v6, %v9936_v10  ;;  %v11594_v20 = vld [vmem:[#allocation8 + $0xe14] sm:$0xf]  ;;  %v4105_v30 = vpop.f32.mrf.mxu0  ;;  %v11203_v45 = vld [vmem:[#allocation8 + $0x1d4] sm:$0xf0] }
 0x123   :  { %4325 = vmatmul.bf16.vlgmr.msra.gmra.mxu1 %v12484_v8  ;;  %v9360_v21 = vld [vmem:[#allocation8 + $0xe50] sm:$0xf0]  ;;  %v4106_v33 = vadd.f32 %v4105_v30, %v12523_v16  ;;  %v7767_v50 = vor.u32 %v11203_v45, %v7766_v44  ;;  %v7638_v10 = vld [vmem:[#allocation8 + $0x98] sm:$0xf]  ;;  %v8024_v44 = vld [vmem:[#allocation8 + $0x3d8] sm:$0xf0] }
 0x124   :  { %4350 = vmatpush.bf16.msra.mxu3 %v8595_v53  ;;  %4369 = vmatpush.bf16.msrb.mxu1 %v10067_v55  ;;  %v11722_v22 = vld [vmem:[#allocation8 + $0x1214] sm:$0xf]  ;;  %v9363_v32 = vor.u32 %v11594_v20, %v9360_v21  ;;  %v7639_v20 = vor.u32 %v11171_v11, %v7638_v10  ;;  %v8086_v27 = vld [vmem:[#allocation8 + $0x418] sm:$0xf] }
 0x125   :  { %4312 = vmatmul.bf16.vlgmr.msra.gmra.mxu0 %v12496_v31  ;;  %4338 = vmatmul.bf16.vlgmr.msra.gmra.mxu2 %v12493_v25  ;;  %v9872_v24 = vld [vmem:[#allocation8 + $0x1250] sm:$0xf0]  ;;  %v12530_v46 = vadd.f32 %v4118_v34, %v4106_v33  ;;  %v11283_v28 = vld [vmem:[#allocation8 + $0x454] sm:$0xf0] }
 0x126   :  { %4356 = vmatpush.bf16.msrb.mxu0 %v9555_v54  ;;  %4382 = vmatpush.bf16.msrb.mxu2 %v8023_v56  ;;  %v9875_v35 = vor.u32 %v11722_v22, %v9872_v24  ;;  %v11578_v37 = vld [vmem:[#allocation8 + $0xd94] sm:$0xf]  ;;  %v8279_v54 = vor.u32 %v11331_v48, %v8278_v47  ;;  %v7702_v56 = vld [vmem:[#allocation8 + $0x118] sm:$0xf]  ;;  %v8151_v24 = vor.u32 %v11299_v13, %v8150_v12 }
 0x127   :  { %4351 = vmatmul.bf16.vlgmr.msra.gmra.mxu3 %v12486_v9  ;;  %v9296_v38 = vld [vmem:[#allocation8 + $0xdd0] sm:$0xf0]  ;;  %v9046_v30 = vld [vmem:[#allocation8 + $0xb98] sm:$0xf]  ;;  %v8087_v45 = vor.u32 %v11283_v28, %v8086_v27 }
 0x128   :  { %4395 = vmatpush.bf16.msrb.mxu3 %v8535_v59  ;;  %4370 = vmatpush.bf16.msrb.mxu1 %v10003_v2  ;;  %v11706_v39 = vld [vmem:[#allocation8 + $0x1194] sm:$0xf]  ;;  %v9299_v49 = vor.u32 %v11578_v37, %v9296_v38  ;;  %v4131_v57 = vpop.f32.mrf.mxu2  ;;  %v11315_v59 = vld [vmem:[#allocation8 + $0x554] sm:$0xf0]  ;;  %v4120_v0 = vpop.f32.mrf.mxu1  ;;  %v7703_v2 = vor.u32 %v11187_v43, %v7702_v56  ;;  %v11243_v56 = vld [vmem:[#allocation8 + $0x31c] sm:$0xf] }
 0x129   :  { %v9808_v41 = vld [vmem:[#allocation8 + $0x11d0] sm:$0xf0]  ;;  %v8215_v6 = vor.u32 %v11315_v59, %v8214_v58  ;;  %v9558_v33 = vld [vmem:[#allocation8 + $0xf98] sm:$0xf]  ;;  %v7960_v43 = vld [vmem:[#allocation8 + $0x358] sm:$0xf0] }
 0x12a   :  { %4357 = vmatpush.bf16.msrb.mxu0 %v9491_v1  ;;  %4383 = vmatpush.bf16.msrb.mxu2 %v7959_v3  ;;  %v9811_v16 = vor.u32 %v11706_v39, %v9808_v41  ;;  %v11562_v51 = vld [vmem:[#allocation8 + $0xd14] sm:$0xf]  ;;  %v4144_v60 = vpop.f32.mrf.mxu3  ;;  %v4107_v61 = vpop.f32.mrf.mxu0  ;;  %v10070_v37 = vld [vmem:[#allocation8 + $0x1398] sm:$0xf]  ;;  %v11259_v41 = vld [vmem:[#allocation8 + $0x39c] sm:$0xf]  ;;  %v7963_v0 = vor.u32 %v11243_v56, %v7960_v43 }
 0x12b   :  { %v9232_v52 = vld [vmem:[#allocation8 + $0xd50] sm:$0xf0]  ;;  %v12532_v63 = vadd.f32 %v4144_v60, %v4131_v57  ;;  %v11779_v38 = vld [vmem:[#allocation8 + $0x13d4] sm:$0xf0] }
 0x12c   :  { %4396 = vmatpush.bf16.msrb.mxu3 %v8471_v7  ;;  %4371 = vmatpush.bf16.msrb.mxu1 %v9939_v18  ;;  %v11690_v53 = vld [vmem:[#allocation8 + $0x1114] sm:$0xf]  ;;  %v9235_v62 = vor.u32 %v11562_v51, %v9232_v52  ;;  %v9494_v51 = vld [vmem:[#allocation8 + $0xf18] sm:$0xf]  ;;  %v8027_v52 = vor.u32 %v11259_v41, %v8024_v44 }
 0x12d   :  { %v9744_v55 = vld [vmem:[#allocation8 + $0x1150] sm:$0xf0]  ;;  %v8918_v60 = vld [vmem:[#allocation8 + $0xa98] sm:$0xf] }
 0x12e   :  { %4358 = vmatpush.bf16.msrb.mxu0 %v9427_v17  ;;  %4384 = vmatpush.bf16.msrb.mxu2 %v7895_v19  ;;  %v9747_v1 = vor.u32 %v11690_v53, %v9744_v55  ;;  %v11546_v3 = vld [vmem:[#allocation8 + $0xc94] sm:$0xf]  ;;  %v11635_v53 = vld [vmem:[#allocation8 + $0xf54] sm:$0xf0] }
 0x12f   :  { %v9168_v4 = vld [vmem:[#allocation8 + $0xcd0] sm:$0xf0]  ;;  %v11763_v55 = vld [vmem:[#allocation8 + $0x1354] sm:$0xf0]  ;;  %v9495_v58 = vor.u32 %v11635_v53, %v9494_v51  ;;  %v11179_v53 = vld [vmem:[#allocation8 + $0x11c] sm:$0xf] }
 0x130   :  { %4397 = vmatpush.bf16.msrb.mxu3 %v8407_v23  ;;  %4372 = vmatpush.bf16.msrb.mxu1 %v9875_v35  ;;  %v11674_v5 = vld [vmem:[#allocation8 + $0x1094] sm:$0xf]  ;;  %v9171_v14 = vor.u32 %v11546_v3, %v9168_v4  ;;  %v7574_v23 = vld [vmem:[#allocation8 + $0x18] sm:$0xf]  ;;  %v4133_v29 = vpop.f32.mrf.mxu2  ;;  %v11227_v4 = vld [vmem:[#allocation8 + $0x29c] sm:$0xf] }
 0x131   :  { %v9680_v7 = vld [vmem:[#allocation8 + $0x10d0] sm:$0xf0]  ;;  %v11491_v61 = vld [vmem:[#allocation8 + $0xad4] sm:$0xf0] }
 0x132   :  { %4359 = vmatpush.bf16.msrb.mxu0 %v9363_v32  ;;  %4385 = vmatpush.bf16.msrb.mxu2 %v7831_v36  ;;  %v11530_v17 = vld [vmem:[#allocation8 + $0xc14] sm:$0xf]  ;;  %v9683_v19 = vor.u32 %v11674_v5, %v9680_v7  ;;  %v11523_v32 = vld [vmem:[#allocation8 + $0xbd4] sm:$0xf0]  ;;  %v4146_v34 = vpop.f32.mrf.mxu3  ;;  %v7896_v5 = vld [vmem:[#allocation8 + $0x2d8] sm:$0xf0] }
 0x133   :  { %v9104_v18 = vld [vmem:[#allocation8 + $0xc50] sm:$0xf0]  ;;  %v11651_v36 = vld [vmem:[#allocation8 + $0xfd4] sm:$0xf0]  ;;  %v9047_v47 = vor.u32 %v11523_v32, %v9046_v30 }
 0x134   :  { %4398 = vmatpush.bf16.msrb.mxu3 %v8343_v40  ;;  %4373 = vmatpush.bf16.msrb.mxu1 %v9811_v16  ;;  %v11658_v21 = vld [vmem:[#allocation8 + $0x1014] sm:$0xf]  ;;  %v9107_v35 = vor.u32 %v11530_v17, %v9104_v18  ;;  %v7575_v40 = vor.u32 %v11155_v26, %v7574_v23  ;;  %v9559_v48 = vor.u32 %v11651_v36, %v9558_v33  ;;  %v8982_v16 = vld [vmem:[#allocation8 + $0xb18] sm:$0xf] }
 0x135   :  { %v9616_v22 = vld [vmem:[#allocation8 + $0x1050] sm:$0xf0]  ;;  %v11747_v3 = vld [vmem:[#allocation8 + $0x12d4] sm:$0xf0] }
 0x136   :  { %4360 = vmatpush.bf16.msrb.mxu0 %v9299_v49  ;;  %4386 = vmatpush.bf16.msrb.mxu2 %v7767_v50  ;;  %v9619_v39 = vor.u32 %v11658_v21, %v9616_v22  ;;  %v10071_v49 = vor.u32 %v11779_v38, %v10070_v37  ;;  %v11507_v50 = vld [vmem:[#allocation8 + $0xb54] sm:$0xf0]  ;;  %v7832_v21 = vld [vmem:[#allocation8 + $0x258] sm:$0xf0] }
 0x137   :  { %v8983_v57 = vor.u32 %v11507_v50, %v8982_v16  ;;  %v8854_v11 = vld [vmem:[#allocation8 + $0xa18] sm:$0xf]  ;;  %v11195_v37 = vld [vmem:[#allocation8 + $0x19c] sm:$0xf] }
 0x138   :  { %4399 = vmatpush.bf16.msrb.mxu3 %v8279_v54  ;;  %4374 = vmatpush.bf16.msrb.mxu1 %v9747_v1  ;;  %v10006_v54 = vld [vmem:[#allocation8 + $0x1318] sm:$0xf]  ;;  %v7768_v38 = vld [vmem:[#allocation8 + $0x1d8] sm:$0xf0] }
 0x139   :  { %v10007_v59 = vor.u32 %v11763_v55, %v10006_v54  ;;  %v11619_v1 = vld [vmem:[#allocation8 + $0xed4] sm:$0xf0]  ;;  %v7704_v54 = vld [vmem:[#allocation8 + $0x158] sm:$0xf0] }
 0x13a   :  { %4361 = vmatpush.bf16.msrb.mxu0 %v9235_v62  ;;  %4387 = vmatpush.bf16.msrb.mxu2 %v7703_v2  ;;  %v9430_v62 = vld [vmem:[#allocation8 + $0xe98] sm:$0xf] }
 0x13b   :  { %v9942_v2 = vld [vmem:[#allocation8 + $0x1298] sm:$0xf]  ;;  %v9431_v7 = vor.u32 %v11619_v1, %v9430_v62 }
 0x13c   :  { %4400 = vmatpush.bf16.msrb.mxu3 %v8215_v6  ;;  %4375 = vmatpush.bf16.msrb.mxu1 %v9683_v19  ;;  %v8919_v6 = vor.u32 %v11491_v61, %v8918_v60  ;;  %v9943_v10 = vor.u32 %v11747_v3, %v9942_v2  ;;  %v11475_v12 = vld [vmem:[#allocation8 + $0xa54] sm:$0xf0] }
 0x13d   :  { %v9366_v13 = vld [vmem:[#allocation8 + $0xe18] sm:$0xf]  ;;  %v8855_v22 = vor.u32 %v11475_v12, %v8854_v11 }
 0x13e   :  { %4362 = vmatpush.bf16.msrb.mxu0 %v9171_v14  ;;  %4388 = vmatpush.bf16.msrb.mxu2 %v7639_v20  ;;  %v7899_v14 = vor.u32 %v11227_v4, %v7896_v5  ;;  %v11603_v17 = vld [vmem:[#allocation8 + $0xe54] sm:$0xf0]  ;;  %v11211_v20 = vld [vmem:[#allocation8 + $0x21c] sm:$0xf] }
 0x13f   :  { %v9878_v18 = vld [vmem:[#allocation8 + $0x1218] sm:$0xf]  ;;  %v9367_v26 = vor.u32 %v11603_v17, %v9366_v13  ;;  %v7835_v33 = vor.u32 %v11211_v20, %v7832_v21  ;;  %v11163_v4 = vld [vmem:[#allocation8 + $0x9c] sm:$0xf] }
 0x140   :  { %4401 = vmatpush.bf16.msrb.mxu3 %v8151_v24  ;;  %4376 = vmatpush.bf16.msrb.mxu1 %v9619_v39  ;;  %v11731_v19 = vld [vmem:[#allocation8 + $0x1254] sm:$0xf0]  ;;  %v4170_v24 = vpop.f32.mrf.mxu1  ;;  %v7640_v5 = vld [vmem:[#allocation8 + $0xd8] sm:$0xf0] }
 0x141   :  { %v9879_v27 = vor.u32 %v11731_v19, %v9878_v18  ;;  %v8790_v28 = vld [vmem:[#allocation8 + $0x998] sm:$0xf]  ;;  %v7643_v19 = vor.u32 %v11163_v4, %v7640_v5  ;;  %v11147_v21 = vld [vmem:[#allocation8 + $0x1c] sm:$0xf] }
 0x142   :  { %4363 = vmatpush.bf16.msrb.mxu0 %v9107_v35  ;;  %4389 = vmatpush.bf16.msrb.mxu2 %v7575_v40  ;;  %v4157_v23 = vpop.f32.mrf.mxu0  ;;  %v11459_v29 = vld [vmem:[#allocation8 + $0x9d4] sm:$0xf0]  ;;  %v11339_v4 = vld [vmem:[#allocation8 + $0x61c] sm:$0xf] }
 0x143   :  { %4377 = vmatmul.bf16.vlgmr.msrb.gmra.mxu1 %v12496_v31  ;;  %v9302_v30 = vld [vmem:[#allocation8 + $0xd98] sm:$0xf]  ;;  %v4158_v32 = vadd.f32 %v4157_v23, %v12532_v63  ;;  %v8791_v40 = vor.u32 %v11459_v29, %v8790_v28  ;;  %v7771_v63 = vor.u32 %v11195_v37, %v7768_v38  ;;  %v11387_v23 = vld [vmem:[#allocation8 + $0x79c] sm:$0xf] }
 0x144   :  { %4402 = vmatpush.bf16.msrb.mxu3 %v8087_v45  ;;  %4421 = vmatpush.bf16.msra.mxu1 %v9559_v48  ;;  %v11587_v34 = vld [vmem:[#allocation8 + $0xdd4] sm:$0xf0]  ;;  %v9048_v29 = vld [vmem:[#allocation8 + $0xbd8] sm:$0xf0] }
 0x145   :  { %4364 = vmatmul.bf16.vlgmr.msrb.gmra.mxu0 %v12488_v15  ;;  %4390 = vmatmul.bf16.vlgmr.msrb.gmra.mxu2 %v12484_v8  ;;  %v9814_v35 = vld [vmem:[#allocation8 + $0x1198] sm:$0xf]  ;;  %v4171_v39 = vadd.f32 %v4170_v24, %v4158_v32  ;;  %v9303_v41 = vor.u32 %v11587_v34, %v9302_v30  ;;  %v8536_v24 = vld [vmem:[#allocation8 + $0x7d8] sm:$0xf0] }
 0x146   :  { %4408 = vmatpush.bf16.msra.mxu0 %v9047_v47  ;;  %4434 = vmatpush.bf16.msra.mxu2 %v10071_v49  ;;  %v11715_v36 = vld [vmem:[#allocation8 + $0x11d4] sm:$0xf0]  ;;  %v11643_v30 = vld [vmem:[#allocation8 + $0xf9c] sm:$0xf]  ;;  %v8539_v38 = vor.u32 %v11387_v23, %v8536_v24 }
 0x147   :  { %4403 = vmatmul.bf16.vlgmr.msrb.gmra.mxu3 %v12493_v25  ;;  %v9815_v44 = vor.u32 %v11715_v36, %v9814_v35  ;;  %v8726_v45 = vld [vmem:[#allocation8 + $0x918] sm:$0xf]  ;;  %v9560_v32 = vld [vmem:[#allocation8 + $0xfd8] sm:$0xf0] }
 0x148   :  { %4447 = vmatpush.bf16.msra.mxu3 %v8027_v52  ;;  %4422 = vmatpush.bf16.msra.mxu1 %v9495_v58  ;;  %v11443_v47 = vld [vmem:[#allocation8 + $0x954] sm:$0xf0]  ;;  %v4183_v49 = vpop.f32.mrf.mxu2  ;;  %v11771_v35 = vld [vmem:[#allocation8 + $0x139c] sm:$0xf] }
 0x149   :  { %v9238_v48 = vld [vmem:[#allocation8 + $0xd18] sm:$0xf]  ;;  %v12539_v52 = vadd.f32 %v4183_v49, %v4171_v39  ;;  %v8727_v56 = vor.u32 %v11443_v47, %v8726_v45  ;;  %v10072_v36 = vld [vmem:[#allocation8 + $0x13d8] sm:$0xf0] }
 0x14a   :  { %4409 = vmatpush.bf16.msra.mxu0 %v8983_v57  ;;  %4435 = vmatpush.bf16.msra.mxu2 %v10007_v59  ;;  %v11571_v16 = vld [vmem:[#allocation8 + $0xd54] sm:$0xf0]  ;;  %v12541_v55 = vpop.f32.mrf.mxu3  ;;  %v4159_v43 = vpop.f32.mrf.mxu0  ;;  %v11499_v45 = vld [vmem:[#allocation8 + $0xb1c] sm:$0xf]  ;;  %v10075_v47 = vor.u32 %v11771_v35, %v10072_v36 }
 0x14b   :  { %v9750_v50 = vld [vmem:[#allocation8 + $0x1118] sm:$0xf]  ;;  %v4172_v57 = vpop.f32.mrf.mxu1  ;;  %v9239_v58 = vor.u32 %v11571_v16, %v9238_v48  ;;  %v8984_v48 = vld [vmem:[#allocation8 + $0xb58] sm:$0xf0] }
 0x14c   :  { %4448 = vmatpush.bf16.msra.mxu3 %v7963_v0  ;;  %4423 = vmatpush.bf16.msra.mxu1 %v9431_v7  ;;  %v11699_v51 = vld [vmem:[#allocation8 + $0x1154] sm:$0xf0]  ;;  %v7707_v0 = vor.u32 %v11179_v53, %v7704_v54  ;;  %v11627_v49 = vld [vmem:[#allocation8 + $0xf1c] sm:$0xf]  ;;  %v8987_v53 = vor.u32 %v11499_v45, %v8984_v48 }
 0x14d   :  { %v9751_v59 = vor.u32 %v11699_v51, %v9750_v50  ;;  %v8662_v60 = vld [vmem:[#allocation8 + $0x898] sm:$0xf]  ;;  %v11755_v16 = vld [vmem:[#allocation8 + $0x131c] sm:$0xf] }
 0x14e   :  { %4410 = vmatpush.bf16.msra.mxu0 %v8919_v6  ;;  %4436 = vmatpush.bf16.msra.mxu2 %v9943_v10  ;;  %v11427_v61 = vld [vmem:[#allocation8 + $0x8d4] sm:$0xf0]  ;;  %v10008_v50 = vld [vmem:[#allocation8 + $0x1358] sm:$0xf0] }
 0x14f   :  { %v9174_v62 = vld [vmem:[#allocation8 + $0xc98] sm:$0xf]  ;;  %v8663_v6 = vor.u32 %v11427_v61, %v8662_v60  ;;  %v8408_v43 = vld [vmem:[#allocation8 + $0x6d8] sm:$0xf0] }
 0x150   :  { %4449 = vmatpush.bf16.msra.mxu3 %v7899_v14  ;;  %4424 = vmatpush.bf16.msra.mxu1 %v9367_v26  ;;  %v11555_v1 = vld [vmem:[#allocation8 + $0xcd4] sm:$0xf0]  ;;  %v4185_v18 = vpop.f32.mrf.mxu2  ;;  %v11515_v26 = vld [vmem:[#allocation8 + $0xb9c] sm:$0xf] }
 0x151   :  { %v9686_v2 = vld [vmem:[#allocation8 + $0x1098] sm:$0xf]  ;;  %v9175_v11 = vor.u32 %v11555_v1, %v9174_v62  ;;  %v9051_v39 = vor.u32 %v11515_v26, %v9048_v29  ;;  %v11483_v57 = vld [vmem:[#allocation8 + $0xa9c] sm:$0xf] }
 0x152   :  { %4411 = vmatpush.bf16.msra.mxu0 %v8855_v22  ;;  %4437 = vmatpush.bf16.msra.mxu2 %v9879_v27  ;;  %v11683_v3 = vld [vmem:[#allocation8 + $0x10d4] sm:$0xf0]  ;;  %v7576_v22 = vld [vmem:[#allocation8 + $0x58] sm:$0xf0]  ;;  %v4198_v27 = vpop.f32.mrf.mxu3 }
 0x153   :  { %v8598_v7 = vld [vmem:[#allocation8 + $0x818] sm:$0xf]  ;;  %v9687_v12 = vor.u32 %v11683_v3, %v9686_v2  ;;  %v7579_v37 = vor.u32 %v11147_v21, %v7576_v22  ;;  %v11611_v60 = vld [vmem:[#allocation8 + $0xe9c] sm:$0xf] }
 0x154   :  { %4450 = vmatpush.bf16.msra.mxu3 %v7835_v33  ;;  %4425 = vmatpush.bf16.msra.mxu1 %v9303_v41  ;;  %v11411_v10 = vld [vmem:[#allocation8 + $0x854] sm:$0xf0]  ;;  %v11371_v41 = vld [vmem:[#allocation8 + $0x71c] sm:$0xf] }
 0x155   :  { %v9110_v13 = vld [vmem:[#allocation8 + $0xc18] sm:$0xf]  ;;  %v8599_v28 = vor.u32 %v11411_v10, %v8598_v7  ;;  %v9432_v61 = vld [vmem:[#allocation8 + $0xed8] sm:$0xf0] }
 0x156   :  { %4412 = vmatpush.bf16.msra.mxu0 %v8791_v40  ;;  %4438 = vmatpush.bf16.msra.mxu2 %v9815_v44  ;;  %v11539_v14 = vld [vmem:[#allocation8 + $0xc54] sm:$0xf0]  ;;  %v9563_v40 = vor.u32 %v11643_v30, %v9560_v32  ;;  %v8472_v44 = vld [vmem:[#allocation8 + $0x758] sm:$0xf0]  ;;  %v9435_v3 = vor.u32 %v11611_v60, %v9432_v61 }
 0x157   :  { %v9622_v17 = vld [vmem:[#allocation8 + $0x1018] sm:$0xf]  ;;  %v9111_v33 = vor.u32 %v11539_v14, %v9110_v13  ;;  %v8475_v51 = vor.u32 %v11371_v41, %v8472_v44  ;;  %v11739_v62 = vld [vmem:[#allocation8 + $0x129c] sm:$0xf] }
 0x158   :  { %4451 = vmatpush.bf16.msra.mxu3 %v7771_v63  ;;  %4426 = vmatpush.bf16.msra.mxu1 %v9239_v58  ;;  %v11667_v20 = vld [vmem:[#allocation8 + $0x1054] sm:$0xf0]  ;;  %v9496_v63 = vld [vmem:[#allocation8 + $0xf58] sm:$0xf0]  ;;  %v10011_v58 = vor.u32 %v11755_v16, %v10008_v50 }
 0x159   :  { %v9623_v34 = vor.u32 %v11667_v20, %v9622_v17  ;;  %v9499_v54 = vor.u32 %v11627_v49, %v9496_v63  ;;  %v8344_v5 = vld [vmem:[#allocation8 + $0x658] sm:$0xf0] }
 0x15a   :  { %4413 = vmatpush.bf16.msra.mxu0 %v8727_v56  ;;  %4439 = vmatpush.bf16.msra.mxu2 %v9751_v59  ;;  %v11355_v56 = vld [vmem:[#allocation8 + $0x69c] sm:$0xf]  ;;  %v8347_v17 = vor.u32 %v11339_v4, %v8344_v5 }
 0x15b   :  { %v8920_v59 = vld [vmem:[#allocation8 + $0xad8] sm:$0xf0]  ;;  %v8411_v1 = vor.u32 %v11355_v56, %v8408_v43 }
 0x15c   :  { %4452 = vmatpush.bf16.msra.mxu3 %v7707_v0  ;;  %4427 = vmatpush.bf16.msra.mxu1 %v9175_v11  ;;  %v9944_v0 = vld [vmem:[#allocation8 + $0x12d8] sm:$0xf0]  ;;  %v8923_v2 = vor.u32 %v11483_v57, %v8920_v59 }
 0x15d   :  { %v9947_v7 = vor.u32 %v11739_v62, %v9944_v0  ;;  %v8856_v10 = vld [vmem:[#allocation8 + $0xa58] sm:$0xf0] }
 0x15e   :  { %4414 = vmatpush.bf16.msra.mxu0 %v8663_v6  ;;  %4440 = vmatpush.bf16.msra.mxu2 %v9687_v12  ;;  %v11467_v6 = vld [vmem:[#allocation8 + $0xa1c] sm:$0xf] }
 0x15f   :  { %v11595_v11 = vld [vmem:[#allocation8 + $0xe1c] sm:$0xf] }
 0x160   :  { %4453 = vmatpush.bf16.msra.mxu3 %v7643_v19  ;;  %4428 = vmatpush.bf16.msra.mxu1 %v9111_v33  ;;  %v9368_v12 = vld [vmem:[#allocation8 + $0xe58] sm:$0xf0]  ;;  %v8859_v19 = vor.u32 %v11467_v6, %v8856_v10  ;;  %v4222_v26 = vpop.f32.mrf.mxu1 }
 0x161   :  { %v11723_v13 = vld [vmem:[#allocation8 + $0x121c] sm:$0xf]  ;;  %v9371_v20 = vor.u32 %v11595_v11, %v9368_v12 }
 0x162   :  { %4415 = vmatpush.bf16.msra.mxu0 %v8599_v28  ;;  %4441 = vmatpush.bf16.msra.mxu2 %v9623_v34  ;;  %v9880_v14 = vld [vmem:[#allocation8 + $0x1258] sm:$0xf0]  ;;  %v4209_v18 = vpop.f32.mrf.mxu0 }
 0x163   :  { %4429 = vmatmul.bf16.vlgmr.msra.gmra.mxu1 %v12488_v15  ;;  %v4210_v21 = vadd.f32 %v4209_v18, %v12541_v55  ;;  %v11323_v22 = vld [vmem:[#allocation8 + $0x59c] sm:$0xf]  ;;  %v9883_v27 = vor.u32 %v11723_v13, %v9880_v14 }
 0x164   :  { %4454 = vmatpush.bf16.msra.mxu3 %v7579_v37  ;;  %4473 = vmatpush.bf16.msrb.mxu1 %v9051_v39  ;;  %v8280_v23 = vld [vmem:[#allocation8 + $0x5d8] sm:$0xf0] }
 0x165   :  { %4442 = vmatmul.bf16.vlgmr.msra.gmra.mxu2 %v12496_v31  ;;  %4416 = vmatmul.bf16.vlgmr.msra.gmra.mxu0 %v12486_v9  ;;  %v11451_v24 = vld [vmem:[#allocation8 + $0x99c] sm:$0xf]  ;;  %v4223_v34 = vadd.f32 %v4222_v26, %v4210_v21  ;;  %v8283_v35 = vor.u32 %v11323_v22, %v8280_v23  ;;  %v8030_v21 = vld [vmem:[#allocation8 + $0x3a0] sm:$0xf] }
 0x166   :  { %4460 = vmatpush.bf16.msrb.mxu0 %v8539_v38  ;;  %4486 = vmatpush.bf16.msrb.mxu2 %v9563_v40  ;;  %v8792_v28 = vld [vmem:[#allocation8 + $0x9d8] sm:$0xf0]  ;;  %v11268_v22 = vld [vmem:[#allocation8 + $0x3dc] sm:$0xf0] }
 0x167   :  { %4455 = vmatmul.bf16.vlgmr.msra.gmra.mxu3 %v12484_v8  ;;  %v11579_v29 = vld [vmem:[#allocation8 + $0xd9c] sm:$0xf]  ;;  %v8795_v36 = vor.u32 %v11451_v24, %v8792_v28  ;;  %v8542_v23 = vld [vmem:[#allocation8 + $0x7a0] sm:$0xf] }
 0x168   :  { %4499 = vmatpush.bf16.msrb.mxu3 %v10075_v47  ;;  %4474 = vmatpush.bf16.msrb.mxu1 %v8987_v53  ;;  %v9304_v30 = vld [vmem:[#allocation8 + $0xdd8] sm:$0xf0]  ;;  %v4235_v38 = vpop.f32.mrf.mxu2  ;;  %v4224_v59 = vpop.f32.mrf.mxu1  ;;  %v11396_v26 = vld [vmem:[#allocation8 + $0x7dc] sm:$0xf0] }
 0x169   :  { %v11707_v32 = vld [vmem:[#allocation8 + $0x119c] sm:$0xf]  ;;  %v9307_v37 = vor.u32 %v11579_v29, %v9304_v30  ;;  %v4236_v44 = vadd.f32 %v4235_v38, %v4223_v34  ;;  %v11524_v28 = vld [vmem:[#allocation8 + $0xbdc] sm:$0xf0] }
 0x16a   :  { %4461 = vmatpush.bf16.msrb.mxu0 %v8475_v51  ;;  %4487 = vmatpush.bf16.msrb.mxu2 %v9499_v54  ;;  %v9816_v33 = vld [vmem:[#allocation8 + $0x11d8] sm:$0xf0]  ;;  %v4248_v49 = vpop.f32.mrf.mxu3  ;;  %v4211_v53 = vpop.f32.mrf.mxu0  ;;  %v7966_v38 = vld [vmem:[#allocation8 + $0x320] sm:$0xf] }
 0x16b   :  { %v11307_v55 = vld [vmem:[#allocation8 + $0x51c] sm:$0xf]  ;;  %v9819_v41 = vor.u32 %v11707_v32, %v9816_v33  ;;  %v12548_v51 = vadd.f32 %v4248_v49, %v4236_v44  ;;  %v9566_v32 = vld [vmem:[#allocation8 + $0xfa0] sm:$0xf] }
 0x16c   :  { %4500 = vmatpush.bf16.msrb.mxu3 %v10011_v58  ;;  %4475 = vmatpush.bf16.msrb.mxu1 %v8923_v2  ;;  %v8216_v39 = vld [vmem:[#allocation8 + $0x558] sm:$0xf0]  ;;  %v11652_v33 = vld [vmem:[#allocation8 + $0xfdc] sm:$0xf0] }
 0x16d   :  { %v11435_v40 = vld [vmem:[#allocation8 + $0x91c] sm:$0xf]  ;;  %v8219_v50 = vor.u32 %v11307_v55, %v8216_v39  ;;  %v11252_v55 = vld [vmem:[#allocation8 + $0x35c] sm:$0xf0] }
 0x16e   :  { %4462 = vmatpush.bf16.msrb.mxu0 %v8411_v1  ;;  %4488 = vmatpush.bf16.msrb.mxu2 %v9435_v3  ;;  %v8728_v45 = vld [vmem:[#allocation8 + $0x958] sm:$0xf0]  ;;  %v8478_v39 = vld [vmem:[#allocation8 + $0x720] sm:$0xf]  ;;  %v7967_v49 = vor.u32 %v11252_v55, %v7966_v38 }
 0x16f   :  { %v11563_v47 = vld [vmem:[#allocation8 + $0xd1c] sm:$0xf]  ;;  %v8731_v54 = vor.u32 %v11435_v40, %v8728_v45  ;;  %v9567_v40 = vor.u32 %v11652_v33, %v9566_v32  ;;  %v8990_v44 = vld [vmem:[#allocation8 + $0xb20] sm:$0xf] }
 0x170   :  { %4501 = vmatpush.bf16.msrb.mxu3 %v9947_v7  ;;  %4476 = vmatpush.bf16.msrb.mxu1 %v8859_v19  ;;  %v9240_v48 = vld [vmem:[#allocation8 + $0xd58] sm:$0xf0]  ;;  %v4237_v13 = vpop.f32.mrf.mxu2  ;;  %v11508_v45 = vld [vmem:[#allocation8 + $0xb5c] sm:$0xf0] }
 0x171   :  { %v11691_v63 = vld [vmem:[#allocation8 + $0x111c] sm:$0xf]  ;;  %v9243_v56 = vor.u32 %v11563_v47, %v9240_v48  ;;  %v9502_v47 = vld [vmem:[#allocation8 + $0xf20] sm:$0xf] }
 0x172   :  { %4463 = vmatpush.bf16.msrb.mxu0 %v8347_v17  ;;  %4489 = vmatpush.bf16.msrb.mxu2 %v9371_v20  ;;  %v9752_v16 = vld [vmem:[#allocation8 + $0x1158] sm:$0xf0]  ;;  %v4250_v20 = vpop.f32.mrf.mxu3  ;;  %v11636_v48 = vld [vmem:[#allocation8 + $0xf5c] sm:$0xf0] }
 0x173   :  { %v11291_v43 = vld [vmem:[#allocation8 + $0x49c] sm:$0xf]  ;;  %v9755_v60 = vor.u32 %v11691_v63, %v9752_v16  ;;  %v8991_v16 = vor.u32 %v11508_v45, %v8990_v44  ;;  %v11236_v53 = vld [vmem:[#allocation8 + $0x2dc] sm:$0xf0] }
 0x174   :  { %4502 = vmatpush.bf16.msrb.mxu3 %v9883_v27  ;;  %4477 = vmatpush.bf16.msrb.mxu1 %v8795_v36  ;;  %v8152_v57 = vld [vmem:[#allocation8 + $0x4d8] sm:$0xf0]  ;;  %v9054_v27 = vld [vmem:[#allocation8 + $0xba0] sm:$0xf]  ;;  %v8543_v36 = vor.u32 %v11396_v26, %v8542_v23 }
 0x175   :  { %v11419_v58 = vld [vmem:[#allocation8 + $0x89c] sm:$0xf]  ;;  %v8155_v3 = vor.u32 %v11291_v43, %v8152_v57  ;;  %v11364_v43 = vld [vmem:[#allocation8 + $0x6dc] sm:$0xf0] }
 0x176   :  { %4464 = vmatpush.bf16.msrb.mxu0 %v8283_v35  ;;  %4490 = vmatpush.bf16.msrb.mxu2 %v9307_v37  ;;  %v8664_v61 = vld [vmem:[#allocation8 + $0x8d8] sm:$0xf0]  ;;  %v8031_v35 = vor.u32 %v11268_v22, %v8030_v21  ;;  %v9055_v37 = vor.u32 %v11524_v28, %v9054_v27  ;;  %v8926_v57 = vld [vmem:[#allocation8 + $0xaa0] sm:$0xf] }
 0x177   :  { %v11547_v62 = vld [vmem:[#allocation8 + $0xc9c] sm:$0xf]  ;;  %v8667_v6 = vor.u32 %v11419_v58, %v8664_v61  ;;  %v11492_v58 = vld [vmem:[#allocation8 + $0xadc] sm:$0xf0] }
 0x178   :  { %4503 = vmatpush.bf16.msrb.mxu3 %v9819_v41  ;;  %v9176_v0 = vld [vmem:[#allocation8 + $0xcd8] sm:$0xf0]  ;;  %4478 = vmatpush.bf16.msrb.mxu1 %v8731_v54  ;;  %v11380_v41 = vld [vmem:[#allocation8 + $0x75c] sm:$0xf0] }
 0x179   :  { %v11675_v1 = vld [vmem:[#allocation8 + $0x109c] sm:$0xf]  ;;  %v9179_v7 = vor.u32 %v11547_v62, %v9176_v0  ;;  %v8479_v63 = vor.u32 %v11380_v41, %v8478_v39  ;;  %v8414_v54 = vld [vmem:[#allocation8 + $0x6a0] sm:$0xf]  ;;  %v8927_v0 = vor.u32 %v11492_v58, %v8926_v57 }
 0x17a   :  { %v9688_v2 = vld [vmem:[#allocation8 + $0x10d8] sm:$0xf0]  ;;  %4465 = vmatpush.bf16.msrb.mxu0 %v8219_v50  ;;  %4491 = vmatpush.bf16.msrb.mxu2 %v9243_v56  ;;  %v7902_v50 = vld [vmem:[#allocation8 + $0x2a0] sm:$0xf]  ;;  %v9503_v56 = vor.u32 %v11636_v48, %v9502_v47  ;;  %v8415_v62 = vor.u32 %v11364_v43, %v8414_v54 }
 0x17b   :  { %v11275_v4 = vld [vmem:[#allocation8 + $0x41c] sm:$0xf]  ;;  %v9691_v14 = vor.u32 %v11675_v1, %v9688_v2  ;;  %v9438_v59 = vld [vmem:[#allocation8 + $0xea0] sm:$0xf]  ;;  %v7903_v61 = vor.u32 %v11236_v53, %v7902_v50 }
 0x17c   :  { %v8088_v5 = vld [vmem:[#allocation8 + $0x458] sm:$0xf0]  ;;  %4504 = vmatpush.bf16.msrb.mxu3 %v9755_v60  ;;  %4479 = vmatpush.bf16.msrb.mxu1 %v8667_v6  ;;  %v11620_v60 = vld [vmem:[#allocation8 + $0xedc] sm:$0xf0] }
 0x17d   :  { %v11403_v10 = vld [vmem:[#allocation8 + $0x81c] sm:$0xf]  ;;  %v8091_v24 = vor.u32 %v11275_v4, %v8088_v5  ;;  %v7838_v1 = vld [vmem:[#allocation8 + $0x220] sm:$0xf]  ;;  %v9439_v4 = vor.u32 %v11620_v60, %v9438_v59 }
 0x17e   :  { %v8600_v11 = vld [vmem:[#allocation8 + $0x858] sm:$0xf0]  ;;  %4466 = vmatpush.bf16.msrb.mxu0 %v8155_v3  ;;  %4492 = vmatpush.bf16.msrb.mxu2 %v9179_v7  ;;  %v11220_v2 = vld [vmem:[#allocation8 + $0x25c] sm:$0xf0] }
 0x17f   :  { %v11531_v12 = vld [vmem:[#allocation8 + $0xc1c] sm:$0xf]  ;;  %v8603_v29 = vor.u32 %v11403_v10, %v8600_v11  ;;  %v8350_v3 = vld [vmem:[#allocation8 + $0x620] sm:$0xf]  ;;  %v7839_v13 = vor.u32 %v11220_v2, %v7838_v1 }
 0x180   :  { %v9112_v17 = vld [vmem:[#allocation8 + $0xc58] sm:$0xf0]  ;;  %4505 = vmatpush.bf16.msrb.mxu3 %v9691_v14  ;;  %v11348_v5 = vld [vmem:[#allocation8 + $0x65c] sm:$0xf0]  ;;  %v4274_v21 = vpop.f32.mrf.mxu1 }
 0x181   :  { %v11659_v18 = vld [vmem:[#allocation8 + $0x101c] sm:$0xf]  ;;  %v9115_v30 = vor.u32 %v11531_v12, %v9112_v17  ;;  %4480 = vmatpush.bf16.msrb.mxu1 %v8603_v29  ;;  %v8862_v6 = vld [vmem:[#allocation8 + $0xa20] sm:$0xf]  ;;  %v8351_v14 = vor.u32 %v11348_v5, %v8350_v3 }
 0x182   :  { %v9624_v19 = vld [vmem:[#allocation8 + $0x1058] sm:$0xf0]  ;;  %4467 = vmatpush.bf16.msrb.mxu0 %v8091_v24  ;;  %v11476_v7 = vld [vmem:[#allocation8 + $0xa5c] sm:$0xf0]  ;;  %v4261_v12 = vpop.f32.mrf.mxu0 }
 0x183   :  { %v9627_v34 = vor.u32 %v11659_v18, %v9624_v19  ;;  %4493 = vmatpush.bf16.msrb.mxu2 %v9115_v30  ;;  %v9374_v10 = vld [vmem:[#allocation8 + $0xe20] sm:$0xf]  ;;  %v8863_v17 = vor.u32 %v11476_v7, %v8862_v6  ;;  %v4275_v27 = vadd.f32 %v4274_v21, %v4261_v12 }
 0x184   :  { %4481 = vmatmul.bf16.vlgmr.msrb.gmra.mxu1 %v12486_v9  ;;  %v11604_v11 = vld [vmem:[#allocation8 + $0xe5c] sm:$0xf0] }
 0x185   :  { %4506 = vmatpush.bf16.msrb.mxu3 %v9627_v34  ;;  %4525 = vmatpush.bf16.msra.mxu1 %v8543_v36  ;;  %v7774_v18 = vld [vmem:[#allocation8 + $0x1a0] sm:$0xf]  ;;  %v9375_v22 = vor.u32 %v11604_v11, %v9374_v10 }
 0x186   :  { %4512 = vmatpush.bf16.msra.mxu0 %v8031_v35  ;;  %4494 = vmatmul.bf16.vlgmr.msrb.gmra.mxu2 %v12488_v15  ;;  %v11204_v19 = vld [vmem:[#allocation8 + $0x1dc] sm:$0xf0] }
 0x187   :  { %4538 = vmatpush.bf16.msra.mxu2 %v9055_v37  ;;  %4468 = vmatmul.bf16.vlgmr.msrb.gmra.mxu0 %v12493_v25  ;;  %v8286_v20 = vld [vmem:[#allocation8 + $0x5a0] sm:$0xf]  ;;  %v7775_v30 = vor.u32 %v11204_v19, %v7774_v18 }
 0x188   :  { %4507 = vmatmul.bf16.vlgmr.msrb.gmra.mxu3 %v12496_v31  ;;  %v11332_v23 = vld [vmem:[#allocation8 + $0x5dc] sm:$0xf0]  ;;  %v4276_v43 = vpop.f32.mrf.mxu1 }
 0x189   :  { %4551 = vmatpush.bf16.msra.mxu3 %v9567_v40  ;;  %4526 = vmatpush.bf16.msra.mxu1 %v8479_v63  ;;  %v8798_v24 = vld [vmem:[#allocation8 + $0x9a0] sm:$0xf]  ;;  %v8287_v32 = vor.u32 %v11332_v23, %v8286_v20  ;;  %v4287_v40 = vpop.f32.mrf.mxu2  ;;  %v11260_v20 = vld [vmem:[#allocation8 + $0x3a4] sm:$0xf] }
 0x18a   :  { %4513 = vmatpush.bf16.msra.mxu0 %v7967_v49  ;;  %v11460_v26 = vld [vmem:[#allocation8 + $0x9dc] sm:$0xf0]  ;;  %v4300_v41 = vpop.f32.mrf.mxu3  ;;  %v4288_v47 = vadd.f32 %v4287_v40, %v4275_v27  ;;  %v4263_v48 = vpop.f32.mrf.mxu0  ;;  %v11388_v23 = vld [vmem:[#allocation8 + $0x7a4] sm:$0xf] }
 0x18b   :  { %4539 = vmatpush.bf16.msra.mxu2 %v8991_v16  ;;  %v9310_v28 = vld [vmem:[#allocation8 + $0xda0] sm:$0xf]  ;;  %v8799_v33 = vor.u32 %v11460_v26, %v8798_v24  ;;  %v8544_v24 = vld [vmem:[#allocation8 + $0x7e0] sm:$0xf0] }
 0x18c   :  { %v11588_v29 = vld [vmem:[#allocation8 + $0xddc] sm:$0xf0]  ;;  %v8480_v40 = vld [vmem:[#allocation8 + $0x760] sm:$0xf0] }
 0x18d   :  { %4552 = vmatpush.bf16.msra.mxu3 %v9503_v56  ;;  %4527 = vmatpush.bf16.msra.mxu1 %v8415_v62  ;;  %v7710_v34 = vld [vmem:[#allocation8 + $0x120] sm:$0xf]  ;;  %v9311_v37 = vor.u32 %v11588_v29, %v9310_v28  ;;  %v12554_v56 = vadd.f32 %v4300_v41, %v4288_v47  ;;  %v11516_v28 = vld [vmem:[#allocation8 + $0xba4] sm:$0xf] }
 0x18e   :  { %4514 = vmatpush.bf16.msra.mxu0 %v7903_v61  ;;  %v11188_v35 = vld [vmem:[#allocation8 + $0x15c] sm:$0xf0]  ;;  %v9056_v29 = vld [vmem:[#allocation8 + $0xbe0] sm:$0xf0] }
 0x18f   :  { %4540 = vmatpush.bf16.msra.mxu2 %v8927_v0  ;;  %v8222_v36 = vld [vmem:[#allocation8 + $0x520] sm:$0xf]  ;;  %v7711_v49 = vor.u32 %v11188_v35, %v7710_v34  ;;  %v8547_v34 = vor.u32 %v11388_v23, %v8544_v24  ;;  %v11500_v41 = vld [vmem:[#allocation8 + $0xb24] sm:$0xf] }
 0x190   :  { %v11316_v38 = vld [vmem:[#allocation8 + $0x55c] sm:$0xf0]  ;;  %v8416_v43 = vld [vmem:[#allocation8 + $0x6e0] sm:$0xf0] }
 0x191   :  { %4553 = vmatpush.bf16.msra.mxu3 %v9439_v4  ;;  %4528 = vmatpush.bf16.msra.mxu1 %v8351_v14  ;;  %v8734_v55 = vld [vmem:[#allocation8 + $0x920] sm:$0xf]  ;;  %v8223_v63 = vor.u32 %v11316_v38, %v8222_v36  ;;  %v4289_v14 = vpop.f32.mrf.mxu2  ;;  %v9059_v38 = vor.u32 %v11516_v28, %v9056_v29  ;;  %v11324_v23 = vld [vmem:[#allocation8 + $0x5a4] sm:$0xf] }
 0x192   :  { %4515 = vmatpush.bf16.msra.mxu0 %v7839_v13  ;;  %v11444_v39 = vld [vmem:[#allocation8 + $0x95c] sm:$0xf0]  ;;  %v8288_v24 = vld [vmem:[#allocation8 + $0x5e0] sm:$0xf0] }
 0x193   :  { %4541 = vmatpush.bf16.msra.mxu2 %v8863_v17  ;;  %v9246_v44 = vld [vmem:[#allocation8 + $0xd20] sm:$0xf]  ;;  %v8735_v16 = vor.u32 %v11444_v39, %v8734_v55  ;;  %v4302_v17 = vpop.f32.mrf.mxu3  ;;  %v7968_v55 = vld [vmem:[#allocation8 + $0x360] sm:$0xf0]  ;;  %v8291_v29 = vor.u32 %v11324_v23, %v8288_v24  ;;  %v11269_v23 = vld [vmem:[#allocation8 + $0x3e4] sm:$0xf0] }
 0x194   :  { %v11572_v45 = vld [vmem:[#allocation8 + $0xd5c] sm:$0xf0]  ;;  %v11372_v39 = vld [vmem:[#allocation8 + $0x724] sm:$0xf] }
 0x195   :  { %4554 = vmatpush.bf16.msra.mxu3 %v9375_v22  ;;  %4529 = vmatpush.bf16.msra.mxu1 %v8287_v32  ;;  %v7646_v50 = vld [vmem:[#allocation8 + $0xa0] sm:$0xf]  ;;  %v9247_v57 = vor.u32 %v11572_v45, %v9246_v44  ;;  %v8032_v22 = vld [vmem:[#allocation8 + $0x3e0] sm:$0xf0]  ;;  %v8483_v48 = vor.u32 %v11372_v39, %v8480_v40 }
 0x196   :  { %4516 = vmatpush.bf16.msra.mxu0 %v7775_v30  ;;  %v11172_v53 = vld [vmem:[#allocation8 + $0xdc] sm:$0xf0]  ;;  %v8992_v44 = vld [vmem:[#allocation8 + $0xb60] sm:$0xf0] }
 0x197   :  { %4542 = vmatpush.bf16.msra.mxu2 %v8799_v33  ;;  %v8158_v54 = vld [vmem:[#allocation8 + $0x4a0] sm:$0xf]  ;;  %v7647_v0 = vor.u32 %v11172_v53, %v7646_v50  ;;  %v8035_v33 = vor.u32 %v11260_v20, %v8032_v22  ;;  %v8995_v50 = vor.u32 %v11500_v41, %v8992_v44  ;;  %v7904_v53 = vld [vmem:[#allocation8 + $0x2e0] sm:$0xf0] }
 0x198   :  { %v11300_v58 = vld [vmem:[#allocation8 + $0x4dc] sm:$0xf0]  ;;  %v7776_v22 = vld [vmem:[#allocation8 + $0x1e0] sm:$0xf0] }
 0x199   :  { %4555 = vmatpush.bf16.msra.mxu3 %v9311_v37  ;;  %v8670_v59 = vld [vmem:[#allocation8 + $0x8a0] sm:$0xf]  ;;  %4530 = vmatpush.bf16.msra.mxu1 %v8223_v63  ;;  %v8159_v3 = vor.u32 %v11300_v58, %v8158_v54  ;;  %v11244_v37 = vld [vmem:[#allocation8 + $0x324] sm:$0xf] }
 0x19a   :  { %v11428_v60 = vld [vmem:[#allocation8 + $0x8dc] sm:$0xf0]  ;;  %4517 = vmatpush.bf16.msra.mxu0 %v7711_v49  ;;  %v7971_v47 = vor.u32 %v11244_v37, %v7968_v55  ;;  %v11356_v54 = vld [vmem:[#allocation8 + $0x6a4] sm:$0xf] }
 0x19b   :  { %v9182_v61 = vld [vmem:[#allocation8 + $0xca0] sm:$0xf]  ;;  %4543 = vmatpush.bf16.msra.mxu2 %v8735_v16  ;;  %v8671_v4 = vor.u32 %v11428_v60, %v8670_v59  ;;  %v11228_v16 = vld [vmem:[#allocation8 + $0x2a4] sm:$0xf] }
 0x19c   :  { %v11556_v62 = vld [vmem:[#allocation8 + $0xcdc] sm:$0xf0]  ;;  %v8928_v58 = vld [vmem:[#allocation8 + $0xae0] sm:$0xf0]  ;;  %v7907_v60 = vor.u32 %v11228_v16, %v7904_v53 }
 0x19d   :  { %v7582_v1 = vld [vmem:[#allocation8 + $0x20] sm:$0xf]  ;;  %4556 = vmatpush.bf16.msra.mxu3 %v9247_v57  ;;  %v9183_v10 = vor.u32 %v11556_v62, %v9182_v61  ;;  %4531 = vmatpush.bf16.msra.mxu1 %v8159_v3  ;;  %v11484_v57 = vld [vmem:[#allocation8 + $0xaa4] sm:$0xf]  ;;  %v8419_v61 = vor.u32 %v11356_v54, %v8416_v43 }
 0x19e   :  { %v11156_v2 = vld [vmem:[#allocation8 + $0x5c] sm:$0xf0]  ;;  %4518 = vmatpush.bf16.msra.mxu0 %v7647_v0  ;;  %v7840_v3 = vld [vmem:[#allocation8 + $0x260] sm:$0xf0] }
 0x19f   :  { %v8094_v5 = vld [vmem:[#allocation8 + $0x420] sm:$0xf]  ;;  %v7583_v21 = vor.u32 %v11156_v2, %v7582_v1  ;;  %4544 = vmatpush.bf16.msra.mxu2 %v8671_v4  ;;  %v11212_v1 = vld [vmem:[#allocation8 + $0x224] sm:$0xf]  ;;  %v8931_v2 = vor.u32 %v11484_v57, %v8928_v58 }
 0x1a0   :  { %v11284_v6 = vld [vmem:[#allocation8 + $0x45c] sm:$0xf0]  ;;  %v11340_v4 = vld [vmem:[#allocation8 + $0x624] sm:$0xf]  ;;  %v4326_v20 = vpop.f32.mrf.mxu1 }
 0x1a1   :  { %v8606_v7 = vld [vmem:[#allocation8 + $0x820] sm:$0xf]  ;;  %v8095_v26 = vor.u32 %v11284_v6, %v8094_v5  ;;  %4557 = vmatpush.bf16.msra.mxu3 %v9183_v10  ;;  %v8352_v5 = vld [vmem:[#allocation8 + $0x660] sm:$0xf0] }
 0x1a2   :  { %v11412_v11 = vld [vmem:[#allocation8 + $0x85c] sm:$0xf0]  ;;  %4519 = vmatpush.bf16.msra.mxu0 %v7583_v21  ;;  %v11468_v6 = vld [vmem:[#allocation8 + $0xa24] sm:$0xf]  ;;  %v4313_v10 = vpop.f32.mrf.mxu0  ;;  %v8355_v14 = vor.u32 %v11340_v4, %v8352_v5 }
 0x1a3   :  { %v9118_v12 = vld [vmem:[#allocation8 + $0xc20] sm:$0xf]  ;;  %v8607_v27 = vor.u32 %v11412_v11, %v8606_v7  ;;  %4532 = vmatpush.bf16.msra.mxu1 %v8095_v26  ;;  %v8864_v7 = vld [vmem:[#allocation8 + $0xa60] sm:$0xf0] }
 0x1a4   :  { %v11540_v13 = vld [vmem:[#allocation8 + $0xc5c] sm:$0xf0]  ;;  %v8867_v21 = vor.u32 %v11468_v6, %v8864_v7  ;;  %v11452_v26 = vld [vmem:[#allocation8 + $0x9a4] sm:$0xf] }
 0x1a5   :  { %v10078_v18 = vld [vmem:[#allocation8 + $0x13a0] sm:$0xf]  ;;  %v9119_v30 = vor.u32 %v11540_v13, %v9118_v12  ;;  %4545 = vmatpush.bf16.msra.mxu2 %v8607_v27  ;;  %4520 = vmatmul.bf16.vlgmr.msra.gmra.mxu0 %v12484_v8  ;;  %v12561_v12 = vadd.f32 %v4313_v10, %v12554_v56  ;;  %v7843_v13 = vor.u32 %v11212_v1, %v7840_v3  ;;  %v8800_v27 = vld [vmem:[#allocation8 + $0x9e0] sm:$0xf0] }
 0x1a6   :  { %v11780_v19 = vld [vmem:[#allocation8 + $0x13dc] sm:$0xf0]  ;;  %4533 = vmatmul.bf16.vlgmr.msra.gmra.mxu1 %v12493_v25  ;;  %v8224_v37 = vld [vmem:[#allocation8 + $0x560] sm:$0xf0] }
 0x1a7   :  { %v10079_v32 = vor.u32 %v11780_v19, %v10078_v18  ;;  %v10014_v35 = vld [vmem:[#allocation8 + $0x1320] sm:$0xf]  ;;  %4558 = vmatpush.bf16.msra.mxu3 %v9119_v30  ;;  %4577 = vmatpush.bf16.msrb.mxu1 %v8035_v33  ;;  %v11196_v19 = vld [vmem:[#allocation8 + $0x1a4] sm:$0xf] }
 0x1a8   :  { %v11764_v36 = vld [vmem:[#allocation8 + $0x135c] sm:$0xf0]  ;;  %4546 = vmatmul.bf16.vlgmr.msra.gmra.mxu2 %v12486_v9  ;;  %v7779_v56 = vor.u32 %v11196_v19, %v7776_v22  ;;  %v11180_v33 = vld [vmem:[#allocation8 + $0x124] sm:$0xf]  ;;  %v4328_v53 = vpop.f32.mrf.mxu1  ;;  %v8038_v22 = vld [vmem:[#allocation8 + $0x3a8] sm:$0xf] }
 0x1a9   :  { %4564 = vmatpush.bf16.msrb.mxu0 %v10079_v32  ;;  %v10015_v45 = vor.u32 %v11764_v36, %v10014_v35  ;;  %4590 = vmatpush.bf16.msrb.mxu2 %v8547_v34  ;;  %v9950_v49 = vld [vmem:[#allocation8 + $0x12a0] sm:$0xf]  ;;  %v8803_v34 = vor.u32 %v11452_v26, %v8800_v27  ;;  %v7712_v35 = vld [vmem:[#allocation8 + $0x160] sm:$0xf0]  ;;  %v8550_v27 = vld [vmem:[#allocation8 + $0x7a8] sm:$0xf] }
 0x1aa   :  { %v11748_v63 = vld [vmem:[#allocation8 + $0x12dc] sm:$0xf0]  ;;  %4559 = vmatmul.bf16.vlgmr.msra.gmra.mxu3 %v12488_v15  ;;  %v11308_v36 = vld [vmem:[#allocation8 + $0x524] sm:$0xf]  ;;  %v4352_v55 = vpop.f32.mrf.mxu3  ;;  %v4315_v44 = vpop.f32.mrf.mxu0  ;;  %v7910_v53 = vld [vmem:[#allocation8 + $0x2a8] sm:$0xf] }
 0x1ab   :  { %4603 = vmatpush.bf16.msrb.mxu3 %v9059_v38  ;;  %v9951_v59 = vor.u32 %v11748_v63, %v9950_v49  ;;  %4578 = vmatpush.bf16.msrb.mxu1 %v7971_v47  ;;  %v9886_v62 = vld [vmem:[#allocation8 + $0x1220] sm:$0xf]  ;;  %v4339_v38 = vpop.f32.mrf.mxu2  ;;  %v11436_v39 = vld [vmem:[#allocation8 + $0x924] sm:$0xf]  ;;  %v7715_v47 = vor.u32 %v11180_v33, %v7712_v35 }
 0x1ac   :  { %v11732_v0 = vld [vmem:[#allocation8 + $0x125c] sm:$0xf0]  ;;  %v8736_v40 = vld [vmem:[#allocation8 + $0x960] sm:$0xf0]  ;;  %v4340_v41 = vadd.f32 %v4339_v38, %v4326_v20  ;;  %v7974_v38 = vld [vmem:[#allocation8 + $0x328] sm:$0xf] }
 0x1ad   :  { %4565 = vmatpush.bf16.msrb.mxu0 %v10015_v45  ;;  %4591 = vmatpush.bf16.msrb.mxu2 %v8483_v48  ;;  %v9887_v11 = vor.u32 %v11732_v0, %v9886_v62  ;;  %v9822_v17 = vld [vmem:[#allocation8 + $0x11a0] sm:$0xf]  ;;  %v8227_v48 = vor.u32 %v11308_v36, %v8224_v37  ;;  %v11164_v16 = vld [vmem:[#allocation8 + $0xa4] sm:$0xf]  ;;  %v8739_v54 = vor.u32 %v11436_v39, %v8736_v40  ;;  %v8486_v39 = vld [vmem:[#allocation8 + $0x728] sm:$0xf] }
 0x1ae   :  { %v11716_v18 = vld [vmem:[#allocation8 + $0x11dc] sm:$0xf0]  ;;  %v7648_v43 = vld [vmem:[#allocation8 + $0xe0] sm:$0xf0]  ;;  %v11381_v40 = vld [vmem:[#allocation8 + $0x764] sm:$0xf0] }
 0x1af   :  { %4604 = vmatpush.bf16.msrb.mxu3 %v8995_v50  ;;  %4579 = vmatpush.bf16.msrb.mxu1 %v7907_v60  ;;  %v9823_v28 = vor.u32 %v11716_v18, %v9822_v17  ;;  %v9758_v30 = vld [vmem:[#allocation8 + $0x1120] sm:$0xf]  ;;  %v12563_v50 = vadd.f32 %v4352_v55, %v4340_v41  ;;  %v11292_v57 = vld [vmem:[#allocation8 + $0x4a4] sm:$0xf]  ;;  %v7651_v1 = vor.u32 %v11164_v16, %v7648_v43  ;;  %v11253_v55 = vld [vmem:[#allocation8 + $0x364] sm:$0xf0] }
 0x1b0   :  { %v11700_v32 = vld [vmem:[#allocation8 + $0x115c] sm:$0xf0]  ;;  %v8160_v58 = vld [vmem:[#allocation8 + $0x4e0] sm:$0xf0]  ;;  %v8422_v43 = vld [vmem:[#allocation8 + $0x6a8] sm:$0xf] }
 0x1b1   :  { %4566 = vmatpush.bf16.msrb.mxu0 %v9951_v59  ;;  %4592 = vmatpush.bf16.msrb.mxu2 %v8419_v61  ;;  %v9759_v45 = vor.u32 %v11700_v32, %v9758_v30  ;;  %v9694_v49 = vld [vmem:[#allocation8 + $0x10a0] sm:$0xf]  ;;  %v11420_v59 = vld [vmem:[#allocation8 + $0x8a4] sm:$0xf]  ;;  %v8039_v32 = vor.u32 %v11269_v23, %v8038_v22  ;;  %v7782_v23 = vld [vmem:[#allocation8 + $0x1a8] sm:$0xf] }
 0x1b2   :  { %v11684_v63 = vld [vmem:[#allocation8 + $0x10dc] sm:$0xf0]  ;;  %v8672_v60 = vld [vmem:[#allocation8 + $0x8e0] sm:$0xf0] }
 0x1b3   :  { %4605 = vmatpush.bf16.msrb.mxu3 %v8931_v2  ;;  %4580 = vmatpush.bf16.msrb.mxu1 %v7843_v13  ;;  %v9695_v61 = vor.u32 %v11684_v63, %v9694_v49  ;;  %v9630_v62 = vld [vmem:[#allocation8 + $0x1020] sm:$0xf]  ;;  %v8163_v2 = vor.u32 %v11292_v57, %v8160_v58  ;;  %v11148_v3 = vld [vmem:[#allocation8 + $0x24] sm:$0xf]  ;;  %v8675_v6 = vor.u32 %v11420_v59, %v8672_v60  ;;  %v4341_v13 = vpop.f32.mrf.mxu2  ;;  %v11365_v57 = vld [vmem:[#allocation8 + $0x6e4] sm:$0xf0] }
 0x1b4   :  { %v11668_v0 = vld [vmem:[#allocation8 + $0x105c] sm:$0xf0]  ;;  %v7584_v4 = vld [vmem:[#allocation8 + $0x60] sm:$0xf0]  ;;  %v8487_v63 = vor.u32 %v11381_v40, %v8486_v39  ;;  %v11317_v39 = vld [vmem:[#allocation8 + $0x564] sm:$0xf0] }
 0x1b5   :  { %4567 = vmatpush.bf16.msrb.mxu0 %v9887_v11  ;;  %4593 = vmatpush.bf16.msrb.mxu2 %v8355_v14  ;;  %v11276_v5 = vld [vmem:[#allocation8 + $0x424] sm:$0xf]  ;;  %v4354_v14 = vpop.f32.mrf.mxu3  ;;  %v9631_v20 = vor.u32 %v11668_v0, %v9630_v62  ;;  %v7587_v24 = vor.u32 %v11148_v3, %v7584_v4  ;;  %v7846_v3 = vld [vmem:[#allocation8 + $0x228] sm:$0xf] }
 0x1b6   :  { %v8096_v7 = vld [vmem:[#allocation8 + $0x460] sm:$0xf0]  ;;  %v11221_v4 = vld [vmem:[#allocation8 + $0x264] sm:$0xf0] }
 0x1b7   :  { %4606 = vmatpush.bf16.msrb.mxu3 %v8867_v21  ;;  %4581 = vmatpush.bf16.msrb.mxu1 %v7779_v56  ;;  %v11404_v10 = vld [vmem:[#allocation8 + $0x824] sm:$0xf]  ;;  %v8099_v26 = vor.u32 %v11276_v5, %v8096_v7  ;;  %v8358_v5 = vld [vmem:[#allocation8 + $0x628] sm:$0xf] }
 0x1b8   :  { %v8608_v11 = vld [vmem:[#allocation8 + $0x860] sm:$0xf0] }
 0x1b9   :  { %4568 = vmatpush.bf16.msrb.mxu0 %v9823_v28  ;;  %4594 = vmatpush.bf16.msrb.mxu2 %v8291_v29  ;;  %v11644_v17 = vld [vmem:[#allocation8 + $0xfa4] sm:$0xf]  ;;  %v11397_v28 = vld [vmem:[#allocation8 + $0x7e4] sm:$0xf0]  ;;  %v8611_v56 = vor.u32 %v11404_v10, %v8608_v11 }
 0x1ba   :  { %v9568_v18 = vld [vmem:[#allocation8 + $0xfe0] sm:$0xf0]  ;;  %v8551_v36 = vor.u32 %v11397_v28, %v8550_v27  ;;  %v8294_v27 = vld [vmem:[#allocation8 + $0x5a8] sm:$0xf] }
 0x1bb   :  { %4607 = vmatpush.bf16.msrb.mxu3 %v8803_v34  ;;  %4582 = vmatpush.bf16.msrb.mxu1 %v7715_v47  ;;  %v11772_v19 = vld [vmem:[#allocation8 + $0x13a4] sm:$0xf]  ;;  %v9571_v29 = vor.u32 %v11644_v17, %v9568_v18  ;;  %v7847_v17 = vor.u32 %v11221_v4, %v7846_v3  ;;  %v11333_v28 = vld [vmem:[#allocation8 + $0x5e4] sm:$0xf0] }
 0x1bc   :  { %v10080_v21 = vld [vmem:[#allocation8 + $0x13e0] sm:$0xf0] }
 0x1bd   :  { %4569 = vmatpush.bf16.msrb.mxu0 %v9759_v45  ;;  %4595 = vmatpush.bf16.msrb.mxu2 %v8227_v48  ;;  %v10083_v30 = vor.u32 %v11772_v19, %v10080_v21  ;;  %v11628_v33 = vld [vmem:[#allocation8 + $0xf24] sm:$0xf]  ;;  %v7975_v45 = vor.u32 %v11253_v55, %v7974_v38  ;;  %v8230_v55 = vld [vmem:[#allocation8 + $0x528] sm:$0xf] }
 0x1be   :  { %v9504_v34 = vld [vmem:[#allocation8 + $0xf60] sm:$0xf0] }
 0x1bf   :  { %4608 = vmatpush.bf16.msrb.mxu3 %v8739_v54  ;;  %4583 = vmatpush.bf16.msrb.mxu1 %v7651_v1  ;;  %v11756_v35 = vld [vmem:[#allocation8 + $0x1324] sm:$0xf]  ;;  %v9507_v41 = vor.u32 %v11628_v33, %v9504_v34  ;;  %v11237_v54 = vld [vmem:[#allocation8 + $0x2e4] sm:$0xf0]  ;;  %v8423_v1 = vor.u32 %v11365_v57, %v8422_v43  ;;  %v8295_v34 = vor.u32 %v11333_v28, %v8294_v27  ;;  %v11261_v28 = vld [vmem:[#allocation8 + $0x3ac] sm:$0xf] }
 0x1c0   :  { %v10016_v37 = vld [vmem:[#allocation8 + $0x1360] sm:$0xf0]  ;;  %v7911_v60 = vor.u32 %v11237_v54, %v7910_v53  ;;  %v4378_v13 = vpop.f32.mrf.mxu1  ;;  %v8231_v54 = vor.u32 %v11317_v39, %v8230_v55  ;;  %v7654_v57 = vld [vmem:[#allocation8 + $0xa8] sm:$0xf]  ;;  %v11245_v39 = vld [vmem:[#allocation8 + $0x32c] sm:$0xf] }
 0x1c1   :  { %4570 = vmatpush.bf16.msrb.mxu0 %v9695_v61  ;;  %4596 = vmatpush.bf16.msrb.mxu2 %v8163_v2  ;;  %v10019_v44 = vor.u32 %v11756_v35, %v10016_v37  ;;  %v11612_v47 = vld [vmem:[#allocation8 + $0xea4] sm:$0xf]  ;;  %v11189_v37 = vld [vmem:[#allocation8 + $0x164] sm:$0xf0] }
 0x1c2   :  { %v9440_v48 = vld [vmem:[#allocation8 + $0xee0] sm:$0xf0]  ;;  %v4365_v7 = vpop.f32.mrf.mxu0  ;;  %v11765_v55 = vld [vmem:[#allocation8 + $0x1364] sm:$0xf0] }
 0x1c3   :  { %4609 = vmatpush.bf16.msrb.mxu3 %v8675_v6  ;;  %4584 = vmatpush.bf16.msrb.mxu1 %v7587_v24  ;;  %v11740_v49 = vld [vmem:[#allocation8 + $0x12a4] sm:$0xf]  ;;  %v9443_v58 = vor.u32 %v11612_v47, %v9440_v48  ;;  %v11349_v6 = vld [vmem:[#allocation8 + $0x664] sm:$0xf0]  ;;  %v4366_v11 = vadd.f32 %v4365_v7, %v12563_v50 }
 0x1c4   :  { %v9952_v16 = vld [vmem:[#allocation8 + $0x12e0] sm:$0xf0]  ;;  %v8359_v21 = vor.u32 %v11349_v6, %v8358_v5  ;;  %v11205_v24 = vld [vmem:[#allocation8 + $0x1e4] sm:$0xf0] }
 0x1c5   :  { %4571 = vmatpush.bf16.msrb.mxu0 %v9631_v20  ;;  %4597 = vmatpush.bf16.msrb.mxu2 %v8099_v26  ;;  %v9955_v59 = vor.u32 %v11740_v49, %v9952_v16  ;;  %v11596_v61 = vld [vmem:[#allocation8 + $0xe24] sm:$0xf]  ;;  %v12570_v26 = vadd.f32 %v4378_v13, %v4366_v11  ;;  %v7590_v5 = vld [vmem:[#allocation8 + $0x28] sm:$0xf] }
 0x1c6   :  { %4585 = vmatmul.bf16.vlgmr.msrb.gmra.mxu1 %v12484_v8  ;;  %v9376_v62 = vld [vmem:[#allocation8 + $0xe60] sm:$0xf0]  ;;  %v11157_v7 = vld [vmem:[#allocation8 + $0x64] sm:$0xf0] }
 0x1c7   :  { %4610 = vmatpush.bf16.msrb.mxu3 %v8611_v56  ;;  %4629 = vmatpush.bf16.msra.mxu1 %v10083_v30  ;;  %v11724_v0 = vld [vmem:[#allocation8 + $0x1224] sm:$0xf]  ;;  %v9379_v10 = vor.u32 %v11596_v61, %v9376_v62  ;;  %v11285_v11 = vld [vmem:[#allocation8 + $0x464] sm:$0xf0]  ;;  %v7591_v27 = vor.u32 %v11157_v7, %v7590_v5  ;;  %v7848_v7 = vld [vmem:[#allocation8 + $0x268] sm:$0xf0] }
 0x1c8   :  { %4572 = vmatmul.bf16.vlgmr.msrb.gmra.mxu0 %v12496_v31  ;;  %4598 = vmatmul.bf16.vlgmr.msrb.gmra.mxu2 %v12493_v25  ;;  %v9888_v2 = vld [vmem:[#allocation8 + $0x1260] sm:$0xf0]  ;;  %v4391_v38 = vpop.f32.mrf.mxu2  ;;  %v4380_v47 = vpop.f32.mrf.mxu1  ;;  %v11733_v5 = vld [vmem:[#allocation8 + $0x1264] sm:$0xf0] }
 0x1c9   :  { %4616 = vmatpush.bf16.msra.mxu0 %v9571_v29  ;;  %4642 = vmatpush.bf16.msra.mxu2 %v8039_v32  ;;  %v9891_v14 = vor.u32 %v11724_v0, %v9888_v2  ;;  %v11580_v18 = vld [vmem:[#allocation8 + $0xda4] sm:$0xf]  ;;  %v7783_v29 = vor.u32 %v11205_v24, %v7782_v23  ;;  %v11781_v23 = vld [vmem:[#allocation8 + $0x13e4] sm:$0xf0] }
 0x1ca   :  { %4611 = vmatmul.bf16.vlgmr.msrb.gmra.mxu3 %v12486_v9  ;;  %v9312_v19 = vld [vmem:[#allocation8 + $0xde0] sm:$0xf0]  ;;  %v4404_v40 = vpop.f32.mrf.mxu3 }
 0x1cb   :  { %4655 = vmatpush.bf16.msra.mxu3 %v8551_v36  ;;  %4630 = vmatpush.bf16.msra.mxu1 %v10019_v44  ;;  %v11708_v20 = vld [vmem:[#allocation8 + $0x11a4] sm:$0xf]  ;;  %v9315_v56 = vor.u32 %v11580_v18, %v9312_v19  ;;  %v7718_v36 = vld [vmem:[#allocation8 + $0x128] sm:$0xf] }
 0x1cc   :  { %v9824_v22 = vld [vmem:[#allocation8 + $0x11e0] sm:$0xf0]  ;;  %v7719_v49 = vor.u32 %v11189_v37, %v7718_v36  ;;  %v9574_v18 = vld [vmem:[#allocation8 + $0xfa8] sm:$0xf] }
 0x1cd   :  { %4617 = vmatpush.bf16.msra.mxu0 %v9507_v41  ;;  %4643 = vmatpush.bf16.msra.mxu2 %v7975_v45  ;;  %v9827_v50 = vor.u32 %v11708_v20, %v9824_v22  ;;  %v11564_v30 = vld [vmem:[#allocation8 + $0xd24] sm:$0xf]  ;;  %v4367_v41 = vpop.f32.mrf.mxu0  ;;  %v12572_v45 = vadd.f32 %v4404_v40, %v4391_v38  ;;  %v10086_v22 = vld [vmem:[#allocation8 + $0x13a8] sm:$0xf]  ;;  %v7976_v40 = vld [vmem:[#allocation8 + $0x368] sm:$0xf0] }
 0x1ce   :  { %v9248_v32 = vld [vmem:[#allocation8 + $0xd60] sm:$0xf0]  ;;  %v11637_v37 = vld [vmem:[#allocation8 + $0xf64] sm:$0xf0] }
 0x1cf   :  { %4656 = vmatpush.bf16.msra.mxu3 %v8487_v63  ;;  %4631 = vmatpush.bf16.msra.mxu1 %v9955_v59  ;;  %v11692_v33 = vld [vmem:[#allocation8 + $0x1124] sm:$0xf]  ;;  %v9251_v44 = vor.u32 %v11564_v30, %v9248_v32  ;;  %v8166_v59 = vld [vmem:[#allocation8 + $0x4a8] sm:$0xf]  ;;  %v10087_v32 = vor.u32 %v11781_v23, %v10086_v22 }
 0x1d0   :  { %v9760_v35 = vld [vmem:[#allocation8 + $0x1160] sm:$0xf0]  ;;  %v4393_v13 = vpop.f32.mrf.mxu2  ;;  %v10022_v38 = vld [vmem:[#allocation8 + $0x1328] sm:$0xf] }
 0x1d1   :  { %4618 = vmatpush.bf16.msra.mxu0 %v9443_v58  ;;  %4644 = vmatpush.bf16.msra.mxu2 %v7911_v60  ;;  %v9763_v48 = vor.u32 %v11692_v33, %v9760_v35  ;;  %v11548_v63 = vld [vmem:[#allocation8 + $0xca4] sm:$0xf]  ;;  %v11173_v58 = vld [vmem:[#allocation8 + $0xe4] sm:$0xf0]  ;;  %v10023_v47 = vor.u32 %v11765_v55, %v10022_v38 }
 0x1d2   :  { %v9184_v16 = vld [vmem:[#allocation8 + $0xce0] sm:$0xf0]  ;;  %v11301_v60 = vld [vmem:[#allocation8 + $0x4e4] sm:$0xf0]  ;;  %v7655_v2 = vor.u32 %v11173_v58, %v7654_v57  ;;  %v4406_v19 = vpop.f32.mrf.mxu3  ;;  %v11229_v57 = vld [vmem:[#allocation8 + $0x2ac] sm:$0xf] }
 0x1d3   :  { %4657 = vmatpush.bf16.msra.mxu3 %v8423_v1  ;;  %4632 = vmatpush.bf16.msra.mxu1 %v9891_v14  ;;  %v11676_v53 = vld [vmem:[#allocation8 + $0x10a4] sm:$0xf]  ;;  %v9187_v61 = vor.u32 %v11548_v63, %v9184_v16  ;;  %v8167_v6 = vor.u32 %v11301_v60, %v8166_v59  ;;  %v9062_v14 = vld [vmem:[#allocation8 + $0xba8] sm:$0xf]  ;;  %v7979_v16 = vor.u32 %v11245_v39, %v7976_v40  ;;  %v7912_v58 = vld [vmem:[#allocation8 + $0x2e8] sm:$0xf0] }
 0x1d4   :  { %v9696_v43 = vld [vmem:[#allocation8 + $0x10e0] sm:$0xf0]  ;;  %v8998_v33 = vld [vmem:[#allocation8 + $0xb28] sm:$0xf]  ;;  %v11181_v40 = vld [vmem:[#allocation8 + $0x12c] sm:$0xf] }
 0x1d5   :  { %4619 = vmatpush.bf16.msra.mxu0 %v9379_v10  ;;  %4645 = vmatpush.bf16.msra.mxu2 %v7847_v17  ;;  %v11532_v62 = vld [vmem:[#allocation8 + $0xc24] sm:$0xf]  ;;  %v9699_v1 = vor.u32 %v11676_v53, %v9696_v43  ;;  %v8102_v10 = vld [vmem:[#allocation8 + $0x428] sm:$0xf] }
 0x1d6   :  { %v9120_v0 = vld [vmem:[#allocation8 + $0xc60] sm:$0xf0]  ;;  %v11525_v17 = vld [vmem:[#allocation8 + $0xbe4] sm:$0xf0] }
 0x1d7   :  { %4658 = vmatpush.bf16.msra.mxu3 %v8359_v21  ;;  %4633 = vmatpush.bf16.msra.mxu1 %v9827_v50  ;;  %v11660_v3 = vld [vmem:[#allocation8 + $0x1024] sm:$0xf]  ;;  %v9123_v20 = vor.u32 %v11532_v62, %v9120_v0  ;;  %v11653_v21 = vld [vmem:[#allocation8 + $0xfe4] sm:$0xf0]  ;;  %v8103_v50 = vor.u32 %v11285_v11, %v8102_v10 }
 0x1d8   :  { %v9632_v4 = vld [vmem:[#allocation8 + $0x1060] sm:$0xf0]  ;;  %v9575_v30 = vor.u32 %v11653_v21, %v9574_v18  ;;  %v9510_v35 = vld [vmem:[#allocation8 + $0xf28] sm:$0xf] }
 0x1d9   :  { %4620 = vmatpush.bf16.msra.mxu0 %v9315_v56  ;;  %4646 = vmatpush.bf16.msra.mxu2 %v7783_v29  ;;  %v9635_v24 = vor.u32 %v11660_v3, %v9632_v4  ;;  %v8040_v56 = vld [vmem:[#allocation8 + $0x3e8] sm:$0xf0]  ;;  %v9063_v29 = vor.u32 %v11525_v17, %v9062_v14  ;;  %v9446_v63 = vld [vmem:[#allocation8 + $0xea8] sm:$0xf] }
 0x1da   :  { %v8043_v36 = vor.u32 %v11261_v28, %v8040_v56  ;;  %v11621_v53 = vld [vmem:[#allocation8 + $0xee4] sm:$0xf0]  ;;  %v11197_v28 = vld [vmem:[#allocation8 + $0x1ac] sm:$0xf] }
 0x1db   :  { %4659 = vmatpush.bf16.msra.mxu3 %v8295_v34  ;;  %4634 = vmatpush.bf16.msra.mxu1 %v9763_v48  ;;  %v11509_v34 = vld [vmem:[#allocation8 + $0xb64] sm:$0xf0]  ;;  %v9447_v60 = vor.u32 %v11621_v53, %v9446_v63  ;;  %v7784_v56 = vld [vmem:[#allocation8 + $0x1e8] sm:$0xf0] }
 0x1dc   :  { %v8999_v41 = vor.u32 %v11509_v34, %v8998_v33  ;;  %v8934_v48 = vld [vmem:[#allocation8 + $0xaa8] sm:$0xf] }
 0x1dd   :  { %4621 = vmatpush.bf16.msra.mxu0 %v9251_v44  ;;  %4647 = vmatpush.bf16.msra.mxu2 %v7719_v49  ;;  %v9511_v44 = vor.u32 %v11637_v37, %v9510_v35  ;;  %v11493_v49 = vld [vmem:[#allocation8 + $0xae4] sm:$0xf0] }
 0x1de   :  { %v11749_v43 = vld [vmem:[#allocation8 + $0x12e4] sm:$0xf0]  ;;  %v8935_v59 = vor.u32 %v11493_v49, %v8934_v48 }
 0x1df   :  { %4660 = vmatpush.bf16.msra.mxu3 %v8231_v54  ;;  %4635 = vmatpush.bf16.msra.mxu1 %v9699_v1  ;;  %v9958_v54 = vld [vmem:[#allocation8 + $0x12a8] sm:$0xf] }
 0x1e0   :  { %v8870_v62 = vld [vmem:[#allocation8 + $0xa28] sm:$0xf]  ;;  %v4430_v13 = vpop.f32.mrf.mxu1 }
 0x1e1   :  { %4622 = vmatpush.bf16.msra.mxu0 %v9187_v61  ;;  %4648 = vmatpush.bf16.msra.mxu2 %v7655_v2  ;;  %v9959_v61 = vor.u32 %v11749_v43, %v9958_v54  ;;  %v11477_v0 = vld [vmem:[#allocation8 + $0xa64] sm:$0xf0]  ;;  %v7915_v2 = vor.u32 %v11229_v57, %v7912_v58 }
 0x1e2   :  { %v9382_v1 = vld [vmem:[#allocation8 + $0xe28] sm:$0xf]  ;;  %v8871_v10 = vor.u32 %v11477_v0, %v8870_v62  ;;  %v4417_v11 = vpop.f32.mrf.mxu0  ;;  %v7656_v62 = vld [vmem:[#allocation8 + $0xe8] sm:$0xf0] }
 0x1e3   :  { %4661 = vmatpush.bf16.msra.mxu3 %v8167_v6  ;;  %4636 = vmatpush.bf16.msra.mxu1 %v9635_v24  ;;  %v11605_v3 = vld [vmem:[#allocation8 + $0xe64] sm:$0xf0]  ;;  %v11213_v6 = vld [vmem:[#allocation8 + $0x22c] sm:$0xf]  ;;  %v4418_v21 = vadd.f32 %v4417_v11, %v12572_v45  ;;  %v7787_v45 = vor.u32 %v11197_v28, %v7784_v56 }
 0x1e4   :  { %v9894_v4 = vld [vmem:[#allocation8 + $0x1228] sm:$0xf]  ;;  %v9383_v14 = vor.u32 %v11605_v3, %v9382_v1  ;;  %v7851_v22 = vor.u32 %v11213_v6, %v7848_v7 }
 0x1e5   :  { %4623 = vmatpush.bf16.msra.mxu0 %v9123_v20  ;;  %4649 = vmatpush.bf16.msra.mxu2 %v7591_v27  ;;  %v9895_v17 = vor.u32 %v11733_v5, %v9894_v4  ;;  %v8806_v18 = vld [vmem:[#allocation8 + $0x9a8] sm:$0xf] }
 0x1e6   :  { %4637 = vmatmul.bf16.vlgmr.msra.gmra.mxu1 %v12496_v31  ;;  %v11461_v19 = vld [vmem:[#allocation8 + $0x9e4] sm:$0xf0] }
 0x1e7   :  { %4662 = vmatpush.bf16.msra.mxu3 %v8103_v50  ;;  %4681 = vmatpush.bf16.msrb.mxu1 %v9575_v30  ;;  %v9318_v20 = vld [vmem:[#allocation8 + $0xda8] sm:$0xf]  ;;  %v4431_v50 = vadd.f32 %v4430_v13, %v4418_v21 }
 0x1e8   :  { %4624 = vmatmul.bf16.vlgmr.msra.gmra.mxu0 %v12488_v15  ;;  %4650 = vmatmul.bf16.vlgmr.msra.gmra.mxu2 %v12484_v8  ;;  %v11589_v23 = vld [vmem:[#allocation8 + $0xde4] sm:$0xf0]  ;;  %v4432_v49 = vpop.f32.mrf.mxu1 }
 0x1e9   :  { %4668 = vmatpush.bf16.msrb.mxu0 %v9063_v29  ;;  %4694 = vmatpush.bf16.msrb.mxu2 %v10087_v32  ;;  %v9830_v24 = vld [vmem:[#allocation8 + $0x11a8] sm:$0xf]  ;;  %v8807_v29 = vor.u32 %v11461_v19, %v8806_v18  ;;  %v9319_v30 = vor.u32 %v11589_v23, %v9318_v20  ;;  %v11389_v18 = vld [vmem:[#allocation8 + $0x7ac] sm:$0xf] }
 0x1ea   :  { %4663 = vmatmul.bf16.vlgmr.msra.gmra.mxu3 %v12493_v25  ;;  %v11717_v27 = vld [vmem:[#allocation8 + $0x11e4] sm:$0xf0]  ;;  %v4419_v48 = vpop.f32.mrf.mxu0  ;;  %v8552_v19 = vld [vmem:[#allocation8 + $0x7e8] sm:$0xf0] }
 0x1eb   :  { %4707 = vmatpush.bf16.msrb.mxu3 %v8043_v36  ;;  %4682 = vmatpush.bf16.msrb.mxu1 %v9511_v44  ;;  %v9831_v32 = vor.u32 %v11717_v27, %v9830_v24  ;;  %v8742_v33 = vld [vmem:[#allocation8 + $0x928] sm:$0xf]  ;;  %v4443_v36 = vpop.f32.mrf.mxu2  ;;  %v12581_v44 = vpop.f32.mrf.mxu3  ;;  %v11517_v20 = vld [vmem:[#allocation8 + $0xbac] sm:$0xf] }
 0x1ec   :  { %v11445_v34 = vld [vmem:[#allocation8 + $0x964] sm:$0xf0]  ;;  %v12579_v39 = vadd.f32 %v4443_v36, %v4431_v50  ;;  %v9064_v23 = vld [vmem:[#allocation8 + $0xbe8] sm:$0xf0] }
 0x1ed   :  { %4669 = vmatpush.bf16.msrb.mxu0 %v8999_v41  ;;  %4695 = vmatpush.bf16.msrb.mxu2 %v10023_v47  ;;  %v9254_v35 = vld [vmem:[#allocation8 + $0xd28] sm:$0xf]  ;;  %v7720_v41 = vld [vmem:[#allocation8 + $0x168] sm:$0xf0]  ;;  %v8743_v47 = vor.u32 %v11445_v34, %v8742_v33  ;;  %v9067_v33 = vor.u32 %v11517_v20, %v9064_v23 }
 0x1ee   :  { %v11573_v37 = vld [vmem:[#allocation8 + $0xd64] sm:$0xf0]  ;;  %v7723_v57 = vor.u32 %v11181_v40, %v7720_v41  ;;  %v11645_v24 = vld [vmem:[#allocation8 + $0xfac] sm:$0xf] }
 0x1ef   :  { %4708 = vmatpush.bf16.msrb.mxu3 %v7979_v16  ;;  %4683 = vmatpush.bf16.msrb.mxu1 %v9447_v60  ;;  %v9766_v38 = vld [vmem:[#allocation8 + $0x1128] sm:$0xf]  ;;  %v9255_v63 = vor.u32 %v11573_v37, %v9254_v35  ;;  %v9576_v27 = vld [vmem:[#allocation8 + $0xfe8] sm:$0xf0] }
 0x1f0   :  { %v11701_v55 = vld [vmem:[#allocation8 + $0x1164] sm:$0xf0]  ;;  %v11773_v50 = vld [vmem:[#allocation8 + $0x13ac] sm:$0xf]  ;;  %v9579_v34 = vor.u32 %v11645_v24, %v9576_v27 }
 0x1f1   :  { %4670 = vmatpush.bf16.msrb.mxu0 %v8935_v59  ;;  %4696 = vmatpush.bf16.msrb.mxu2 %v9959_v61  ;;  %v9767_v16 = vor.u32 %v11701_v55, %v9766_v38  ;;  %v8678_v53 = vld [vmem:[#allocation8 + $0x8a8] sm:$0xf]  ;;  %v11165_v61 = vld [vmem:[#allocation8 + $0xac] sm:$0xf] }
 0x1f2   :  { %v11429_v54 = vld [vmem:[#allocation8 + $0x8e4] sm:$0xf0]  ;;  %v7659_v11 = vor.u32 %v11165_v61, %v7656_v62  ;;  %v11373_v35 = vld [vmem:[#allocation8 + $0x72c] sm:$0xf] }
 0x1f3   :  { %4709 = vmatpush.bf16.msrb.mxu3 %v7915_v2  ;;  %4684 = vmatpush.bf16.msrb.mxu1 %v9383_v14  ;;  %v9190_v43 = vld [vmem:[#allocation8 + $0xca8] sm:$0xf]  ;;  %v8679_v0 = vor.u32 %v11429_v54, %v8678_v53  ;;  %v11149_v14 = vld [vmem:[#allocation8 + $0x2c] sm:$0xf]  ;;  %v4458_v21 = vpop.f32.mrf.mxu3 }
 0x1f4   :  { %v11557_v58 = vld [vmem:[#allocation8 + $0xce4] sm:$0xf0]  ;;  %v8488_v36 = vld [vmem:[#allocation8 + $0x768] sm:$0xf0] }
 0x1f5   :  { %4671 = vmatpush.bf16.msrb.mxu0 %v8871_v10  ;;  %4697 = vmatpush.bf16.msrb.mxu2 %v9895_v17  ;;  %v9702_v59 = vld [vmem:[#allocation8 + $0x10a8] sm:$0xf]  ;;  %v9191_v3 = vor.u32 %v11557_v58, %v9190_v43  ;;  %v4445_v10 = vpop.f32.mrf.mxu2  ;;  %v7592_v17 = vld [vmem:[#allocation8 + $0x68] sm:$0xf0]  ;;  %v8491_v48 = vor.u32 %v11373_v35, %v8488_v36 }
 0x1f6   :  { %v11685_v60 = vld [vmem:[#allocation8 + $0x10e4] sm:$0xf0]  ;;  %v9000_v38 = vld [vmem:[#allocation8 + $0xb68] sm:$0xf0] }
 0x1f7   :  { %4710 = vmatpush.bf16.msrb.mxu3 %v7851_v22  ;;  %4685 = vmatpush.bf16.msrb.mxu1 %v9319_v30  ;;  %v8614_v1 = vld [vmem:[#allocation8 + $0x828] sm:$0xf]  ;;  %v9703_v4 = vor.u32 %v11685_v60, %v9702_v59  ;;  %v7595_v30 = vor.u32 %v11149_v14, %v7592_v17  ;;  %v11629_v55 = vld [vmem:[#allocation8 + $0xf2c] sm:$0xf] }
 0x1f8   :  { %v11413_v2 = vld [vmem:[#allocation8 + $0x864] sm:$0xf0]  ;;  %v9512_v40 = vld [vmem:[#allocation8 + $0xf68] sm:$0xf0] }
 0x1f9   :  { %4672 = vmatpush.bf16.msrb.mxu0 %v8807_v29  ;;  %4698 = vmatpush.bf16.msrb.mxu2 %v9831_v32  ;;  %v9126_v5 = vld [vmem:[#allocation8 + $0xc28] sm:$0xf]  ;;  %v8615_v22 = vor.u32 %v11413_v2, %v8614_v1  ;;  %v10088_v29 = vld [vmem:[#allocation8 + $0x13e8] sm:$0xf0]  ;;  %v8555_v32 = vor.u32 %v11389_v18, %v8552_v19 }
 0x1fa   :  { %v11541_v6 = vld [vmem:[#allocation8 + $0xc64] sm:$0xf0]  ;;  %v10091_v37 = vor.u32 %v11773_v50, %v10088_v29  ;;  %v11757_v41 = vld [vmem:[#allocation8 + $0x132c] sm:$0xf] }
 0x1fb   :  { %4711 = vmatpush.bf16.msrb.mxu3 %v7787_v45  ;;  %4686 = vmatpush.bf16.msrb.mxu1 %v9255_v63  ;;  %v9638_v7 = vld [vmem:[#allocation8 + $0x1028] sm:$0xf]  ;;  %v9127_v28 = vor.u32 %v11541_v6, %v9126_v5  ;;  %v11501_v45 = vld [vmem:[#allocation8 + $0xb2c] sm:$0xf]  ;;  %v9515_v63 = vor.u32 %v11629_v55, %v9512_v40 }
 0x1fc   :  { %v11669_v13 = vld [vmem:[#allocation8 + $0x1064] sm:$0xf0]  ;;  %v9003_v49 = vor.u32 %v11501_v45, %v9000_v38  ;;  %v8424_v53 = vld [vmem:[#allocation8 + $0x6e8] sm:$0xf0] }
 0x1fd   :  { %4673 = vmatpush.bf16.msrb.mxu0 %v8743_v47  ;;  %4699 = vmatpush.bf16.msrb.mxu2 %v9767_v16  ;;  %v9639_v56 = vor.u32 %v11669_v13, %v9638_v7  ;;  %v10024_v47 = vld [vmem:[#allocation8 + $0x1368] sm:$0xf0] }
 0x1fe   :  { %v11357_v16 = vld [vmem:[#allocation8 + $0x6ac] sm:$0xf]  ;;  %v10027_v43 = vor.u32 %v11757_v41, %v10024_v47 }
 0x1ff   :  { %4712 = vmatpush.bf16.msrb.mxu3 %v7723_v57  ;;  %4687 = vmatpush.bf16.msrb.mxu1 %v9191_v3  ;;  %v11485_v54 = vld [vmem:[#allocation8 + $0xaac] sm:$0xf]  ;;  %v8427_v62 = vor.u32 %v11357_v16, %v8424_v53 }
 0x200   :  { %v8936_v57 = vld [vmem:[#allocation8 + $0xae8] sm:$0xf0] }
 0x201   :  { %4674 = vmatpush.bf16.msrb.mxu0 %v8679_v0  ;;  %4700 = vmatpush.bf16.msrb.mxu2 %v9703_v4  ;;  %v11613_v58 = vld [vmem:[#allocation8 + $0xeac] sm:$0xf]  ;;  %v8939_v0 = vor.u32 %v11485_v54, %v8936_v57  ;;  %v4482_v24 = vpop.f32.mrf.mxu1 }
 0x202   :  { %v9448_v59 = vld [vmem:[#allocation8 + $0xee8] sm:$0xf0] }
 0x203   :  { %4713 = vmatpush.bf16.msrb.mxu3 %v7659_v11  ;;  %4688 = vmatpush.bf16.msrb.mxu1 %v9127_v28  ;;  %v11741_v60 = vld [vmem:[#allocation8 + $0x12ac] sm:$0xf]  ;;  %v9451_v1 = vor.u32 %v11613_v58, %v9448_v59 }
 0x204   :  { %v9960_v61 = vld [vmem:[#allocation8 + $0x12e8] sm:$0xf0]  ;;  %v4469_v17 = vpop.f32.mrf.mxu0 }
 0x205   :  { %4675 = vmatpush.bf16.msrb.mxu0 %v8615_v22  ;;  %4701 = vmatpush.bf16.msrb.mxu2 %v9639_v56  ;;  %v11341_v2 = vld [vmem:[#allocation8 + $0x62c] sm:$0xf]  ;;  %v9963_v5 = vor.u32 %v11741_v60, %v9960_v61  ;;  %v4470_v20 = vadd.f32 %v4469_v17, %v12581_v44 }
 0x206   :  { %4689 = vmatmul.bf16.vlgmr.msrb.gmra.mxu1 %v12488_v15  ;;  %v8360_v3 = vld [vmem:[#allocation8 + $0x668] sm:$0xf0] }
 0x207   :  { %4714 = vmatpush.bf16.msrb.mxu3 %v7595_v30  ;;  %4733 = vmatpush.bf16.msra.mxu1 %v9067_v33  ;;  %v11469_v4 = vld [vmem:[#allocation8 + $0xa2c] sm:$0xf]  ;;  %v8363_v14 = vor.u32 %v11341_v2, %v8360_v3 }
 0x208   :  { %4702 = vmatmul.bf16.vlgmr.msrb.gmra.mxu2 %v12496_v31  ;;  %4676 = vmatmul.bf16.vlgmr.msrb.gmra.mxu0 %v12486_v9  ;;  %v8872_v6 = vld [vmem:[#allocation8 + $0xa68] sm:$0xf0] }
 0x209   :  { %4720 = vmatpush.bf16.msra.mxu0 %v8555_v32  ;;  %4746 = vmatpush.bf16.msra.mxu2 %v9579_v34  ;;  %v11597_v7 = vld [vmem:[#allocation8 + $0xe2c] sm:$0xf]  ;;  %v8875_v18 = vor.u32 %v11469_v4, %v8872_v6  ;;  %v4483_v32 = vadd.f32 %v4482_v24, %v4470_v20  ;;  %v4495_v36 = vpop.f32.mrf.mxu2  ;;  %v4484_v61 = vpop.f32.mrf.mxu1  ;;  %v8046_v24 = vld [vmem:[#allocation8 + $0x3b0] sm:$0xf] }
 0x20a   :  { %4715 = vmatmul.bf16.vlgmr.msrb.gmra.mxu3 %v12484_v8  ;;  %v9384_v10 = vld [vmem:[#allocation8 + $0xe68] sm:$0xf0] }
 0x20b   :  { %4759 = vmatpush.bf16.msra.mxu3 %v10091_v37  ;;  %4734 = vmatpush.bf16.msra.mxu1 %v9003_v49  ;;  %v11725_v11 = vld [vmem:[#allocation8 + $0x122c] sm:$0xf]  ;;  %v9387_v19 = vor.u32 %v11597_v7, %v9384_v10  ;;  %v4496_v55 = vadd.f32 %v4495_v36, %v4483_v32 }
 0x20c   :  { %v9896_v13 = vld [vmem:[#allocation8 + $0x1268] sm:$0xf0]  ;;  %v4471_v54 = vpop.f32.mrf.mxu0 }
 0x20d   :  { %4721 = vmatpush.bf16.msra.mxu0 %v8491_v48  ;;  %4747 = vmatpush.bf16.msra.mxu2 %v9515_v63  ;;  %v11325_v21 = vld [vmem:[#allocation8 + $0x5ac] sm:$0xf]  ;;  %v9899_v27 = vor.u32 %v11725_v11, %v9896_v13  ;;  %v4508_v48 = vpop.f32.mrf.mxu3 }
 0x20e   :  { %v8296_v22 = vld [vmem:[#allocation8 + $0x5e8] sm:$0xf0]  ;;  %v12588_v53 = vadd.f32 %v4508_v48, %v4496_v55  ;;  %v11254_v55 = vld [vmem:[#allocation8 + $0x36c] sm:$0xf0] }
 0x20f   :  { %4760 = vmatpush.bf16.msra.mxu3 %v10027_v43  ;;  %4735 = vmatpush.bf16.msra.mxu1 %v8939_v0  ;;  %v11453_v23 = vld [vmem:[#allocation8 + $0x9ac] sm:$0xf]  ;;  %v8299_v33 = vor.u32 %v11325_v21, %v8296_v22  ;;  %v9006_v48 = vld [vmem:[#allocation8 + $0xb30] sm:$0xf] }
 0x210   :  { %v8808_v28 = vld [vmem:[#allocation8 + $0x9e8] sm:$0xf0] }
 0x211   :  { %4722 = vmatpush.bf16.msra.mxu0 %v8427_v62  ;;  %4748 = vmatpush.bf16.msra.mxu2 %v9451_v1  ;;  %v11581_v56 = vld [vmem:[#allocation8 + $0xdac] sm:$0xf]  ;;  %v8811_v34 = vor.u32 %v11453_v23, %v8808_v28  ;;  %v8558_v28 = vld [vmem:[#allocation8 + $0x7b0] sm:$0xf] }
 0x212   :  { %v9320_v50 = vld [vmem:[#allocation8 + $0xde8] sm:$0xf0] }
 0x213   :  { %4761 = vmatpush.bf16.msra.mxu3 %v9963_v5  ;;  %v11709_v29 = vld [vmem:[#allocation8 + $0x11ac] sm:$0xf]  ;;  %4736 = vmatpush.bf16.msra.mxu1 %v8875_v18  ;;  %v9323_v35 = vor.u32 %v11581_v56, %v9320_v50  ;;  %v4497_v18 = vpop.f32.mrf.mxu2  ;;  %v11398_v50 = vld [vmem:[#allocation8 + $0x7ec] sm:$0xf0] }
 0x214   :  { %v9832_v30 = vld [vmem:[#allocation8 + $0x11e8] sm:$0xf0]  ;;  %v11478_v18 = vld [vmem:[#allocation8 + $0xa6c] sm:$0xf0] }
 0x215   :  { %4723 = vmatpush.bf16.msra.mxu0 %v8363_v14  ;;  %4749 = vmatpush.bf16.msra.mxu2 %v9387_v19  ;;  %v11309_v44 = vld [vmem:[#allocation8 + $0x52c] sm:$0xf]  ;;  %v9835_v38 = vor.u32 %v11709_v29, %v9832_v30  ;;  %v4510_v23 = vpop.f32.mrf.mxu3  ;;  %v9070_v29 = vld [vmem:[#allocation8 + $0xbb0] sm:$0xf] }
 0x216   :  { %v8232_v45 = vld [vmem:[#allocation8 + $0x568] sm:$0xf0]  ;;  %v11526_v30 = vld [vmem:[#allocation8 + $0xbec] sm:$0xf0] }
 0x217   :  { %v11437_v37 = vld [vmem:[#allocation8 + $0x92c] sm:$0xf]  ;;  %4762 = vmatpush.bf16.msra.mxu3 %v9899_v27  ;;  %v8235_v16 = vor.u32 %v11309_v44, %v8232_v45  ;;  %4737 = vmatpush.bf16.msra.mxu1 %v8811_v34  ;;  %v11270_v27 = vld [vmem:[#allocation8 + $0x3ec] sm:$0xf0]  ;;  %v8559_v45 = vor.u32 %v11398_v50, %v8558_v28 }
 0x218   :  { %v8744_v40 = vld [vmem:[#allocation8 + $0x968] sm:$0xf0]  ;;  %v9582_v34 = vld [vmem:[#allocation8 + $0xfb0] sm:$0xf]  ;;  %v8047_v44 = vor.u32 %v11270_v27, %v8046_v24 }
 0x219   :  { %v11565_v41 = vld [vmem:[#allocation8 + $0xd2c] sm:$0xf]  ;;  %4724 = vmatpush.bf16.msra.mxu0 %v8299_v33  ;;  %4750 = vmatpush.bf16.msra.mxu2 %v9323_v35  ;;  %v8747_v43 = vor.u32 %v11437_v37, %v8744_v40  ;;  %v11654_v35 = vld [vmem:[#allocation8 + $0xfec] sm:$0xf0]  ;;  %v9071_v37 = vor.u32 %v11526_v30, %v9070_v29 }
 0x21a   :  { %v9256_v47 = vld [vmem:[#allocation8 + $0xd68] sm:$0xf0]  ;;  %v8494_v40 = vld [vmem:[#allocation8 + $0x730] sm:$0xf] }
 0x21b   :  { %v11693_v49 = vld [vmem:[#allocation8 + $0x112c] sm:$0xf]  ;;  %v9259_v57 = vor.u32 %v11565_v41, %v9256_v47  ;;  %4763 = vmatpush.bf16.msra.mxu3 %v9835_v38  ;;  %4738 = vmatpush.bf16.msra.mxu1 %v8747_v43  ;;  %v7982_v38 = vld [vmem:[#allocation8 + $0x330] sm:$0xf]  ;;  %v9583_v41 = vor.u32 %v11654_v35, %v9582_v34 }
 0x21c   :  { %v9768_v63 = vld [vmem:[#allocation8 + $0x1168] sm:$0xf0]  ;;  %v11382_v47 = vld [vmem:[#allocation8 + $0x76c] sm:$0xf0]  ;;  %v7983_v54 = vor.u32 %v11254_v55, %v7982_v38 }
 0x21d   :  { %v11293_v58 = vld [vmem:[#allocation8 + $0x4ac] sm:$0xf]  ;;  %v9771_v62 = vor.u32 %v11693_v49, %v9768_v63  ;;  %4725 = vmatpush.bf16.msra.mxu0 %v8235_v16  ;;  %4751 = vmatpush.bf16.msra.mxu2 %v9259_v57  ;;  %v11510_v49 = vld [vmem:[#allocation8 + $0xb6c] sm:$0xf0]  ;;  %v8495_v43 = vor.u32 %v11382_v47, %v8494_v40 }
 0x21e   :  { %v8168_v59 = vld [vmem:[#allocation8 + $0x4e8] sm:$0xf0]  ;;  %v9518_v63 = vld [vmem:[#allocation8 + $0xf30] sm:$0xf]  ;;  %v9007_v57 = vor.u32 %v11510_v49, %v9006_v48 }
 0x21f   :  { %v11421_v60 = vld [vmem:[#allocation8 + $0x8ac] sm:$0xf]  ;;  %v8171_v5 = vor.u32 %v11293_v58, %v8168_v59  ;;  %4764 = vmatpush.bf16.msra.mxu3 %v9771_v62  ;;  %v11638_v16 = vld [vmem:[#allocation8 + $0xf6c] sm:$0xf0] }
 0x220   :  { %v8680_v0 = vld [vmem:[#allocation8 + $0x8e8] sm:$0xf0]  ;;  %v7918_v58 = vld [vmem:[#allocation8 + $0x2b0] sm:$0xf]  ;;  %v9519_v61 = vor.u32 %v11638_v16, %v9518_v63 }
 0x221   :  { %v11549_v1 = vld [vmem:[#allocation8 + $0xcac] sm:$0xf]  ;;  %v8683_v10 = vor.u32 %v11421_v60, %v8680_v0  ;;  %4726 = vmatpush.bf16.msra.mxu0 %v8171_v5  ;;  %v11238_v59 = vld [vmem:[#allocation8 + $0x2ec] sm:$0xf0] }
 0x222   :  { %v9192_v2 = vld [vmem:[#allocation8 + $0xce8] sm:$0xf0]  ;;  %v8430_v60 = vld [vmem:[#allocation8 + $0x6b0] sm:$0xf] }
 0x223   :  { %v11677_v3 = vld [vmem:[#allocation8 + $0x10ac] sm:$0xf]  ;;  %v9195_v11 = vor.u32 %v11549_v1, %v9192_v2  ;;  %4739 = vmatpush.bf16.msra.mxu1 %v8683_v10  ;;  %v11366_v62 = vld [vmem:[#allocation8 + $0x6ec] sm:$0xf0]  ;;  %v4534_v50 = vpop.f32.mrf.mxu1 }
 0x224   :  { %v9704_v4 = vld [vmem:[#allocation8 + $0x10e8] sm:$0xf0]  ;;  %v8942_v0 = vld [vmem:[#allocation8 + $0xab0] sm:$0xf]  ;;  %v8431_v5 = vor.u32 %v11366_v62, %v8430_v60 }
 0x225   :  { %v11277_v6 = vld [vmem:[#allocation8 + $0x42c] sm:$0xf]  ;;  %v9707_v19 = vor.u32 %v11677_v3, %v9704_v4  ;;  %4752 = vmatpush.bf16.msra.mxu2 %v9195_v11  ;;  %v11494_v1 = vld [vmem:[#allocation8 + $0xaec] sm:$0xf0]  ;;  %v7919_v4 = vor.u32 %v11238_v59, %v7918_v58 }
 0x226   :  { %v8104_v7 = vld [vmem:[#allocation8 + $0x468] sm:$0xf0]  ;;  %v9454_v2 = vld [vmem:[#allocation8 + $0xeb0] sm:$0xf] }
 0x227   :  { %v11405_v13 = vld [vmem:[#allocation8 + $0x82c] sm:$0xf]  ;;  %v8107_v56 = vor.u32 %v11277_v6, %v8104_v7  ;;  %4765 = vmatpush.bf16.msra.mxu3 %v9707_v19  ;;  %v11622_v3 = vld [vmem:[#allocation8 + $0xeec] sm:$0xf0]  ;;  %v8943_v6 = vor.u32 %v11494_v1, %v8942_v0 }
 0x228   :  { %v8616_v14 = vld [vmem:[#allocation8 + $0x868] sm:$0xf0]  ;;  %v7854_v7 = vld [vmem:[#allocation8 + $0x230] sm:$0xf] }
 0x229   :  { %v11533_v17 = vld [vmem:[#allocation8 + $0xc2c] sm:$0xf]  ;;  %v8619_v32 = vor.u32 %v11405_v13, %v8616_v14  ;;  %4727 = vmatpush.bf16.msra.mxu0 %v8107_v56  ;;  %v11222_v10 = vld [vmem:[#allocation8 + $0x26c] sm:$0xf0]  ;;  %v9455_v13 = vor.u32 %v11622_v3, %v9454_v2 }
 0x22a   :  { %v9128_v20 = vld [vmem:[#allocation8 + $0xc68] sm:$0xf0]  ;;  %v8366_v11 = vld [vmem:[#allocation8 + $0x630] sm:$0xf] }
 0x22b   :  { %v11661_v21 = vld [vmem:[#allocation8 + $0x102c] sm:$0xf]  ;;  %v9131_v33 = vor.u32 %v11533_v17, %v9128_v20  ;;  %4740 = vmatpush.bf16.msra.mxu1 %v8619_v32  ;;  %v11350_v14 = vld [vmem:[#allocation8 + $0x66c] sm:$0xf0]  ;;  %v4547_v63 = vpop.f32.mrf.mxu2  ;;  %v4536_v3 = vpop.f32.mrf.mxu1 }
 0x22c   :  { %v9640_v22 = vld [vmem:[#allocation8 + $0x1068] sm:$0xf0]  ;;  %4728 = vmatmul.bf16.vlgmr.msra.gmra.mxu0 %v12493_v25  ;;  %v8878_v17 = vld [vmem:[#allocation8 + $0xa30] sm:$0xf]  ;;  %v8367_v23 = vor.u32 %v11350_v14, %v8366_v11  ;;  %v11230_v3 = vld [vmem:[#allocation8 + $0x2b4] sm:$0xf] }
 0x22d   :  { %v9643_v36 = vor.u32 %v11661_v21, %v9640_v22  ;;  %4753 = vmatpush.bf16.msra.mxu2 %v9131_v33  ;;  %4772 = vmatpush.bf16.msrb.mxu0 %v8047_v44  ;;  %v9390_v19 = vld [vmem:[#allocation8 + $0xe30] sm:$0xf]  ;;  %v4521_v21 = vpop.f32.mrf.mxu0  ;;  %v7855_v22 = vor.u32 %v11222_v10, %v7854_v7  ;;  %v8879_v24 = vor.u32 %v11478_v18, %v8878_v17  ;;  %v4560_v16 = vpop.f32.mrf.mxu3 }
 0x22e   :  { %4741 = vmatmul.bf16.vlgmr.msra.gmra.mxu1 %v12486_v9  ;;  %v11606_v20 = vld [vmem:[#allocation8 + $0xe6c] sm:$0xf0]  ;;  %v4535_v34 = vadd.f32 %v4534_v50, %v4521_v21 }
 0x22f   :  { %4766 = vmatpush.bf16.msra.mxu3 %v9643_v36  ;;  %4785 = vmatpush.bf16.msrb.mxu1 %v8559_v45  ;;  %v7790_v27 = vld [vmem:[#allocation8 + $0x1b0] sm:$0xf]  ;;  %v9391_v29 = vor.u32 %v11606_v20, %v9390_v19 }
 0x230   :  { %4754 = vmatmul.bf16.vlgmr.msra.gmra.mxu2 %v12488_v15  ;;  %v11206_v28 = vld [vmem:[#allocation8 + $0x1ec] sm:$0xf0] }
 0x231   :  { %4798 = vmatpush.bf16.msrb.mxu2 %v9071_v37  ;;  %4773 = vmatpush.bf16.msrb.mxu0 %v7983_v54  ;;  %v8302_v56 = vld [vmem:[#allocation8 + $0x5b0] sm:$0xf]  ;;  %v7791_v44 = vor.u32 %v11206_v28, %v7790_v27 }
 0x232   :  { %4767 = vmatmul.bf16.vlgmr.msra.gmra.mxu3 %v12496_v31  ;;  %v11334_v30 = vld [vmem:[#allocation8 + $0x5ec] sm:$0xf0] }
 0x233   :  { %4811 = vmatpush.bf16.msrb.mxu3 %v9583_v41  ;;  %4786 = vmatpush.bf16.msrb.mxu1 %v8495_v43  ;;  %v8814_v32 = vld [vmem:[#allocation8 + $0x9b0] sm:$0xf]  ;;  %v8303_v45 = vor.u32 %v11334_v30, %v8302_v56  ;;  %v4549_v56 = vpop.f32.mrf.mxu2 }
 0x234   :  { %v11462_v33 = vld [vmem:[#allocation8 + $0x9ec] sm:$0xf0] }
 0x235   :  { %4799 = vmatpush.bf16.msrb.mxu2 %v9007_v57  ;;  %4774 = vmatpush.bf16.msrb.mxu0 %v7919_v4  ;;  %v9326_v35 = vld [vmem:[#allocation8 + $0xdb0] sm:$0xf]  ;;  %v8815_v37 = vor.u32 %v11462_v33, %v8814_v32  ;;  %v4548_v57 = vadd.f32 %v4547_v63, %v4535_v34  ;;  %v4523_v58 = vpop.f32.mrf.mxu0  ;;  %v4562_v50 = vpop.f32.mrf.mxu3  ;;  %v11262_v32 = vld [vmem:[#allocation8 + $0x3b4] sm:$0xf] }
 0x236   :  { %v11590_v36 = vld [vmem:[#allocation8 + $0xdec] sm:$0xf0]  ;;  %v8048_v34 = vld [vmem:[#allocation8 + $0x3f0] sm:$0xf0] }
 0x237   :  { %4812 = vmatpush.bf16.msrb.mxu3 %v9519_v61  ;;  %4787 = vmatpush.bf16.msrb.mxu1 %v8431_v5  ;;  %v7726_v38 = vld [vmem:[#allocation8 + $0x130] sm:$0xf]  ;;  %v9327_v41 = vor.u32 %v11590_v36, %v9326_v35  ;;  %v12594_v2 = vadd.f32 %v4560_v16, %v4548_v57  ;;  %v11390_v35 = vld [vmem:[#allocation8 + $0x7b4] sm:$0xf] }
 0x238   :  { %v11190_v55 = vld [vmem:[#allocation8 + $0x16c] sm:$0xf0]  ;;  %v8560_v36 = vld [vmem:[#allocation8 + $0x7f0] sm:$0xf0] }
 0x239   :  { %4800 = vmatpush.bf16.msrb.mxu2 %v8943_v6  ;;  %4775 = vmatpush.bf16.msrb.mxu0 %v7855_v22  ;;  %v8238_v40 = vld [vmem:[#allocation8 + $0x530] sm:$0xf]  ;;  %v7727_v59 = vor.u32 %v11190_v55, %v7726_v38  ;;  %v9072_v38 = vld [vmem:[#allocation8 + $0xbf0] sm:$0xf0] }
 0x23a   :  { %v11318_v47 = vld [vmem:[#allocation8 + $0x56c] sm:$0xf0]  ;;  %v11246_v63 = vld [vmem:[#allocation8 + $0x334] sm:$0xf] }
 0x23b   :  { %4813 = vmatpush.bf16.msrb.mxu3 %v9455_v13  ;;  %4788 = vmatpush.bf16.msrb.mxu1 %v8367_v23  ;;  %v8750_v48 = vld [vmem:[#allocation8 + $0x930] sm:$0xf]  ;;  %v8239_v60 = vor.u32 %v11318_v47, %v8238_v40  ;;  %v8563_v47 = vor.u32 %v11390_v35, %v8560_v36  ;;  %v8496_v57 = vld [vmem:[#allocation8 + $0x770] sm:$0xf0] }
 0x23c   :  { %v11446_v49 = vld [vmem:[#allocation8 + $0x96c] sm:$0xf0]  ;;  %v11502_v58 = vld [vmem:[#allocation8 + $0xb34] sm:$0xf] }
 0x23d   :  { %4801 = vmatpush.bf16.msrb.mxu2 %v8879_v24  ;;  %v9262_v54 = vld [vmem:[#allocation8 + $0xd30] sm:$0xf]  ;;  %4776 = vmatpush.bf16.msrb.mxu0 %v7791_v44  ;;  %v8751_v61 = vor.u32 %v11446_v49, %v8750_v48  ;;  %v11198_v35 = vld [vmem:[#allocation8 + $0x1b4] sm:$0xf] }
 0x23e   :  { %v11574_v43 = vld [vmem:[#allocation8 + $0xd6c] sm:$0xf0] }
 0x23f   :  { %4814 = vmatpush.bf16.msrb.mxu3 %v9391_v29  ;;  %4789 = vmatpush.bf16.msrb.mxu1 %v8303_v45  ;;  %v7662_v62 = vld [vmem:[#allocation8 + $0xb0] sm:$0xf]  ;;  %v9263_v4 = vor.u32 %v11574_v43, %v9262_v54  ;;  %v7984_v54 = vld [vmem:[#allocation8 + $0x370] sm:$0xf0] }
 0x240   :  { %v11174_v0 = vld [vmem:[#allocation8 + $0xec] sm:$0xf0]  ;;  %v11374_v43 = vld [vmem:[#allocation8 + $0x734] sm:$0xf] }
 0x241   :  { %4802 = vmatpush.bf16.msrb.mxu2 %v8815_v37  ;;  %v8174_v1 = vld [vmem:[#allocation8 + $0x4b0] sm:$0xf]  ;;  %4777 = vmatpush.bf16.msrb.mxu0 %v7727_v59  ;;  %v7663_v13 = vor.u32 %v11174_v0, %v7662_v62  ;;  %v11518_v37 = vld [vmem:[#allocation8 + $0xbb4] sm:$0xf]  ;;  %v8499_v62 = vor.u32 %v11374_v43, %v8496_v57 }
 0x242   :  { %v11302_v5 = vld [vmem:[#allocation8 + $0x4ec] sm:$0xf0]  ;;  %v9075_v16 = vor.u32 %v11518_v37, %v9072_v38  ;;  %v9008_v59 = vld [vmem:[#allocation8 + $0xb70] sm:$0xf0] }
 0x243   :  { %4815 = vmatpush.bf16.msrb.mxu3 %v9327_v41  ;;  %v8686_v6 = vld [vmem:[#allocation8 + $0x8b0] sm:$0xf]  ;;  %4790 = vmatpush.bf16.msrb.mxu1 %v8239_v60  ;;  %v8175_v18 = vor.u32 %v11302_v5, %v8174_v1  ;;  %v8051_v41 = vor.u32 %v11262_v32, %v8048_v34  ;;  %v7920_v5 = vld [vmem:[#allocation8 + $0x2f0] sm:$0xf0]  ;;  %v4586_v36 = vpop.f32.mrf.mxu1 }
 0x244   :  { %v11430_v7 = vld [vmem:[#allocation8 + $0x8ec] sm:$0xf0]  ;;  %v11326_v37 = vld [vmem:[#allocation8 + $0x5b4] sm:$0xf] }
 0x245   :  { %v9198_v10 = vld [vmem:[#allocation8 + $0xcb0] sm:$0xf]  ;;  %4803 = vmatpush.bf16.msrb.mxu2 %v8751_v61  ;;  %v8687_v19 = vor.u32 %v11430_v7, %v8686_v6  ;;  %4778 = vmatpush.bf16.msrb.mxu0 %v7663_v13  ;;  %v7987_v61 = vor.u32 %v11246_v63, %v7984_v54  ;;  %v11358_v6 = vld [vmem:[#allocation8 + $0x6b4] sm:$0xf]  ;;  %v4573_v56 = vpop.f32.mrf.mxu0 }
 0x246   :  { %v11558_v11 = vld [vmem:[#allocation8 + $0xcec] sm:$0xf0]  ;;  %v8432_v7 = vld [vmem:[#allocation8 + $0x6f0] sm:$0xf0] }
 0x247   :  { %v7598_v14 = vld [vmem:[#allocation8 + $0x30] sm:$0xf]  ;;  %4816 = vmatpush.bf16.msrb.mxu3 %v9263_v4  ;;  %v9199_v23 = vor.u32 %v11558_v11, %v9198_v10  ;;  %4791 = vmatpush.bf16.msrb.mxu1 %v8175_v18  ;;  %v9011_v4 = vor.u32 %v11502_v58, %v9008_v59  ;;  %v11486_v10 = vld [vmem:[#allocation8 + $0xab4] sm:$0xf] }
 0x248   :  { %v11158_v17 = vld [vmem:[#allocation8 + $0x6c] sm:$0xf0]  ;;  %v8944_v11 = vld [vmem:[#allocation8 + $0xaf0] sm:$0xf0] }
 0x249   :  { %v8110_v20 = vld [vmem:[#allocation8 + $0x430] sm:$0xf]  ;;  %v7599_v33 = vor.u32 %v11158_v17, %v7598_v14  ;;  %4804 = vmatpush.bf16.msrb.mxu2 %v8687_v19  ;;  %v7923_v14 = vor.u32 %v11230_v3, %v7920_v5  ;;  %v8435_v17 = vor.u32 %v11358_v6, %v8432_v7  ;;  %v8304_v38 = vld [vmem:[#allocation8 + $0x5f0] sm:$0xf0] }
 0x24a   :  { %v11286_v21 = vld [vmem:[#allocation8 + $0x46c] sm:$0xf0]  ;;  %v11182_v63 = vld [vmem:[#allocation8 + $0x134] sm:$0xf] }
 0x24b   :  { %v8622_v22 = vld [vmem:[#allocation8 + $0x830] sm:$0xf]  ;;  %v8111_v44 = vor.u32 %v11286_v21, %v8110_v20  ;;  %4817 = vmatpush.bf16.msrb.mxu3 %v9199_v23  ;;  %4779 = vmatpush.bf16.msrb.mxu0 %v7599_v33  ;;  %v11214_v20 = vld [vmem:[#allocation8 + $0x234] sm:$0xf]  ;;  %v8947_v21 = vor.u32 %v11486_v10, %v8944_v11  ;;  %v4599_v58 = vpop.f32.mrf.mxu2  ;;  %v4588_v11 = vpop.f32.mrf.mxu1 }
 0x24c   :  { %v11414_v24 = vld [vmem:[#allocation8 + $0x86c] sm:$0xf0]  ;;  %v11342_v23 = vld [vmem:[#allocation8 + $0x634] sm:$0xf] }
 0x24d   :  { %v9134_v27 = vld [vmem:[#allocation8 + $0xc30] sm:$0xf]  ;;  %v8623_v45 = vor.u32 %v11414_v24, %v8622_v22  ;;  %4792 = vmatpush.bf16.msrb.mxu1 %v8111_v44  ;;  %v7856_v22 = vld [vmem:[#allocation8 + $0x270] sm:$0xf0]  ;;  %v4612_v59 = vpop.f32.mrf.mxu3 }
 0x24e   :  { %v11542_v28 = vld [vmem:[#allocation8 + $0xc6c] sm:$0xf0]  ;;  %4780 = vmatmul.bf16.vlgmr.msrb.gmra.mxu0 %v12484_v8  ;;  %v8368_v24 = vld [vmem:[#allocation8 + $0x670] sm:$0xf0] }
 0x24f   :  { %v10094_v29 = vld [vmem:[#allocation8 + $0x13b0] sm:$0xf]  ;;  %v9135_v55 = vor.u32 %v11542_v28, %v9134_v27  ;;  %4805 = vmatpush.bf16.msrb.mxu2 %v8623_v45  ;;  %v11470_v27 = vld [vmem:[#allocation8 + $0xa34] sm:$0xf]  ;;  %v8371_v32 = vor.u32 %v11342_v23, %v8368_v24 }
 0x250   :  { %v11782_v30 = vld [vmem:[#allocation8 + $0x13ec] sm:$0xf0]  ;;  %4793 = vmatmul.bf16.vlgmr.msrb.gmra.mxu1 %v12493_v25  ;;  %v8880_v28 = vld [vmem:[#allocation8 + $0xa70] sm:$0xf0] }
 0x251   :  { %v10095_v40 = vor.u32 %v11782_v30, %v10094_v29  ;;  %v10030_v48 = vld [vmem:[#allocation8 + $0x1330] sm:$0xf]  ;;  %4818 = vmatpush.bf16.msrb.mxu3 %v9135_v55  ;;  %4837 = vmatpush.bf16.msra.mxu1 %v8051_v41  ;;  %v12601_v29 = vadd.f32 %v4573_v56, %v12594_v2  ;;  %v7859_v30 = vor.u32 %v11214_v20, %v7856_v22  ;;  %v7792_v45 = vld [vmem:[#allocation8 + $0x1f0] sm:$0xf0] }
 0x252   :  { %v11766_v49 = vld [vmem:[#allocation8 + $0x136c] sm:$0xf0]  ;;  %4806 = vmatmul.bf16.vlgmr.msrb.gmra.mxu2 %v12486_v9  ;;  %v8883_v44 = vor.u32 %v11470_v27, %v8880_v28  ;;  %v11454_v55 = vld [vmem:[#allocation8 + $0x9b4] sm:$0xf]  ;;  %v7795_v2 = vor.u32 %v11198_v35, %v7792_v45 }
 0x253   :  { %4824 = vmatpush.bf16.msra.mxu0 %v10095_v40  ;;  %v10031_v60 = vor.u32 %v11766_v49, %v10030_v48  ;;  %4850 = vmatpush.bf16.msra.mxu2 %v8563_v47  ;;  %v9966_v0 = vld [vmem:[#allocation8 + $0x12b0] sm:$0xf]  ;;  %v8816_v40 = vld [vmem:[#allocation8 + $0x9f0] sm:$0xf0]  ;;  %v8307_v47 = vor.u32 %v11326_v37, %v8304_v38  ;;  %v4601_v35 = vpop.f32.mrf.mxu2 }
 0x254   :  { %v11750_v1 = vld [vmem:[#allocation8 + $0x12ec] sm:$0xf0]  ;;  %4819 = vmatmul.bf16.vlgmr.msrb.gmra.mxu3 %v12488_v15  ;;  %v7728_v54 = vld [vmem:[#allocation8 + $0x170] sm:$0xf0]  ;;  %v11351_v35 = vld [vmem:[#allocation8 + $0x674] sm:$0xf0] }
 0x255   :  { %4863 = vmatpush.bf16.msra.mxu3 %v9075_v16  ;;  %v9967_v13 = vor.u32 %v11750_v1, %v9966_v0  ;;  %4838 = vmatpush.bf16.msra.mxu1 %v7987_v61  ;;  %v9902_v18 = vld [vmem:[#allocation8 + $0x1230] sm:$0xf]  ;;  %v8819_v16 = vor.u32 %v11454_v55, %v8816_v40  ;;  %v11310_v43 = vld [vmem:[#allocation8 + $0x534] sm:$0xf]  ;;  %v4575_v0 = vpop.f32.mrf.mxu0  ;;  %v7731_v3 = vor.u32 %v11182_v63, %v7728_v54  ;;  %v8054_v40 = vld [vmem:[#allocation8 + $0x3b8] sm:$0xf] }
 0x256   :  { %v11734_v19 = vld [vmem:[#allocation8 + $0x126c] sm:$0xf0]  ;;  %v8240_v57 = vld [vmem:[#allocation8 + $0x570] sm:$0xf0]  ;;  %v11255_v0 = vld [vmem:[#allocation8 + $0x374] sm:$0xf0] }
 0x257   :  { %4825 = vmatpush.bf16.msra.mxu0 %v10031_v60  ;;  %4851 = vmatpush.bf16.msra.mxu2 %v8499_v62  ;;  %v9903_v50 = vor.u32 %v11734_v19, %v9902_v18  ;;  %v9838_v33 = vld [vmem:[#allocation8 + $0x11b0] sm:$0xf]  ;;  %v11438_v60 = vld [vmem:[#allocation8 + $0x934] sm:$0xf]  ;;  %v4600_v62 = vadd.f32 %v4599_v58, %v4586_v36  ;;  %v4614_v36 = vpop.f32.mrf.mxu3 }
 0x258   :  { %v11718_v34 = vld [vmem:[#allocation8 + $0x11ec] sm:$0xf0]  ;;  %v8752_v61 = vld [vmem:[#allocation8 + $0x970] sm:$0xf0] }
 0x259   :  { %4864 = vmatpush.bf16.msra.mxu3 %v9011_v4  ;;  %4839 = vmatpush.bf16.msra.mxu1 %v7923_v14  ;;  %v9839_v41 = vor.u32 %v11718_v34, %v9838_v33  ;;  %v9774_v48 = vld [vmem:[#allocation8 + $0x1130] sm:$0xf]  ;;  %v8243_v4 = vor.u32 %v11310_v43, %v8240_v57  ;;  %v11166_v7 = vld [vmem:[#allocation8 + $0xb4] sm:$0xf]  ;;  %v12603_v10 = vadd.f32 %v4612_v59, %v4600_v62  ;;  %v7990_v62 = vld [vmem:[#allocation8 + $0x338] sm:$0xf] }
 0x25a   :  { %v11702_v49 = vld [vmem:[#allocation8 + $0x116c] sm:$0xf0]  ;;  %v7664_v14 = vld [vmem:[#allocation8 + $0xf0] sm:$0xf0] }
 0x25b   :  { %4826 = vmatpush.bf16.msra.mxu0 %v9967_v13  ;;  %4852 = vmatpush.bf16.msra.mxu2 %v8435_v17  ;;  %v9775_v1 = vor.u32 %v11702_v49, %v9774_v48  ;;  %v9710_v5 = vld [vmem:[#allocation8 + $0x10b0] sm:$0xf]  ;;  %v8755_v13 = vor.u32 %v11438_v60, %v8752_v61  ;;  %v11294_v17 = vld [vmem:[#allocation8 + $0x4b4] sm:$0xf]  ;;  %v7667_v24 = vor.u32 %v11166_v7, %v7664_v14  ;;  %v8566_v48 = vld [vmem:[#allocation8 + $0x7b8] sm:$0xf] }
 0x25c   :  { %v11686_v6 = vld [vmem:[#allocation8 + $0x10ec] sm:$0xf0]  ;;  %v8176_v18 = vld [vmem:[#allocation8 + $0x4f0] sm:$0xf0]  ;;  %v11399_v49 = vld [vmem:[#allocation8 + $0x7f4] sm:$0xf0] }
 0x25d   :  { %4865 = vmatpush.bf16.msra.mxu3 %v8947_v21  ;;  %4840 = vmatpush.bf16.msra.mxu1 %v7859_v30  ;;  %v11422_v19 = vld [vmem:[#allocation8 + $0x8b4] sm:$0xf]  ;;  %v9711_v21 = vor.u32 %v11686_v6, %v9710_v5  ;;  %v9646_v22 = vld [vmem:[#allocation8 + $0x1030] sm:$0xf]  ;;  %v8179_v27 = vor.u32 %v11294_v17, %v8176_v18  ;;  %v8567_v60 = vor.u32 %v11399_v49, %v8566_v48  ;;  %v7926_v18 = vld [vmem:[#allocation8 + $0x2b8] sm:$0xf] }
 0x25e   :  { %v8688_v20 = vld [vmem:[#allocation8 + $0x8f0] sm:$0xf0]  ;;  %v11670_v23 = vld [vmem:[#allocation8 + $0x106c] sm:$0xf0]  ;;  %v7991_v6 = vor.u32 %v11255_v0, %v7990_v62  ;;  %v7798_v49 = vld [vmem:[#allocation8 + $0x1b8] sm:$0xf] }
 0x25f   :  { %4827 = vmatpush.bf16.msra.mxu0 %v9903_v50  ;;  %4853 = vmatpush.bf16.msra.mxu2 %v8371_v32  ;;  %v11150_v28 = vld [vmem:[#allocation8 + $0x34] sm:$0xf]  ;;  %v8691_v30 = vor.u32 %v11422_v19, %v8688_v20  ;;  %v9647_v38 = vor.u32 %v11670_v23, %v9646_v22  ;;  %v11239_v19 = vld [vmem:[#allocation8 + $0x2f4] sm:$0xf0] }
 0x260   :  { %v7600_v56 = vld [vmem:[#allocation8 + $0x70] sm:$0xf0]  ;;  %v8438_v20 = vld [vmem:[#allocation8 + $0x6b8] sm:$0xf] }
 0x261   :  { %4866 = vmatpush.bf16.msra.mxu3 %v8883_v44  ;;  %4841 = vmatpush.bf16.msra.mxu1 %v7795_v2  ;;  %v11278_v50 = vld [vmem:[#allocation8 + $0x434] sm:$0xf]  ;;  %v7603_v2 = vor.u32 %v11150_v28, %v7600_v56 }
 0x262   :  { %v8112_v32 = vld [vmem:[#allocation8 + $0x470] sm:$0xf0] }
 0x263   :  { %4828 = vmatpush.bf16.msra.mxu0 %v9839_v41  ;;  %4854 = vmatpush.bf16.msra.mxu2 %v8307_v47  ;;  %v11406_v33 = vld [vmem:[#allocation8 + $0x834] sm:$0xf]  ;;  %v11271_v41 = vld [vmem:[#allocation8 + $0x3f4] sm:$0xf0]  ;;  %v8115_v47 = vor.u32 %v11278_v50, %v8112_v32 }
 0x264   :  { %v8624_v34 = vld [vmem:[#allocation8 + $0x870] sm:$0xf0]  ;;  %v8055_v43 = vor.u32 %v11271_v41, %v8054_v40  ;;  %v7862_v32 = vld [vmem:[#allocation8 + $0x238] sm:$0xf] }
 0x265   :  { %4867 = vmatpush.bf16.msra.mxu3 %v8819_v16  ;;  %4842 = vmatpush.bf16.msra.mxu1 %v7731_v3  ;;  %v11646_v44 = vld [vmem:[#allocation8 + $0xfb4] sm:$0xf]  ;;  %v8627_v63 = vor.u32 %v11406_v33, %v8624_v34  ;;  %v11383_v3 = vld [vmem:[#allocation8 + $0x774] sm:$0xf0]  ;;  %v4625_v36 = vpop.f32.mrf.mxu0 }
 0x266   :  { %v9584_v45 = vld [vmem:[#allocation8 + $0xff0] sm:$0xf0]  ;;  %v11223_v33 = vld [vmem:[#allocation8 + $0x274] sm:$0xf0] }
 0x267   :  { %4829 = vmatpush.bf16.msra.mxu0 %v9775_v1  ;;  %4855 = vmatpush.bf16.msra.mxu2 %v8243_v4  ;;  %v11774_v37 = vld [vmem:[#allocation8 + $0x13b4] sm:$0xf]  ;;  %v9587_v16 = vor.u32 %v11646_v44, %v9584_v45  ;;  %v8502_v1 = vld [vmem:[#allocation8 + $0x738] sm:$0xf]  ;;  %v4626_v45 = vadd.f32 %v4625_v36, %v12603_v10 }
 0x268   :  { %v10096_v55 = vld [vmem:[#allocation8 + $0x13f0] sm:$0xf0]  ;;  %v8503_v14 = vor.u32 %v11383_v3, %v8502_v1  ;;  %v8374_v34 = vld [vmem:[#allocation8 + $0x638] sm:$0xf] }
 0x269   :  { %4868 = vmatpush.bf16.msra.mxu3 %v8755_v13  ;;  %4843 = vmatpush.bf16.msra.mxu1 %v7667_v24  ;;  %v10099_v54 = vor.u32 %v11774_v37, %v10096_v55  ;;  %v11630_v57 = vld [vmem:[#allocation8 + $0xf34] sm:$0xf]  ;;  %v7927_v24 = vor.u32 %v11239_v19, %v7926_v18  ;;  %v4638_v37 = vpop.f32.mrf.mxu1  ;;  %v7863_v55 = vor.u32 %v11223_v33, %v7862_v32  ;;  %v7734_v1 = vld [vmem:[#allocation8 + $0x138] sm:$0xf] }
 0x26a   :  { %v9520_v58 = vld [vmem:[#allocation8 + $0xf70] sm:$0xf0]  ;;  %v11191_v3 = vld [vmem:[#allocation8 + $0x174] sm:$0xf0] }
 0x26b   :  { %4830 = vmatpush.bf16.msra.mxu0 %v9711_v21  ;;  %4856 = vmatpush.bf16.msra.mxu2 %v8179_v27  ;;  %v11758_v59 = vld [vmem:[#allocation8 + $0x1334] sm:$0xf]  ;;  %v9523_v4 = vor.u32 %v11630_v57, %v9520_v58  ;;  %v11367_v21 = vld [vmem:[#allocation8 + $0x6f4] sm:$0xf0]  ;;  %v7735_v19 = vor.u32 %v11191_v3, %v7734_v1 }
 0x26c   :  { %v10032_v61 = vld [vmem:[#allocation8 + $0x1370] sm:$0xf0]  ;;  %v8439_v50 = vor.u32 %v11367_v21, %v8438_v20  ;;  %v9014_v3 = vld [vmem:[#allocation8 + $0xb38] sm:$0xf] }
 0x26d   :  { %4869 = vmatpush.bf16.msra.mxu3 %v8691_v30  ;;  %4844 = vmatpush.bf16.msra.mxu1 %v7603_v2  ;;  %v10035_v5 = vor.u32 %v11758_v59, %v10032_v61  ;;  %v11614_v7 = vld [vmem:[#allocation8 + $0xeb4] sm:$0xf] }
 0x26e   :  { %v9456_v11 = vld [vmem:[#allocation8 + $0xef0] sm:$0xf0] }
 0x26f   :  { %4831 = vmatpush.bf16.msra.mxu0 %v9647_v38  ;;  %4857 = vmatpush.bf16.msra.mxu2 %v8115_v47  ;;  %v11742_v13 = vld [vmem:[#allocation8 + $0x12b4] sm:$0xf]  ;;  %v9459_v22 = vor.u32 %v11614_v7, %v9456_v11  ;;  %v8375_v47 = vor.u32 %v11351_v35, %v8374_v34  ;;  %v4664_v7 = vpop.f32.mrf.mxu3  ;;  %v4627_v11 = vpop.f32.mrf.mxu0 }
 0x270   :  { %v9968_v17 = vld [vmem:[#allocation8 + $0x12f0] sm:$0xf0]  ;;  %4845 = vmatmul.bf16.vlgmr.msra.gmra.mxu1 %v12484_v8  ;;  %v10038_v11 = vld [vmem:[#allocation8 + $0x1338] sm:$0xf] }
 0x271   :  { %4870 = vmatpush.bf16.msra.mxu3 %v8627_v63  ;;  %4889 = vmatpush.bf16.msrb.mxu1 %v10099_v54  ;;  %v9971_v23 = vor.u32 %v11742_v13, %v9968_v17  ;;  %v11598_v27 = vld [vmem:[#allocation8 + $0xe34] sm:$0xf]  ;;  %v11207_v63 = vld [vmem:[#allocation8 + $0x1f4] sm:$0xf0]  ;;  %v4640_v17 = vpop.f32.mrf.mxu1 }
 0x272   :  { %4832 = vmatmul.bf16.vlgmr.msra.gmra.mxu0 %v12496_v31  ;;  %4858 = vmatmul.bf16.vlgmr.msra.gmra.mxu2 %v12493_v25  ;;  %v9392_v28 = vld [vmem:[#allocation8 + $0xe70] sm:$0xf0]  ;;  %v8310_v54 = vld [vmem:[#allocation8 + $0x5b8] sm:$0xf]  ;;  %v7799_v58 = vor.u32 %v11207_v63, %v7798_v49  ;;  %v11247_v17 = vld [vmem:[#allocation8 + $0x33c] sm:$0xf] }
 0x273   :  { %4876 = vmatpush.bf16.msrb.mxu0 %v9587_v16  ;;  %4902 = vmatpush.bf16.msrb.mxu2 %v8055_v43  ;;  %v11726_v56 = vld [vmem:[#allocation8 + $0x1234] sm:$0xf]  ;;  %v9395_v44 = vor.u32 %v11598_v27, %v9392_v28  ;;  %v12610_v16 = vadd.f32 %v4638_v37, %v4626_v45  ;;  %v11335_v43 = vld [vmem:[#allocation8 + $0x5f4] sm:$0xf0] }
 0x274   :  { %4871 = vmatmul.bf16.vlgmr.msra.gmra.mxu3 %v12486_v9  ;;  %v9904_v30 = vld [vmem:[#allocation8 + $0x1270] sm:$0xf0]  ;;  %v8311_v62 = vor.u32 %v11335_v43, %v8310_v54  ;;  %v7670_v27 = vld [vmem:[#allocation8 + $0xb8] sm:$0xf] }
 0x275   :  { %4915 = vmatpush.bf16.msrb.mxu3 %v8567_v60  ;;  %4890 = vmatpush.bf16.msrb.mxu1 %v10035_v5  ;;  %v9907_v38 = vor.u32 %v11726_v56, %v9904_v30  ;;  %v11582_v40 = vld [vmem:[#allocation8 + $0xdb4] sm:$0xf]  ;;  %v8246_v5 = vld [vmem:[#allocation8 + $0x538] sm:$0xf] }
 0x276   :  { %v9328_v41 = vld [vmem:[#allocation8 + $0xdf0] sm:$0xf0]  ;;  %v11175_v28 = vld [vmem:[#allocation8 + $0xf4] sm:$0xf0] }
 0x277   :  { %4877 = vmatpush.bf16.msrb.mxu0 %v9523_v4  ;;  %4903 = vmatpush.bf16.msrb.mxu2 %v7991_v6  ;;  %v11710_v2 = vld [vmem:[#allocation8 + $0x11b4] sm:$0xf]  ;;  %v9331_v57 = vor.u32 %v11582_v40, %v9328_v41  ;;  %v4651_v4 = vpop.f32.mrf.mxu2  ;;  %v11319_v6 = vld [vmem:[#allocation8 + $0x574] sm:$0xf0]  ;;  %v7671_v35 = vor.u32 %v11175_v28, %v7670_v27  ;;  %v4666_v49 = vpop.f32.mrf.mxu3 }
 0x278   :  { %v9840_v48 = vld [vmem:[#allocation8 + $0x11f0] sm:$0xf0]  ;;  %v8182_v56 = vld [vmem:[#allocation8 + $0x4b8] sm:$0xf] }
 0x279   :  { %4916 = vmatpush.bf16.msrb.mxu3 %v8503_v14  ;;  %4891 = vmatpush.bf16.msrb.mxu1 %v9971_v23  ;;  %v9843_v10 = vor.u32 %v11710_v2, %v9840_v48  ;;  %v11566_v59 = vld [vmem:[#allocation8 + $0xd34] sm:$0xf]  ;;  %v12612_v14 = vadd.f32 %v4664_v7, %v4651_v4  ;;  %v8247_v23 = vor.u32 %v11319_v6, %v8246_v5  ;;  %v7606_v45 = vld [vmem:[#allocation8 + $0x38] sm:$0xf] }
 0x27a   :  { %v9264_v60 = vld [vmem:[#allocation8 + $0xd70] sm:$0xf0]  ;;  %v11287_v40 = vld [vmem:[#allocation8 + $0x474] sm:$0xf0] }
 0x27b   :  { %4878 = vmatpush.bf16.msrb.mxu0 %v9459_v22  ;;  %4904 = vmatpush.bf16.msrb.mxu2 %v7927_v24  ;;  %v11694_v61 = vld [vmem:[#allocation8 + $0x1134] sm:$0xf]  ;;  %v9267_v13 = vor.u32 %v11566_v59, %v9264_v60  ;;  %v9078_v2 = vld [vmem:[#allocation8 + $0xbb8] sm:$0xf]  ;;  %v11263_v59 = vld [vmem:[#allocation8 + $0x3bc] sm:$0xf] }
 0x27c   :  { %v9776_v0 = vld [vmem:[#allocation8 + $0x1170] sm:$0xf0]  ;;  %v9590_v48 = vld [vmem:[#allocation8 + $0xfb8] sm:$0xf]  ;;  %v8056_v60 = vld [vmem:[#allocation8 + $0x3f8] sm:$0xf0] }
 0x27d   :  { %4917 = vmatpush.bf16.msrb.mxu3 %v8439_v50  ;;  %4892 = vmatpush.bf16.msrb.mxu1 %v9907_v38  ;;  %v9779_v18 = vor.u32 %v11694_v61, %v9776_v0  ;;  %v11550_v20 = vld [vmem:[#allocation8 + $0xcb4] sm:$0xf]  ;;  %v11303_v50 = vld [vmem:[#allocation8 + $0x4f4] sm:$0xf0]  ;;  %v8059_v6 = vor.u32 %v11263_v59, %v8056_v60 }
 0x27e   :  { %v9200_v21 = vld [vmem:[#allocation8 + $0xcf0] sm:$0xf0]  ;;  %v8183_v37 = vor.u32 %v11303_v50, %v8182_v56  ;;  %v11159_v38 = vld [vmem:[#allocation8 + $0x74] sm:$0xf0] }
 0x27f   :  { %4879 = vmatpush.bf16.msrb.mxu0 %v9395_v44  ;;  %4905 = vmatpush.bf16.msrb.mxu2 %v7863_v55  ;;  %v11678_v22 = vld [vmem:[#allocation8 + $0x10b4] sm:$0xf]  ;;  %v9203_v30 = vor.u32 %v11550_v20, %v9200_v21  ;;  %v8118_v55 = vld [vmem:[#allocation8 + $0x438] sm:$0xf]  ;;  %v4653_v41 = vpop.f32.mrf.mxu2 }
 0x280   :  { %v9712_v24 = vld [vmem:[#allocation8 + $0x10f0] sm:$0xf0]  ;;  %v11655_v54 = vld [vmem:[#allocation8 + $0xff4] sm:$0xf0]  ;;  %v8119_v61 = vor.u32 %v11287_v40, %v8118_v55  ;;  %v11215_v41 = vld [vmem:[#allocation8 + $0x23c] sm:$0xf] }
 0x281   :  { %4918 = vmatpush.bf16.msrb.mxu3 %v8375_v47  ;;  %4893 = vmatpush.bf16.msrb.mxu1 %v9843_v10  ;;  %v11534_v32 = vld [vmem:[#allocation8 + $0xc34] sm:$0xf]  ;;  %v9715_v34 = vor.u32 %v11678_v22, %v9712_v24  ;;  %v11527_v47 = vld [vmem:[#allocation8 + $0xbf4] sm:$0xf0]  ;;  %v9591_v0 = vor.u32 %v11655_v54, %v9590_v48 }
 0x282   :  { %v9136_v33 = vld [vmem:[#allocation8 + $0xc70] sm:$0xf0]  ;;  %v10102_v43 = vld [vmem:[#allocation8 + $0x13b8] sm:$0xf] }
 0x283   :  { %4880 = vmatpush.bf16.msrb.mxu0 %v9331_v57  ;;  %4906 = vmatpush.bf16.msrb.mxu2 %v7799_v58  ;;  %v11662_v36 = vld [vmem:[#allocation8 + $0x1034] sm:$0xf]  ;;  %v9139_v63 = vor.u32 %v11534_v32, %v9136_v33  ;;  %v11783_v57 = vld [vmem:[#allocation8 + $0x13f4] sm:$0xf0]  ;;  %v7607_v58 = vor.u32 %v11159_v38, %v7606_v45  ;;  %v7928_v32 = vld [vmem:[#allocation8 + $0x2f8] sm:$0xf0]  ;;  %v4690_v49 = vpop.f32.mrf.mxu1 }
 0x284   :  { %v9648_v44 = vld [vmem:[#allocation8 + $0x1070] sm:$0xf0]  ;;  %v10103_v1 = vor.u32 %v11783_v57, %v10102_v43  ;;  %v11511_v4 = vld [vmem:[#allocation8 + $0xb74] sm:$0xf0] }
 0x285   :  { %4919 = vmatpush.bf16.msrb.mxu3 %v8311_v62  ;;  %4894 = vmatpush.bf16.msrb.mxu1 %v9779_v18  ;;  %v9651_v10 = vor.u32 %v11662_v36, %v9648_v44  ;;  %v9079_v62 = vor.u32 %v11527_v47, %v9078_v2  ;;  %v9526_v5 = vld [vmem:[#allocation8 + $0xf38] sm:$0xf]  ;;  %v7992_v18 = vld [vmem:[#allocation8 + $0x378] sm:$0xf0]  ;;  %v4677_v48 = vpop.f32.mrf.mxu0 }
 0x286   :  { %v11639_v7 = vld [vmem:[#allocation8 + $0xf74] sm:$0xf0]  ;;  %v7995_v27 = vor.u32 %v11247_v17, %v7992_v18  ;;  %v7864_v2 = vld [vmem:[#allocation8 + $0x278] sm:$0xf0] }
 0x287   :  { %4881 = vmatpush.bf16.msrb.mxu0 %v9267_v13  ;;  %4907 = vmatpush.bf16.msrb.mxu2 %v7735_v19  ;;  %v11767_v13 = vld [vmem:[#allocation8 + $0x1374] sm:$0xf0]  ;;  %v9015_v19 = vor.u32 %v11511_v4, %v9014_v3  ;;  %v9527_v20 = vor.u32 %v11639_v7, %v9526_v5  ;;  %v7867_v59 = vor.u32 %v11215_v41, %v7864_v2 }
 0x288   :  { %v10039_v21 = vor.u32 %v11767_v13, %v10038_v11  ;;  %v8950_v22 = vld [vmem:[#allocation8 + $0xab8] sm:$0xf] }
 0x289   :  { %4920 = vmatpush.bf16.msrb.mxu3 %v8247_v23  ;;  %4895 = vmatpush.bf16.msrb.mxu1 %v9715_v34  ;;  %v11495_v23 = vld [vmem:[#allocation8 + $0xaf4] sm:$0xf0] }
 0x28a   :  { %v9462_v24 = vld [vmem:[#allocation8 + $0xeb8] sm:$0xf]  ;;  %v8951_v33 = vor.u32 %v11495_v23, %v8950_v22  ;;  %v11183_v22 = vld [vmem:[#allocation8 + $0x13c] sm:$0xf] }
 0x28b   :  { %4882 = vmatpush.bf16.msrb.mxu0 %v9203_v30  ;;  %4908 = vmatpush.bf16.msrb.mxu2 %v7671_v35  ;;  %v11623_v28 = vld [vmem:[#allocation8 + $0xef4] sm:$0xf0]  ;;  %v11231_v30 = vld [vmem:[#allocation8 + $0x2bc] sm:$0xf]  ;;  %v4703_v17 = vpop.f32.mrf.mxu2 }
 0x28c   :  { %v9974_v56 = vld [vmem:[#allocation8 + $0x12b8] sm:$0xf]  ;;  %v9463_v34 = vor.u32 %v11623_v28, %v9462_v24  ;;  %v7736_v23 = vld [vmem:[#allocation8 + $0x178] sm:$0xf0] }
 0x28d   :  { %4921 = vmatpush.bf16.msrb.mxu3 %v8183_v37  ;;  %4896 = vmatpush.bf16.msrb.mxu1 %v9651_v10  ;;  %v11751_v50 = vld [vmem:[#allocation8 + $0x12f4] sm:$0xf0]  ;;  %v7931_v37 = vor.u32 %v11231_v30, %v7928_v32  ;;  %v12621_v24 = vpop.f32.mrf.mxu3  ;;  %v4679_v28 = vpop.f32.mrf.mxu0 }
 0x28e   :  { %v9975_v35 = vor.u32 %v11751_v50, %v9974_v56  ;;  %v8886_v36 = vld [vmem:[#allocation8 + $0xa38] sm:$0xf]  ;;  %v4692_v56 = vpop.f32.mrf.mxu1  ;;  %v11631_v28 = vld [vmem:[#allocation8 + $0xf3c] sm:$0xf] }
 0x28f   :  { %4883 = vmatpush.bf16.msrb.mxu0 %v9139_v63  ;;  %4909 = vmatpush.bf16.msrb.mxu2 %v7607_v58  ;;  %v11479_v44 = vld [vmem:[#allocation8 + $0xa74] sm:$0xf0]  ;;  %v4678_v58 = vadd.f32 %v4677_v48, %v12612_v14  ;;  %v9528_v56 = vld [vmem:[#allocation8 + $0xf78] sm:$0xf0] }
 0x290   :  { %4897 = vmatmul.bf16.vlgmr.msrb.gmra.mxu1 %v12496_v31  ;;  %v9398_v45 = vld [vmem:[#allocation8 + $0xe38] sm:$0xf]  ;;  %v8887_v47 = vor.u32 %v11479_v44, %v8886_v36 }
 0x291   :  { %4922 = vmatpush.bf16.msrb.mxu3 %v8119_v61  ;;  %4941 = vmatpush.bf16.msra.mxu1 %v9591_v0  ;;  %v11607_v38 = vld [vmem:[#allocation8 + $0xe74] sm:$0xf0]  ;;  %v11199_v0 = vld [vmem:[#allocation8 + $0x1bc] sm:$0xf]  ;;  %v4691_v3 = vadd.f32 %v4690_v49, %v4678_v58 }
 0x292   :  { %4884 = vmatmul.bf16.vlgmr.msrb.gmra.mxu0 %v12488_v15  ;;  %4910 = vmatmul.bf16.vlgmr.msrb.gmra.mxu2 %v12484_v8  ;;  %v9910_v55 = vld [vmem:[#allocation8 + $0x1238] sm:$0xf]  ;;  %v9399_v63 = vor.u32 %v11607_v38, %v9398_v45  ;;  %v7672_v38 = vld [vmem:[#allocation8 + $0xf8] sm:$0xf0] }
 0x293   :  { %4928 = vmatpush.bf16.msra.mxu0 %v9079_v62  ;;  %4954 = vmatpush.bf16.msra.mxu2 %v10103_v1  ;;  %v11735_v40 = vld [vmem:[#allocation8 + $0x1274] sm:$0xf0]  ;;  %v7800_v1 = vld [vmem:[#allocation8 + $0x1f8] sm:$0xf0] }
 0x294   :  { %4923 = vmatmul.bf16.vlgmr.msrb.gmra.mxu3 %v12493_v25  ;;  %v9911_v54 = vor.u32 %v11735_v40, %v9910_v55  ;;  %v8822_v43 = vld [vmem:[#allocation8 + $0x9b8] sm:$0xf]  ;;  %v7803_v14 = vor.u32 %v11199_v0, %v7800_v1  ;;  %v7608_v58 = vld [vmem:[#allocation8 + $0x78] sm:$0xf0] }
 0x295   :  { %4967 = vmatpush.bf16.msra.mxu3 %v8059_v6  ;;  %4942 = vmatpush.bf16.msra.mxu1 %v9527_v20  ;;  %v11463_v57 = vld [vmem:[#allocation8 + $0x9f4] sm:$0xf0]  ;;  %v9080_v1 = vld [vmem:[#allocation8 + $0xbf8] sm:$0xf0] }
 0x296   :  { %v9334_v10 = vld [vmem:[#allocation8 + $0xdb8] sm:$0xf]  ;;  %v8823_v4 = vor.u32 %v11463_v57, %v8822_v43 }
 0x297   :  { %4929 = vmatpush.bf16.msra.mxu0 %v9015_v19  ;;  %4955 = vmatpush.bf16.msra.mxu2 %v10039_v21  ;;  %v11591_v60 = vld [vmem:[#allocation8 + $0xdf4] sm:$0xf0]  ;;  %v12619_v21 = vadd.f32 %v4703_v17, %v4691_v3  ;;  %v11647_v3 = vld [vmem:[#allocation8 + $0xfbc] sm:$0xf] }
 0x298   :  { %v9846_v61 = vld [vmem:[#allocation8 + $0x11b8] sm:$0xf]  ;;  %v9335_v5 = vor.u32 %v11591_v60, %v9334_v10  ;;  %v11151_v10 = vld [vmem:[#allocation8 + $0x3c] sm:$0xf] }
 0x299   :  { %4968 = vmatpush.bf16.msra.mxu3 %v7995_v27  ;;  %4943 = vmatpush.bf16.msra.mxu1 %v9463_v34  ;;  %v11719_v62 = vld [vmem:[#allocation8 + $0x11f4] sm:$0xf0]  ;;  %v8568_v60 = vld [vmem:[#allocation8 + $0x7f8] sm:$0xf0] }
 0x29a   :  { %v9847_v6 = vor.u32 %v11719_v62, %v9846_v61  ;;  %v8758_v7 = vld [vmem:[#allocation8 + $0x938] sm:$0xf]  ;;  %v11519_v61 = vld [vmem:[#allocation8 + $0xbbc] sm:$0xf]  ;;  %v4718_v62 = vpop.f32.mrf.mxu3 }
 0x29b   :  { %4930 = vmatpush.bf16.msra.mxu0 %v8951_v33  ;;  %4956 = vmatpush.bf16.msra.mxu2 %v9975_v35  ;;  %v11447_v11 = vld [vmem:[#allocation8 + $0x974] sm:$0xf0]  ;;  %v7739_v35 = vor.u32 %v11183_v22, %v7736_v23  ;;  %v11503_v22 = vld [vmem:[#allocation8 + $0xb3c] sm:$0xf] }
 0x29c   :  { %v9270_v13 = vld [vmem:[#allocation8 + $0xd38] sm:$0xf]  ;;  %v8759_v27 = vor.u32 %v11447_v11, %v8758_v7  ;;  %v11775_v7 = vld [vmem:[#allocation8 + $0x13bc] sm:$0xf] }
 0x29d   :  { %4969 = vmatpush.bf16.msra.mxu3 %v7931_v37  ;;  %4944 = vmatpush.bf16.msra.mxu1 %v9399_v63  ;;  %v11575_v18 = vld [vmem:[#allocation8 + $0xd74] sm:$0xf0]  ;;  %v11167_v37 = vld [vmem:[#allocation8 + $0xbc] sm:$0xf] }
 0x29e   :  { %v9782_v19 = vld [vmem:[#allocation8 + $0x1138] sm:$0xf]  ;;  %v9271_v50 = vor.u32 %v11575_v18, %v9270_v13  ;;  %v7675_v43 = vor.u32 %v11167_v37, %v7672_v38  ;;  %v10104_v11 = vld [vmem:[#allocation8 + $0x13f8] sm:$0xf0]  ;;  %v7611_v13 = vor.u32 %v11151_v10, %v7608_v58 }
 0x29f   :  { %4931 = vmatpush.bf16.msra.mxu0 %v8887_v47  ;;  %4957 = vmatpush.bf16.msra.mxu2 %v9911_v54  ;;  %v11703_v20 = vld [vmem:[#allocation8 + $0x1174] sm:$0xf0]  ;;  %v4705_v54 = vpop.f32.mrf.mxu2  ;;  %v10107_v23 = vor.u32 %v11775_v7, %v10104_v11  ;;  %v8952_v37 = vld [vmem:[#allocation8 + $0xaf8] sm:$0xf0] }
 0x2a0   :  { %v9783_v30 = vor.u32 %v11703_v20, %v9782_v19  ;;  %v8694_v32 = vld [vmem:[#allocation8 + $0x8b8] sm:$0xf]  ;;  %v11375_v19 = vld [vmem:[#allocation8 + $0x73c] sm:$0xf] }
 0x2a1   :  { %4970 = vmatpush.bf16.msra.mxu3 %v7867_v59  ;;  %4945 = vmatpush.bf16.msra.mxu1 %v9335_v5  ;;  %v11431_v33 = vld [vmem:[#allocation8 + $0x8f4] sm:$0xf0]  ;;  %v11391_v59 = vld [vmem:[#allocation8 + $0x7bc] sm:$0xf] }
 0x2a2   :  { %v9206_v34 = vld [vmem:[#allocation8 + $0xcb8] sm:$0xf]  ;;  %v8695_v55 = vor.u32 %v11431_v33, %v8694_v32  ;;  %v8571_v17 = vor.u32 %v11391_v59, %v8568_v60  ;;  %v8504_v20 = vld [vmem:[#allocation8 + $0x778] sm:$0xf0] }
 0x2a3   :  { %4932 = vmatpush.bf16.msra.mxu0 %v8823_v4  ;;  %4958 = vmatpush.bf16.msra.mxu2 %v9847_v6  ;;  %v11559_v36 = vld [vmem:[#allocation8 + $0xcf4] sm:$0xf0]  ;;  %v9592_v4 = vld [vmem:[#allocation8 + $0xff8] sm:$0xf0]  ;;  %v8507_v32 = vor.u32 %v11375_v19, %v8504_v20 }
 0x2a4   :  { %v9718_v44 = vld [vmem:[#allocation8 + $0x10b8] sm:$0xf]  ;;  %v9207_v2 = vor.u32 %v11559_v36, %v9206_v34  ;;  %v9595_v18 = vor.u32 %v11647_v3, %v9592_v4  ;;  %v9531_v34 = vor.u32 %v11631_v28, %v9528_v56  ;;  %v8440_v36 = vld [vmem:[#allocation8 + $0x6f8] sm:$0xf0] }
 0x2a5   :  { %4971 = vmatpush.bf16.msra.mxu3 %v7803_v14  ;;  %v11687_v45 = vld [vmem:[#allocation8 + $0x10f4] sm:$0xf0]  ;;  %4946 = vmatpush.bf16.msra.mxu1 %v9271_v50  ;;  %v9083_v14 = vor.u32 %v11519_v61, %v9080_v1  ;;  %v11759_v50 = vld [vmem:[#allocation8 + $0x133c] sm:$0xf] }
 0x2a6   :  { %v8630_v40 = vld [vmem:[#allocation8 + $0x838] sm:$0xf]  ;;  %v9719_v47 = vor.u32 %v11687_v45, %v9718_v44  ;;  %v11487_v44 = vld [vmem:[#allocation8 + $0xabc] sm:$0xf] }
 0x2a7   :  { %4933 = vmatpush.bf16.msra.mxu0 %v8759_v27  ;;  %v11415_v41 = vld [vmem:[#allocation8 + $0x874] sm:$0xf0]  ;;  %4959 = vmatpush.bf16.msra.mxu2 %v9783_v30  ;;  %v9016_v27 = vld [vmem:[#allocation8 + $0xb78] sm:$0xf0] }
 0x2a8   :  { %v9142_v48 = vld [vmem:[#allocation8 + $0xc38] sm:$0xf]  ;;  %v8631_v0 = vor.u32 %v11415_v41, %v8630_v40  ;;  %v10040_v30 = vld [vmem:[#allocation8 + $0x1378] sm:$0xf0]  ;;  %v9019_v33 = vor.u32 %v11503_v22, %v9016_v27 }
 0x2a9   :  { %v11543_v49 = vld [vmem:[#allocation8 + $0xc74] sm:$0xf0]  ;;  %4972 = vmatpush.bf16.msra.mxu3 %v7739_v35  ;;  %4947 = vmatpush.bf16.msra.mxu1 %v9207_v2  ;;  %v11359_v35 = vld [vmem:[#allocation8 + $0x6bc] sm:$0xf]  ;;  %v10043_v45 = vor.u32 %v11759_v50, %v10040_v30  ;;  %v4729_v62 = vpop.f32.mrf.mxu0 }
 0x2aa   :  { %v9654_v63 = vld [vmem:[#allocation8 + $0x1038] sm:$0xf]  ;;  %v9143_v5 = vor.u32 %v11543_v49, %v9142_v48  ;;  %v11615_v38 = vld [vmem:[#allocation8 + $0xebc] sm:$0xf]  ;;  %v8443_v2 = vor.u32 %v11359_v35, %v8440_v36  ;;  %v4730_v1 = vadd.f32 %v4729_v62, %v12621_v24 }
 0x2ab   :  { %v11671_v57 = vld [vmem:[#allocation8 + $0x1074] sm:$0xf0]  ;;  %4934 = vmatpush.bf16.msra.mxu0 %v8695_v55  ;;  %4960 = vmatpush.bf16.msra.mxu2 %v9719_v47  ;;  %v9464_v55 = vld [vmem:[#allocation8 + $0xef8] sm:$0xf0]  ;;  %v8955_v47 = vor.u32 %v11487_v44, %v8952_v37 }
 0x2ac   :  { %v9655_v6 = vor.u32 %v11671_v57, %v9654_v63  ;;  %v11743_v40 = vld [vmem:[#allocation8 + $0x12bc] sm:$0xf]  ;;  %v9467_v48 = vor.u32 %v11615_v38, %v9464_v55 }
 0x2ad   :  { %4973 = vmatpush.bf16.msra.mxu3 %v7675_v43  ;;  %4948 = vmatpush.bf16.msra.mxu1 %v9143_v5  ;;  %v9976_v41 = vld [vmem:[#allocation8 + $0x12f8] sm:$0xf0] }
 0x2ae   :  { %v11343_v49 = vld [vmem:[#allocation8 + $0x63c] sm:$0xf]  ;;  %v9979_v43 = vor.u32 %v11743_v40, %v9976_v41 }
 0x2af   :  { %4935 = vmatpush.bf16.msra.mxu0 %v8631_v0  ;;  %4961 = vmatpush.bf16.msra.mxu2 %v9655_v6  ;;  %v8376_v63 = vld [vmem:[#allocation8 + $0x678] sm:$0xf0]  ;;  %v4742_v6 = vpop.f32.mrf.mxu1 }
 0x2b0   :  { %4949 = vmatmul.bf16.vlgmr.msra.gmra.mxu1 %v12488_v15  ;;  %v11471_v54 = vld [vmem:[#allocation8 + $0xa3c] sm:$0xf]  ;;  %v8379_v61 = vor.u32 %v11343_v49, %v8376_v63  ;;  %v4743_v19 = vadd.f32 %v4742_v6, %v4730_v1 }
 0x2b1   :  { %4974 = vmatpush.bf16.msra.mxu3 %v7611_v13  ;;  %4993 = vmatpush.bf16.msrb.mxu1 %v9083_v14  ;;  %v8888_v57 = vld [vmem:[#allocation8 + $0xa78] sm:$0xf0]  ;;  %v4731_v38 = vpop.f32.mrf.mxu0 }
 0x2b2   :  { %4962 = vmatmul.bf16.vlgmr.msra.gmra.mxu2 %v12496_v31  ;;  %4936 = vmatmul.bf16.vlgmr.msra.gmra.mxu0 %v12486_v9  ;;  %v11599_v10 = vld [vmem:[#allocation8 + $0xe3c] sm:$0xf]  ;;  %v10304_v38 = vld [vmem:[#allocation10 + $0x1a0] sm:$0xf0] }
 0x2b3   :  { %4980 = vmatpush.bf16.msrb.mxu0 %v8571_v17  ;;  %5006 = vmatpush.bf16.msrb.mxu2 %v9595_v18  ;;  %v9400_v58 = vld [vmem:[#allocation8 + $0xe78] sm:$0xf0]  ;;  %v4755_v27 = vpop.f32.mrf.mxu2 }
 0x2b4   :  { %4975 = vmatmul.bf16.vlgmr.msra.gmra.mxu3 %v12484_v8  ;;  %v11727_v59 = vld [vmem:[#allocation8 + $0x123c] sm:$0xf]  ;;  %v8891_v8 = vor.u32 %v11471_v54, %v8888_v57  ;;  %v9403_v0 = vor.u32 %v11599_v10, %v9400_v58  ;;  %v4756_v30 = vadd.f32 %v4755_v27, %v4743_v19  ;;  %v11908_v19 = vld [vmem:[#allocation10 + $0x3dc] sm:$0xf0] }
 0x2b5   :  { %5019 = vmatpush.bf16.msrb.mxu3 %v10107_v23  ;;  %4994 = vmatpush.bf16.msrb.mxu1 %v9019_v33  ;;  %v9912_v60 = vld [vmem:[#allocation8 + $0x1278] sm:$0xf0]  ;;  %v4768_v35 = vpop.f32.mrf.mxu3 }
 0x2b6   :  { %v11327_v3 = vld [vmem:[#allocation8 + $0x5bc] sm:$0xf]  ;;  %v9915_v7 = vor.u32 %v11727_v59, %v9912_v60  ;;  %v12628_v37 = vadd.f32 %v4768_v35, %v4756_v30  ;;  %v10558_v35 = vld [vmem:[#allocation10 + $0x380] sm:$0xf] }
 0x2b7   :  { %4981 = vmatpush.bf16.msrb.mxu0 %v8507_v32  ;;  %5007 = vmatpush.bf16.msrb.mxu2 %v9531_v34  ;;  %v8312_v4 = vld [vmem:[#allocation8 + $0x5f8] sm:$0xf0] }
 0x2b8   :  { %v11455_v5 = vld [vmem:[#allocation8 + $0x9bc] sm:$0xf]  ;;  %v8315_v20 = vor.u32 %v11327_v3, %v8312_v4 }
 0x2b9   :  { %5020 = vmatpush.bf16.msrb.mxu3 %v10043_v45  ;;  %4995 = vmatpush.bf16.msrb.mxu1 %v8955_v47  ;;  %v8824_v11 = vld [vmem:[#allocation8 + $0x9f8] sm:$0xf0] }
 0x2ba   :  { %v11583_v13 = vld [vmem:[#allocation8 + $0xdbc] sm:$0xf]  ;;  %v8827_v22 = vor.u32 %v11455_v5, %v8824_v11 }
 0x2bb   :  { %4982 = vmatpush.bf16.msrb.mxu0 %v8443_v2  ;;  %5008 = vmatpush.bf16.msrb.mxu2 %v9467_v48  ;;  %v9336_v17 = vld [vmem:[#allocation8 + $0xdf8] sm:$0xf0]  ;;  %v4744_v48 = vpop.f32.mrf.mxu1  ;;  %v4757_v3 = vpop.f32.mrf.mxu2 }
 0x2bc   :  { %v11711_v14 = vld [vmem:[#allocation8 + $0x11bc] sm:$0xf]  ;;  %v9339_v23 = vor.u32 %v11583_v13, %v9336_v17  ;;  %v10334_v13 = vld [vmem:[#allocation10 + $0x1c0] sm:$0xf] }
 0x2bd   :  { %5021 = vmatpush.bf16.msrb.mxu3 %v9979_v43  ;;  %v9848_v18 = vld [vmem:[#allocation8 + $0x11f8] sm:$0xf0]  ;;  %4996 = vmatpush.bf16.msrb.mxu1 %v8891_v8  ;;  %v4770_v11 = vpop.f32.mrf.mxu3  ;;  %v11844_v17 = vld [vmem:[#allocation10 + $0x1dc] sm:$0xf0] }
 0x2be   :  { %v11311_v24 = vld [vmem:[#allocation8 + $0x53c] sm:$0xf]  ;;  %v9851_v50 = vor.u32 %v11711_v14, %v9848_v18  ;;  %v10590_v14 = vld [vmem:[#allocation10 + $0x3c0] sm:$0xf] }
 0x2bf   :  { %4983 = vmatpush.bf16.msrb.mxu0 %v8379_v61  ;;  %5009 = vmatpush.bf16.msrb.mxu2 %v9403_v0  ;;  %v8248_v28 = vld [vmem:[#allocation8 + $0x578] sm:$0xf0]  ;;  %v10591_v30 = vor.u32 %v11908_v19, %v10590_v14  ;;  %v10270_v48 = vld [vmem:[#allocation10 + $0x140] sm:$0xf] }
 0x2c0   :  { %v11439_v56 = vld [vmem:[#allocation8 + $0x93c] sm:$0xf]  ;;  %v8251_v45 = vor.u32 %v11311_v24, %v8248_v28  ;;  %v11904_v24 = vld [vmem:[#allocation10 + $0x3c4] sm:$0xf]  ;;  %v11884_v3 = vld [vmem:[#allocation10 + $0x31c] sm:$0xf0] }
 0x2c1   :  { %5022 = vmatpush.bf16.msrb.mxu3 %v9915_v7  ;;  %v8760_v32 = vld [vmem:[#allocation8 + $0x978] sm:$0xf0]  ;;  %4997 = vmatpush.bf16.msrb.mxu1 %v8827_v22  ;;  %v10336_v22 = vld [vmem:[#allocation10 + $0x1e0] sm:$0xf0]  ;;  %v10462_v14 = vld [vmem:[#allocation10 + $0x2c0] sm:$0xf] }
 0x2c2   :  { %v11567_v33 = vld [vmem:[#allocation8 + $0xd3c] sm:$0xf]  ;;  %v8763_v55 = vor.u32 %v11439_v56, %v8760_v32  ;;  %v10592_v28 = vld [vmem:[#allocation10 + $0x3e0] sm:$0xf0] }
 0x2c3   :  { %v9272_v34 = vld [vmem:[#allocation8 + $0xd78] sm:$0xf0]  ;;  %4984 = vmatpush.bf16.msrb.mxu0 %v8315_v20  ;;  %5010 = vmatpush.bf16.msrb.mxu2 %v9339_v23  ;;  %v11840_v20 = vld [vmem:[#allocation10 + $0x1c4] sm:$0xf] }
 0x2c4   :  { %v11695_v36 = vld [vmem:[#allocation8 + $0x113c] sm:$0xf]  ;;  %v9275_v40 = vor.u32 %v11567_v33, %v9272_v34  ;;  %v10339_v32 = vor.u32 %v11840_v20, %v10336_v22  ;;  %v10302_v33 = vld [vmem:[#allocation10 + $0x180] sm:$0xf]  ;;  %v11808_v22 = vld [vmem:[#allocation10 + $0xc4] sm:$0xf] }
 0x2c5   :  { %v9784_v44 = vld [vmem:[#allocation8 + $0x1178] sm:$0xf0]  ;;  %5023 = vmatpush.bf16.msrb.mxu3 %v9851_v50  ;;  %4998 = vmatpush.bf16.msrb.mxu1 %v8763_v55  ;;  %v10335_v50 = vor.u32 %v11844_v17, %v10334_v13  ;;  %v11836_v34 = vld [vmem:[#allocation10 + $0x19c] sm:$0xf0]  ;;  %v11896_v55 = vld [vmem:[#allocation10 + $0x384] sm:$0xf] }
 0x2c6   :  { %v11295_v41 = vld [vmem:[#allocation8 + $0x4bc] sm:$0xf]  ;;  %v9787_v49 = vor.u32 %v11695_v36, %v9784_v44  ;;  %v10595_v36 = vor.u32 %v11904_v24, %v10592_v28  ;;  %v11900_v44 = vld [vmem:[#allocation10 + $0x39c] sm:$0xf0]  ;;  %v11872_v24 = vld [vmem:[#allocation10 + $0x2c4] sm:$0xf] }
 0x2c7   :  { %v8184_v2 = vld [vmem:[#allocation8 + $0x4f8] sm:$0xf0]  ;;  %4985 = vmatpush.bf16.msrb.mxu0 %v8251_v45  ;;  %5011 = vmatpush.bf16.msrb.mxu2 %v9275_v40  ;;  %v11832_v45 = vld [vmem:[#allocation10 + $0x184] sm:$0xf]  ;;  %v10206_v13 = vld [vmem:[#allocation10 + $0xc0] sm:$0xf] }
 0x2c8   :  { %v11423_v47 = vld [vmem:[#allocation8 + $0x8bc] sm:$0xf]  ;;  %v8187_v58 = vor.u32 %v11295_v41, %v8184_v2  ;;  %v10560_v40 = vld [vmem:[#allocation10 + $0x3a0] sm:$0xf0]  ;;  %v10303_v41 = vor.u32 %v11836_v34, %v10302_v33  ;;  %v10559_v2 = vor.u32 %v11900_v44, %v10558_v35  ;;  %v11812_v17 = vld [vmem:[#allocation10 + $0xdc] sm:$0xf0] }
 0x2c9   :  { %v8696_v63 = vld [vmem:[#allocation8 + $0x8f8] sm:$0xf0]  ;;  %5024 = vmatpush.bf16.msrb.mxu3 %v9787_v49  ;;  %v11828_v49 = vld [vmem:[#allocation10 + $0x15c] sm:$0xf0]  ;;  %v10464_v28 = vld [vmem:[#allocation10 + $0x2e0] sm:$0xf0] }
 0x2ca   :  { %v11551_v54 = vld [vmem:[#allocation8 + $0xcbc] sm:$0xf]  ;;  %v8699_v61 = vor.u32 %v11423_v47, %v8696_v63  ;;  %v10307_v47 = vor.u32 %v11832_v45, %v10304_v38  ;;  %v10526_v63 = vld [vmem:[#allocation10 + $0x340] sm:$0xf]  ;;  %v10467_v35 = vor.u32 %v11872_v24, %v10464_v28  ;;  %v11800_v44 = vld [vmem:[#allocation10 + $0x84] sm:$0xf] }
 0x2cb   :  { %v9208_v43 = vld [vmem:[#allocation8 + $0xcf8] sm:$0xf0]  ;;  %4986 = vmatpush.bf16.msrb.mxu0 %v8187_v58  ;;  %v11888_v58 = vld [vmem:[#allocation10 + $0x344] sm:$0xf]  ;;  %v11876_v20 = vld [vmem:[#allocation10 + $0x2dc] sm:$0xf0] }
 0x2cc   :  { %v11679_v57 = vld [vmem:[#allocation8 + $0x10bc] sm:$0xf]  ;;  %v9211_v62 = vor.u32 %v11551_v54, %v9208_v43  ;;  %4999 = vmatpush.bf16.msrb.mxu1 %v8699_v61  ;;  %v10563_v54 = vor.u32 %v11896_v55, %v10560_v40  ;;  %v11892_v43 = vld [vmem:[#allocation10 + $0x35c] sm:$0xf0]  ;;  %v10176_v45 = vld [vmem:[#allocation10 + $0xa0] sm:$0xf0] }
 0x2cd   :  { %v9720_v10 = vld [vmem:[#allocation8 + $0x10f8] sm:$0xf0]  ;;  %v10527_v61 = vor.u32 %v11892_v43, %v10526_v63  ;;  %v11804_v33 = vld [vmem:[#allocation10 + $0x9c] sm:$0xf0]  ;;  %v11864_v40 = vld [vmem:[#allocation10 + $0x284] sm:$0xf]  ;;  %v10179_v63 = vor.u32 %v11800_v44, %v10176_v45 }
 0x2ce   :  { %v11279_v59 = vld [vmem:[#allocation8 + $0x43c] sm:$0xf]  ;;  %v9723_v4 = vor.u32 %v11679_v57, %v9720_v10  ;;  %5012 = vmatpush.bf16.msrb.mxu2 %v9211_v62  ;;  %v11824_v57 = vld [vmem:[#allocation10 + $0x144] sm:$0xf]  ;;  %v10430_v34 = vld [vmem:[#allocation10 + $0x280] sm:$0xf] }
 0x2cf   :  { %v8120_v60 = vld [vmem:[#allocation8 + $0x478] sm:$0xf0]  ;;  %v10272_v10 = vld [vmem:[#allocation10 + $0x160] sm:$0xf0]  ;;  %v11796_v43 = vld [vmem:[#allocation10 + $0x5c] sm:$0xf0] }
 0x2d0   :  { %v11407_v8 = vld [vmem:[#allocation8 + $0x83c] sm:$0xf]  ;;  %v8123_v18 = vor.u32 %v11279_v59, %v8120_v60  ;;  %5025 = vmatpush.bf16.msrb.mxu3 %v9723_v4  ;;  %v10528_v59 = vld [vmem:[#allocation10 + $0x360] sm:$0xf0]  ;;  %v10271_v60 = vor.u32 %v11828_v49, %v10270_v48  ;;  %v10275_v62 = vor.u32 %v11824_v57, %v10272_v10  ;;  %v10398_v57 = vld [vmem:[#allocation10 + $0x240] sm:$0xf] }
 0x2d1   :  { %v8632_v0 = vld [vmem:[#allocation8 + $0x878] sm:$0xf0]  ;;  %v11816_v4 = vld [vmem:[#allocation10 + $0x104] sm:$0xf]  ;;  %v10344_v24 = vld [vmem:[#allocation10 + $0x1e8] sm:$0xf0] }
 0x2d2   :  { %v11535_v1 = vld [vmem:[#allocation8 + $0xc3c] sm:$0xf]  ;;  %v8635_v23 = vor.u32 %v11407_v8, %v8632_v0  ;;  %4987 = vmatpush.bf16.msrb.mxu0 %v8123_v18  ;;  %v10238_v8 = vld [vmem:[#allocation10 + $0x100] sm:$0xf]  ;;  %v4794_v18 = vpop.f32.mrf.mxu1  ;;  %v10310_v45 = vld [vmem:[#allocation10 + $0x188] sm:$0xf] }
 0x2d3   :  { %v9144_v5 = vld [vmem:[#allocation8 + $0xc78] sm:$0xf0]  ;;  %v10494_v0 = vld [vmem:[#allocation10 + $0x300] sm:$0xf] }
 0x2d4   :  { %v11663_v6 = vld [vmem:[#allocation8 + $0x103c] sm:$0xf]  ;;  %v9147_v27 = vor.u32 %v11535_v1, %v9144_v5  ;;  %5000 = vmatpush.bf16.msrb.mxu1 %v8635_v23  ;;  %v10531_v1 = vor.u32 %v11888_v58, %v10528_v59  ;;  %v11880_v5 = vld [vmem:[#allocation10 + $0x304] sm:$0xf] }
 0x2d5   :  { %v9656_v7 = vld [vmem:[#allocation8 + $0x1078] sm:$0xf0]  ;;  %4988 = vmatmul.bf16.vlgmr.msrb.gmra.mxu0 %v12493_v25  ;;  %v10240_v25 = vld [vmem:[#allocation10 + $0x120] sm:$0xf0]  ;;  %v4807_v38 = vpop.f32.mrf.mxu2 }
 0x2d6   :  { %v9659_v56 = vor.u32 %v11663_v6, %v9656_v7  ;;  %5013 = vmatpush.bf16.msrb.mxu2 %v9147_v27  ;;  %5806 = vmatpush.bf16.msra.mxu0 %v10335_v50  ;;  %v4781_v6 = vpop.f32.mrf.mxu0  ;;  %v10243_v11 = vor.u32 %v11816_v4, %v10240_v25  ;;  %v10208_v23 = vld [vmem:[#allocation10 + $0xe0] sm:$0xf0]  ;;  %v10463_v50 = vor.u32 %v11876_v20, %v10462_v14  ;;  %v10598_v20 = vld [vmem:[#allocation10 + $0x3c8] sm:$0xf] }
 0x2d7   :  { %5001 = vmatmul.bf16.vlgmr.msrb.gmra.mxu1 %v12486_v9  ;;  %v10495_v9 = vor.u32 %v11884_v3, %v10494_v0  ;;  %v4795_v27 = vadd.f32 %v4794_v18, %v4781_v6  ;;  %v4820_v55 = vpop.f32.mrf.mxu3  ;;  %v11788_v3 = vld [vmem:[#allocation10 + $0x1c] sm:$0xf0]  ;;  %v11784_v6 = vld [vmem:[#allocation10 + $0x4] sm:$0xf]  ;;  %v10342_v18 = vld [vmem:[#allocation10 + $0x1c8] sm:$0xf] }
 0x2d8   :  { %5026 = vmatpush.bf16.msrb.mxu3 %v9659_v56  ;;  %5819 = vmatpush.bf16.msra.mxu1 %v10591_v30  ;;  %v10207_v56 = vor.u32 %v11812_v17, %v10206_v13  ;;  %v10211_v30 = vor.u32 %v11808_v22, %v10208_v23  ;;  %v10368_v13 = vld [vmem:[#allocation10 + $0x220] sm:$0xf0]  ;;  %v11909_v23 = vld [vmem:[#allocation10 + $0x3e4] sm:$0xf0] }
 0x2d9   :  { %5014 = vmatmul.bf16.vlgmr.msrb.gmra.mxu2 %v12488_v15  ;;  %v11820_v15 = vld [vmem:[#allocation10 + $0x11c] sm:$0xf0] }
 0x2da   :  { %5832 = vmatpush.bf16.msra.mxu2 %v10339_v32  ;;  %5807 = vmatpush.bf16.msra.mxu0 %v10303_v41  ;;  %v10239_v7 = vor.u32 %v11820_v15, %v10238_v8  ;;  %v10174_v32 = vld [vmem:[#allocation10 + $0x80] sm:$0xf]  ;;  %v10432_v41 = vld [vmem:[#allocation10 + $0x2a0] sm:$0xf0]  ;;  %v4796_v58 = vpop.f32.mrf.mxu1 }
 0x2db   :  { %5027 = vmatmul.bf16.vlgmr.msrb.gmra.mxu3 %v12496_v31  ;;  %v10496_v31 = vld [vmem:[#allocation10 + $0x320] sm:$0xf0]  ;;  %v10175_v48 = vor.u32 %v11804_v33, %v10174_v32  ;;  %v10435_v59 = vor.u32 %v11864_v40, %v10432_v41 }
 0x2dc   :  { %5845 = vmatpush.bf16.msra.mxu3 %v10595_v36  ;;  %5820 = vmatpush.bf16.msra.mxu1 %v10559_v2  ;;  %v10499_v19 = vor.u32 %v11880_v5, %v10496_v31  ;;  %v11868_v36 = vld [vmem:[#allocation10 + $0x29c] sm:$0xf0]  ;;  %v4808_v2 = vadd.f32 %v4807_v38, %v4795_v27  ;;  %v11856_v8 = vld [vmem:[#allocation10 + $0x244] sm:$0xf]  ;;  %v11841_v27 = vld [vmem:[#allocation10 + $0x1cc] sm:$0xf] }
 0x2dd   :  { %v10431_v49 = vor.u32 %v11868_v36, %v10430_v34  ;;  %v10400_v15 = vld [vmem:[#allocation10 + $0x260] sm:$0xf0]  ;;  %v10366_v5 = vld [vmem:[#allocation10 + $0x200] sm:$0xf]  ;;  %v4809_v17 = vpop.f32.mrf.mxu2  ;;  %v10599_v36 = vor.u32 %v11909_v23, %v10598_v20  ;;  %v10347_v44 = vor.u32 %v11841_v27, %v10344_v24  ;;  %v11837_v38 = vld [vmem:[#allocation10 + $0x1a4] sm:$0xf0] }
 0x2de   :  { %5833 = vmatpush.bf16.msra.mxu2 %v10307_v47  ;;  %5808 = vmatpush.bf16.msra.mxu0 %v10271_v60  ;;  %v4783_v47 = vpop.f32.mrf.mxu0  ;;  %v12634_v10 = vadd.f32 %v4820_v55, %v4808_v2  ;;  %v11860_v60 = vld [vmem:[#allocation10 + $0x25c] sm:$0xf0]  ;;  %v10566_v55 = vld [vmem:[#allocation10 + $0x388] sm:$0xf]  ;;  %v10248_v17 = vld [vmem:[#allocation10 + $0x128] sm:$0xf0] }
 0x2df   :  { %v10399_v4 = vor.u32 %v11860_v60, %v10398_v57  ;;  %v11852_v31 = vld [vmem:[#allocation10 + $0x21c] sm:$0xf0]  ;;  %v4822_v14 = vpop.f32.mrf.mxu3  ;;  %v11901_v2 = vld [vmem:[#allocation10 + $0x3a4] sm:$0xf0]  ;;  %v11833_v47 = vld [vmem:[#allocation10 + $0x18c] sm:$0xf] }
 0x2e0   :  { %5846 = vmatpush.bf16.msra.mxu3 %v10563_v54  ;;  %5821 = vmatpush.bf16.msra.mxu1 %v10527_v61  ;;  %v10142_v54 = vld [vmem:[#allocation10 + $0x40] sm:$0xf]  ;;  %v11792_v61 = vld [vmem:[#allocation10 + $0x44] sm:$0xf]  ;;  %v10367_v28 = vor.u32 %v11852_v31, %v10366_v5  ;;  %v10567_v57 = vor.u32 %v11901_v2, %v10566_v55  ;;  %v11829_v60 = vld [vmem:[#allocation10 + $0x164] sm:$0xf0] }
 0x2e1   :  { %v10143_v0 = vor.u32 %v11796_v43, %v10142_v54  ;;  %v5032_v32 = vld [vmem:[#allocation5] sm:$0xff]  ;;  %v10568_v54 = vld [vmem:[#allocation10 + $0x3a8] sm:$0xf0]  ;;  %v10311_v43 = vor.u32 %v11837_v38, %v10310_v45  ;;  %v10246_v31 = vld [vmem:[#allocation10 + $0x108] sm:$0xf] }
 0x2e2   :  { %5834 = vmatpush.bf16.msra.mxu2 %v10275_v62  ;;  %5809 = vmatpush.bf16.msra.mxu0 %v10239_v7  ;;  %v10144_v62 = vld [vmem:[#allocation10 + $0x60] sm:$0xf0]  ;;  %v10403_v7 = vor.u32 %v11856_v8, %v10400_v15  ;;  %v12636_v41 = vpack.c.bf16 %v5032_v32, %v5032_v32  ;;  %v11893_v8 = vld [vmem:[#allocation10 + $0x364] sm:$0xf0]  ;;  %v11825_v15 = vld [vmem:[#allocation10 + $0x14c] sm:$0xf] }
 0x2e3   :  { %v10147_v25 = vor.u32 %v11792_v61, %v10144_v62  ;;  %v10534_v61 = vld [vmem:[#allocation10 + $0x348] sm:$0xf]  ;;  %v11881_v14 = vld [vmem:[#allocation10 + $0x30c] sm:$0xf] }
 0x2e4   :  { %5847 = vmatpush.bf16.msra.mxu3 %v10531_v1  ;;  %5822 = vmatpush.bf16.msra.mxu1 %v10495_v9  ;;  %v10110_v1 = vld [vmem:[#allocation10] sm:$0xf]  ;;  %v10112_v9 = vld [vmem:[#allocation10 + $0x20] sm:$0xf0]  ;;  %v10214_v27 = vld [vmem:[#allocation10 + $0xc8] sm:$0xf] }
 0x2e5   :  { %v10111_v22 = vor.u32 %v11788_v3, %v10110_v1  ;;  %v11889_v1 = vld [vmem:[#allocation10 + $0x34c] sm:$0xf]  ;;  %v11813_v24 = vld [vmem:[#allocation10 + $0xe4] sm:$0xf0] }
 0x2e6   :  { %5835 = vmatpush.bf16.msra.mxu2 %v10243_v11  ;;  %5810 = vmatpush.bf16.msra.mxu0 %v10207_v56  ;;  %v11848_v11 = vld [vmem:[#allocation10 + $0x204] sm:$0xf]  ;;  %v10115_v56 = vor.u32 %v11784_v6, %v10112_v9  ;;  %v10536_v3 = vld [vmem:[#allocation10 + $0x368] sm:$0xf0]  ;;  %v11821_v6 = vld [vmem:[#allocation10 + $0x124] sm:$0xf0] }
 0x2e7   :  { %v10371_v33 = vor.u32 %v11848_v11, %v10368_v13  ;;  %v10539_v9 = vor.u32 %v11889_v1, %v10536_v3  ;;  %v11885_v11 = vld [vmem:[#allocation10 + $0x324] sm:$0xf0]  ;;  %v11817_v13 = vld [vmem:[#allocation10 + $0x10c] sm:$0xf]  ;;  %v10247_v20 = vor.u32 %v11821_v6, %v10246_v31 }
 0x2e8   :  { %5848 = vmatpush.bf16.msra.mxu3 %v10499_v19  ;;  %5823 = vmatpush.bf16.msra.mxu1 %v10463_v50  ;;  %v11845_v19 = vld [vmem:[#allocation10 + $0x1e4] sm:$0xf0]  ;;  %v11905_v50 = vld [vmem:[#allocation10 + $0x3cc] sm:$0xf]  ;;  %v10251_v23 = vor.u32 %v11817_v13, %v10248_v17 }
 0x2e9   :  { %v10343_v34 = vor.u32 %v11845_v19, %v10342_v18  ;;  %v10504_v18 = vld [vmem:[#allocation10 + $0x328] sm:$0xf0]  ;;  %v10182_v38 = vld [vmem:[#allocation10 + $0x88] sm:$0xf] }
 0x2ea   :  { %5836 = vmatpush.bf16.msra.mxu2 %v10211_v30  ;;  %5811 = vmatpush.bf16.msra.mxu0 %v10175_v48  ;;  %v10600_v30 = vld [vmem:[#allocation10 + $0x3e8] sm:$0xf0]  ;;  %v11805_v55 = vld [vmem:[#allocation10 + $0xa4] sm:$0xf0] }
 0x2eb   :  { %v10603_v40 = vor.u32 %v11905_v50, %v10600_v30  ;;  %v10312_v48 = vld [vmem:[#allocation10 + $0x1a8] sm:$0xf0]  ;;  %v10507_v50 = vor.u32 %v11881_v14, %v10504_v18  ;;  %v11877_v30 = vld [vmem:[#allocation10 + $0x2e4] sm:$0xf0] }
 0x2ec   :  { %5849 = vmatpush.bf16.msra.mxu3 %v10467_v35  ;;  %5824 = vmatpush.bf16.msra.mxu1 %v10431_v49  ;;  %v5033_v35 = vld [vmem:[#allocation5 + $0x8] sm:$0xff]  ;;  %v10315_v58 = vor.u32 %v11833_v47, %v10312_v48 }
 0x2ed   :  { %v12638_v49 = vpack.c.bf16 %v5033_v35, %v5033_v35  ;;  %v11809_v32 = vld [vmem:[#allocation10 + $0xcc] sm:$0xf]  ;;  %v11869_v47 = vld [vmem:[#allocation10 + $0x2a4] sm:$0xf0] }
 0x2ee   :  { %5837 = vmatpush.bf16.msra.mxu2 %v10179_v63  ;;  %5812 = vmatpush.bf16.msra.mxu0 %v10143_v0  ;;  %v11897_v63 = vld [vmem:[#allocation10 + $0x38c] sm:$0xf]  ;;  %v10374_v14 = vld [vmem:[#allocation10 + $0x208] sm:$0xf] }
 0x2ef   :  { %v10571_v62 = vor.u32 %v11897_v63, %v10568_v54  ;;  %v10280_v0 = vld [vmem:[#allocation10 + $0x168] sm:$0xf0]  ;;  %v12644_v19 = vpop.f32.mrf.mxu0  ;;  %v11853_v18 = vld [vmem:[#allocation10 + $0x224] sm:$0xf0] }
 0x2f0   :  { %5850 = vmatpush.bf16.msra.mxu3 %v10435_v59  ;;  %5825 = vmatpush.bf16.msra.mxu1 %v10399_v4  ;;  %v10278_v59 = vld [vmem:[#allocation10 + $0x148] sm:$0xf]  ;;  %v10283_v5 = vor.u32 %v11825_v15, %v10280_v0  ;;  %v10472_v35 = vld [vmem:[#allocation10 + $0x2e8] sm:$0xf0] }
 0x2f1   :  { %v10279_v4 = vor.u32 %v11829_v60, %v10278_v59  ;;  %v11801_v48 = vld [vmem:[#allocation10 + $0x8c] sm:$0xf]  ;;  %v10183_v60 = vor.u32 %v11805_v55, %v10182_v38  ;;  %v11797_v15 = vld [vmem:[#allocation10 + $0x64] sm:$0xf0]  ;;  %v11906_v55 = vld [vmem:[#allocation10 + $0x3d4] sm:$0xf] }
 0x2f2   :  { %5838 = vmatpush.bf16.msra.mxu2 %v10147_v25  ;;  %5813 = vmatpush.bf16.msra.mxu0 %v10111_v22  ;;  %v10535_v25 = vor.u32 %v11893_v8, %v10534_v61  ;;  %v10184_v63 = vld [vmem:[#allocation10 + $0xa8] sm:$0xf0]  ;;  %v10150_v8 = vld [vmem:[#allocation10 + $0x48] sm:$0xf] }
 0x2f3   :  { %v10406_v0 = vld [vmem:[#allocation10 + $0x248] sm:$0xf]  ;;  %v11857_v31 = vld [vmem:[#allocation10 + $0x24c] sm:$0xf] }
 0x2f4   :  { %5851 = vmatpush.bf16.msra.mxu3 %v10403_v7  ;;  %5826 = vmatpush.bf16.msra.mxu1 %v10367_v28  ;;  %v10502_v7 = vld [vmem:[#allocation10 + $0x308] sm:$0xf]  ;;  %v10408_v6 = vld [vmem:[#allocation10 + $0x268] sm:$0xf0] }
 0x2f5   :  { %5814 = vmatmul.bf16.vlgmr.msra.gmra.mxu0 %v12636_v41  ;;  %v10503_v22 = vor.u32 %v11885_v11, %v10502_v7  ;;  %v10470_v28 = vld [vmem:[#allocation10 + $0x2c8] sm:$0xf]  ;;  %v12648_v54 = vpop.f32.mrf.mxu2  ;;  %v10151_v7 = vor.u32 %v11797_v15, %v10150_v8  ;;  %v10320_v8 = vld [vmem:[#allocation10 + $0x1b0] sm:$0xf0] }
 0x2f6   :  { %5839 = vmatpush.bf16.msra.mxu2 %v10115_v56  ;;  %5858 = vmatpush.bf16.msrb.mxu0 %v10343_v34  ;;  %v12646_v56 = vpop.f32.mrf.mxu1  ;;  %v11873_v34 = vld [vmem:[#allocation10 + $0x2cc] sm:$0xf]  ;;  %v11789_v11 = vld [vmem:[#allocation10 + $0x24] sm:$0xf0]  ;;  %v11898_v15 = vld [vmem:[#allocation10 + $0x394] sm:$0xf] }
 0x2f7   :  { %5827 = vmatmul.bf16.vlgmr.msra.gmra.mxu1 %v12638_v49  ;;  %v10475_v2 = vor.u32 %v11873_v34, %v10472_v35  ;;  %v4835_v59 = vpop.f32.mrf.mxu0  ;;  %v11910_v35 = vld [vmem:[#allocation10 + $0x3ec] sm:$0xf0] }
 0x2f8   :  { %5852 = vmatpush.bf16.msra.mxu3 %v10371_v33  ;;  %5871 = vmatpush.bf16.msrb.mxu1 %v10599_v36  ;;  %v10216_v33 = vld [vmem:[#allocation10 + $0xe8] sm:$0xf0]  ;;  %v10215_v36 = vor.u32 %v11813_v24, %v10214_v27  ;;  %v10574_v59 = vld [vmem:[#allocation10 + $0x390] sm:$0xf] }
 0x2f9   :  { %5840 = vmatmul.bf16.vlgmr.msra.gmra.mxu2 %v12636_v41  ;;  %v10219_v45 = vor.u32 %v11809_v32, %v10216_v33  ;;  %v11849_v27 = vld [vmem:[#allocation10 + $0x20c] sm:$0xf]  ;;  %v11846_v32 = vld [vmem:[#allocation10 + $0x1ec] sm:$0xf0] }
 0x2fa   :  { %5884 = vmatpush.bf16.msrb.mxu2 %v10347_v44  ;;  %5859 = vmatpush.bf16.msrb.mxu0 %v10311_v43  ;;  %v10471_v44 = vor.u32 %v11877_v30, %v10470_v28  ;;  %v12650_v43 = vpop.f32.mrf.mxu3  ;;  %v10376_v24 = vld [vmem:[#allocation10 + $0x228] sm:$0xf0]  ;;  %v10350_v30 = vld [vmem:[#allocation10 + $0x1d0] sm:$0xf] }
 0x2fb   :  { %5853 = vmatmul.bf16.vlgmr.msra.gmra.mxu3 %v12638_v49  ;;  %v10606_v33 = vld [vmem:[#allocation10 + $0x3d0] sm:$0xf] }
 0x2fc   :  { %5897 = vmatpush.bf16.msrb.mxu3 %v10603_v40  ;;  %5872 = vmatpush.bf16.msrb.mxu1 %v10567_v57  ;;  %v10438_v40 = vld [vmem:[#allocation10 + $0x288] sm:$0xf]  ;;  %v11865_v57 = vld [vmem:[#allocation10 + $0x28c] sm:$0xf] }
 0x2fd   :  { %v10439_v61 = vor.u32 %v11869_v47, %v10438_v40  ;;  %v4861_v28 = vpop.f32.mrf.mxu2  ;;  %v10608_v40 = vld [vmem:[#allocation10 + $0x3f0] sm:$0xf0]  ;;  %v10351_v47 = vor.u32 %v11846_v32, %v10350_v30 }
 0x2fe   :  { %5885 = vmatpush.bf16.msrb.mxu2 %v10315_v58  ;;  %5860 = vmatpush.bf16.msrb.mxu0 %v10279_v4  ;;  %v10440_v58 = vld [vmem:[#allocation10 + $0x2a8] sm:$0xf0]  ;;  %v4848_v1 = vpop.f32.mrf.mxu1  ;;  %v11861_v4 = vld [vmem:[#allocation10 + $0x264] sm:$0xf0]  ;;  %v11886_v28 = vld [vmem:[#allocation10 + $0x32c] sm:$0xf0] }
 0x2ff   :  { %v10443_v3 = vor.u32 %v11865_v57, %v10440_v58  ;;  %v10407_v13 = vor.u32 %v11861_v4, %v10406_v0  ;;  %v10318_v57 = vld [vmem:[#allocation10 + $0x190] sm:$0xf]  ;;  %v10576_v0 = vld [vmem:[#allocation10 + $0x3b0] sm:$0xf0] }
 0x300   :  { %5898 = vmatpush.bf16.msrb.mxu3 %v10571_v62  ;;  %5873 = vmatpush.bf16.msrb.mxu1 %v10535_v25  ;;  %v10187_v62 = vor.u32 %v11801_v48, %v10184_v63  ;;  %v11793_v25 = vld [vmem:[#allocation10 + $0x4c] sm:$0xf]  ;;  %v10607_v48 = vor.u32 %v11910_v35, %v10606_v33  ;;  %v11838_v58 = vld [vmem:[#allocation10 + $0x1ac] sm:$0xf0]  ;;  %v10256_v30 = vld [vmem:[#allocation10 + $0x130] sm:$0xf0] }
 0x301   :  { %v10319_v1 = vor.u32 %v11838_v58, %v10318_v57  ;;  %v11882_v32 = vld [vmem:[#allocation10 + $0x314] sm:$0xf] }
 0x302   :  { %5886 = vmatpush.bf16.msrb.mxu2 %v10283_v5  ;;  %5861 = vmatpush.bf16.msrb.mxu0 %v10247_v20  ;;  %v10152_v5 = vld [vmem:[#allocation10 + $0x68] sm:$0xf0]  ;;  %v10512_v33 = vld [vmem:[#allocation10 + $0x330] sm:$0xf0] }
 0x303   :  { %v10155_v17 = vor.u32 %v11793_v25, %v10152_v5  ;;  %v11785_v20 = vld [vmem:[#allocation10 + $0xc] sm:$0xf]  ;;  %v10286_v5 = vld [vmem:[#allocation10 + $0x150] sm:$0xf]  ;;  %v11874_v58 = vld [vmem:[#allocation10 + $0x2d4] sm:$0xf] }
 0x304   :  { %5899 = vmatpush.bf16.msrb.mxu3 %v10539_v9  ;;  %5874 = vmatpush.bf16.msrb.mxu1 %v10503_v22  ;;  %v10118_v9 = vld [vmem:[#allocation10 + $0x8] sm:$0xf]  ;;  %v10411_v22 = vor.u32 %v11857_v31, %v10408_v6  ;;  %v11830_v31 = vld [vmem:[#allocation10 + $0x16c] sm:$0xf0] }
 0x305   :  { %v10119_v34 = vor.u32 %v11789_v11, %v10118_v9  ;;  %v10542_v6 = vld [vmem:[#allocation10 + $0x350] sm:$0xf]  ;;  %v11826_v11 = vld [vmem:[#allocation10 + $0x154] sm:$0xf] }
 0x306   :  { %5887 = vmatpush.bf16.msrb.mxu2 %v10251_v23  ;;  %5862 = vmatpush.bf16.msrb.mxu0 %v10215_v36  ;;  %v10120_v23 = vld [vmem:[#allocation10 + $0x28] sm:$0xf0]  ;;  %v11842_v36 = vld [vmem:[#allocation10 + $0x1d4] sm:$0xf]  ;;  %v11894_v9 = vld [vmem:[#allocation10 + $0x36c] sm:$0xf0] }
 0x307   :  { %v10123_v38 = vor.u32 %v11785_v20, %v10120_v23  ;;  %v11822_v23 = vld [vmem:[#allocation10 + $0x12c] sm:$0xf0] }
 0x308   :  { %5900 = vmatpush.bf16.msrb.mxu3 %v10507_v50  ;;  %5875 = vmatpush.bf16.msrb.mxu1 %v10471_v44  ;;  %v4874_v50 = vpop.f32.mrf.mxu3  ;;  %v10352_v44 = vld [vmem:[#allocation10 + $0x1f0] sm:$0xf0] }
 0x309   :  { %v10355_v63 = vor.u32 %v11842_v36, %v10352_v44  ;;  %v11818_v50 = vld [vmem:[#allocation10 + $0x114] sm:$0xf] }
 0x30a   :  { %5888 = vmatpush.bf16.msrb.mxu2 %v10219_v45  ;;  %5863 = vmatpush.bf16.msrb.mxu0 %v10183_v60  ;;  %v10375_v45 = vor.u32 %v11853_v18, %v10374_v14  ;;  %v10611_v60 = vor.u32 %v11906_v55, %v10608_v40  ;;  %v10287_v14 = vor.u32 %v11830_v31, %v10286_v5  ;;  %v11814_v55 = vld [vmem:[#allocation10 + $0xec] sm:$0xf0]  ;;  %v11866_v31 = vld [vmem:[#allocation10 + $0x294] sm:$0xf] }
 0x30b   :  { %v10543_v18 = vor.u32 %v11894_v9, %v10542_v6  ;;  %v10478_v40 = vld [vmem:[#allocation10 + $0x2d0] sm:$0xf]  ;;  %v10448_v6 = vld [vmem:[#allocation10 + $0x2b0] sm:$0xf0] }
 0x30c   :  { %5901 = vmatpush.bf16.msrb.mxu3 %v10475_v2  ;;  %5876 = vmatpush.bf16.msrb.mxu1 %v10439_v61  ;;  %v10379_v2 = vor.u32 %v11849_v27, %v10376_v24  ;;  %v11902_v61 = vld [vmem:[#allocation10 + $0x3ac] sm:$0xf0] }
 0x30d   :  { %v10575_v4 = vor.u32 %v11902_v61, %v10574_v59  ;;  %v10510_v27 = vld [vmem:[#allocation10 + $0x310] sm:$0xf]  ;;  %v10480_v59 = vld [vmem:[#allocation10 + $0x2f0] sm:$0xf0] }
 0x30e   :  { %5889 = vmatpush.bf16.msrb.mxu2 %v10187_v62  ;;  %5864 = vmatpush.bf16.msrb.mxu0 %v10151_v7  ;;  %v11834_v62 = vld [vmem:[#allocation10 + $0x194] sm:$0xf]  ;;  %v10579_v7 = vor.u32 %v11898_v15, %v10576_v0  ;;  %v10511_v44 = vor.u32 %v11886_v28, %v10510_v27  ;;  %v11806_v15 = vld [vmem:[#allocation10 + $0xac] sm:$0xf0] }
 0x30f   :  { %v10323_v25 = vor.u32 %v11834_v62, %v10320_v8  ;;  %v10190_v8 = vld [vmem:[#allocation10 + $0x90] sm:$0xf]  ;;  %v11794_v27 = vld [vmem:[#allocation10 + $0x54] sm:$0xf] }
 0x310   :  { %5902 = vmatpush.bf16.msrb.mxu3 %v10443_v3  ;;  %5877 = vmatpush.bf16.msrb.mxu1 %v10407_v13  ;;  %v4860_v3 = vadd.f32 %v12648_v54, %v12646_v56  ;;  %v10288_v13 = vld [vmem:[#allocation10 + $0x170] sm:$0xf0]  ;;  %v10446_v0 = vld [vmem:[#allocation10 + $0x290] sm:$0xf] }
 0x311   :  { %v10544_v56 = vld [vmem:[#allocation10 + $0x370] sm:$0xf0]  ;;  %v10291_v20 = vor.u32 %v11826_v11, %v10288_v13  ;;  %v10191_v11 = vor.u32 %v11806_v15, %v10190_v8 }
 0x312   :  { %5890 = vmatpush.bf16.msrb.mxu2 %v10155_v17  ;;  %5865 = vmatpush.bf16.msrb.mxu0 %v10119_v34  ;;  %v11890_v17 = vld [vmem:[#allocation10 + $0x354] sm:$0xf]  ;;  %v4873_v54 = vadd.f32 %v12650_v43, %v4860_v3  ;;  %v4885_v34 = vpop.f32.mrf.mxu0  ;;  %v4898_v43 = vpop.f32.mrf.mxu1  ;;  %v11870_v3 = vld [vmem:[#allocation10 + $0x2ac] sm:$0xf0] }
 0x313   :  { %v10547_v24 = vor.u32 %v11890_v17, %v10544_v56  ;;  %v10447_v56 = vor.u32 %v11870_v3, %v10446_v0  ;;  %v11858_v28 = vld [vmem:[#allocation10 + $0x254] sm:$0xf]  ;;  %v11907_v0 = vld [vmem:[#allocation10 + $0x3dc] sm:$0xf] }
 0x314   :  { %5903 = vmatpush.bf16.msrb.mxu3 %v10411_v22  ;;  %5878 = vmatpush.bf16.msrb.mxu1 %v10375_v45  ;;  %v10254_v22 = vld [vmem:[#allocation10 + $0x110] sm:$0xf]  ;;  %v4886_v36 = vadd.f32 %v4885_v34, %v4873_v54  ;;  %v10259_v45 = vor.u32 %v11818_v50, %v10256_v30  ;;  %v10416_v50 = vld [vmem:[#allocation10 + $0x270] sm:$0xf0] }
 0x315   :  { %5866 = vmatmul.bf16.vlgmr.msrb.gmra.mxu0 %v12636_v41  ;;  %v10255_v35 = vor.u32 %v11822_v23, %v10254_v22  ;;  %v4911_v5 = vpop.f32.mrf.mxu2  ;;  %v10451_v22 = vor.u32 %v11866_v31, %v10448_v6  ;;  %v11862_v23 = vld [vmem:[#allocation10 + $0x26c] sm:$0xf0]  ;;  %v10326_v31 = vld [vmem:[#allocation10 + $0x198] sm:$0xf] }
 0x316   :  { %5891 = vmatpush.bf16.msrb.mxu2 %v10123_v38  ;;  %5910 = vmatpush.bf16.msra.mxu0 %v10351_v47  ;;  %v10222_v38 = vld [vmem:[#allocation10 + $0xd0] sm:$0xf]  ;;  %v12659_v57 = vadd.f32 %v4898_v43, %v4886_v36  ;;  %v11839_v6 = vld [vmem:[#allocation10 + $0x1b4] sm:$0xf0] }
 0x317   :  { %5879 = vmatmul.bf16.vlgmr.msrb.gmra.mxu1 %v12638_v49  ;;  %v11878_v47 = vld [vmem:[#allocation10 + $0x2ec] sm:$0xf0] }
 0x318   :  { %5904 = vmatpush.bf16.msrb.mxu3 %v10379_v2  ;;  %5923 = vmatpush.bf16.msra.mxu1 %v10607_v48  ;;  %v10515_v2 = vor.u32 %v11882_v32, %v10512_v33  ;;  %v11810_v48 = vld [vmem:[#allocation10 + $0xd4] sm:$0xf]  ;;  %v10479_v61 = vor.u32 %v11878_v47, %v10478_v40  ;;  %v10126_v32 = vld [vmem:[#allocation10 + $0x10] sm:$0xf]  ;;  %v10358_v47 = vld [vmem:[#allocation10 + $0x1d8] sm:$0xf] }
 0x319   :  { %5892 = vmatmul.bf16.vlgmr.msrb.gmra.mxu2 %v12636_v41  ;;  %v11790_v33 = vld [vmem:[#allocation10 + $0x2c] sm:$0xf0]  ;;  %v10384_v40 = vld [vmem:[#allocation10 + $0x230] sm:$0xf0] }
 0x31a   :  { %5936 = vmatpush.bf16.msra.mxu2 %v10355_v63  ;;  %5911 = vmatpush.bf16.msra.mxu0 %v10319_v1  ;;  %v10224_v63 = vld [vmem:[#allocation10 + $0xf0] sm:$0xf0]  ;;  %v10483_v1 = vor.u32 %v11874_v58, %v10480_v59  ;;  %v4887_v9 = vpop.f32.mrf.mxu0  ;;  %v4900_v17 = vpop.f32.mrf.mxu1  ;;  %v10382_v36 = vld [vmem:[#allocation10 + $0x210] sm:$0xf]  ;;  %v10127_v59 = vor.u32 %v11790_v33, %v10126_v32  ;;  %v10296_v32 = vld [vmem:[#allocation10 + $0x178] sm:$0xf0] }
 0x31b   :  { %5905 = vmatmul.bf16.vlgmr.msrb.gmra.mxu3 %v12638_v49  ;;  %v10227_v62 = vor.u32 %v11810_v48, %v10224_v63  ;;  %v11854_v43 = vld [vmem:[#allocation10 + $0x22c] sm:$0xf0]  ;;  %v11847_v48 = vld [vmem:[#allocation10 + $0x1f4] sm:$0xf0]  ;;  %v11835_v17 = vld [vmem:[#allocation10 + $0x19c] sm:$0xf] }
 0x31c   :  { %5949 = vmatpush.bf16.msra.mxu3 %v10611_v60  ;;  %5924 = vmatpush.bf16.msra.mxu1 %v10575_v4  ;;  %v10223_v60 = vor.u32 %v11814_v55, %v10222_v38  ;;  %v11802_v4 = vld [vmem:[#allocation10 + $0x94] sm:$0xf]  ;;  %v10614_v63 = vld [vmem:[#allocation10 + $0x3d8] sm:$0xf]  ;;  %v10383_v8 = vor.u32 %v11854_v43, %v10382_v36  ;;  %v11891_v33 = vld [vmem:[#allocation10 + $0x35c] sm:$0xf] }
 0x31d   :  { %v10128_v38 = vld [vmem:[#allocation10 + $0x30] sm:$0xf0] }
 0x31e   :  { %5937 = vmatpush.bf16.msra.mxu2 %v10323_v25  ;;  %5912 = vmatpush.bf16.msra.mxu0 %v10287_v14  ;;  %v10192_v25 = vld [vmem:[#allocation10 + $0xb0] sm:$0xf0]  ;;  %v10158_v14 = vld [vmem:[#allocation10 + $0x50] sm:$0xf] }
 0x31f   :  { %v10195_v54 = vor.u32 %v11802_v4, %v10192_v25  ;;  %v11850_v55 = vld [vmem:[#allocation10 + $0x214] sm:$0xf]  ;;  %v10359_v4 = vor.u32 %v11847_v48, %v10358_v47  ;;  %v10264_v47 = vld [vmem:[#allocation10 + $0x138] sm:$0xf0] }
 0x320   :  { %5950 = vmatpush.bf16.msra.mxu3 %v10579_v7  ;;  %5925 = vmatpush.bf16.msra.mxu1 %v10543_v18  ;;  %v4924_v7 = vpop.f32.mrf.mxu3  ;;  %v11798_v18 = vld [vmem:[#allocation10 + $0x6c] sm:$0xf0]  ;;  %v10387_v3 = vor.u32 %v11850_v55, %v10384_v40  ;;  %v11887_v40 = vld [vmem:[#allocation10 + $0x334] sm:$0xf0]  ;;  %v11883_v48 = vld [vmem:[#allocation10 + $0x31c] sm:$0xf] }
 0x321   :  { %v12661_v13 = vadd.f32 %v4924_v7, %v4911_v5  ;;  %v10159_v30 = vor.u32 %v11798_v18, %v10158_v14  ;;  %v10582_v7 = vld [vmem:[#allocation10 + $0x398] sm:$0xf]  ;;  %v10584_v14 = vld [vmem:[#allocation10 + $0x3b8] sm:$0xf0]  ;;  %v10327_v18 = vor.u32 %v11839_v6, %v10326_v31 }
 0x322   :  { %5938 = vmatpush.bf16.msra.mxu2 %v10291_v20  ;;  %5913 = vmatpush.bf16.msra.mxu0 %v10255_v35  ;;  %v10414_v20 = vld [vmem:[#allocation10 + $0x250] sm:$0xf]  ;;  %v11875_v31 = vld [vmem:[#allocation10 + $0x2dc] sm:$0xf] }
 0x323   :  { %v10415_v34 = vor.u32 %v11862_v23, %v10414_v20  ;;  %v10294_v23 = vld [vmem:[#allocation10 + $0x158] sm:$0xf]  ;;  %v10488_v6 = vld [vmem:[#allocation10 + $0x2f8] sm:$0xf0] }
 0x324   :  { %5951 = vmatpush.bf16.msra.mxu3 %v10547_v24  ;;  %5926 = vmatpush.bf16.msra.mxu1 %v10511_v44  ;;  %v10160_v24 = vld [vmem:[#allocation10 + $0x70] sm:$0xf0] }
 0x325   :  { %v10163_v35 = vor.u32 %v11794_v27, %v10160_v24  ;;  %v11786_v44 = vld [vmem:[#allocation10 + $0x14] sm:$0xf]  ;;  %v11831_v27 = vld [vmem:[#allocation10 + $0x174] sm:$0xf0] }
 0x326   :  { %5939 = vmatpush.bf16.msra.mxu2 %v10259_v45  ;;  %5914 = vmatpush.bf16.msra.mxu0 %v10223_v60  ;;  %v10419_v45 = vor.u32 %v11858_v28, %v10416_v50  ;;  %v11911_v60 = vld [vmem:[#allocation10 + $0x3f4] sm:$0xf0]  ;;  %v10131_v15 = vor.u32 %v11786_v44, %v10128_v38 }
 0x327   :  { %v10615_v25 = vor.u32 %v11911_v60, %v10614_v63  ;;  %v10550_v24 = vld [vmem:[#allocation10 + $0x358] sm:$0xf]  ;;  %v10520_v63 = vld [vmem:[#allocation10 + $0x338] sm:$0xf0] }
 0x328   :  { %5952 = vmatpush.bf16.msra.mxu3 %v10515_v2  ;;  %5927 = vmatpush.bf16.msra.mxu1 %v10479_v61  ;;  %v4913_v2 = vpop.f32.mrf.mxu2  ;;  %v4926_v58 = vpop.f32.mrf.mxu3  ;;  %v11843_v61 = vld [vmem:[#allocation10 + $0x1dc] sm:$0xf]  ;;  %v11895_v50 = vld [vmem:[#allocation10 + $0x374] sm:$0xf0] }
 0x329   :  { %v10551_v36 = vor.u32 %v11895_v50, %v10550_v24  ;;  %v10262_v44 = vld [vmem:[#allocation10 + $0x118] sm:$0xf]  ;;  %v11819_v2 = vld [vmem:[#allocation10 + $0x11c] sm:$0xf] }
 0x32a   :  { %5940 = vmatpush.bf16.msra.mxu2 %v10227_v62  ;;  %5915 = vmatpush.bf16.msra.mxu0 %v10191_v11  ;;  %v10360_v62 = vld [vmem:[#allocation10 + $0x1f8] sm:$0xf0]  ;;  %v11903_v11 = vld [vmem:[#allocation10 + $0x3b4] sm:$0xf0] }
 0x32b   :  { %v10363_v5 = vor.u32 %v11843_v61, %v10360_v62  ;;  %v10583_v20 = vor.u32 %v11903_v11, %v10582_v7  ;;  %v10518_v38 = vld [vmem:[#allocation10 + $0x318] sm:$0xf]  ;;  %v10267_v62 = vor.u32 %v11819_v2, %v10264_v47  ;;  %v11867_v24 = vld [vmem:[#allocation10 + $0x29c] sm:$0xf] }
 0x32c   :  { %5953 = vmatpush.bf16.msra.mxu3 %v10483_v1  ;;  %5928 = vmatpush.bf16.msra.mxu1 %v10447_v56  ;;  %v10616_v1 = vld [vmem:[#allocation10 + $0x3f8] sm:$0xf0]  ;;  %v10519_v61 = vor.u32 %v11887_v40, %v10518_v38  ;;  %v11863_v38 = vld [vmem:[#allocation10 + $0x274] sm:$0xf0] }
 0x32d   :  { %v10619_v9 = vor.u32 %v11907_v0, %v10616_v1  ;;  %v10328_v56 = vld [vmem:[#allocation10 + $0x1b8] sm:$0xf0]  ;;  %v4950_v60 = vpop.f32.mrf.mxu1  ;;  %v10486_v0 = vld [vmem:[#allocation10 + $0x2d8] sm:$0xf] }
 0x32e   :  { %5941 = vmatpush.bf16.msra.mxu2 %v10195_v54  ;;  %5916 = vmatpush.bf16.msra.mxu0 %v10159_v30  ;;  %v11899_v54 = vld [vmem:[#allocation10 + $0x39c] sm:$0xf] }
 0x32f   :  { %v10587_v28 = vor.u32 %v11899_v54, %v10584_v14  ;;  %v11827_v30 = vld [vmem:[#allocation10 + $0x15c] sm:$0xf]  ;;  %v11807_v54 = vld [vmem:[#allocation10 + $0xb4] sm:$0xf0] }
 0x330   :  { %5954 = vmatpush.bf16.msra.mxu3 %v10451_v22  ;;  %5929 = vmatpush.bf16.msra.mxu1 %v10415_v34  ;;  %v10331_v22 = vor.u32 %v11835_v17, %v10328_v56  ;;  %v10552_v34 = vld [vmem:[#allocation10 + $0x378] sm:$0xf0]  ;;  %v10299_v43 = vor.u32 %v11827_v30, %v10296_v32  ;;  %v10198_v56 = vld [vmem:[#allocation10 + $0x98] sm:$0xf] }
 0x331   :  { %v10555_v55 = vor.u32 %v11891_v33, %v10552_v34  ;;  %v10454_v14 = vld [vmem:[#allocation10 + $0x298] sm:$0xf]  ;;  %v10199_v30 = vor.u32 %v11807_v54, %v10198_v56  ;;  %v10168_v40 = vld [vmem:[#allocation10 + $0x78] sm:$0xf0] }
 0x332   :  { %5942 = vmatpush.bf16.msra.mxu2 %v10163_v35  ;;  %5917 = vmatpush.bf16.msra.mxu0 %v10127_v59  ;;  %v10295_v35 = vor.u32 %v11831_v27, %v10294_v23  ;;  %v4937_v59 = vpop.f32.mrf.mxu0  ;;  %v10200_v23 = vld [vmem:[#allocation10 + $0xb8] sm:$0xf0] }
 0x333   :  { %v4938_v1 = vadd.f32 %v4937_v59, %v12661_v13  ;;  %v10491_v13 = vor.u32 %v11875_v31, %v10488_v6  ;;  %v11859_v2 = vld [vmem:[#allocation10 + $0x25c] sm:$0xf]  ;;  %v11108_v31 = vld [vmem:[#allocation10 + $0x7c0] sm:$0xf] }
 0x334   :  { %5955 = vmatpush.bf16.msra.mxu3 %v10419_v45  ;;  %5930 = vmatpush.bf16.msra.mxu1 %v10383_v8  ;;  %v11823_v45 = vld [vmem:[#allocation10 + $0x134] sm:$0xf0]  ;;  %v10424_v47 = vld [vmem:[#allocation10 + $0x278] sm:$0xf0] }
 0x335   :  { %5918 = vmatmul.bf16.vlgmr.msra.gmra.mxu0 %v12636_v41  ;;  %v10263_v58 = vor.u32 %v11823_v45, %v10262_v44  ;;  %v10230_v8 = vld [vmem:[#allocation10 + $0xd8] sm:$0xf]  ;;  %v4951_v7 = vadd.f32 %v4950_v60, %v4938_v1  ;;  %v4952_v33 = vpop.f32.mrf.mxu1  ;;  %v10136_v1 = vld [vmem:[#allocation10 + $0x38] sm:$0xf0] }
 0x336   :  { %5943 = vmatpush.bf16.msra.mxu2 %v10131_v15  ;;  %5962 = vmatpush.bf16.msrb.mxu0 %v10359_v4  ;;  %v11815_v15 = vld [vmem:[#allocation10 + $0xf4] sm:$0xf0]  ;;  %v12028_v33 = vld [vmem:[#allocation10 + $0x79c] sm:$0xf0] }
 0x337   :  { %5931 = vmatmul.bf16.vlgmr.msra.gmra.mxu1 %v12638_v49  ;;  %v11879_v4 = vld [vmem:[#allocation10 + $0x2f4] sm:$0xf0]  ;;  %v12670_v50 = vpop.f32.mrf.mxu3 }
 0x338   :  { %5956 = vmatpush.bf16.msra.mxu3 %v10387_v3  ;;  %5975 = vmatpush.bf16.msrb.mxu1 %v10615_v25  ;;  %v10523_v3 = vor.u32 %v11883_v48, %v10520_v63  ;;  %v11811_v25 = vld [vmem:[#allocation10 + $0xdc] sm:$0xf]  ;;  %v10487_v11 = vor.u32 %v11879_v4, %v10486_v0  ;;  %v10422_v44 = vld [vmem:[#allocation10 + $0x258] sm:$0xf]  ;;  %v10427_v0 = vor.u32 %v11859_v2, %v10424_v47  ;;  %v11044_v2 = vld [vmem:[#allocation10 + $0x740] sm:$0xf] }
 0x339   :  { %5944 = vmatmul.bf16.vlgmr.msra.gmra.mxu2 %v12636_v41  ;;  %v10134_v63 = vld [vmem:[#allocation10 + $0x18] sm:$0xf]  ;;  %v10423_v59 = vor.u32 %v11863_v38, %v10422_v44  ;;  %v10392_v4 = vld [vmem:[#allocation10 + $0x238] sm:$0xf0] }
 0x33a   :  { %5988 = vmatpush.bf16.msrb.mxu2 %v10363_v5  ;;  %5963 = vmatpush.bf16.msrb.mxu0 %v10327_v18  ;;  %v10232_v5 = vld [vmem:[#allocation10 + $0xf8] sm:$0xf0]  ;;  %v4963_v18 = vpop.f32.mrf.mxu2  ;;  %v4939_v32 = vpop.f32.mrf.mxu0 }
 0x33b   :  { %5957 = vmatmul.bf16.vlgmr.msra.gmra.mxu3 %v12638_v49  ;;  %v10235_v17 = vor.u32 %v11811_v25, %v10232_v5  ;;  %v12668_v27 = vadd.f32 %v4963_v18, %v4951_v7  ;;  %v10852_v25 = vld [vmem:[#allocation10 + $0x5c0] sm:$0xf]  ;;  %v11110_v18 = vld [vmem:[#allocation10 + $0x7e0] sm:$0xf0] }
 0x33c   :  { %6001 = vmatpush.bf16.msrb.mxu3 %v10619_v9  ;;  %5976 = vmatpush.bf16.msrb.mxu1 %v10583_v20  ;;  %v10231_v9 = vor.u32 %v11815_v15, %v10230_v8  ;;  %v11871_v20 = vld [vmem:[#allocation10 + $0x2b4] sm:$0xf0]  ;;  %v11787_v8 = vld [vmem:[#allocation10 + $0x1c] sm:$0xf]  ;;  %v11972_v5 = vld [vmem:[#allocation10 + $0x5dc] sm:$0xf0] }
 0x33d   :  { %v10455_v34 = vor.u32 %v11871_v20, %v10454_v14  ;;  %v10139_v54 = vor.u32 %v11787_v8, %v10136_v1  ;;  %v12032_v14 = vld [vmem:[#allocation10 + $0x7c4] sm:$0xf]  ;;  %v10853_v20 = vor.u32 %v11972_v5, %v10852_v25  ;;  %v11012_v1 = vld [vmem:[#allocation10 + $0x700] sm:$0xf] }
 0x33e   :  { %5989 = vmatpush.bf16.msrb.mxu2 %v10331_v22  ;;  %5964 = vmatpush.bf16.msrb.mxu0 %v10295_v35  ;;  %v11803_v22 = vld [vmem:[#allocation10 + $0x9c] sm:$0xf]  ;;  %v11113_v32 = vor.u32 %v12032_v14, %v11110_v18  ;;  %v11944_v25 = vld [vmem:[#allocation10 + $0x504] sm:$0xf] }
 0x33f   :  { %v10203_v35 = vor.u32 %v11803_v22, %v10200_v23  ;;  %v4978_v6 = vpop.f32.mrf.mxu3  ;;  %v10758_v5 = vld [vmem:[#allocation10 + $0x520] sm:$0xf0] }
 0x340   :  { %6002 = vmatpush.bf16.msrb.mxu3 %v10587_v28  ;;  %5977 = vmatpush.bf16.msrb.mxu1 %v10551_v36  ;;  %v10456_v28 = vld [vmem:[#allocation10 + $0x2b8] sm:$0xf0]  ;;  %v10166_v36 = vld [vmem:[#allocation10 + $0x58] sm:$0xf] }
 0x341   :  { %v10459_v45 = vor.u32 %v11867_v24, %v10456_v28  ;;  %v10820_v24 = vld [vmem:[#allocation10 + $0x580] sm:$0xf] }
 0x342   :  { %5990 = vmatpush.bf16.msrb.mxu2 %v10299_v43  ;;  %5965 = vmatpush.bf16.msrb.mxu0 %v10263_v58  ;;  %v11799_v43 = vld [vmem:[#allocation10 + $0x74] sm:$0xf0]  ;;  %v4965_v15 = vpop.f32.mrf.mxu2  ;;  %v11964_v28 = vld [vmem:[#allocation10 + $0x59c] sm:$0xf0] }
 0x343   :  { %v10167_v48 = vor.u32 %v11799_v43, %v10166_v36  ;;  %v11791_v58 = vld [vmem:[#allocation10 + $0x34] sm:$0xf0]  ;;  %v12024_v36 = vld [vmem:[#allocation10 + $0x784] sm:$0xf]  ;;  %v10821_v44 = vor.u32 %v11964_v28, %v10820_v24  ;;  %v10756_v15 = vld [vmem:[#allocation10 + $0x500] sm:$0xf] }
 0x344   :  { %6003 = vmatpush.bf16.msrb.mxu3 %v10555_v55  ;;  %5978 = vmatpush.bf16.msrb.mxu1 %v10519_v61  ;;  %v11795_v55 = vld [vmem:[#allocation10 + $0x5c] sm:$0xf]  ;;  %v10390_v61 = vld [vmem:[#allocation10 + $0x218] sm:$0xf]  ;;  %v10135_v7 = vor.u32 %v11791_v58, %v10134_v63  ;;  %v11078_v43 = vld [vmem:[#allocation10 + $0x7a0] sm:$0xf0] }
 0x345   :  { %v10171_v60 = vor.u32 %v11795_v55, %v10168_v40  ;;  %v10788_v55 = vld [vmem:[#allocation10 + $0x540] sm:$0xf]  ;;  %v11081_v47 = vor.u32 %v12024_v36, %v11078_v43  ;;  %v11952_v63 = vld [vmem:[#allocation10 + $0x544] sm:$0xf] }
 0x346   :  { %5991 = vmatpush.bf16.msrb.mxu2 %v10267_v62  ;;  %5966 = vmatpush.bf16.msrb.mxu0 %v10231_v9  ;;  %v11855_v62 = vld [vmem:[#allocation10 + $0x234] sm:$0xf0]  ;;  %v12036_v9 = vld [vmem:[#allocation10 + $0x7dc] sm:$0xf0]  ;;  %v10790_v58 = vld [vmem:[#allocation10 + $0x560] sm:$0xf0] }
 0x347   :  { %v10391_v56 = vor.u32 %v11855_v62, %v10390_v61  ;;  %v11109_v22 = vor.u32 %v12036_v9, %v11108_v31  ;;  %v11956_v40 = vld [vmem:[#allocation10 + $0x55c] sm:$0xf0]  ;;  %v10793_v8 = vor.u32 %v11952_v63, %v10790_v58  ;;  %v12008_v31 = vld [vmem:[#allocation10 + $0x704] sm:$0xf]  ;;  %v10761_v9 = vor.u32 %v11944_v25, %v10758_v5 }
 0x348   :  { %6004 = vmatpush.bf16.msrb.mxu3 %v10523_v3  ;;  %5979 = vmatpush.bf16.msrb.mxu1 %v10487_v11  ;;  %v11851_v3 = vld [vmem:[#allocation10 + $0x21c] sm:$0xf]  ;;  %v11968_v11 = vld [vmem:[#allocation10 + $0x5c4] sm:$0xf]  ;;  %v10789_v61 = vor.u32 %v11956_v40, %v10788_v55  ;;  %v10948_v36 = vld [vmem:[#allocation10 + $0x680] sm:$0xf] }
 0x349   :  { %v10982_v24 = vld [vmem:[#allocation10 + $0x6e0] sm:$0xf0] }
 0x34a   :  { %5992 = vmatpush.bf16.msrb.mxu2 %v10235_v17  ;;  %5967 = vmatpush.bf16.msrb.mxu0 %v10199_v30  ;;  %v10854_v17 = vld [vmem:[#allocation10 + $0x5e0] sm:$0xf0]  ;;  %v11076_v30 = vld [vmem:[#allocation10 + $0x780] sm:$0xf] }
 0x34b   :  { %v10857_v23 = vor.u32 %v11968_v11, %v10854_v17  ;;  %v10724_v17 = vld [vmem:[#allocation10 + $0x4c0] sm:$0xf]  ;;  %v10694_v55 = vld [vmem:[#allocation10 + $0x4a0] sm:$0xf0] }
 0x34c   :  { %6005 = vmatpush.bf16.msrb.mxu3 %v10491_v13  ;;  %5980 = vmatpush.bf16.msrb.mxu1 %v10455_v34  ;;  %v10395_v13 = vor.u32 %v11851_v3, %v10392_v4  ;;  %v11960_v34 = vld [vmem:[#allocation10 + $0x584] sm:$0xf]  ;;  %v12012_v4 = vld [vmem:[#allocation10 + $0x71c] sm:$0xf0] }
 0x34d   :  { %v11984_v25 = vld [vmem:[#allocation10 + $0x644] sm:$0xf] }
 0x34e   :  { %5993 = vmatpush.bf16.msrb.mxu2 %v10203_v35  ;;  %5968 = vmatpush.bf16.msrb.mxu0 %v10167_v48  ;;  %v10822_v35 = vld [vmem:[#allocation10 + $0x5a0] sm:$0xf0]  ;;  %v12020_v48 = vld [vmem:[#allocation10 + $0x75c] sm:$0xf0] }
 0x34f   :  { %v10825_v38 = vor.u32 %v11960_v34, %v10822_v35  ;;  %v11045_v62 = vor.u32 %v12020_v48, %v11044_v2  ;;  %v11932_v35 = vld [vmem:[#allocation10 + $0x49c] sm:$0xf0]  ;;  %v11992_v2 = vld [vmem:[#allocation10 + $0x684] sm:$0xf] }
 0x350   :  { %6006 = vmatpush.bf16.msrb.mxu3 %v10459_v45  ;;  %5981 = vmatpush.bf16.msrb.mxu1 %v10423_v59  ;;  %v11077_v45 = vor.u32 %v12028_v33, %v11076_v30  ;;  %v12016_v59 = vld [vmem:[#allocation10 + $0x744] sm:$0xf] }
 0x351   :  { %v10918_v5 = vld [vmem:[#allocation10 + $0x660] sm:$0xf0] }
 0x352   :  { %5994 = vmatpush.bf16.msrb.mxu2 %v10171_v60  ;;  %5969 = vmatpush.bf16.msrb.mxu0 %v10135_v7  ;;  %v11046_v60 = vld [vmem:[#allocation10 + $0x760] sm:$0xf0]  ;;  %v4989_v7 = vpop.f32.mrf.mxu0 }
 0x353   :  { %v11049_v3 = vor.u32 %v12016_v59, %v11046_v60  ;;  %v4990_v11 = vadd.f32 %v4989_v7, %v12670_v50  ;;  %v10692_v50 = vld [vmem:[#allocation10 + $0x480] sm:$0xf] }
 0x354   :  { %6007 = vmatpush.bf16.msrb.mxu3 %v10427_v0  ;;  %5982 = vmatpush.bf16.msrb.mxu1 %v10391_v56  ;;  %v11948_v0 = vld [vmem:[#allocation10 + $0x51c] sm:$0xf0]  ;;  %v5002_v14 = vpop.f32.mrf.mxu1  ;;  %v10693_v48 = vor.u32 %v11932_v35, %v10692_v50  ;;  %v12033_v35 = vld [vmem:[#allocation10 + $0x7cc] sm:$0xf] }
 0x355   :  { %5970 = vmatmul.bf16.vlgmr.msrb.gmra.mxu0 %v12636_v41  ;;  %v10757_v6 = vor.u32 %v11948_v0, %v10756_v15  ;;  %v11940_v56 = vld [vmem:[#allocation10 + $0x4dc] sm:$0xf0]  ;;  %v5003_v28 = vadd.f32 %v5002_v14, %v4990_v11  ;;  %v10630_v14 = vld [vmem:[#allocation10 + $0x420] sm:$0xf0] }
 0x356   :  { %5995 = vmatpush.bf16.msrb.mxu2 %v10139_v54  ;;  %6951 = vmatpush.bf16.msra.mxu0 %v10853_v20  ;;  %v10980_v54 = vld [vmem:[#allocation10 + $0x6c0] sm:$0xf]  ;;  %v11936_v20 = vld [vmem:[#allocation10 + $0x4c4] sm:$0xf]  ;;  %v10725_v30 = vor.u32 %v11940_v56, %v10724_v17 }
 0x357   :  { %5983 = vmatmul.bf16.vlgmr.msrb.gmra.mxu1 %v12638_v49  ;;  %v11980_v11 = vld [vmem:[#allocation10 + $0x61c] sm:$0xf0]  ;;  %v11912_v17 = vld [vmem:[#allocation10 + $0x404] sm:$0xf] }
 0x358   :  { %6008 = vmatpush.bf16.msrb.mxu3 %v10395_v13  ;;  %6964 = vmatpush.bf16.msra.mxu1 %v11109_v22  ;;  %v12004_v13 = vld [vmem:[#allocation10 + $0x6dc] sm:$0xf0]  ;;  %v10726_v22 = vld [vmem:[#allocation10 + $0x4e0] sm:$0xf0]  ;;  %v10633_v50 = vor.u32 %v11912_v17, %v10630_v14  ;;  %v10764_v14 = vld [vmem:[#allocation10 + $0x508] sm:$0xf] }
 0x359   :  { %5996 = vmatmul.bf16.vlgmr.msrb.gmra.mxu2 %v12636_v41  ;;  %v11014_v41 = vld [vmem:[#allocation10 + $0x720] sm:$0xf0]  ;;  %v10729_v33 = vor.u32 %v11936_v20, %v10726_v22  ;;  %v10860_v22 = vld [vmem:[#allocation10 + $0x5c8] sm:$0xf] }
 0x35a   :  { %6977 = vmatpush.bf16.msra.mxu2 %v10857_v23  ;;  %6952 = vmatpush.bf16.msra.mxu0 %v10821_v44  ;;  %v11017_v18 = vor.u32 %v12008_v31, %v11014_v41  ;;  %v12000_v23 = vld [vmem:[#allocation10 + $0x6c4] sm:$0xf]  ;;  %v4991_v58 = vpop.f32.mrf.mxu0  ;;  %v10628_v41 = vld [vmem:[#allocation10 + $0x400] sm:$0xf] }
 0x35b   :  { %6009 = vmatmul.bf16.vlgmr.msrb.gmra.mxu3 %v12638_v49  ;;  %v11013_v49 = vor.u32 %v12012_v4, %v11012_v1  ;;  %v10985_v43 = vor.u32 %v12000_v23, %v10982_v24  ;;  %v11988_v1 = vld [vmem:[#allocation10 + $0x65c] sm:$0xf0]  ;;  %v10662_v4 = vld [vmem:[#allocation10 + $0x460] sm:$0xf0]  ;;  %v11973_v23 = vld [vmem:[#allocation10 + $0x5e4] sm:$0xf0] }
 0x35c   :  { %6990 = vmatpush.bf16.msra.mxu3 %v11113_v32  ;;  %6965 = vmatpush.bf16.msra.mxu1 %v11077_v45  ;;  %v10981_v32 = vor.u32 %v12004_v13, %v10980_v54  ;;  %v5015_v34 = vpop.f32.mrf.mxu2  ;;  %v11996_v45 = vld [vmem:[#allocation10 + $0x69c] sm:$0xf0]  ;;  %v5004_v15 = vpop.f32.mrf.mxu1  ;;  %v10921_v54 = vor.u32 %v11984_v25, %v10918_v5  ;;  %v10886_v13 = vld [vmem:[#allocation10 + $0x620] sm:$0xf0]  ;;  %v11116_v24 = vld [vmem:[#allocation10 + $0x7c8] sm:$0xf] }
 0x35d   :  { %v5016_v44 = vadd.f32 %v5015_v34, %v5003_v28  ;;  %v10949_v59 = vor.u32 %v11996_v45, %v10948_v36  ;;  %v11118_v36 = vld [vmem:[#allocation10 + $0x7e8] sm:$0xf0]  ;;  %v10861_v45 = vor.u32 %v11973_v23, %v10860_v22  ;;  %v10796_v25 = vld [vmem:[#allocation10 + $0x548] sm:$0xf] }
 0x35e   :  { %6978 = vmatpush.bf16.msra.mxu2 %v10825_v38  ;;  %6953 = vmatpush.bf16.msra.mxu0 %v10789_v61  ;;  %v11928_v38 = vld [vmem:[#allocation10 + $0x484] sm:$0xf]  ;;  %v5028_v40 = vpop.f32.mrf.mxu3  ;;  %v10660_v61 = vld [vmem:[#allocation10 + $0x440] sm:$0xf]  ;;  %v11121_v58 = vor.u32 %v12033_v35, %v11118_v36  ;;  %v12025_v15 = vld [vmem:[#allocation10 + $0x78c] sm:$0xf] }
 0x35f   :  { %v12677_v63 = vadd.f32 %v5028_v40, %v5016_v44  ;;  %v10697_v60 = vor.u32 %v11928_v38, %v10694_v55  ;;  %v6176_v38 = vld [vmem:[#allocation5 + $0x18] sm:$0xff]  ;;  %v11957_v5 = vld [vmem:[#allocation10 + $0x564] sm:$0xf0]  ;;  %v11945_v23 = vld [vmem:[#allocation10 + $0x50c] sm:$0xf] }
 0x360   :  { %6991 = vmatpush.bf16.msra.mxu3 %v11081_v47  ;;  %6966 = vmatpush.bf16.msra.mxu1 %v11045_v62  ;;  %v10950_v47 = vld [vmem:[#allocation10 + $0x6a0] sm:$0xf0]  ;;  %v11924_v62 = vld [vmem:[#allocation10 + $0x45c] sm:$0xf0]  ;;  %v10797_v17 = vor.u32 %v11957_v5, %v10796_v25  ;;  %v12013_v22 = vld [vmem:[#allocation10 + $0x724] sm:$0xf0] }
 0x361   :  { %v10953_v0 = vor.u32 %v11992_v2, %v10950_v47  ;;  %v10661_v31 = vor.u32 %v11924_v62, %v10660_v61  ;;  %v10828_v2 = vld [vmem:[#allocation10 + $0x588] sm:$0xf]  ;;  %v11961_v61 = vld [vmem:[#allocation10 + $0x58c] sm:$0xf] }
 0x362   :  { %6979 = vmatpush.bf16.msra.mxu2 %v10793_v8  ;;  %6954 = vmatpush.bf16.msra.mxu0 %v10757_v6  ;;  %v10916_v8 = vld [vmem:[#allocation10 + $0x640] sm:$0xf]  ;;  %v11965_v47 = vld [vmem:[#allocation10 + $0x5a4] sm:$0xf0]  ;;  %v10830_v62 = vld [vmem:[#allocation10 + $0x5a8] sm:$0xf0] }
 0x363   :  { %v11916_v6 = vld [vmem:[#allocation10 + $0x41c] sm:$0xf0]  ;;  %v10917_v7 = vor.u32 %v11988_v1, %v10916_v8  ;;  %v12681_v8 = vpack.c.bf16 %v6176_v38, %v6176_v38  ;;  %v10829_v1 = vor.u32 %v11965_v47, %v10828_v2  ;;  %v10732_v36 = vld [vmem:[#allocation10 + $0x4c8] sm:$0xf]  ;;  %v12001_v2 = vld [vmem:[#allocation10 + $0x6cc] sm:$0xf] }
 0x364   :  { %6992 = vmatpush.bf16.msra.mxu3 %v11049_v3  ;;  %6967 = vmatpush.bf16.msra.mxu1 %v11013_v49  ;;  %v11920_v3 = vld [vmem:[#allocation10 + $0x444] sm:$0xf]  ;;  %v5017_v56 = vpop.f32.mrf.mxu2  ;;  %v10629_v28 = vor.u32 %v11916_v6, %v10628_v41  ;;  %v12021_v6 = vld [vmem:[#allocation10 + $0x764] sm:$0xf0]  ;;  %v10990_v47 = vld [vmem:[#allocation10 + $0x6e8] sm:$0xf0] }
 0x365   :  { %v10665_v49 = vor.u32 %v11920_v3, %v10662_v4  ;;  %v10833_v4 = vor.u32 %v11961_v61, %v10830_v62  ;;  %v12005_v38 = vld [vmem:[#allocation10 + $0x6e4] sm:$0xf0]  ;;  %v10702_v25 = vld [vmem:[#allocation10 + $0x4a8] sm:$0xf0] }
 0x366   :  { %6980 = vmatpush.bf16.msra.mxu2 %v10761_v9  ;;  %6955 = vmatpush.bf16.msra.mxu0 %v10725_v30  ;;  %v10884_v9 = vld [vmem:[#allocation10 + $0x600] sm:$0xf]  ;;  %v5030_v20 = vpop.f32.mrf.mxu3  ;;  %v12037_v30 = vld [vmem:[#allocation10 + $0x7e4] sm:$0xf0] }
 0x367   :  { %v10885_v34 = vor.u32 %v11980_v11, %v10884_v9  ;;  %v11117_v55 = vor.u32 %v12037_v30, %v11116_v24  ;;  %v12017_v9 = vld [vmem:[#allocation10 + $0x74c] sm:$0xf]  ;;  %v10700_v61 = vld [vmem:[#allocation10 + $0x488] sm:$0xf] }
 0x368   :  { %6993 = vmatpush.bf16.msra.mxu3 %v11017_v18  ;;  %6968 = vmatpush.bf16.msra.mxu1 %v10981_v32  ;;  %v11976_v18 = vld [vmem:[#allocation10 + $0x604] sm:$0xf]  ;;  %v11969_v32 = vld [vmem:[#allocation10 + $0x5cc] sm:$0xf]  ;;  %v11933_v62 = vld [vmem:[#allocation10 + $0x4a4] sm:$0xf0] }
 0x369   :  { %v10889_v44 = vor.u32 %v11976_v18, %v10886_v13  ;;  %v11054_v11 = vld [vmem:[#allocation10 + $0x768] sm:$0xf0]  ;;  %v11949_v18 = vld [vmem:[#allocation10 + $0x524] sm:$0xf0] }
 0x36a   :  { %6981 = vmatpush.bf16.msra.mxu2 %v10729_v33  ;;  %6956 = vmatpush.bf16.msra.mxu0 %v10693_v48  ;;  %v10862_v33 = vld [vmem:[#allocation10 + $0x5e8] sm:$0xf0]  ;;  %v11084_v48 = vld [vmem:[#allocation10 + $0x788] sm:$0xf]  ;;  %v11057_v20 = vor.u32 %v12017_v9, %v11054_v11 }
 0x36b   :  { %v10865_v40 = vor.u32 %v11969_v32, %v10862_v33  ;;  %v11020_v13 = vld [vmem:[#allocation10 + $0x708] sm:$0xf]  ;;  %v10766_v24 = vld [vmem:[#allocation10 + $0x528] sm:$0xf0] }
 0x36c   :  { %6994 = vmatpush.bf16.msra.mxu3 %v10985_v43  ;;  %6969 = vmatpush.bf16.msra.mxu1 %v10949_v59  ;;  %v6175_v43 = vld [vmem:[#allocation5 + $0x10] sm:$0xff]  ;;  %v12009_v30 = vld [vmem:[#allocation10 + $0x70c] sm:$0xf]  ;;  %v10769_v35 = vor.u32 %v11945_v23, %v10766_v24  ;;  %v12691_v24 = vld [vmem:[#allocation11] sm:$0xff] }
 0x36d   :  { %v12679_v59 = vpack.c.bf16 %v6175_v43, %v6175_v43  ;;  %v11022_v32 = vld [vmem:[#allocation10 + $0x728] sm:$0xf0]  ;;  %v11941_v43 = vld [vmem:[#allocation10 + $0x4e4] sm:$0xf0] }
 0x36e   :  { %6982 = vmatpush.bf16.msra.mxu2 %v10697_v60  ;;  %6957 = vmatpush.bf16.msra.mxu0 %v10661_v31  ;;  %v12029_v60 = vld [vmem:[#allocation10 + $0x7a4] sm:$0xf0]  ;;  %v10926_v23 = vld [vmem:[#allocation10 + $0x668] sm:$0xf0] }
 0x36f   :  { %v11085_v3 = vor.u32 %v12029_v60, %v11084_v48  ;;  %v11052_v31 = vld [vmem:[#allocation10 + $0x748] sm:$0xf]  ;;  %v10733_v48 = vor.u32 %v11941_v43, %v10732_v36 }
 0x370   :  { %6995 = vmatpush.bf16.msra.mxu3 %v10953_v0  ;;  %6970 = vmatpush.bf16.msra.mxu1 %v10917_v7  ;;  %v11086_v0 = vld [vmem:[#allocation10 + $0x7a8] sm:$0xf0]  ;;  %v11053_v56 = vor.u32 %v12021_v6, %v11052_v31  ;;  %v10892_v43 = vld [vmem:[#allocation10 + $0x608] sm:$0xf] }
 0x371   :  { %v11089_v41 = vor.u32 %v12025_v15, %v11086_v0  ;;  %v11953_v7 = vld [vmem:[#allocation10 + $0x54c] sm:$0xf]  ;;  %v10956_v15 = vld [vmem:[#allocation10 + $0x688] sm:$0xf]  ;;  %v10993_v0 = vor.u32 %v12001_v2, %v10990_v47 }
 0x372   :  { %6983 = vmatpush.bf16.msra.mxu2 %v10665_v49  ;;  %6958 = vmatpush.bf16.msra.mxu0 %v10629_v28  ;;  %v10798_v49 = vld [vmem:[#allocation10 + $0x568] sm:$0xf0]  ;;  %v5815_v28 = vpop.f32.mrf.mxu0 }
 0x373   :  { %v11993_v31 = vld [vmem:[#allocation10 + $0x68c] sm:$0xf] }
 0x374   :  { %6996 = vmatpush.bf16.msra.mxu3 %v10921_v54  ;;  %6971 = vmatpush.bf16.msra.mxu1 %v10885_v34  ;;  %v10801_v54 = vor.u32 %v11953_v7, %v10798_v49  ;;  %v5828_v33 = vpop.f32.mrf.mxu1  ;;  %v10765_v34 = vor.u32 %v11949_v18, %v10764_v14  ;;  %v10701_v7 = vor.u32 %v11933_v62, %v10700_v61  ;;  %v11989_v18 = vld [vmem:[#allocation10 + $0x664] sm:$0xf0]  ;;  %v10894_v2 = vld [vmem:[#allocation10 + $0x628] sm:$0xf0] }
 0x375   :  { %6959 = vmatmul.bf16.vlgmr.msra.gmra.mxu0 %v12679_v59 }
 0x376   :  { %6984 = vmatpush.bf16.msra.mxu2 %v10633_v50  ;;  %7003 = vmatpush.bf16.msrb.mxu0 %v10861_v45  ;;  %v11021_v50 = vor.u32 %v12013_v22, %v11020_v13  ;;  %v11025_v45 = vor.u32 %v12009_v30, %v11022_v32  ;;  %v11921_v13 = vld [vmem:[#allocation10 + $0x44c] sm:$0xf]  ;;  %v10636_v32 = vld [vmem:[#allocation10 + $0x408] sm:$0xf] }
 0x377   :  { %6972 = vmatmul.bf16.vlgmr.msra.gmra.mxu1 %v12681_v8  ;;  %v11985_v22 = vld [vmem:[#allocation10 + $0x64c] sm:$0xf] }
 0x378   :  { %6997 = vmatpush.bf16.msra.mxu3 %v10889_v44  ;;  %7016 = vmatpush.bf16.msrb.mxu1 %v11117_v55  ;;  %v10988_v44 = vld [vmem:[#allocation10 + $0x6c8] sm:$0xf]  ;;  %v11937_v55 = vld [vmem:[#allocation10 + $0x4cc] sm:$0xf] }
 0x379   :  { %6985 = vmatmul.bf16.vlgmr.msra.gmra.mxu2 %v12679_v59 }
 0x37a   :  { %7029 = vmatpush.bf16.msrb.mxu2 %v10865_v40  ;;  %7004 = vmatpush.bf16.msrb.mxu0 %v10829_v1  ;;  %v10734_v40 = vld [vmem:[#allocation10 + $0x4e8] sm:$0xf0]  ;;  %v5817_v6 = vpop.f32.mrf.mxu0 }
 0x37b   :  { %6998 = vmatmul.bf16.vlgmr.msra.gmra.mxu3 %v12681_v8  ;;  %v10737_v60 = vor.u32 %v11937_v55, %v10734_v40  ;;  %v10638_v55 = vld [vmem:[#allocation10 + $0x428] sm:$0xf0] }
 0x37c   :  { %7042 = vmatpush.bf16.msrb.mxu3 %v11121_v58  ;;  %7017 = vmatpush.bf16.msrb.mxu1 %v11085_v3  ;;  %v10989_v58 = vor.u32 %v12005_v38, %v10988_v44  ;;  %v12687_v1 = vpop.f32.mrf.mxu2  ;;  %v11997_v3 = vld [vmem:[#allocation10 + $0x6a4] sm:$0xf0]  ;;  %v5830_v49 = vpop.f32.mrf.mxu1  ;;  %v10929_v38 = vor.u32 %v11985_v22, %v10926_v23  ;;  %v11977_v40 = vld [vmem:[#allocation10 + $0x60c] sm:$0xf]  ;;  %v12026_v22 = vld [vmem:[#allocation10 + $0x794] sm:$0xf] }
 0x37d   :  { %v10957_v9 = vor.u32 %v11997_v3, %v10956_v15  ;;  %v11981_v44 = vld [vmem:[#allocation10 + $0x624] sm:$0xf0]  ;;  %v10870_v15 = vld [vmem:[#allocation10 + $0x5f0] sm:$0xf0]  ;;  %v6024_v3 = vperm.slane %v12691_v24, 0  ;;  %v10897_v6 = vor.u32 %v11977_v40, %v10894_v2 }
 0x37e   :  { %7030 = vmatpush.bf16.msrb.mxu2 %v10833_v4  ;;  %7005 = vmatpush.bf16.msrb.mxu0 %v10797_v17  ;;  %v11929_v4 = vld [vmem:[#allocation10 + $0x48c] sm:$0xf]  ;;  %v12689_v5 = vpop.f32.mrf.mxu3  ;;  %v10668_v17 = vld [vmem:[#allocation10 + $0x448] sm:$0xf]  ;;  %v11094_v23 = vld [vmem:[#allocation10 + $0x7b0] sm:$0xf0] }
 0x37f   :  { %v10705_v11 = vor.u32 %v11929_v4, %v10702_v25  ;;  %v10893_v4 = vor.u32 %v11981_v44, %v10892_v43  ;;  %v11060_v43 = vld [vmem:[#allocation10 + $0x750] sm:$0xf]  ;;  %v11954_v44 = vld [vmem:[#allocation10 + $0x554] sm:$0xf] }
 0x380   :  { %7043 = vmatpush.bf16.msrb.mxu3 %v11089_v41  ;;  %7018 = vmatpush.bf16.msrb.mxu1 %v11053_v56  ;;  %v10958_v41 = vld [vmem:[#allocation10 + $0x6a8] sm:$0xf0]  ;;  %v11925_v56 = vld [vmem:[#allocation10 + $0x464] sm:$0xf0]  ;;  %v12018_v40 = vld [vmem:[#allocation10 + $0x754] sm:$0xf] }
 0x381   :  { %v10961_v14 = vor.u32 %v11993_v31, %v10958_v41  ;;  %v10669_v30 = vor.u32 %v11925_v56, %v10668_v17  ;;  %v12034_v31 = vld [vmem:[#allocation10 + $0x7d4] sm:$0xf]  ;;  %v11966_v17 = vld [vmem:[#allocation10 + $0x5ac] sm:$0xf0] }
 0x382   :  { %7031 = vmatpush.bf16.msrb.mxu2 %v10801_v54  ;;  %7006 = vmatpush.bf16.msrb.mxu0 %v10765_v34  ;;  %v10924_v54 = vld [vmem:[#allocation10 + $0x648] sm:$0xf]  ;;  %v11126_v41 = vld [vmem:[#allocation10 + $0x7f0] sm:$0xf0]  ;;  %v11092_v56 = vld [vmem:[#allocation10 + $0x790] sm:$0xf] }
 0x383   :  { %v11917_v34 = vld [vmem:[#allocation10 + $0x424] sm:$0xf0]  ;;  %v11062_v2 = vld [vmem:[#allocation10 + $0x770] sm:$0xf0] }
 0x384   :  { %7044 = vmatpush.bf16.msrb.mxu3 %v11057_v20  ;;  %7019 = vmatpush.bf16.msrb.mxu1 %v11021_v50  ;;  %v10670_v20 = vld [vmem:[#allocation10 + $0x468] sm:$0xf0]  ;;  %v5829_v50 = vadd.f32 %v5828_v33, %v5815_v28  ;;  %v5843_v47 = vpop.f32.mrf.mxu2  ;;  %v10637_v62 = vor.u32 %v11917_v34, %v10636_v32  ;;  %v12038_v28 = vld [vmem:[#allocation10 + $0x7ec] sm:$0xf0]  ;;  %v11970_v33 = vld [vmem:[#allocation10 + $0x5d4] sm:$0xf] }
 0x385   :  { %v10673_v36 = vor.u32 %v11921_v13, %v10670_v20  ;;  %v5855_v20 = vadd.f32 %v12689_v5, %v12687_v1  ;;  %v11097_v1 = vor.u32 %v12026_v22, %v11094_v23  ;;  %v12022_v5 = vld [vmem:[#allocation10 + $0x76c] sm:$0xf0]  ;;  %v12002_v22 = vld [vmem:[#allocation10 + $0x6d4] sm:$0xf] }
 0x386   :  { %7032 = vmatpush.bf16.msrb.mxu2 %v10769_v35  ;;  %7007 = vmatpush.bf16.msrb.mxu0 %v10733_v48  ;;  %v10925_v35 = vor.u32 %v11989_v18, %v10924_v54  ;;  %v10868_v48 = vld [vmem:[#allocation10 + $0x5d0] sm:$0xf]  ;;  %v5856_v61 = vpop.f32.mrf.mxu3  ;;  %v11129_v54 = vor.u32 %v12034_v31, %v11126_v41  ;;  %v10838_v18 = vld [vmem:[#allocation10 + $0x5b0] sm:$0xf0]  ;;  %v6026_v41 = vperm.slane %v12691_v24, 2 }
 0x387   :  { %v11950_v61 = vld [vmem:[#allocation10 + $0x52c] sm:$0xf0]  ;;  %v10998_v23 = vld [vmem:[#allocation10 + $0x6f0] sm:$0xf0] }
 0x388   :  { %7045 = vmatpush.bf16.msrb.mxu3 %v11025_v45  ;;  %7020 = vmatpush.bf16.msrb.mxu1 %v10989_v58  ;;  %v11913_v45 = vld [vmem:[#allocation10 + $0x40c] sm:$0xf]  ;;  %v11974_v58 = vld [vmem:[#allocation10 + $0x5ec] sm:$0xf0] }
 0x389   :  { %v10641_v25 = vor.u32 %v11913_v45, %v10638_v55  ;;  %v10806_v45 = vld [vmem:[#allocation10 + $0x570] sm:$0xf0]  ;;  %v6015_v55 = vadd.f32 %v5855_v20, %v12530_v46  ;;  %v12014_v46 = vld [vmem:[#allocation10 + $0x72c] sm:$0xf0] }
 0x38a   :  { %7033 = vmatpush.bf16.msrb.mxu2 %v10737_v60  ;;  %7008 = vmatpush.bf16.msrb.mxu0 %v10701_v7  ;;  %v11124_v60 = vld [vmem:[#allocation10 + $0x7d0] sm:$0xf]  ;;  %v10869_v7 = vor.u32 %v11974_v58, %v10868_v48  ;;  %v11061_v48 = vor.u32 %v12022_v5, %v11060_v43  ;;  %v10809_v58 = vor.u32 %v11954_v44, %v10806_v45 }
 0x38b   :  { %v11125_v49 = vor.u32 %v12038_v28, %v11124_v60  ;;  %v10772_v60 = vld [vmem:[#allocation10 + $0x510] sm:$0xf]  ;;  %v11065_v28 = vor.u32 %v12018_v40, %v11062_v2  ;;  %v11001_v5 = vor.u32 %v12002_v22, %v10998_v23  ;;  %v11994_v2 = vld [vmem:[#allocation10 + $0x694] sm:$0xf] }
 0x38c   :  { %7046 = vmatpush.bf16.msrb.mxu3 %v10993_v0  ;;  %7021 = vmatpush.bf16.msrb.mxu1 %v10957_v9  ;;  %v6014_v0 = vadd.f32 %v5829_v50, %v12521_v42  ;;  %v10873_v9 = vor.u32 %v11970_v33, %v10870_v15  ;;  %v11962_v42 = vld [vmem:[#allocation10 + $0x594] sm:$0xf]  ;;  %v11934_v43 = vld [vmem:[#allocation10 + $0x4ac] sm:$0xf0] }
 0x38d   :  { %v10841_v50 = vor.u32 %v11962_v42, %v10838_v18  ;;  %v11946_v33 = vld [vmem:[#allocation10 + $0x514] sm:$0xf]  ;;  %v11998_v45 = vld [vmem:[#allocation10 + $0x6ac] sm:$0xf0] }
 0x38e   :  { %7034 = vmatpush.bf16.msrb.mxu2 %v10705_v11  ;;  %7009 = vmatpush.bf16.msrb.mxu0 %v10669_v30  ;;  %v10836_v11 = vld [vmem:[#allocation10 + $0x590] sm:$0xf]  ;;  %v6040_v13 = vadd.f32 %v6024_v3, %v6014_v0  ;;  %v6025_v30 = vperm.slane %v12691_v24, 1  ;;  %v10774_v15 = vld [vmem:[#allocation10 + $0x530] sm:$0xf0] }
 0x38f   :  { %v10837_v32 = vor.u32 %v11966_v17, %v10836_v11  ;;  %v10740_v11 = vld [vmem:[#allocation10 + $0x4d0] sm:$0xf]  ;;  %v11938_v42 = vld [vmem:[#allocation10 + $0x4d4] sm:$0xf] }
 0x390   :  { %7047 = vmatpush.bf16.msrb.mxu3 %v10961_v14  ;;  %7022 = vmatpush.bf16.msrb.mxu1 %v10925_v35  ;;  %v12030_v14 = vld [vmem:[#allocation10 + $0x7ac] sm:$0xf0]  ;;  %v6041_v0 = vadd.f32 %v6025_v30, %v6015_v55  ;;  %v10742_v18 = vld [vmem:[#allocation10 + $0x4f0] sm:$0xf0] }
 0x391   :  { %v11093_v34 = vor.u32 %v12030_v14, %v11092_v56  ;;  %v10804_v35 = vld [vmem:[#allocation10 + $0x550] sm:$0xf]  ;;  %v10710_v55 = vld [vmem:[#allocation10 + $0x4b0] sm:$0xf0] }
 0x392   :  { %7035 = vmatpush.bf16.msrb.mxu2 %v10673_v36  ;;  %7010 = vmatpush.bf16.msrb.mxu0 %v10637_v62  ;;  %v11958_v36 = vld [vmem:[#allocation10 + $0x56c] sm:$0xf0]  ;;  %v5867_v3 = vpop.f32.mrf.mxu0  ;;  %v11978_v22 = vld [vmem:[#allocation10 + $0x614] sm:$0xf] }
 0x393   :  { %v10805_v47 = vor.u32 %v11958_v36, %v10804_v35  ;;  %v11028_v62 = vld [vmem:[#allocation10 + $0x710] sm:$0xf]  ;;  %v10745_v35 = vor.u32 %v11938_v42, %v10742_v18 }
 0x394   :  { %7048 = vmatpush.bf16.msrb.mxu3 %v10929_v38  ;;  %7023 = vmatpush.bf16.msrb.mxu1 %v10893_v4  ;;  %v10620_v38 = vmul.f32 -1.442695, %v6040_v13  ;;  %v12010_v4 = vld [vmem:[#allocation10 + $0x714] sm:$0xf]  ;;  %v5880_v31 = vpop.f32.mrf.mxu1  ;;  %v11942_v17 = vld [vmem:[#allocation10 + $0x4ec] sm:$0xf0] }
 0x395   :  { %7011 = vmatmul.bf16.vlgmr.msrb.gmra.mxu0 %v12679_v59  ;;  %v10996_v56 = vld [vmem:[#allocation10 + $0x6d0] sm:$0xf]  ;;  %v10621_v13 = vmul.f32 -1.442695, %v6041_v0  ;;  %v10741_v30 = vor.u32 %v11942_v17, %v10740_v11 }
 0x396   :  { %7036 = vmatpush.bf16.msrb.mxu2 %v10641_v25  ;;  %7055 = vmatpush.bf16.msra.mxu0 %v10869_v7  ;;  %12059 = vpow2.f32 %v10620_v38  ;;  %v11030_v25 = vld [vmem:[#allocation10 + $0x730] sm:$0xf0]  ;;  %v5881_v7 = vadd.f32 %v5880_v31, %v5867_v3  ;;  %v12006_v14 = vld [vmem:[#allocation10 + $0x6ec] sm:$0xf0] }
 0x397   :  { %7024 = vmatmul.bf16.vlgmr.msrb.gmra.mxu1 %v12681_v8  ;;  %v10708_v36 = vld [vmem:[#allocation10 + $0x490] sm:$0xf]  ;;  %v11930_v38 = vld [vmem:[#allocation10 + $0x494] sm:$0xf]  ;;  %12061 = vpow2.f32 %v10621_v13 }
 0x398   :  { %7049 = vmatpush.bf16.msrb.mxu3 %v10897_v6  ;;  %7068 = vmatpush.bf16.msra.mxu1 %v11125_v49  ;;  %v10773_v6 = vor.u32 %v11950_v61, %v10772_v60  ;;  %v11029_v49 = vor.u32 %v12014_v46, %v11028_v62  ;;  %v6016_v20 = vadd.f32 %v5881_v7, %v12539_v52  ;;  %v6027_v61 = vperm.slane %v12691_v24, 3  ;;  %v11926_v0 = vld [vmem:[#allocation10 + $0x46c] sm:$0xf0]  ;;  %v11986_v7 = vld [vmem:[#allocation10 + $0x654] sm:$0xf] }
 0x399   :  { %7037 = vmatmul.bf16.vlgmr.msrb.gmra.mxu2 %v12679_v59  ;;  %v10709_v62 = vor.u32 %v11934_v43, %v10708_v36  ;;  %v10932_v3 = vld [vmem:[#allocation10 + $0x650] sm:$0xf]  ;;  %v11914_v13 = vld [vmem:[#allocation10 + $0x414] sm:$0xf]  ;;  %v11975_v36 = vld [vmem:[#allocation10 + $0x5f4] sm:$0xf0] }
 0x39a   :  { %7081 = vmatpush.bf16.msra.mxu2 %v10873_v9  ;;  %7056 = vmatpush.bf16.msra.mxu0 %v10837_v32  ;;  %v10777_v9 = vor.u32 %v11946_v33, %v10774_v15  ;;  %v10713_v33 = vor.u32 %v11930_v38, %v10710_v55  ;;  %v10676_v15 = vld [vmem:[#allocation10 + $0x450] sm:$0xf]  ;;  %v11132_v43 = vld [vmem:[#allocation10 + $0x7d8] sm:$0xf]  ;;  %v11971_v55 = vld [vmem:[#allocation10 + $0x5dc] sm:$0xf] }
 0x39b   :  { %7050 = vmatmul.bf16.vlgmr.msrb.gmra.mxu3 %v12681_v8  ;;  %v11990_v31 = vld [vmem:[#allocation10 + $0x66c] sm:$0xf0]  ;;  %v10677_v17 = vor.u32 %v11926_v0, %v10676_v15  ;;  %v11967_v15 = vld [vmem:[#allocation10 + $0x5b4] sm:$0xf0] }
 0x39c   :  { %7094 = vmatpush.bf16.msra.mxu3 %v11129_v54  ;;  %7069 = vmatpush.bf16.msra.mxu1 %v11093_v34  ;;  %v11033_v54 = vor.u32 %v12010_v4, %v11030_v25  ;;  %v12060_v32 = vpop.eup %12059  ;;  %v6042_v34 = vadd.f32 %v6026_v41, %v6016_v20  ;;  %v5893_v44 = vpop.f32.mrf.mxu2  ;;  %v11922_v41 = vld [vmem:[#allocation10 + $0x454] sm:$0xf]  ;;  %v10933_v18 = vor.u32 %v11990_v31, %v10932_v3  ;;  %v11100_v0 = vld [vmem:[#allocation10 + $0x798] sm:$0xf]  ;;  %v10846_v31 = vld [vmem:[#allocation10 + $0x5b8] sm:$0xf0] }
 0x39d   :  { %v12062_v42 = vpop.eup %12061  ;;  %v10646_v20 = vld [vmem:[#allocation10 + $0x430] sm:$0xf0] }
 0x39e   :  { %7082 = vmatpush.bf16.msra.mxu2 %v10841_v50  ;;  %7057 = vmatpush.bf16.msra.mxu0 %v10805_v47  ;;  %v10997_v50 = vor.u32 %v12006_v14, %v10996_v56  ;;  %v10622_v52 = vmul.f32 -1.442695, %v6042_v34  ;;  %v5906_v40 = vpop.f32.mrf.mxu3  ;;  %v10966_v47 = vld [vmem:[#allocation10 + $0x6b0] sm:$0xf0]  ;;  %v11918_v56 = vld [vmem:[#allocation10 + $0x42c] sm:$0xf0] }
 0x39f   :  { %v5907_v60 = vadd.f32 %v5906_v40, %v5893_v44  ;;  %v10969_v25 = vor.u32 %v11994_v2, %v10966_v47  ;;  %v11982_v14 = vld [vmem:[#allocation10 + $0x62c] sm:$0xf0]  ;;  %v10876_v34 = vld [vmem:[#allocation10 + $0x5d8] sm:$0xf]  ;;  %v12710_v44 = vadd.f32 1.0, %v12062_v42  ;;  %v10649_v2 = vor.u32 %v11914_v13, %v10646_v20 }
 0x3a0   :  { %7095 = vmatpush.bf16.msra.mxu3 %v11097_v1  ;;  %7070 = vmatpush.bf16.msra.mxu1 %v11061_v48  ;;  %v10964_v1 = vld [vmem:[#allocation10 + $0x690] sm:$0xf]  ;;  %v5869_v48 = vpop.f32.mrf.mxu0  ;;  %12063 = vpow2.f32 %v10622_v52  ;;  %v10878_v52 = vld [vmem:[#allocation10 + $0x5f8] sm:$0xf0]  ;;  %v11068_v42 = vld [vmem:[#allocation10 + $0x758] sm:$0xf] }
 0x3a1   :  { %v10965_v46 = vor.u32 %v11998_v45, %v10964_v1  ;;  %v6017_v4 = vadd.f32 %v5907_v60, %v12548_v51  ;;  %v12039_v1 = vld [vmem:[#allocation10 + $0x7f4] sm:$0xf0]  ;;  %v12035_v47 = vld [vmem:[#allocation10 + $0x7dc] sm:$0xf]  ;;  %vm6076_vm12 = vweird.f32 %v12710_v44 }
 0x3a2   :  { %7083 = vmatpush.bf16.msra.mxu2 %v10809_v58  ;;  %7058 = vmatpush.bf16.msra.mxu0 %v10773_v6  ;;  %v12705_v58 = vadd.f32 1.0, %v12060_v32  ;;  %v10678_v6 = vld [vmem:[#allocation10 + $0x470] sm:$0xf0]  ;;  %v11134_v48 = vld [vmem:[#allocation10 + $0x7f8] sm:$0xf0] }
 0x3a3   :  { %v6043_v11 = vadd.f32 %v6027_v61, %v6017_v4  ;;  %v10681_v51 = vor.u32 %v11922_v41, %v10678_v6  ;;  %v10902_v32 = vld [vmem:[#allocation10 + $0x630] sm:$0xf0]  ;;  %v11137_v3 = vor.u32 %v12035_v47, %v11134_v48  ;;  %v12031_v4 = vld [vmem:[#allocation10 + $0x7b4] sm:$0xf0]  ;;  %v12027_v6 = vld [vmem:[#allocation10 + $0x79c] sm:$0xf] }
 0x3a4   :  { %7096 = vmatpush.bf16.msra.mxu3 %v11065_v28  ;;  %7071 = vmatpush.bf16.msra.mxu1 %v11029_v49  ;;  %v5882_v28 = vpop.f32.mrf.mxu1  ;;  %v10934_v49 = vld [vmem:[#allocation10 + $0x670] sm:$0xf0]  ;;  %12065 = vrcp.f32 %v12705_v58  ;;  %v10905_v61 = vor.u32 %v11978_v22, %v10902_v32  ;;  %v12023_v13 = vld [vmem:[#allocation10 + $0x774] sm:$0xf0]  ;;  %v11955_v20 = vld [vmem:[#allocation10 + $0x55c] sm:$0xf]  ;;  %vm6061_vm0 = vweird.f32 %v12705_v58 }
 0x3a5   :  { %v10623_v23 = vmul.f32 -1.442695, %v6043_v11  ;;  %v11133_v28 = vor.u32 %v12039_v1, %v11132_v43  ;;  %v10812_v11 = vld [vmem:[#allocation10 + $0x558] sm:$0xf]  ;;  %v10814_v22 = vld [vmem:[#allocation10 + $0x578] sm:$0xf0] }
 0x3a6   :  { %7084 = vmatpush.bf16.msra.mxu2 %v10777_v9  ;;  %7059 = vmatpush.bf16.msra.mxu0 %v10741_v30  ;;  %v10644_v9 = vld [vmem:[#allocation10 + $0x410] sm:$0xf]  ;;  %v10937_v30 = vor.u32 %v11986_v7, %v10934_v49  ;;  %v11102_v7 = vld [vmem:[#allocation10 + $0x7b8] sm:$0xf0]  ;;  %v10780_v43 = vld [vmem:[#allocation10 + $0x518] sm:$0xf] }
 0x3a7   :  { %12067 = vpow2.f32 %v10623_v23  ;;  %v10645_v38 = vor.u32 %v11918_v56, %v10644_v9  ;;  %v11101_v56 = vor.u32 %v12031_v4, %v11100_v0  ;;  %v12019_v32 = vld [vmem:[#allocation10 + $0x75c] sm:$0xf]  ;;  %v6028_v4 = vperm.slane %v12691_v24, 4 }
 0x3a8   :  { %7097 = vmatpush.bf16.msra.mxu3 %v11033_v54  ;;  %7072 = vmatpush.bf16.msra.mxu1 %v10997_v50  ;;  %v10900_v54 = vld [vmem:[#allocation10 + $0x610] sm:$0xf]  ;;  %v5895_v50 = vpop.f32.mrf.mxu2  ;;  %v11947_v47 = vld [vmem:[#allocation10 + $0x51c] sm:$0xf] }
 0x3a9   :  { %v10901_v40 = vor.u32 %v11982_v14, %v10900_v54  ;;  %v11959_v14 = vld [vmem:[#allocation10 + $0x574] sm:$0xf0]  ;;  %v10782_v48 = vld [vmem:[#allocation10 + $0x538] sm:$0xf0] }
 0x3aa   :  { %7085 = vmatpush.bf16.msra.mxu2 %v10745_v35  ;;  %7060 = vmatpush.bf16.msra.mxu0 %v10709_v62  ;;  %v12064_v35 = vpop.eup %12063  ;;  %v10877_v62 = vor.u32 %v11975_v36, %v10876_v34  ;;  %v11070_v34 = vld [vmem:[#allocation10 + $0x778] sm:$0xf0]  ;;  %v6065_v36 = vand.u32 2147483647, %v12705_v58 }
 0x3ab   :  { %v12712_v45 = vadd.f32 1.0, %v12064_v35  ;;  %v12714_v60 = vpop.eup %12065  ;;  %v10813_v35 = vor.u32 %v11959_v14, %v10812_v11  ;;  %v11004_v11 = vld [vmem:[#allocation10 + $0x6d8] sm:$0xf] }
 0x3ac   :  { %7098 = vmatpush.bf16.msra.mxu3 %v11001_v5  ;;  %7073 = vmatpush.bf16.msra.mxu1 %v10965_v46  ;;  %v5908_v5 = vpop.f32.mrf.mxu3  ;;  %v10881_v46 = vor.u32 %v11971_v55, %v10878_v52  ;;  %v6057_v41 = vmul.f32 %v12714_v60, %v12705_v58  ;;  %v11951_v55 = vld [vmem:[#allocation10 + $0x534] sm:$0xf0]  ;;  %vm6062_vm1 = vweird.f32 %v12714_v60  ;;  %vm12748_vm2 = vcmp.eq.f32.partialorder %v6065_v36, 8.507059e+37 }
 0x3ad   :  { %12069 = vrcp.f32 %v12712_v45  ;;  %v12068_v49 = vpop.eup %12067  ;;  %v11069_v5 = vor.u32 %v12023_v13, %v11068_v42  ;;  %v11036_v52 = vld [vmem:[#allocation10 + $0x718] sm:$0xf]  ;;  %v10750_v13 = vld [vmem:[#allocation10 + $0x4f8] sm:$0xf0]  ;;  %vm6099_vm4 = vweird.f32 %v12712_v45  ;;  %vm12765_vm5 = vmor %vm6061_vm0, %vm6062_vm1 }
 0x3ae   :  { %7086 = vmatpush.bf16.msra.mxu2 %v10713_v33  ;;  %7061 = vmatpush.bf16.msra.mxu0 %v10677_v17  ;;  %v10844_v33 = vld [vmem:[#allocation10 + $0x598] sm:$0xf]  ;;  %12071 = vrcp.f32 %v12710_v44  ;;  %v12720_v17 = vadd.f32 1.0, %v12068_v49  ;;  %v6058_v23 = vsub.f32 1.0, %v6057_v41 }
 0x3af   :  { %v10845_v9 = vor.u32 %v11967_v15, %v10844_v33  ;;  %v12011_v33 = vld [vmem:[#allocation10 + $0x71c] sm:$0xf]  ;;  %v10748_v49 = vld [vmem:[#allocation10 + $0x4d8] sm:$0xf] }
 0x3b0   :  { %7099 = vmatpush.bf16.msra.mxu3 %v10969_v25  ;;  %7074 = vmatpush.bf16.msra.mxu1 %v10933_v18  ;;  %v11963_v25 = vld [vmem:[#allocation10 + $0x59c] sm:$0xf]  ;;  %12073 = vrcp.f32 %v12720_v17  ;;  %v12007_v42 = vld [vmem:[#allocation10 + $0x6f4] sm:$0xf0]  ;;  %vm6114_vm10 = vweird.f32 %v12720_v17 }
 0x3b1   :  { %v10849_v54 = vor.u32 %v11963_v25, %v10846_v31  ;;  %v11038_v15 = vld [vmem:[#allocation10 + $0x738] sm:$0xf0]  ;;  %v10781_v25 = vor.u32 %v11951_v55, %v10780_v43 }
 0x3b2   :  { %7087 = vmatpush.bf16.msra.mxu2 %v10681_v51  ;;  %7062 = vmatpush.bf16.msra.mxu0 %v10645_v38  ;;  %v11105_v51 = vor.u32 %v12027_v6, %v11102_v7  ;;  %v10817_v38 = vor.u32 %v11955_v20, %v10814_v22  ;;  %v10785_v7 = vor.u32 %v11947_v47, %v10782_v48  ;;  %v6103_v48 = vand.u32 2147483647, %v12712_v45 }
 0x3b3   :  { %v12722_v18 = vpop.eup %12069  ;;  %v11041_v14 = vor.u32 %v12011_v33, %v11038_v15 }
 0x3b4   :  { %7100 = vmatpush.bf16.msra.mxu3 %v10937_v30  ;;  %7075 = vmatpush.bf16.msra.mxu1 %v10901_v40  ;;  %v6095_v30 = vmul.f32 %v12722_v18, %v12712_v45  ;;  %v12730_v50 = vpop.eup %12071  ;;  %v11073_v40 = vor.u32 %v12019_v32, %v11070_v34  ;;  %v12003_v32 = vld [vmem:[#allocation10 + $0x6dc] sm:$0xf]  ;;  %vm6100_vm3 = vweird.f32 %v12722_v18  ;;  %vm6104_vm7 = vcmp.eq.f32.partialorder %v6103_v48, 8.507059e+37  ;;  %v10908_v48 = vld [vmem:[#allocation10 + $0x618] sm:$0xf] }
 0x3b5   :  { %7063 = vmatmul.bf16.vlgmr.msra.gmra.mxu0 %v12679_v59  ;;  %v11006_v34 = vld [vmem:[#allocation10 + $0x6f8] sm:$0xf0]  ;;  %vm12772_vm6 = vmor %vm6099_vm4, %vm6100_vm3  ;;  %vm6077_vm8 = vweird.f32 %v12730_v50 }
 0x3b6   :  { %7088 = vmatpush.bf16.msra.mxu2 %v10649_v2  ;;  %7107 = vmatpush.bf16.msrb.mxu0 %v10877_v62  ;;  %v6096_v1 = vsub.f32 1.0, %v6095_v30  ;;  %v12015_v2 = vld [vmem:[#allocation10 + $0x734] sm:$0xf0]  ;;  %v5919_v62 = vpop.f32.mrf.mxu0  ;;  %v12742_v31 = vpop.eup %12073  ;;  %vm12812_vm13 = vmor %vm6076_vm12, %vm6077_vm8 }
 0x3b7   :  { %7076 = vmatmul.bf16.vlgmr.msra.gmra.mxu1 %v12681_v8  ;;  %v11037_v6 = vor.u32 %v12015_v2, %v11036_v52  ;;  %v11999_v2 = vld [vmem:[#allocation10 + $0x6b4] sm:$0xf0]  ;;  %vm6115_vm9 = vweird.f32 %v12742_v31 }
 0x3b8   :  { %7101 = vmatpush.bf16.msra.mxu3 %v10905_v61  ;;  %7120 = vmatpush.bf16.msrb.mxu1 %v11133_v28  ;;  %v12736_v61 = vmul.f32 %v12730_v50, %v12710_v44  ;;  %v6059_v28 = vmul.f32 %v12714_v60, %v6058_v23  ;;  %v6097_v0 = vmul.f32 %v12722_v18, %v6096_v1  ;;  %v10716_v1 = vld [vmem:[#allocation10 + $0x498] sm:$0xf]  ;;  %vm12799_vm11 = vmor %vm6114_vm10, %vm6115_vm9 }
 0x3b9   :  { %7089 = vmatmul.bf16.vlgmr.msra.gmra.mxu2 %v12679_v59 }
 0x3ba   :  { %7133 = vmatpush.bf16.msrb.mxu2 %v10881_v46  ;;  %7108 = vmatpush.bf16.msrb.mxu0 %v10845_v9  ;;  %v6067_v46 = vand.u32 2147483648, %v12705_v58  ;;  %v11943_v9 = vld [vmem:[#allocation10 + $0x4f4] sm:$0xf0]  ;;  %v6073_v20 = vsub.f32 1.0, %v12736_v61  ;;  %v12755_v23 = vadd.f32 %v12714_v60, %v6059_v28  ;;  %v6098_v36 = vadd.f32 %v12722_v18, %v6097_v0  ;;  %v11931_v28 = vld [vmem:[#allocation10 + $0x49c] sm:$0xf] }
 0x3bb   :  { %7102 = vmatmul.bf16.vlgmr.msra.gmra.mxu3 %v12681_v8  ;;  %v10749_v43 = vor.u32 %v11943_v9, %v10748_v49  ;;  %v11009_v61 = vor.u32 %v12003_v32, %v11006_v34  ;;  %v10684_v9 = vld [vmem:[#allocation10 + $0x458] sm:$0xf]  ;;  %v10686_v32 = vld [vmem:[#allocation10 + $0x478] sm:$0xf0]  ;;  %v5034_v34 = vld [vmem:[#allocation7] sm:$0xff] }
 0x3bc   :  { %7146 = vmatpush.bf16.msrb.mxu3 %v11137_v3  ;;  %7121 = vmatpush.bf16.msrb.mxu1 %v11101_v56  ;;  %v5932_v3 = vpop.f32.mrf.mxu1  ;;  %v6110_v56 = vmul.f32 %v12742_v31, %v12720_v17  ;;  %v6068_v30 = vor.u32 1.1754944e-38, %v6067_v46  ;;  %v10718_v46 = vld [vmem:[#allocation10 + $0x4b8] sm:$0xf0]  ;;  %v6064_v58 = vsel %vm12765_vm5, %v12714_v60, %v12755_v23  ;;  %v6074_v0 = vmul.f32 %v12730_v50, %v6073_v20  ;;  %v11991_v20 = vld [vmem:[#allocation10 + $0x674] sm:$0xf0] }
 0x3bd   :  { %v5933_v41 = vadd.f32 %v5932_v3, %v5919_v62  ;;  %v5945_v62 = vpop.f32.mrf.mxu2  ;;  %v11995_v3 = vld [vmem:[#allocation10 + $0x69c] sm:$0xf] }
 0x3be   :  { %7134 = vmatpush.bf16.msrb.mxu2 %v10849_v54  ;;  %7109 = vmatpush.bf16.msrb.mxu0 %v10813_v35  ;;  %v6111_v35 = vsub.f32 1.0, %v6110_v56  ;;  %v11923_v23 = vld [vmem:[#allocation10 + $0x45c] sm:$0xf]  ;;  %v6118_v54 = vand.u32 2147483647, %v12720_v17 }
 0x3bf   :  { %v6018_v22 = vadd.f32 %v5933_v41, %v12561_v12  ;;  %v11005_v12 = vor.u32 %v12007_v42, %v11004_v11  ;;  %v6102_v41 = vsel %vm12772_vm6, %v12722_v18, %v6098_v36  ;;  %v11927_v11 = vld [vmem:[#allocation10 + $0x474] sm:$0xf0]  ;;  %v10689_v47 = vor.u32 %v11923_v23, %v10686_v32  ;;  %v7360_v32 = vld [vmem:[%s13148_s6 + $0xf0] sm:$0xff] }
 0x3c0   :  { %7147 = vmatpush.bf16.msrb.mxu3 %v11105_v51  ;;  %7122 = vmatpush.bf16.msrb.mxu1 %v11069_v5  ;;  %v11939_v51 = vld [vmem:[#allocation10 + $0x4dc] sm:$0xf]  ;;  %v11935_v5 = vld [vmem:[#allocation10 + $0x4b4] sm:$0xf0]  ;;  %v6112_v15 = vmul.f32 %v12742_v31, %v6111_v35  ;;  %v6069_v35 = vsel %vm12748_vm2, %v6068_v30, %v6064_v58  ;;  %vm6119_vm14 = vcmp.eq.f32.partialorder %v6118_v54, 8.507059e+37 }
 0x3c1   :  { %v6044_v55 = vadd.f32 %v6028_v4, %v6018_v22  ;;  %v10753_v52 = vor.u32 %v11939_v51, %v10750_v13  ;;  %v10974_v4 = vld [vmem:[#allocation10 + $0x6b8] sm:$0xf0]  ;;  %v10717_v49 = vor.u32 %v11935_v5, %v10716_v1  ;;  %v10721_v51 = vor.u32 %v11931_v28, %v10718_v46  ;;  %v10940_v13 = vld [vmem:[#allocation10 + $0x658] sm:$0xf] }
 0x3c2   :  { %7135 = vmatpush.bf16.msrb.mxu2 %v10817_v38  ;;  %7110 = vmatpush.bf16.msrb.mxu0 %v10781_v25  ;;  %v6105_v38 = vand.u32 2147483648, %v12712_v45  ;;  %v5958_v45 = vpop.f32.mrf.mxu3  ;;  %v5921_v25 = vpop.f32.mrf.mxu0  ;;  %v10977_v22 = vor.u32 %v11995_v3, %v10974_v4  ;;  %v11987_v1 = vld [vmem:[#allocation10 + $0x65c] sm:$0xf]  ;;  %v10941_v30 = vor.u32 %v11991_v20, %v10940_v13 }
 0x3c3   :  { %12075 = vtanh.f32 %v6044_v55  ;;  %v10942_v5 = vld [vmem:[#allocation10 + $0x678] sm:$0xf0] }
 0x3c4   :  { %7148 = vmatpush.bf16.msrb.mxu3 %v11073_v40  ;;  %7123 = vmatpush.bf16.msrb.mxu1 %v11037_v6  ;;  %v10972_v40 = vld [vmem:[#allocation10 + $0x698] sm:$0xf]  ;;  %v5959_v6 = vadd.f32 %v5958_v45, %v5945_v62  ;;  %v5934_v56 = vpop.f32.mrf.mxu1  ;;  %v6106_v60 = vor.u32 1.1754944e-38, %v6105_v38  ;;  %v6120_v38 = vand.u32 2147483648, %v12720_v17  ;;  %v10945_v33 = vor.u32 %v11987_v1, %v10942_v5  ;;  %v10654_v58 = vld [vmem:[#allocation10 + $0x438] sm:$0xf0] }
 0x3c5   :  { %v10973_v42 = vor.u32 %v11999_v2, %v10972_v40  ;;  %v11919_v40 = vld [vmem:[#allocation10 + $0x434] sm:$0xf0]  ;;  %v5947_v17 = vpop.f32.mrf.mxu2  ;;  %v6080_v45 = vand.u32 2147483647, %v12710_v44  ;;  %v11979_v3 = vld [vmem:[#allocation10 + $0x61c] sm:$0xf] }
 0x3c6   :  { %7136 = vmatpush.bf16.msrb.mxu2 %v10785_v7  ;;  %7111 = vmatpush.bf16.msrb.mxu0 %v10749_v43  ;;  %v6029_v7 = vperm.slane %v12691_v24, 5  ;;  %v6019_v18 = vadd.f32 %v5959_v6, %v12570_v26  ;;  %v6107_v36 = vsel %vm6104_vm7, %v6106_v60, %v6102_v41  ;;  %v6113_v43 = vadd.f32 %v12742_v31, %v6112_v15  ;;  %v11915_v15 = vld [vmem:[#allocation10 + $0x41c] sm:$0xf]  ;;  %v7357_v1 = vld [vmem:[%s13148_s6 + $0xd8] sm:$0xff]  ;;  %v7336_v17 = vld [vmem:[%s13148_s6 + $0x30] sm:$0xff] }
 0x3c7   :  { %v6075_v26 = vadd.f32 %v12730_v50, %v6074_v0  ;;  %v6164_v28 = vmul.f32 %v6107_v36, %v5034_v34  ;;  %v10910_v4 = vld [vmem:[#allocation10 + $0x638] sm:$0xf0]  ;;  %v6121_v41 = vor.u32 1.1754944e-38, %v6120_v38  ;;  %vm6081_vm15 = vcmp.eq.f32.partialorder %v6080_v45, 8.507059e+37  ;;  %v7343_v34 = vld [vmem:[%s13148_s6 + $0x68] sm:$0xff]  ;;  %v7340_v38 = vld [vmem:[%s13148_s6 + $0x50] sm:$0xff] }
 0x3c8   :  { %7149 = vmatpush.bf16.msrb.mxu3 %v11041_v14  ;;  %7124 = vmatpush.bf16.msrb.mxu1 %v11005_v12  ;;  %v6082_v14 = vand.u32 2147483648, %v12710_v44  ;;  %v6045_v55 = vadd.f32 %v6029_v7, %v6019_v18  ;;  %v10685_v12 = vor.u32 %v11927_v11, %v10684_v9  ;;  %v6117_v0 = vsel %vm12799_vm11, %v12742_v31, %v6113_v43  ;;  %v5035_v11 = vld [vmem:[#allocation7 + $0x8] sm:$0xff]  ;;  %v7342_v36 = vld [vmem:[%s13148_s6 + $0x60] sm:$0xff]  ;;  %v7341_v43 = vld [vmem:[%s13148_s6 + $0x58] sm:$0xff] }
 0x3c9   :  { %v12076_v2 = vpop.eup %12075  ;;  %v6079_v44 = vsel %vm12812_vm13, %v12730_v50, %v6075_v26  ;;  %v10657_v9 = vor.u32 %v11915_v15, %v10654_v58  ;;  %v6122_v60 = vsel %vm6119_vm14, %v6121_v41, %v6117_v0  ;;  %v7361_v50 = vld [vmem:[%s13148_s6 + $0xf8] sm:$0xff]  ;;  %v6030_v26 = vperm.slane %v12691_v24, 6  ;;  %v7338_v54 = vld [vmem:[%s13148_s6 + $0x40] sm:$0xff]  ;;  %v7352_v45 = vld [vmem:[%s13148_s6 + $0xb0] sm:$0xff] }
 0x3ca   :  { %7137 = vmatpush.bf16.msrb.mxu2 %v10753_v52  ;;  %7112 = vmatpush.bf16.msrb.mxu0 %v10717_v49  ;;  %v10652_v52 = vld [vmem:[#allocation10 + $0x418] sm:$0xf]  ;;  %v6166_v46 = vmul.f32 %v12076_v2, %v6069_v35  ;;  %12077 = vtanh.f32 %v6045_v55  ;;  %v5960_v25 = vpop.f32.mrf.mxu3  ;;  %v6083_v56 = vor.u32 1.1754944e-38, %v6082_v14  ;;  %v6165_v18 = vmul.f32 %v6122_v60, %v5035_v11  ;;  %v7344_v14 = vld [vmem:[%s13148_s6 + $0x70] sm:$0xff]  ;;  %v7359_v35 = vld [vmem:[%s13148_s6 + $0xe8] sm:$0xff] }
 0x3cb   :  { %v10653_v49 = vor.u32 %v11919_v40, %v10652_v52  ;;  %v7339_v52 = vld [vmem:[%s13148_s6 + $0x48] sm:$0xff]  ;;  %v6031_v15 = vperm.slane %v12691_v24, 7  ;;  %v7334_v25 = vld [vmem:[%s13148_s6 + $0x20] sm:$0xff]  ;;  %v7348_v60 = vld [vmem:[%s13148_s6 + $0x90] sm:$0xff] }
 0x3cc   :  { %7150 = vmatpush.bf16.msrb.mxu3 %v11009_v61  ;;  %7125 = vmatpush.bf16.msrb.mxu1 %v10973_v42  ;;  %v11983_v61 = vld [vmem:[#allocation10 + $0x634] sm:$0xf0]  ;;  %v12808_v6 = vadd.f32 %v6166_v46, %v6164_v28  ;;  %v10913_v42 = vor.u32 %v11979_v3, %v10910_v4  ;;  %v6084_v20 = vsel %vm6081_vm15, %v6083_v56, %v6079_v44  ;;  %v7355_v2 = vld [vmem:[%s13148_s6 + $0xc8] sm:$0xff]  ;;  %v7353_v46 = vld [vmem:[%s13148_s6 + $0xb8] sm:$0xff] }
 0x3cd   :  { %v10909_v31 = vor.u32 %v11983_v61, %v10908_v48  ;;  %v7335_v3 = vld [vmem:[%s13148_s6 + $0x28] sm:$0xff]  ;;  %v7332_v56 = vld [vmem:[%s13148_s6 + $0x10] sm:$0xff] }
 0x3ce   :  { %7138 = vmatpush.bf16.msrb.mxu2 %v10721_v51  ;;  %7113 = vmatpush.bf16.msrb.mxu0 %v10685_v12  ;;  %7325 = vst [vmem:[#allocation17] sm:$0xff] %v12808_v6  ;;  %v7345_v51 = vld [vmem:[%s13148_s6 + $0x78] sm:$0xff]  ;;  %v7356_v12 = vld [vmem:[%s13148_s6 + $0xd0] sm:$0xff]  ;;  %v7351_v24 = vld [vmem:[%s13148_s6 + $0xa8] sm:$0xff] }
 0x3d0   :  { %7151 = vmatpush.bf16.msrb.mxu3 %v10977_v22  ;;  %7126 = vmatpush.bf16.msrb.mxu1 %v10941_v30  ;;  %v12078_v13 = vpop.eup %12077 }
 0x3d1   :  { %v6167_v22 = vmul.f32 %v12078_v13, %v6084_v20  ;;  %v7330_v13 = vld [vmem:[%s13148_s6] sm:$0xff] }
 0x3d2   :  { %7139 = vmatpush.bf16.msrb.mxu2 %v10689_v47  ;;  %7114 = vmatpush.bf16.msrb.mxu0 %v10653_v49  ;;  %v7354_v47 = vld [vmem:[%s13148_s6 + $0xc0] sm:$0xff]  ;;  %v7333_v49 = vld [vmem:[%s13148_s6 + $0x18] sm:$0xff] }
 0x3d3   :  { %v12829_v23 = vadd.f32 %v6167_v22, %v6165_v18  ;;  %v7346_v20 = vld [vmem:[%s13148_s6 + $0x80] sm:$0xff] }
 0x3d4   :  { %7152 = vmatpush.bf16.msrb.mxu3 %v10945_v33  ;;  %7127 = vmatpush.bf16.msrb.mxu1 %v10909_v31  ;;  %v5984_v5 = vpop.f32.mrf.mxu1 }
 0x3d5   :  { %7115 = vmatmul.bf16.vlgmr.msrb.gmra.mxu0 %v12679_v59  ;;  %7326 = vst [vmem:[#allocation17 + $0x8] sm:$0xff] %v12829_v23 }
 0x3d6   :  { %7140 = vmatpush.bf16.msrb.mxu2 %v10657_v9  ;;  %v7349_v9 = vld [vmem:[%s13148_s6 + $0x98] sm:$0xff] }
 0x3d7   :  { %7128 = vmatmul.bf16.vlgmr.msrb.gmra.mxu1 %v12681_v8 }
 0x3d8   :  { %7153 = vmatpush.bf16.msrb.mxu3 %v10913_v42  ;;  %v7331_v42 = vld [vmem:[%s13148_s6 + $0x8] sm:$0xff] }
 0x3d9   :  { %7141 = vmatmul.bf16.vlgmr.msrb.gmra.mxu2 %v12679_v59  ;;  %v7358_v59 = vld [vmem:[%s13148_s6 + $0xe0] sm:$0xff] }
 0x3da   :  { %7434 = vmatpush.msra.mxu2 %v7345_v51  ;;  %v7347_v51 = vld [vmem:[%s13148_s6 + $0x88] sm:$0xff] }
 0x3db   :  { %7154 = vmatmul.bf16.vlgmr.msrb.gmra.mxu3 %v12681_v8  ;;  %v5971_v8 = vpop.f32.mrf.mxu0 }
 0x3dc   :  { %7454 = vmatpush.msra.mxu3 %v7361_v50  ;;  %7435 = vmatpush.msra.mxu2 %v7344_v14  ;;  %v5985_v55 = vadd.f32 %v5984_v5, %v5971_v8  ;;  %v5997_v48 = vpop.f32.mrf.mxu2  ;;  %v5986_v58 = vpop.f32.mrf.mxu1 }
 0x3de   :  { %7455 = vmatpush.msra.mxu3 %v7360_v32  ;;  %7436 = vmatpush.msra.mxu2 %v7343_v34  ;;  %v6020_v40 = vadd.f32 %v5985_v55, %v12579_v39  ;;  %v7337_v39 = vld [vmem:[%s13148_s6 + $0x38] sm:$0xff]  ;;  %v6010_v62 = vpop.f32.mrf.mxu3 }
 0x3df   :  { %v6011_v33 = vadd.f32 %v6010_v62, %v5997_v48 }
 0x3e0   :  { %7456 = vmatpush.msra.mxu3 %v7359_v35  ;;  %7437 = vmatpush.msra.mxu2 %v7342_v36  ;;  %v6046_v30 = vadd.f32 %v6030_v26, %v6020_v40 }
 0x3e1   :  { %v6021_v0 = vadd.f32 %v6011_v33, %v12588_v53  ;;  %v7350_v53 = vld [vmem:[%s13148_s6 + $0xa0] sm:$0xff] }
 0x3e2   :  { %7457 = vmatpush.msra.mxu3 %v7358_v59  ;;  %7438 = vmatpush.msra.mxu2 %v7341_v43  ;;  %v10624_v61 = vmul.f32 -1.442695, %v6046_v30 }
 0x3e3   :  { %v5973_v28 = vpop.f32.mrf.mxu0  ;;  %v6047_v4 = vadd.f32 %v6031_v15, %v6021_v0 }
 0x3e4   :  { %7458 = vmatpush.msra.mxu3 %v7357_v1  ;;  %7439 = vmatpush.msra.mxu2 %v7340_v38  ;;  %12079 = vpow2.f32 %v10624_v61  ;;  %v5999_v7 = vpop.f32.mrf.mxu2 }
 0x3e5   :  { %v10625_v41 = vmul.f32 -1.442695, %v6047_v4 }
 0x3e6   :  { %7459 = vmatpush.msra.mxu3 %v7356_v12  ;;  %7440 = vmatpush.msra.mxu2 %v7339_v52  ;;  %v6012_v31 = vpop.f32.mrf.mxu3 }
 0x3e7   :  { %12081 = vpow2.f32 %v10625_v41 }
 0x3e8   :  { %7460 = vmatpush.msra.mxu3 %v7355_v2  ;;  %7441 = vmatpush.msra.mxu2 %v7338_v54 }
 0x3ea   :  { %7461 = vmatpush.msra.mxu3 %v7354_v47  ;;  %7442 = vmatpush.msra.mxu2 %v7337_v39  ;;  %v12080_v44 = vpop.eup %12079 }
 0x3eb   :  { %v6132_v11 = vadd.f32 1.0, %v12080_v44 }
 0x3ec   :  { %7462 = vmatpush.msra.mxu3 %v7353_v46  ;;  %7443 = vmatpush.msra.mxu2 %v7336_v17 }
 0x3ed   :  { %12083 = vrcp.f32 %v6132_v11  ;;  %v12082_v50 = vpop.eup %12081  ;;  %v6145_v34 = vand.u32 2147483648, %v6132_v11  ;;  %v6143_v59 = vand.u32 2147483647, %v6132_v11  ;;  %vm6139_vm1 = vweird.f32 %v6132_v11 }
 0x3ee   :  { %7463 = vmatpush.msra.mxu3 %v7352_v45  ;;  %7444 = vmatpush.msra.mxu2 %v7335_v3  ;;  %v6133_v18 = vadd.f32 1.0, %v12082_v50  ;;  %v12929_v45 = vld [vmem:[#allocation11 + $0x8] sm:$0xff] }
 0x3ef   :  { %v6146_v38 = vor.u32 1.1754944e-38, %v6145_v34  ;;  %vm6144_vm3 = vcmp.eq.f32.partialorder %v6143_v59, 8.507059e+37  ;;  %v7170_v3 = vperm.slane %v12929_v45, 0  ;;  %v7173_v50 = vperm.slane %v12929_v45, 3 }
 0x3f0   :  { %7464 = vmatpush.msra.mxu3 %v7351_v24  ;;  %7445 = vmatpush.msra.mxu2 %v7334_v25  ;;  %12085 = vrcp.f32 %v6133_v18  ;;  %v6160_v40 = vand.u32 2147483648, %v6133_v18  ;;  %v6158_v30 = vand.u32 2147483647, %v6133_v18  ;;  %vm6154_vm5 = vweird.f32 %v6133_v18 }
 0x3f1   :  { %12087 = vtanh.f32 %v12808_v6 }
 0x3f2   :  { %7465 = vmatpush.msra.mxu3 %v7350_v53  ;;  %7446 = vmatpush.msra.mxu2 %v7333_v49  ;;  %v6960_v35 = vpop.f32.mrf.mxu0  ;;  %12089 = vtanh.f32 %v12829_v23  ;;  %v6161_v62 = vor.u32 1.1754944e-38, %v6160_v40  ;;  %vm6159_vm7 = vcmp.eq.f32.partialorder %v6158_v30, 8.507059e+37  ;;  %v7171_v53 = vperm.slane %v12929_v45, 1 }
 0x3f3   :  { %v12084_v22 = vpop.eup %12083 }
 0x3f4   :  { %7466 = vmatpush.msra.mxu3 %v7349_v9  ;;  %7447 = vmatpush.msra.mxu2 %v7332_v56  ;;  %v6135_v14 = vmul.f32 %v12084_v22, %v6132_v11  ;;  %vm6140_vm0 = vweird.f32 %v12084_v22  ;;  %v6973_v43 = vpop.f32.mrf.mxu1  ;;  %v7172_v9 = vperm.slane %v12929_v45, 2 }
 0x3f5   :  { %vm6141_vm2 = vmor %vm6139_vm1, %vm6140_vm0  ;;  %v6974_v17 = vadd.f32 %v6973_v43, %v6960_v35 }
 0x3f6   :  { %7467 = vmatpush.msra.mxu3 %v7348_v60  ;;  %7448 = vmatpush.msra.mxu2 %v7331_v42  ;;  %v6136_v32 = vsub.f32 1.0, %v6135_v14  ;;  %v12086_v8 = vpop.eup %12085 }
 0x3f7   :  { %v6150_v5 = vmul.f32 %v12086_v8, %v6133_v18  ;;  %v12088_v26 = vpop.eup %12087  ;;  %vm6155_vm4 = vweird.f32 %v12086_v8  ;;  %v7159_v0 = vadd.f32 %v6974_v17, %v12601_v29 }
 0x3f8   :  { %7468 = vmatpush.msra.mxu3 %v7347_v51  ;;  %7449 = vmatpush.msra.mxu2 %v7330_v13  ;;  %v6137_v36 = vmul.f32 %v12084_v22, %v6136_v32  ;;  %vm6156_vm6 = vmor %vm6154_vm5, %vm6155_vm4  ;;  %v12090_v46 = vpop.eup %12089 }
 0x3f9   :  { %v6151_v12 = vsub.f32 1.0, %v6150_v5  ;;  %v7186_v4 = vadd.f32 %v7170_v3, %v7159_v0  ;;  %v7387_v3 = vld [vmem:[%s13149_s7 + $0xc8] sm:$0xff] }
 0x3fa   :  { %7469 = vmatpush.msra.mxu3 %v7346_v20  ;;  %v6138_v1 = vadd.f32 %v12084_v22, %v6137_v36  ;;  %v6962_v48 = vpop.f32.mrf.mxu0 }
 0x3fb   :  { %v6152_v54 = vmul.f32 %v12086_v8, %v6151_v12  ;;  %v11138_v41 = vmul.f32 -1.442695, %v7186_v4 }
 0x3fc   :  { %v6142_v55 = vsel %vm6141_vm2, %v12084_v22, %v6138_v1  ;;  %v6986_v2 = vpop.f32.mrf.mxu2  ;;  %v6975_v61 = vpop.f32.mrf.mxu1 }
 0x3fd   :  { %v6147_v52 = vsel %vm6144_vm3, %v6146_v38, %v6142_v55  ;;  %v6153_v39 = vadd.f32 %v12086_v8, %v6152_v54  ;;  %12091 = vpow2.f32 %v11138_v41  ;;  %v7174_v61 = vperm.slane %v12929_v45, 4 }
 0x3fe   :  { %v6172_v6 = vmul.f32 %v12088_v26, %v6147_v52  ;;  %v6999_v47 = vpop.f32.mrf.mxu3 }
 0x3ff   :  { %v6157_v28 = vsel %vm6156_vm6, %v12086_v8, %v6153_v39  ;;  %v7000_v24 = vadd.f32 %v6999_v47, %v6986_v2  ;;  %v4834_v47 = vadd.f32 %v12644_v19, %v12634_v10 }
 0x400   :  { %7450 = vmatmul.f32.vlgmr.msra.gmra.mxu2 %v6172_v6  ;;  %7320 = vst [vmem:[#allocation15] sm:$0xff] %v6172_v6  ;;  %v6162_v33 = vsel %vm6159_vm7, %v6161_v62, %v6157_v28 }
 0x401   :  { %v6173_v23 = vmul.f32 %v12090_v46, %v6162_v33  ;;  %v7160_v25 = vadd.f32 %v7000_v24, %v12610_v16 }
 0x403   :  { %7470 = vmatmul.f32.vlgmr.msra.gmra.mxu3 %v6173_v23  ;;  %7321 = vst [vmem:[#allocation15 + $0x8] sm:$0xff] %v6173_v23  ;;  %v7187_v49 = vadd.f32 %v7171_v53, %v7160_v25  ;;  %v12092_v20 = vpop.eup %12091 }
 0x404   :  { %v6988_v15 = vpop.f32.mrf.mxu2  ;;  %v12939_v14 = vadd.f32 1.0, %v12092_v20 }
 0x405   :  { %v11139_v56 = vmul.f32 -1.442695, %v7187_v49 }
 0x406   :  { %v7001_v58 = vpop.f32.mrf.mxu3  ;;  %vm7207_vm12 = vweird.f32 %v12939_v14  ;;  %v7213_v4 = vand.u32 2147483648, %v12939_v14  ;;  %v7211_v41 = vand.u32 2147483647, %v12939_v14 }
 0x407   :  { %12093 = vpow2.f32 %v11139_v56  ;;  %v7364_v56 = vld [vmem:[%s13149_s7 + $0x10] sm:$0xff] }
 0x408   :  { %v7214_v20 = vor.u32 1.1754944e-38, %v7213_v4  ;;  %vm7212_vm0 = vcmp.eq.f32.partialorder %v7211_v41, 8.507059e+37  ;;  %v7367_v4 = vld [vmem:[%s13149_s7 + $0x28] sm:$0xff] }
 0x40d   :  { %v12094_v34 = vpop.eup %12093 }
 0x40e   :  { %v12942_v8 = vadd.f32 1.0, %v12094_v34 }
 0x410   :  { %vm7222_vm4 = vweird.f32 %v12942_v8 }
 0x412   :  { %v7012_v7 = vpop.f32.mrf.mxu0 }
 0x414   :  { %v7025_v44 = vpop.f32.mrf.mxu1 }
 0x415   :  { %v7026_v31 = vadd.f32 %v7025_v44, %v7012_v7  ;;  %v7175_v44 = vperm.slane %v12929_v45, 5 }
 0x417   :  { %v7161_v11 = vadd.f32 %v7026_v31, %v12619_v21 }
 0x419   :  { %v7188_v29 = vadd.f32 %v7172_v9, %v7161_v11  ;;  %v7377_v9 = vld [vmem:[%s13149_s7 + $0x78] sm:$0xff] }
 0x41a   :  { %v7014_v13 = vpop.f32.mrf.mxu0  ;;  %7394 = vmatpush.msra.mxu0 %v7377_v9  ;;  %v7384_v9 = vld [vmem:[%s13149_s7 + $0xb0] sm:$0xff] }
 0x41b   :  { %v11140_v42 = vmul.f32 -1.442695, %v7188_v29  ;;  %v6178_v13 = vld [vmem:[#allocation7 + $0x10] sm:$0xff] }
 0x41c   :  { %v7038_v60 = vpop.f32.mrf.mxu2  ;;  %v7027_v18 = vpop.f32.mrf.mxu1 }
 0x41d   :  { %12095 = vpow2.f32 %v11140_v42 }
 0x41e   :  { %v7051_v51 = vpop.f32.mrf.mxu3  ;;  %12097 = vrcp.f32 %v12939_v14 }
 0x41f   :  { %v7052_v16 = vadd.f32 %v7051_v51, %v7038_v60  ;;  %v7376_v51 = vld [vmem:[%s13149_s7 + $0x70] sm:$0xff] }
 0x420   :  { %7395 = vmatpush.msra.mxu0 %v7376_v51  ;;  %v7382_v51 = vld [vmem:[%s13149_s7 + $0xa0] sm:$0xff] }
 0x421   :  { %v7162_v22 = vadd.f32 %v7052_v16, %v12628_v37 }
 0x423   :  { %v7189_v32 = vadd.f32 %v7173_v50, %v7162_v22  ;;  %v12096_v36 = vpop.eup %12095 }
 0x424   :  { %v7040_v35 = vpop.f32.mrf.mxu2  ;;  %v7238_v43 = vadd.f32 1.0, %v12096_v36  ;;  %v12944_v1 = vpop.eup %12097 }
 0x425   :  { %v11141_v21 = vmul.f32 -1.442695, %v7189_v32  ;;  %v7203_v55 = vmul.f32 %v12944_v1, %v12939_v14  ;;  %vm7208_vm10 = vweird.f32 %v12944_v1 }
 0x426   :  { %v7053_v59 = vpop.f32.mrf.mxu3  ;;  %v7251_v58 = vand.u32 2147483648, %v7238_v43  ;;  %vm7245_vm9 = vweird.f32 %v7238_v43  ;;  %v7249_v19 = vand.u32 2147483647, %v7238_v43  ;;  %vm12982_vm13 = vmor %vm7207_vm12, %vm7208_vm10 }
 0x427   :  { %12099 = vpow2.f32 %v11141_v21  ;;  %v7204_v6 = vsub.f32 1.0, %v7203_v55 }
 0x428   :  { %12101 = vrcp.f32 %v7238_v43  ;;  %v7252_v11 = vor.u32 1.1754944e-38, %v7251_v58  ;;  %vm7250_vm14 = vcmp.eq.f32.partialorder %v7249_v19, 8.507059e+37  ;;  %v7389_v58 = vld [vmem:[%s13149_s7 + $0xd8] sm:$0xff]  ;;  %v7388_v19 = vld [vmem:[%s13149_s7 + $0xd0] sm:$0xff] }
 0x429   :  { %12103 = vrcp.f32 %v12942_v8  ;;  %v7205_v28 = vmul.f32 %v12944_v1, %v7204_v6 }
 0x42b   :  { %v7206_v10 = vadd.f32 %v12944_v1, %v7205_v28  ;;  %v7371_v28 = vld [vmem:[%s13149_s7 + $0x48] sm:$0xff] }
 0x42d   :  { %v12100_v5 = vpop.eup %12099  ;;  %v7210_v60 = vsel %vm12982_vm13, %v12944_v1, %v7206_v10  ;;  %v7369_v10 = vld [vmem:[%s13149_s7 + $0x38] sm:$0xff] }
 0x42e   :  { %v12947_v37 = vadd.f32 1.0, %v12100_v5  ;;  %v12102_v38 = vpop.eup %12101  ;;  %v7215_v32 = vsel %vm7212_vm0, %v7214_v20, %v7210_v60  ;;  %v7374_v5 = vld [vmem:[%s13149_s7 + $0x60] sm:$0xff]  ;;  %vm7479_vm0 = vcmask 48128  }
 0x42f   :  { %v7241_v26 = vmul.f32 %v12102_v38, %v7238_v43  ;;  %v12952_v52 = vpop.eup %12103  ;;  %vm7246_vm8 = vweird.f32 %v12102_v38  ;;  %v7228_v43 = vand.u32 2147483648, %v12942_v8 }
 0x430   :  { %12105 = vrcp.f32 %v12947_v37  ;;  %v7218_v48 = vmul.f32 %v12952_v52, %v12942_v8  ;;  %vm12966_vm11 = vmor %vm7245_vm9, %vm7246_vm8  ;;  %v7266_v18 = vand.u32 2147483648, %v12947_v37  ;;  %vm7223_vm1 = vweird.f32 %v12952_v52 }
 0x431   :  { %v7242_v12 = vsub.f32 1.0, %v7241_v26  ;;  %vm7260_vm2 = vweird.f32 %v12947_v37  ;;  %v7264_v21 = vand.u32 2147483647, %v12947_v37  ;;  %vm13026_vm5 = vmor %vm7222_vm4, %vm7223_vm1 }
 0x432   :  { %v7064_v40 = vpop.f32.mrf.mxu0  ;;  %v7219_v15 = vsub.f32 1.0, %v7218_v48 }
 0x433   :  { %v7243_v2 = vmul.f32 %v12102_v38, %v7242_v12  ;;  %v7267_v12 = vor.u32 1.1754944e-38, %v7266_v18  ;;  %vm7265_vm6 = vcmp.eq.f32.partialorder %v7264_v21, 8.507059e+37  ;;  %v7381_v18 = vld [vmem:[%s13149_s7 + $0x98] sm:$0xff]  ;;  %v7379_v21 = vld [vmem:[%s13149_s7 + $0x88] sm:$0xff] }
 0x434   :  { %v7077_v54 = vpop.f32.mrf.mxu1  ;;  %v7220_v29 = vmul.f32 %v12952_v52, %v7219_v15  ;;  %v7370_v15 = vld [vmem:[%s13149_s7 + $0x40] sm:$0xff] }
 0x435   :  { %v7078_v39 = vadd.f32 %v7077_v54, %v7064_v40  ;;  %v7244_v23 = vadd.f32 %v12102_v38, %v7243_v2  ;;  %v7392_v2 = vld [vmem:[%s13149_s7 + $0xf0] sm:$0xff] }
 0x436   :  { %v12954_v30 = vpop.eup %12105  ;;  %v7221_v34 = vadd.f32 %v12952_v52, %v7220_v29  ;;  %v7383_v29 = vld [vmem:[%s13149_s7 + $0xa8] sm:$0xff] }
 0x437   :  { %v7256_v62 = vmul.f32 %v12954_v30, %v12947_v37  ;;  %v7163_v46 = vadd.f32 %v7078_v39, %v4834_v47  ;;  %v7248_v7 = vsel %vm12966_vm11, %v12102_v38, %v7244_v23  ;;  %vm7261_vm15 = vweird.f32 %v12954_v30  ;;  %v7393_v37 = vld [vmem:[%s13149_s7 + $0xf8] sm:$0xff]  ;;  %v7372_v39 = vld [vmem:[%s13149_s7 + $0x50] sm:$0xff] }
 0x438   :  { %v7253_v16 = vsel %vm7250_vm14, %v7252_v11, %v7248_v7  ;;  %vm13006_vm3 = vmor %vm7260_vm2, %vm7261_vm15  ;;  %v7226_v38 = vand.u32 2147483647, %v12942_v8  ;;  %7414 = vmatpush.msra.mxu1 %v7393_v37  ;;  %v7373_v8 = vld [vmem:[%s13149_s7 + $0x58] sm:$0xff]  ;;  %v7225_v54 = vsel %vm13026_vm5, %v12952_v52, %v7221_v34  ;;  %v7229_v47 = vor.u32 1.1754944e-38, %v7228_v43 }
 0x439   :  { %v7257_v33 = vsub.f32 1.0, %v7256_v62  ;;  %v7190_v17 = vadd.f32 %v7174_v61, %v7163_v46  ;;  %v7310_v36 = vmul.f32 %v7253_v16, %v6178_v13  ;;  %v7391_v61 = vld [vmem:[%s13149_s7 + $0xe8] sm:$0xff]  ;;  %v7390_v46 = vld [vmem:[%s13149_s7 + $0xe0] sm:$0xff]  ;;  %v7176_v7 = vperm.slane %v12929_v45, 6 }
 0x43a   :  { %v7066_v53 = vpop.f32.mrf.mxu0  ;;  %7415 = vmatpush.msra.mxu1 %v7392_v2  ;;  %vm7227_vm7 = vcmp.eq.f32.partialorder %v7226_v38, 8.507059e+37 }
 0x43b   :  { %v7258_v24 = vmul.f32 %v12954_v30, %v7257_v33  ;;  %12107 = vtanh.f32 %v7190_v17  ;;  %v7230_v62 = vsel %vm7227_vm7, %v7229_v47, %v7225_v54 }
 0x43c   :  { %v7090_v0 = vpop.f32.mrf.mxu2  ;;  %v7079_v31 = vpop.f32.mrf.mxu1  ;;  %7416 = vmatpush.msra.mxu1 %v7391_v61 }
 0x43d   :  { %v7259_v50 = vadd.f32 %v12954_v30, %v7258_v24  ;;  %v7365_v31 = vld [vmem:[%s13149_s7 + $0x18] sm:$0xff] }
 0x43e   :  { %v7103_v25 = vpop.f32.mrf.mxu3  ;;  %7417 = vmatpush.msra.mxu1 %v7390_v46 }
 0x43f   :  { %v7104_v49 = vadd.f32 %v7103_v25, %v7090_v0  ;;  %v7263_v55 = vsel %vm13006_vm3, %v12954_v30, %v7259_v50  ;;  %v6179_v30 = vld [vmem:[#allocation7 + $0x18] sm:$0xff]  ;;  %v7368_v0 = vld [vmem:[%s13149_s7 + $0x30] sm:$0xff] }
 0x440   :  { %v7268_v48 = vsel %vm7265_vm6, %v7267_v12, %v7263_v55  ;;  %7418 = vmatpush.msra.mxu1 %v7389_v58  ;;  %v7386_v25 = vld [vmem:[%s13149_s7 + $0xc0] sm:$0xff] }
 0x441   :  { %v7164_v42 = vadd.f32 %v7104_v49, %v12659_v57  ;;  %v7375_v57 = vld [vmem:[%s13149_s7 + $0x68] sm:$0xff]  ;;  %v12108_v14 = vpop.eup %12107  ;;  %v7311_v33 = vmul.f32 %v7268_v48, %v6179_v30  ;;  %v7366_v49 = vld [vmem:[%s13149_s7 + $0x20] sm:$0xff] }
 0x442   :  { %7396 = vmatpush.msra.mxu0 %v7375_v57  ;;  %v7312_v59 = vmul.f32 %v12108_v14, %v7215_v32  ;;  %7419 = vmatpush.msra.mxu1 %v7388_v19  ;;  %v7362_v50 = vld [vmem:[%s13149_s7] sm:$0xff]  ;;  %v7177_v57 = vperm.slane %v12929_v45, 7  ;;  %v7380_v32 = vld [vmem:[%s13149_s7 + $0x90] sm:$0xff] }
 0x443   :  { %v7191_v22 = vadd.f32 %v7175_v44, %v7164_v42  ;;  %v7385_v44 = vld [vmem:[%s13149_s7 + $0xb8] sm:$0xff]  ;;  %v7363_v42 = vld [vmem:[%s13149_s7 + $0x8] sm:$0xff]  ;;  %v7378_v45 = vld [vmem:[%s13149_s7 + $0x80] sm:$0xff] }
 0x444   :  { %v7092_v1 = vpop.f32.mrf.mxu2  ;;  %7397 = vmatpush.msra.mxu0 %v7374_v5  ;;  %v13022_v6 = vadd.f32 %v7312_v59, %v7310_v36  ;;  %7420 = vmatpush.msra.mxu1 %v7387_v3 }
 0x445   :  { %12109 = vtanh.f32 %v7191_v22 }
 0x446   :  { %v7105_v26 = vpop.f32.mrf.mxu3  ;;  %7398 = vmatpush.msra.mxu0 %v7373_v8  ;;  %7328 = vst [vmem:[#allocation17 + $0x10] sm:$0xff] %v13022_v6  ;;  %7421 = vmatpush.msra.mxu1 %v7386_v25  ;;  %v12058_v25 = vld [vmem:[#allocation13] ss:$0 sm:$0xff] }
 0x448   :  { %7399 = vmatpush.msra.mxu0 %v7372_v39  ;;  %7422 = vmatpush.msra.mxu1 %v7385_v44 }
 0x44a   :  { %7400 = vmatpush.msra.mxu0 %v7371_v28  ;;  %7423 = vmatpush.msra.mxu1 %v7384_v9 }
 0x44b   :  { %v12110_v52 = vpop.eup %12109 }
 0x44c   :  { %v7313_v23 = vmul.f32 %v12110_v52, %v7230_v62  ;;  %7401 = vmatpush.msra.mxu0 %v7370_v15  ;;  %7424 = vmatpush.msra.mxu1 %v7383_v29 }
 0x44e   :  { %v13058_v17 = vadd.f32 %v7313_v23, %v7311_v33  ;;  %7402 = vmatpush.msra.mxu0 %v7369_v10  ;;  %7425 = vmatpush.msra.mxu1 %v7382_v51 }
 0x450   :  { %7329 = vst [vmem:[#allocation17 + $0x18] sm:$0xff] %v13058_v17  ;;  %7403 = vmatpush.msra.mxu0 %v7368_v0  ;;  %7426 = vmatpush.msra.mxu1 %v7381_v18 }
 0x452   :  { %v7116_v24 = vpop.f32.mrf.mxu0  ;;  %7404 = vmatpush.msra.mxu0 %v7367_v4  ;;  %7427 = vmatpush.msra.mxu1 %v7380_v32 }
 0x454   :  { %v7129_v53 = vpop.f32.mrf.mxu1  ;;  %7405 = vmatpush.msra.mxu0 %v7366_v49  ;;  %7428 = vmatpush.msra.mxu1 %v7379_v21 }
 0x455   :  { %v7130_v41 = vadd.f32 %v7129_v53, %v7116_v24 }
 0x456   :  { %7406 = vmatpush.msra.mxu0 %v7365_v31  ;;  %7429 = vmatpush.msra.mxu1 %v7378_v45 }
 0x457   :  { %v7165_v11 = vadd.f32 %v7130_v41, %v12668_v27 }
 0x458   :  { %7407 = vmatpush.msra.mxu0 %v7364_v56 }
 0x459   :  { %v7192_v60 = vadd.f32 %v7176_v7, %v7165_v11 }
 0x45a   :  { %v7118_v16 = vpop.f32.mrf.mxu0  ;;  %7408 = vmatpush.msra.mxu0 %v7363_v42 }
 0x45b   :  { %v11142_v13 = vmul.f32 -1.442695, %v7192_v60 }
 0x45c   :  { %v7142_v27 = vpop.f32.mrf.mxu2  ;;  %v7131_v14 = vpop.f32.mrf.mxu1  ;;  %7409 = vmatpush.msra.mxu0 %v7362_v50 }
 0x45d   :  { %12111 = vpow2.f32 %v11142_v13 }
 0x45e   :  { %v7155_v20 = vpop.f32.mrf.mxu3 }
 0x45f   :  { %v7156_v22 = vadd.f32 %v7155_v20, %v7142_v27 }
 0x461   :  { %v7166_v34 = vadd.f32 %v7156_v22, %v12677_v63 }
 0x463   :  { %v7193_v35 = vadd.f32 %v7177_v57, %v7166_v34  ;;  %v12112_v43 = vpop.eup %12111 }
 0x464   :  { %v7144_v59 = vpop.f32.mrf.mxu2  ;;  %v7278_v5 = vadd.f32 1.0, %v12112_v43 }
 0x465   :  { %v11143_v36 = vmul.f32 -1.442695, %v7193_v35 }
 0x466   :  { %v7157_v1 = vpop.f32.mrf.mxu3  ;;  %v7291_v12 = vand.u32 2147483648, %v7278_v5  ;;  %v7289_v8 = vand.u32 2147483647, %v7278_v5  ;;  %vm7285_vm9 = vweird.f32 %v7278_v5 }
 0x467   :  { %12113 = vpow2.f32 %v11143_v36 }
 0x468   :  { %12115 = vrcp.f32 %v7278_v5  ;;  %v7292_v47 = vor.u32 1.1754944e-38, %v7291_v12  ;;  %vm7290_vm11 = vcmp.eq.f32.partialorder %v7289_v8, 8.507059e+37 }
 0x46d   :  { %v12114_v63 = vpop.eup %12113 }
 0x46e   :  { %v7279_v37 = vadd.f32 1.0, %v12114_v63  ;;  %v12116_v38 = vpop.eup %12115 }
 0x46f   :  { %v7281_v55 = vmul.f32 %v12116_v38, %v7278_v5  ;;  %vm7286_vm8 = vweird.f32 %v12116_v38 }
 0x470   :  { %12117 = vrcp.f32 %v7279_v37  ;;  %vm7287_vm10 = vmor %vm7285_vm9, %vm7286_vm8  ;;  %v7306_v28 = vand.u32 2147483648, %v7279_v37  ;;  %v7304_v46 = vand.u32 2147483647, %v7279_v37  ;;  %vm7300_vm13 = vweird.f32 %v7279_v37 }
 0x471   :  { %v7282_v26 = vsub.f32 1.0, %v7281_v55  ;;  %12119 = vtanh.f32 %v13022_v6 }
 0x472   :  { %12121 = vtanh.f32 %v13058_v17  ;;  %v7307_v23 = vor.u32 1.1754944e-38, %v7306_v28  ;;  %vm7305_vm15 = vcmp.eq.f32.partialorder %v7304_v46, 8.507059e+37 }
 0x473   :  { %v7283_v40 = vmul.f32 %v12116_v38, %v7282_v26 }
 0x475   :  { %v7284_v54 = vadd.f32 %v12116_v38, %v7283_v40 }
 0x476   :  { %v12118_v2 = vpop.eup %12117 }
 0x477   :  { %v7296_v30 = vmul.f32 %v12118_v2, %v7279_v37  ;;  %v7288_v48 = vsel %vm7287_vm10, %v12116_v38, %v7284_v54  ;;  %v12120_v39 = vpop.eup %12119  ;;  %vm7301_vm12 = vweird.f32 %v12118_v2 }
 0x478   :  { %v7293_v52 = vsel %vm7290_vm11, %v7292_v47, %v7288_v48  ;;  %vm7302_vm14 = vmor %vm7300_vm13, %vm7301_vm12  ;;  %v12122_v58 = vpop.eup %12121 }
 0x479   :  { %v7297_v61 = vsub.f32 1.0, %v7296_v30  ;;  %v7318_v62 = vmul.f32 %v12120_v39, %v7293_v52 }
 0x47b   :  { %v7298_v6 = vmul.f32 %v12118_v2, %v7297_v61  ;;  %7410 = vmatmul.f32.vlgmr.msra.gmra.mxu0 %v7318_v62  ;;  %7323 = vst [vmem:[#allocation15 + $0x10] sm:$0xff] %v7318_v62 }
 0x47d   :  { %v7299_v33 = vadd.f32 %v12118_v2, %v7298_v6 }
 0x47f   :  { %v7303_v15 = vsel %vm7302_vm14, %v12118_v2, %v7299_v33 }
 0x480   :  { %v7308_v10 = vsel %vm7305_vm15, %v7307_v23, %v7303_v15 }
 0x481   :  { %v7319_v19 = vmul.f32 %v12122_v58, %v7308_v10 }
 0x483   :  { %7430 = vmatmul.f32.vlgmr.msra.gmra.mxu1 %v7319_v19  ;;  %7324 = vst [vmem:[#allocation15 + $0x18] sm:$0xff] %v7319_v19  ;;  %v7451_v24 = vpop.f32.mrf.mxu2 }
 0x484   :  { %7516 = dma.vmem_to_hbm [thread:$0]  %s7509_s23, 512, %s7511_s21, [#allocation16], %s12380_s25, %s12380_s25, %s12381_s26  }
 0x485   :  { %7529 = dma.vmem_to_hbm [thread:$0]  %s7522_s1, 512, %s7524_s27, [#allocation16], %s12380_s25, %s12380_s25, %s12381_s26  }
 0x486   :  { %v7471_v53 = vpop.f32.mrf.mxu3 }
 0x4f8   :  { %v7411_v0 = vpop.f32.mrf.mxu0 }
 0x500   :  { %v7431_v17 = vpop.f32.mrf.mxu1 }
 0x501   :  { %v7432_v3 = vadd.f32 %v7431_v17, %v7411_v0 }
 0x503   :  { %v7452_v4 = vadd.f32 %v7451_v24, %v7432_v3 }
 0x505   :  { %v7472_v41 = vadd.f32 %v7471_v53, %v7452_v4 }
 0x507   :  { %v7478_v7 = vadd.f32 %v12058_v25, %v7472_v41 }
 0x509   :  { %v7480_v49 = vsel %vm7479_vm0, %v7478_v7, -inf }
 0x50a   :  { %7481 = vmax.xlane.f32.xlu0 %v7480_v49 }
 0x57d   :  { %v7482_v44 = vpop.xlane.xlu0 %7481 }
 0x57e   :  { %v7483_v31 = vsub.f32 %v7478_v7, %v7482_v44 }
 0x580   :  { %v7484_v9 = vmul.f32 1.442695, %v7483_v31 }
 0x582   :  { %12123 = vpow2.f32 %v7484_v9 }
 0x588   :  { %v12124_v11 = vpop.eup %12123 }
 0x589   :  { %v7486_v56 = vsel %vm7479_vm0, %v12124_v11, 0.0 }
 0x58a   :  { %7487 = vadd.xlane.f32.xlu0 %v7486_v56 }
 0x5fd   :  { %v7488_v29 = vpop.xlane.xlu0 %7487 }
 0x5fe   :  { %12125 = vlog2.f32 %v7488_v29 }
 0x604   :  { %v12126_v60 = vpop.eup %12125 }
 0x605   :  { %v7490_v42 = vmul.f32 0.6931472, %v12126_v60 }
 0x607   :  { %v7491_v51 = vsub.f32 %v7483_v31, %v7490_v42 }
 0x609   :  { %7492 = vst.msk [vmem:[#allocation14] sm:$0xff] %vm7479_vm0, %v7491_v51 }
 0x60a   :  { %7503 = dma.vmem_to_hbm [thread:$0]  %s7499_s29, 128, %s7501_s30, [#allocation4]  }
 0x60b   :  { %12375 = dma.done.wait [#allocation4], 128  }
 0x60c   :  { %12376 = vsyncadd [#allocation4], 4294967168 }
 0x60d   :  { %12377 = dma.done.wait [#allocation16], 1024  }
 0x60e   :  { %12378 = vsyncadd [#allocation16], 4294966272 }
 0x60f   :  { %7542 = vsyncpa [#allocation3], 1 }
 0x610   :  { %7543 = vsyncpa [#allocation6], 1 }
 0x611   :  { %7544 = vsyncpa [#allocation9], 1 }
 0x612   :  { %7545 = vsyncpa [#allocation12], 1 }
 0x613   :  { %7546 = vsyncpa [#allocation4], 1 }
 0x614   :  { %7547 = vsyncpa [#allocation16], 1 }

</bundles_post_ra>
